<compile_context>
chip_gen: v7x
topology: tpu7x:2x2x1
jax: 0.10.0
libtpu: 0.0.40
codegen_flags: <defaults>
</compile_context>

<pallas_src>
import jax
import jax.numpy as jnp
from jax.experimental import pallas as pl
from jax.experimental.pallas import tpu as pltpu

HEAD_PAD = 128   # 63 pose cols + 10 beta cols, zero-padded to one lane width


def _pointnet_kernel(x_ref, w1_ref, b1_ref, w2_ref, b2_ref, w3_ref, b3_ref,
                     whT_ref, bh_ref, out_ref, max_acc):
    p = pl.program_id(1)

    # Per-point MLP, channel-major: (C_in, TN) -> (C_out, TN), ReLU each.
    # f32 accumulation; bias/ReLU in f32; weights/activations in compute dtype.
    x = x_ref[...]                                                   # (3, TN)
    h = jnp.dot(w1_ref[...], x, preferred_element_type=jnp.float32) + b1_ref[...]
    h = jnp.maximum(h, 0.0)
    h = jnp.dot(w2_ref[...], h.astype(w2_ref.dtype),
                preferred_element_type=jnp.float32) + b2_ref[...]
    h = jnp.maximum(h, 0.0)
    h = jnp.dot(w3_ref[...], h.astype(w3_ref.dtype),
                preferred_element_type=jnp.float32) + b3_ref[...]
    h = jnp.maximum(h, 0.0)                                          # (feat, TN) f32

    # VPU-only running max: fold the TN lanes down to a single 128-lane tile
    # with elementwise maxima (VALU slots only), so no XLU reduce competes
    # with vmatmul on the hot path.
    tn = h.shape[1]
    m = h[:, 0:128]
    for t in range(1, tn // 128):
        m = jnp.maximum(m, h[:, t * 128:(t + 1) * 128])              # (feat, 128)

    @pl.when(p == 0)
    def _():
        max_acc[...] = jnp.full(max_acc.shape, -jnp.inf, max_acc.dtype)

    max_acc[...] = jnp.maximum(max_acc[...], m)

    # Last reduction step: one true lane reduce + fused f32 (pose|beta) head,
    # emitted as a lane-dense (1, 128) row.
    @pl.when(p == pl.num_programs(1) - 1)
    def _():
        g = jnp.max(max_acc[...], axis=1, keepdims=True)             # (feat, 1) f32
        out_ref[...] = (jnp.sum(g * whT_ref[...], axis=0, keepdims=True)
                        + bh_ref[...])                               # (1, 128) f32


def pack_params(params, compute_dtype=jnp.float32):
    """One-time parameter repacking (hoisted out of the per-call path).

    compute_dtype: jnp.bfloat16 recommended on all generations (v5e/v6e/v7x
    MXUs are natively bf16); accumulation, biases, ReLU, max-pool and the
    head always stay f32.
    """
    w1, b1, w2, b2, w3, b3, wp, bp, wb, bb = params
    feat = w3.shape[1]
    cd = compute_dtype
    w1t, w2t, w3t = (w.T.astype(cd) for w in (w1, w2, w3))
    b1c, b2c, b3c = (b.reshape(-1, 1).astype(jnp.float32) for b in (b1, b2, b3))
    # Fused, lane-padded head (kept in f32): cols [0,63)=pose, [63,73)=beta.
    whT = jnp.zeros((feat, HEAD_PAD), jnp.float32)
    whT = whT.at[:, :63].set(wp.astype(jnp.float32))
    whT = whT.at[:, 63:73].set(wb.astype(jnp.float32))
    bh = jnp.zeros((1, HEAD_PAD), jnp.float32)
    bh = bh.at[0, :63].set(bp.reshape(-1)).at[0, 63:73].set(bb.reshape(-1))
    return (w1t, b1c, w2t, b2c, w3t, b3c, whT, bh)


def pointnet_encoder(x, packed, *, tn=2048, vmem_limit_bytes=48 * 1024 * 1024):
    """x: (B, N, 3) float32 point cloud.  packed: output of pack_params.

    Returns (pose (B, 63), beta (B, 10)).

    tn: points per grid step; clamped to N, must divide N and be a multiple
        of 128.  2048-4096 amortizes the per-grid-step overhead and fits
        comfortably in VMEM on v5e/v6e (128 MiB) and v7x (64 MiB).
    """
    w1t, b1c, w2t, b2c, w3t, b3c, whT, bh = packed
    B, N, C = x.shape
    feat = w3t.shape[0]
    cd = w1t.dtype
    tn = min(tn, N)
    assert C == 3 and N % tn == 0 and tn % 128 == 0

    # Channel-major input (exactly the torch module's x.transpose(1, 2)).
    xt = jnp.transpose(x, (0, 2, 1)).astype(cd)

    # Constant-index blocks: Pallas skips the re-DMA when the block index
    # does not change between grid steps, so weights are streamed only once.
    full = lambda a: pl.BlockSpec(a.shape, lambda bi, pi: (0,) * a.ndim)

    # TODO(synk): for v7x with B == 1, add a leading "parallel" point-axis
    # split (per-core partial max + tiny combine) so the second TensorCore
    # is not idle; with B >= 2 the batch axis already shards across cores.
    grid_spec = pltpu.PrefetchScalarGridSpec(
        num_scalar_prefetch=0,
        grid=(B, N // tn),                        # (parallel batch, reduction)
        in_specs=[
            pl.BlockSpec((pl.Squeezed(), 3, tn), lambda bi, pi: (bi, 0, pi)),
            full(w1t), full(b1c),
            full(w2t), full(b2c),
            full(w3t), full(b3c),
            full(whT), full(bh),
        ],
        out_specs=pl.BlockSpec((pl.Squeezed(), 1, HEAD_PAD),
                               lambda bi, pi: (bi, 0, 0)),
        scratch_shapes=[pltpu.VMEM((feat, 128), jnp.float32)],
    )

    flops = 2 * B * N * (3 * 64 + 64 * 128 + 128 * feat) + 2 * B * feat * HEAD_PAD
    bytes_accessed = (xt.size * xt.dtype.itemsize
                      + sum(a.size * a.dtype.itemsize for a in packed)
                      + B * HEAD_PAD * 4)

    out = pl.pallas_call(
        _pointnet_kernel,
        grid_spec=grid_spec,
        out_shape=jax.ShapeDtypeStruct((B, 1, HEAD_PAD), jnp.float32),
        compiler_params=pltpu.CompilerParams(
            dimension_semantics=("parallel", "arbitrary"),
            vmem_limit_bytes=vmem_limit_bytes),
        cost_estimate=pl.CostEstimate(flops=flops, transcendentals=0,
                                      bytes_accessed=bytes_accessed),
    )(xt, w1t, b1c, w2t, b2c, w3t, b3c, whT, bh)

    pb = out[:, 0, :]                             # (B, 128) lane-dense heads
    return pb[:, :63], pb[:, 63:73]


def init_params(key, feat):
    """Deterministic init mimicking PyTorch default uniform(-1/sqrt(fan_in), ...)."""
    dims = [(3, 64), (64, 128), (128, feat), (feat, 63), (feat, 10)]
    params = []
    keys = jax.random.split(key, 2 * len(dims))
    for i, (fin, fout) in enumerate(dims):
        bound = 1.0 / jnp.sqrt(fin)
        w = jax.random.uniform(keys[2 * i], (fin, fout), jnp.float32, -bound, bound)
        b = jax.random.uniform(keys[2 * i + 1], (1, fout), jnp.float32, -bound, bound)
        params += [w, b]
    return tuple(params)


def reference(x, params):
    w1, b1, w2, b2, w3, b3, wp, bp, wb, bb = params
    h = jnp.maximum(jnp.einsum("bnc,cd->bnd", x, w1) + b1, 0.0)
    h = jnp.maximum(jnp.einsum("bnc,cd->bnd", h, w2) + b2, 0.0)
    h = jnp.maximum(jnp.einsum("bnc,cd->bnd", h, w3) + b3, 0.0)
    g = jnp.max(h, axis=1)                        # torch.max(x, 2).values
    return g @ wp + bp, g @ wb + bb


if __name__ == "__main__":
    # Small shapes (module default feat=512; smaller here for the smoke test).
    B, N, FEAT = 2, 2048, 256
    key = jax.random.PRNGKey(0)
    kx, kp = jax.random.split(key)
    x = jax.random.normal(kx, (B, N, 3), dtype=jnp.float32)
    params = init_params(kp, FEAT)
    pose_ref, beta_ref = reference(x, params)

    # f32 path, single reduction step (tn clamps to N => grid collapses to 1).
    packed_f32 = pack_params(params, jnp.float32)
    pose, beta = pointnet_encoder(x, packed_f32)
    jax.block_until_ready((pose, beta))
    assert pose.shape == (B, 63) and beta.shape == (B, 10)
    assert jnp.allclose(pose, pose_ref, atol=5e-4, rtol=5e-4)
    assert jnp.allclose(beta, beta_ref, atol=5e-4, rtol=5e-4)

    # f32 path, multi-step reduction (exercises the running-max accumulator).
    pose2, beta2 = pointnet_encoder(x, packed_f32, tn=512)
    jax.block_until_ready((pose2, beta2))
    assert jnp.allclose(pose2, pose_ref, atol=5e-4, rtol=5e-4)
    assert jnp.allclose(beta2, beta_ref, atol=5e-4, rtol=5e-4)

    # bf16 MXU path (recommended on v5e/v6e/v7x); f32 accumulation + f32 head.
    packed_bf16 = pack_params(params, jnp.bfloat16)
    pose_bf, beta_bf = pointnet_encoder(x, packed_bf16)
    jax.block_until_ready((pose_bf, beta_bf))
    assert jnp.allclose(pose_bf, pose_ref, atol=1e-1, rtol=1e-1)
    assert jnp.allclose(beta_bf, beta_ref, atol=1e-1, rtol=1e-1)

    print("KERNEL_OK")
</pallas_src>

<mosaic_0001>
module attributes {stable_mosaic.version = 11 : i64} {
  func.func @_pointnet_kernel(%arg0: i32, %arg1: i32, %arg2: memref<1x3x2048xf32, #tpu.memory_space<vmem>>, %arg3: memref<64x3xf32, #tpu.memory_space<vmem>>, %arg4: memref<64x1xf32, #tpu.memory_space<vmem>>, %arg5: memref<128x64xf32, #tpu.memory_space<vmem>>, %arg6: memref<128x1xf32, #tpu.memory_space<vmem>>, %arg7: memref<256x128xf32, #tpu.memory_space<vmem>>, %arg8: memref<256x1xf32, #tpu.memory_space<vmem>>, %arg9: memref<256x128xf32, #tpu.memory_space<vmem>>, %arg10: memref<1x128xf32, #tpu.memory_space<vmem>>, %arg11: memref<1x1x128xf32, #tpu.memory_space<vmem>>, %arg12: memref<256x128xf32, #tpu.memory_space<vmem>>) attributes {dimension_semantics = [#tpu.dimension_semantics<parallel>, #tpu.dimension_semantics<arbitrary>], iteration_bounds = array<i64: 2, 1>, scalar_prefetch = 0 : i64, scratch_operands = 1 : i64, tpu.core_type = #tpu.core_type<tc>, window_params = [{transform_indices = @transform_0, window_bounds = array<i64: 1, 3, 2048>}, {pipeline_mode = #tpu.pipeline_mode<synchronous>, transform_indices = @transform_1, window_bounds = array<i64: 64, 3>}, {pipeline_mode = #tpu.pipeline_mode<synchronous>, transform_indices = @transform_2, window_bounds = array<i64: 64, 1>}, {pipeline_mode = #tpu.pipeline_mode<synchronous>, transform_indices = @transform_3, window_bounds = array<i64: 128, 64>}, {pipeline_mode = #tpu.pipeline_mode<synchronous>, transform_indices = @transform_4, window_bounds = array<i64: 128, 1>}, {pipeline_mode = #tpu.pipeline_mode<synchronous>, transform_indices = @transform_5, window_bounds = array<i64: 256, 128>}, {pipeline_mode = #tpu.pipeline_mode<synchronous>, transform_indices = @transform_6, window_bounds = array<i64: 256, 1>}, {pipeline_mode = #tpu.pipeline_mode<synchronous>, transform_indices = @transform_7, window_bounds = array<i64: 256, 128>}, {pipeline_mode = #tpu.pipeline_mode<synchronous>, transform_indices = @transform_8, window_bounds = array<i64: 1, 128>}, {transform_indices = @transform_9, window_bounds = array<i64: 1, 1, 128>}]} {
    %c0 = arith.constant 0 : index
    %c0_0 = arith.constant 0 : index
    %c0_1 = arith.constant 0 : index
    %0 = vector.load %arg2[%c0, %c0_0, %c0_1] : memref<1x3x2048xf32, #tpu.memory_space<vmem>>, vector<1x3x2048xf32>
    %1 = vector.shape_cast %0 : vector<1x3x2048xf32> to vector<3x2048xf32>
    %c0_2 = arith.constant 0 : index
    %c0_3 = arith.constant 0 : index
    %2 = vector.load %arg3[%c0_2, %c0_3] : memref<64x3xf32, #tpu.memory_space<vmem>>, vector<64x3xf32>
    %cst = arith.constant dense<0.000000e+00> : vector<64x2048xf32>
    %3 = tpu.matmul %2, %1, %cst {dimension_numbers = #tpu.dot_dimension_numbers<[1], [0], [0], [1], [0, 0, 1, 1], [], []>} : vector<64x3xf32>, vector<3x2048xf32>, vector<64x2048xf32> -> vector<64x2048xf32>
    %c0_4 = arith.constant 0 : index
    %c0_5 = arith.constant 0 : index
    %4 = vector.load %arg4[%c0_4, %c0_5] : memref<64x1xf32, #tpu.memory_space<vmem>>, vector<64x1xf32>
    %5 = vector.broadcast %4 : vector<64x1xf32> to vector<64x2048xf32>
    %6 = arith.addf %3, %5 : vector<64x2048xf32>
    %cst_6 = arith.constant 0.000000e+00 : f32
    %7 = vector.broadcast %cst_6 : f32 to vector<64x2048xf32>
    %8 = arith.maximumf %6, %7 : vector<64x2048xf32>
    %c0_7 = arith.constant 0 : index
    %c0_8 = arith.constant 0 : index
    %9 = vector.load %arg5[%c0_7, %c0_8] : memref<128x64xf32, #tpu.memory_space<vmem>>, vector<128x64xf32>
    %cst_9 = arith.constant dense<0.000000e+00> : vector<128x2048xf32>
    %10 = tpu.matmul %9, %8, %cst_9 {dimension_numbers = #tpu.dot_dimension_numbers<[1], [0], [0], [1], [0, 0, 1, 1], [], []>} : vector<128x64xf32>, vector<64x2048xf32>, vector<128x2048xf32> -> vector<128x2048xf32>
    %c0_10 = arith.constant 0 : index
    %c0_11 = arith.constant 0 : index
    %11 = vector.load %arg6[%c0_10, %c0_11] : memref<128x1xf32, #tpu.memory_space<vmem>>, vector<128x1xf32>
    %12 = vector.broadcast %11 : vector<128x1xf32> to vector<128x2048xf32>
    %13 = arith.addf %10, %12 : vector<128x2048xf32>
    %cst_12 = arith.constant 0.000000e+00 : f32
    %14 = vector.broadcast %cst_12 : f32 to vector<128x2048xf32>
    %15 = arith.maximumf %13, %14 : vector<128x2048xf32>
    %c0_13 = arith.constant 0 : index
    %c0_14 = arith.constant 0 : index
    %16 = vector.load %arg7[%c0_13, %c0_14] : memref<256x128xf32, #tpu.memory_space<vmem>>, vector<256x128xf32>
    %cst_15 = arith.constant dense<0.000000e+00> : vector<256x2048xf32>
    %17 = tpu.matmul %16, %15, %cst_15 {dimension_numbers = #tpu.dot_dimension_numbers<[1], [0], [0], [1], [0, 0, 1, 1], [], []>} : vector<256x128xf32>, vector<128x2048xf32>, vector<256x2048xf32> -> vector<256x2048xf32>
    %c0_16 = arith.constant 0 : index
    %c0_17 = arith.constant 0 : index
    %18 = vector.load %arg8[%c0_16, %c0_17] : memref<256x1xf32, #tpu.memory_space<vmem>>, vector<256x1xf32>
    %19 = vector.broadcast %18 : vector<256x1xf32> to vector<256x2048xf32>
    %20 = arith.addf %17, %19 : vector<256x2048xf32>
    %cst_18 = arith.constant 0.000000e+00 : f32
    %21 = vector.broadcast %cst_18 : f32 to vector<256x2048xf32>
    %22 = arith.maximumf %20, %21 : vector<256x2048xf32>
    %23 = vector.extract_strided_slice %22 {offsets = [0, 0], sizes = [256, 128], strides = [1, 1]} : vector<256x2048xf32> to vector<256x128xf32>
    %24 = vector.extract_strided_slice %22 {offsets = [0, 128], sizes = [256, 128], strides = [1, 1]} : vector<256x2048xf32> to vector<256x128xf32>
    %25 = arith.maximumf %23, %24 : vector<256x128xf32>
    %26 = vector.extract_strided_slice %22 {offsets = [0, 256], sizes = [256, 128], strides = [1, 1]} : vector<256x2048xf32> to vector<256x128xf32>
    %27 = arith.maximumf %25, %26 : vector<256x128xf32>
    %28 = vector.extract_strided_slice %22 {offsets = [0, 384], sizes = [256, 128], strides = [1, 1]} : vector<256x2048xf32> to vector<256x128xf32>
    %29 = arith.maximumf %27, %28 : vector<256x128xf32>
    %30 = vector.extract_strided_slice %22 {offsets = [0, 512], sizes = [256, 128], strides = [1, 1]} : vector<256x2048xf32> to vector<256x128xf32>
    %31 = arith.maximumf %29, %30 : vector<256x128xf32>
    %32 = vector.extract_strided_slice %22 {offsets = [0, 640], sizes = [256, 128], strides = [1, 1]} : vector<256x2048xf32> to vector<256x128xf32>
    %33 = arith.maximumf %31, %32 : vector<256x128xf32>
    %34 = vector.extract_strided_slice %22 {offsets = [0, 768], sizes = [256, 128], strides = [1, 1]} : vector<256x2048xf32> to vector<256x128xf32>
    %35 = arith.maximumf %33, %34 : vector<256x128xf32>
    %36 = vector.extract_strided_slice %22 {offsets = [0, 896], sizes = [256, 128], strides = [1, 1]} : vector<256x2048xf32> to vector<256x128xf32>
    %37 = arith.maximumf %35, %36 : vector<256x128xf32>
    %38 = vector.extract_strided_slice %22 {offsets = [0, 1024], sizes = [256, 128], strides = [1, 1]} : vector<256x2048xf32> to vector<256x128xf32>
    %39 = arith.maximumf %37, %38 : vector<256x128xf32>
    %40 = vector.extract_strided_slice %22 {offsets = [0, 1152], sizes = [256, 128], strides = [1, 1]} : vector<256x2048xf32> to vector<256x128xf32>
    %41 = arith.maximumf %39, %40 : vector<256x128xf32>
    %42 = vector.extract_strided_slice %22 {offsets = [0, 1280], sizes = [256, 128], strides = [1, 1]} : vector<256x2048xf32> to vector<256x128xf32>
    %43 = arith.maximumf %41, %42 : vector<256x128xf32>
    %44 = vector.extract_strided_slice %22 {offsets = [0, 1408], sizes = [256, 128], strides = [1, 1]} : vector<256x2048xf32> to vector<256x128xf32>
    %45 = arith.maximumf %43, %44 : vector<256x128xf32>
    %46 = vector.extract_strided_slice %22 {offsets = [0, 1536], sizes = [256, 128], strides = [1, 1]} : vector<256x2048xf32> to vector<256x128xf32>
    %47 = arith.maximumf %45, %46 : vector<256x128xf32>
    %48 = vector.extract_strided_slice %22 {offsets = [0, 1664], sizes = [256, 128], strides = [1, 1]} : vector<256x2048xf32> to vector<256x128xf32>
    %49 = arith.maximumf %47, %48 : vector<256x128xf32>
    %50 = vector.extract_strided_slice %22 {offsets = [0, 1792], sizes = [256, 128], strides = [1, 1]} : vector<256x2048xf32> to vector<256x128xf32>
    %51 = arith.maximumf %49, %50 : vector<256x128xf32>
    %52 = vector.extract_strided_slice %22 {offsets = [0, 1920], sizes = [256, 128], strides = [1, 1]} : vector<256x2048xf32> to vector<256x128xf32>
    %53 = arith.maximumf %51, %52 : vector<256x128xf32>
    %c0_i32 = arith.constant 0 : i32
    %54 = arith.cmpi eq, %arg1, %c0_i32 : i32
    %55 = arith.extui %54 : i1 to i32
    %c0_i32_19 = arith.constant 0 : i32
    %56 = arith.cmpi ne, %55, %c0_i32_19 : i32
    scf.if %56 {
      %cst_26 = arith.constant 0xFF800000 : f32
      %63 = vector.broadcast %cst_26 : f32 to vector<256x128xf32>
      %c0_27 = arith.constant 0 : index
      %c0_28 = arith.constant 0 : index
      %64 = vector.load %arg12[%c0_27, %c0_28] : memref<256x128xf32, #tpu.memory_space<vmem>>, vector<256x128xf32>
      tpu.vector_store %arg12[%c0_27, %c0_28], %63 {strides = array<i32>} : memref<256x128xf32, #tpu.memory_space<vmem>>, vector<256x128xf32>,
    } else {
    }
    %c0_20 = arith.constant 0 : index
    %c0_21 = arith.constant 0 : index
    %57 = vector.load %arg12[%c0_20, %c0_21] : memref<256x128xf32, #tpu.memory_space<vmem>>, vector<256x128xf32>
    %58 = arith.maximumf %57, %53 : vector<256x128xf32>
    %c0_22 = arith.constant 0 : index
    %c0_23 = arith.constant 0 : index
    %59 = vector.load %arg12[%c0_22, %c0_23] : memref<256x128xf32, #tpu.memory_space<vmem>>, vector<256x128xf32>
    tpu.vector_store %arg12[%c0_22, %c0_23], %58 {strides = array<i32>} : memref<256x128xf32, #tpu.memory_space<vmem>>, vector<256x128xf32>,
    %c0_i32_24 = arith.constant 0 : i32
    %60 = arith.cmpi eq, %arg1, %c0_i32_24 : i32
    %61 = arith.extui %60 : i1 to i32
    %c0_i32_25 = arith.constant 0 : i32
    %62 = arith.cmpi ne, %61, %c0_i32_25 : i32
    scf.if %62 {
      %c0_26 = arith.constant 0 : index
      %c0_27 = arith.constant 0 : index
      %63 = vector.load %arg12[%c0_26, %c0_27] : memref<256x128xf32, #tpu.memory_space<vmem>>, vector<256x128xf32>
      %cst_28 = arith.constant dense<0xFF800000> : vector<256xf32>
      %64 = vector.multi_reduction <maximumf>, %63, %cst_28 [1] : vector<256x128xf32> to vector<256xf32>
      %65 = vector.shape_cast %64 : vector<256xf32> to vector<256x1xf32>
      %c0_29 = arith.constant 0 : index
      %c0_30 = arith.constant 0 : index
      %66 = vector.load %arg9[%c0_29, %c0_30] : memref<256x128xf32, #tpu.memory_space<vmem>>, vector<256x128xf32>
      %67 = vector.broadcast %65 : vector<256x1xf32> to vector<256x128xf32>
      %68 = arith.mulf %67, %66 : vector<256x128xf32>
      %cst_31 = arith.constant dense<0.000000e+00> : vector<128xf32>
      %69 = vector.multi_reduction <add>, %68, %cst_31 [0] : vector<256x128xf32> to vector<128xf32>
      %70 = vector.shape_cast %69 : vector<128xf32> to vector<1x128xf32>
      %c0_32 = arith.constant 0 : index
      %c0_33 = arith.constant 0 : index
      %71 = vector.load %arg10[%c0_32, %c0_33] : memref<1x128xf32, #tpu.memory_space<vmem>>, vector<1x128xf32>
      %72 = arith.addf %70, %71 : vector<1x128xf32>
      %c0_34 = arith.constant 0 : index
      %c0_35 = arith.constant 0 : index
      %c0_36 = arith.constant 0 : index
      %73 = vector.load %arg11[%c0_34, %c0_35, %c0_36] : memref<1x1x128xf32, #tpu.memory_space<vmem>>, vector<1x1x128xf32>
      %74 = vector.shape_cast %73 : vector<1x1x128xf32> to vector<1x128xf32>
      %75 = vector.shape_cast %72 : vector<1x128xf32> to vector<1x1x128xf32>
      tpu.vector_store %arg11[%c0_34, %c0_35, %c0_36], %75 {strides = array<i32>} : memref<1x1x128xf32, #tpu.memory_space<vmem>>, vector<1x1x128xf32>,
    } else {
    }
    return
  }
  func.func @transform_0(%arg0: i32, %arg1: i32) -> (i32, i32, i32) {
    %c0_i32 = arith.constant 0 : i32
    %c0_i32_0 = arith.constant 0 : i32
    return %arg0, %c0_i32, %arg1 : i32, i32, i32
  }
  func.func @transform_1(%arg0: i32, %arg1: i32) -> (i32, i32) {
    %c0_i32 = arith.constant 0 : i32
    %c0_i32_0 = arith.constant 0 : i32
    %c0_i32_1 = arith.constant 0 : i32
    return %c0_i32, %c0_i32_0 : i32, i32
  }
  func.func @transform_2(%arg0: i32, %arg1: i32) -> (i32, i32) {
    %c0_i32 = arith.constant 0 : i32
    %c0_i32_0 = arith.constant 0 : i32
    %c0_i32_1 = arith.constant 0 : i32
    return %c0_i32, %c0_i32_0 : i32, i32
  }
  func.func @transform_3(%arg0: i32, %arg1: i32) -> (i32, i32) {
    %c0_i32 = arith.constant 0 : i32
    %c0_i32_0 = arith.constant 0 : i32
    %c0_i32_1 = arith.constant 0 : i32
    return %c0_i32, %c0_i32_0 : i32, i32
  }
  func.func @transform_4(%arg0: i32, %arg1: i32) -> (i32, i32) {
    %c0_i32 = arith.constant 0 : i32
    %c0_i32_0 = arith.constant 0 : i32
    %c0_i32_1 = arith.constant 0 : i32
    return %c0_i32, %c0_i32_0 : i32, i32
  }
  func.func @transform_5(%arg0: i32, %arg1: i32) -> (i32, i32) {
    %c0_i32 = arith.constant 0 : i32
    %c0_i32_0 = arith.constant 0 : i32
    %c0_i32_1 = arith.constant 0 : i32
    return %c0_i32, %c0_i32_0 : i32, i32
  }
  func.func @transform_6(%arg0: i32, %arg1: i32) -> (i32, i32) {
    %c0_i32 = arith.constant 0 : i32
    %c0_i32_0 = arith.constant 0 : i32
    %c0_i32_1 = arith.constant 0 : i32
    return %c0_i32, %c0_i32_0 : i32, i32
  }
  func.func @transform_7(%arg0: i32, %arg1: i32) -> (i32, i32) {
    %c0_i32 = arith.constant 0 : i32
    %c0_i32_0 = arith.constant 0 : i32
    %c0_i32_1 = arith.constant 0 : i32
    return %c0_i32, %c0_i32_0 : i32, i32
  }
  func.func @transform_8(%arg0: i32, %arg1: i32) -> (i32, i32) {
    %c0_i32 = arith.constant 0 : i32
    %c0_i32_0 = arith.constant 0 : i32
    %c0_i32_1 = arith.constant 0 : i32
    return %c0_i32, %c0_i32_0 : i32, i32
  }
  func.func @transform_9(%arg0: i32, %arg1: i32) -> (i32, i32, i32) {
    %c0_i32 = arith.constant 0 : i32
    %c0_i32_0 = arith.constant 0 : i32
    %c0_i32_1 = arith.constant 0 : i32
    return %arg0, %c0_i32, %c0_i32_0 : i32, i32, i32
  }
}

</mosaic_0001>

<bundles_post_ra>
// kernel: tpu_custom_call.1
= control target key start
LH: loop header
LB: loop body
LE: loop exit
PB: predicated region body
PF: predicated region fallthrough
CT: control target
= control target key end

     0   :  { %14 = vsyncpa [#allocation4], 0  ;;  %s11158_s0 = inlined_call_operand.vmem [shape: f32[2,3,2048], index: 0, kind: input, shape index: {}]   ;;  %s11159_s1 = inlined_call_operand.vmem [shape: f32[64,3], index: 1, kind: input, shape index: {}]   ;;  %s11160_s2 = inlined_call_operand.vmem [shape: f32[64,1], index: 2, kind: input, shape index: {}]   ;;  %s11161_s3 = inlined_call_operand.vmem [shape: f32[128,64], index: 3, kind: input, shape index: {}]   ;;  %s11162_s4 = inlined_call_operand.vmem [shape: f32[128,1], index: 4, kind: input, shape index: {}]   ;;  %s11163_s5 = inlined_call_operand.vmem [shape: f32[256,128], index: 5, kind: input, shape index: {}]   ;;  %s11164_s6 = inlined_call_operand.vmem [shape: f32[256,1], index: 6, kind: input, shape index: {}]   ;;  %s11165_s7 = inlined_call_operand.vmem [shape: f32[256,128], index: 7, kind: input, shape index: {}]   ;;  %s11166_s8 = inlined_call_operand.vmem [shape: f32[1,128], index: 8, kind: input, shape index: {}]   ;;  %s11167_s9 = inlined_call_operand.hbm [shape: f32[2,1,128], index: 9, kind: output, shape index: {}]  }
   0x1   :  { %16 = vsyncpa [#allocation4 + $0x1], 0  ;;  %s7826_s30 = smov 0   ;;  %s7828_s10 = smov 0  }
   0x2   :  { %s7830_s11 = smov 0   ;;  %s7832_s12 = smov 0  }
   0x3   :  { %s7834_s13 = smov 0   ;;  %s7836_s14 = smov 0  }
   0x4 LB: > { %s6922_s15 = sadd.s32 4294967295, %s7771_s14   ;;  %s6923_s16 = sadd.s32 4294967294, %s7771_s14   ;;  %s7771_s14 = sphi %s7836_s14, %s22_s14   ;;  %s7767_s13 = sphi %s7834_s13, %s11361_s13   ;;  %s7763_s12 = sphi %s7832_s12, %s11360_s12   ;;  %s7759_s11 = sphi %s7830_s11, %s11359_s11   ;;  %s7755_s10 = sphi %s7828_s10, %s11358_s10   ;;  %s7751_s30 = sphi %s7826_s30, %s11357_s30  }
   0x5   : > { %s34_s17 = sadd.s32 1, %s7767_s13  ;;  %s237_s18 = sadd.s32 1, %s7759_s11 }
   0x6   : > { %p36_p0 = scmp.ge.s32.totalorder %s34_s17, 2  ;;  %p247_p1 = scmp.ne.s32.totalorder %s7759_s11, %s7755_s10 }
   0x7   : > { %p248_p2 = scmp.eq.s32.totalorder %s6922_s15, 1  ;;  %p253_p3 = scmp.ne.s32.totalorder %s7755_s10, %s7751_s30 }
   0x8   : > { %s11363_s17 = smov (%p36_p0, %s34_s17), 0  ;;  %p254_p5 = scmp.eq.s32.totalorder %s6923_s16, 1 }
   0x9   : > { %p7866_p4 = por %p248_p2, %p247_p1  ;;  %s234_s20 = ssub.s32 %s7767_s13, %s11363_s17 }
   0xa   : > { %p6926_p6 = scmp.ge.s32.totalorder %s7771_s14, 1  ;;  %p235_p7 = scmp.eq.s32.totalorder %s234_s20, 0 }
   0xb   : > { %p7873_p8 = por %p254_p5, %p253_p3  ;;  %p309_p9 = scmp.lt.s32.totalorder %s7771_s14, 3 }
   0xc   : > { %s7879_s22 = scalar_select %p235_p7, %s7759_s11, %s237_s18  }
   0xd   : > { %p310_p10 = pnand %p6926_p6, %p309_p9 }
   0xf   : > { %313 = sbr.rel (%p310_p10) target bundleno = 1475 (0x5c3), region = 56 }
  0x16   : > { %v376_v0 = vld [vmem:[%s11160_s2 + $0x10] sm:$0xff]  ;;  %v374_v1 = vld [vmem:[%s11160_s2] sm:$0xff]  ;;  %p349_p11 = scmp.lt.s32.totalorder %s7763_s12, 1  ;;  %v7773_v2 = vmov 0   ;;  %v377_v3 = vld [vmem:[%s11160_s2 + $0x18] sm:$0xff]  ;;  %v11168_v5 = vmov 0.0  }
  0x17   : > { %7583 = vset.pattern.permute.xlu1 %v7773_v2  ;;  %7582 = vset.pattern.permute.xlu0 %v7773_v2  ;;  %v375_v4 = vld [vmem:[%s11160_s2 + $0x8] sm:$0xff]  ;;  %vm463_vm0 = vcmask 1042432   ;;  %v378_v11 = vld [vmem:[%s11160_s2 + $0x20] sm:$0xff]  ;;  %vm438_vm1 = vcmask 23552   ;;  %v381_v15 = vld [vmem:[%s11160_s2 + $0x38] sm:$0xff]  ;;  %vm1640_vm2 = vcmask 523264  }
  0x18   : > { %394 = vperm.xlu1 %7583, %v376_v0   ;;  %384 = vperm.xlu0 %7582, %v374_v1   ;;  %s350_s27 = scalar_select %p349_p11, %s7763_s12, 1  ;;  %v379_v10 = vld [vmem:[%s11160_s2 + $0x28] sm:$0xff]  ;;  %v7915_v12 = vld [vmem:[%s11159_s1] sm:$0xff]  ;;  %v380_v16 = vld [vmem:[%s11160_s2 + $0x30] sm:$0xff] }
  0x19   : > { %560 = vmatprep.mubr.f32.mxu0 %v11168_v5  ;;  %673 = vmatprep.mubr.f32.mxu1 %v11168_v5  ;;  %v7936_v19 = vld [vmem:[%s11159_s1 + $0x8] sm:$0xff]  ;;  %v1544_v21 = vld [vmem:[%s11162_s4] sm:$0xff]  ;;  %v7961_v24 = vld [vmem:[%s11159_s1 + $0x10] sm:$0xff]  ;;  %s346_s28 = sand.u32 1, %s7755_s10   ;;  %s7137_s16 = sshll.u32 %s7763_s12, 4 }
  0x1a   : > { %s7140_s18 = sshll.u32 %s350_s27, 6  ;;  %v1545_v20 = vld [vmem:[%s11162_s4 + $0x8] sm:$0xff]  ;;  %v1547_v25 = vld [vmem:[%s11162_s4 + $0x18] sm:$0xff]  ;;  %v1546_v26 = vld [vmem:[%s11162_s4 + $0x10] sm:$0xff]  ;;  %s11111_s25 = scalar_lea.hbm %s11167_s9, %s7137_s16 }
  0x1b   : > { %s7900_s24 = scalar_lea.vmem %s11158_s0, %s7140_s18  ;;  %v7984_v29 = vld [vmem:[%s11159_s1 + $0x18] sm:$0xff]  ;;  %v1549_v30 = vld [vmem:[%s11162_s4 + $0x28] sm:$0xff]  ;;  %v1548_v31 = vld [vmem:[%s11162_s4 + $0x20] sm:$0xff]  ;;  %s347_s18 = scalar_lea.vmem [#allocation3], %s346_s28 }
  0x1c   : > { %399 = vperm.xlu1 %7583, %v377_v3   ;;  %389 = vperm.xlu0 %7582, %v375_v4   ;;  %v358_v6 = vld [vmem:[%s7900_s24] sm:$0x77]  ;;  %v359_v7 = vld [vmem:[%s7900_s24 + $0x8] sm:$0x77]  ;;  %v360_v13 = vld [vmem:[%s7900_s24 + $0x10] sm:$0x77] }
  0x1d   : > { %v430_v8 = vcombine.high %v358_v6, %v358_v6  ;;  %v431_v9 = vcombine.high %v359_v7, %v359_v7  ;;  %v361_v14 = vld [vmem:[%s7900_s24 + $0x18] sm:$0x77]  ;;  %v432_v17 = vcombine.high %v360_v13, %v360_v13  ;;  %v7951_v22 = vld [vmem:[%s7900_s24 + $0x20] sm:$0x77]  ;;  %v7954_v23 = vld [vmem:[%s7900_s24 + $0x28] sm:$0x77] }
  0x1e   : > { %v433_v18 = vcombine.high %v361_v14, %v361_v14  ;;  %v434_v27 = vcombine.high %v7951_v22, %v7951_v22  ;;  %v435_v28 = vcombine.high %v7954_v23, %v7954_v23  ;;  %v8003_v32 = vld [vmem:[%s11159_s1 + $0x20] sm:$0xff]  ;;  %v1551_v33 = vld [vmem:[%s11162_s4 + $0x38] sm:$0xff]  ;;  %v1550_v34 = vld [vmem:[%s11162_s4 + $0x30] sm:$0xff]  ;;  %s6853_s20 = sshll.u32 %s347_s18, 4  ;;  %s6841_s26 = scalar_lea.sflag [#allocation4], %s346_s28  ;;  %s11113_s20 = int_to_ptr.vmem [resolvable:$true] %s6853_s20 }
  0x1f   : > { %6929 = vmatprep.subr.msk.mxu0 %vm463_vm0, %v430_v8  ;;  %6939 = vmatprep.subr.msk.mxu1 %vm463_vm0, %v431_v9  ;;  %v8020_v35 = vld [vmem:[%s11159_s1 + $0x28] sm:$0xff]  ;;  %v1552_v37 = vld [vmem:[%s11162_s4 + $0x40] sm:$0xff]  ;;  %v8037_v38 = vld [vmem:[%s11159_s1 + $0x30] sm:$0xff]  ;;  %s7693_s27 = scalar_lea.vmem %s11113_s20, 16  ;;  %s7775_s12 = smov [#allocation3]  }
  0x20   : > { %409 = vperm.xlu1 %7583, %v379_v10   ;;  %404 = vperm.xlu0 %7582, %v378_v11   ;;  %v1553_v36 = vld [vmem:[%s11162_s4 + $0x48] sm:$0xff]  ;;  %v1555_v39 = vld [vmem:[%s11162_s4 + $0x58] sm:$0xff]  ;;  %v1554_v40 = vld [vmem:[%s11162_s4 + $0x50] sm:$0xff]  ;;  %p7694_p12 = scmp.ne.s32.totalorder %s11113_s20, %s7693_s27  ;;  %s7697_s29 = sshll.u32 %s7775_s12, 4  ;;  %s7698_s29 = int_to_ptr.vmem [resolvable:$false] %s7697_s29 }
  0x21   : > { %6930 = vmatpush1.msk.msra.mxu0 %vm463_vm0, %v358_v6  ;;  %6940 = vmatpush1.msk.msra.mxu1 %vm463_vm0, %v359_v7  ;;  %v8054_v41 = vld [vmem:[%s11159_s1 + $0x38] sm:$0xff]  ;;  %v1557_v42 = vld [vmem:[%s11162_s4 + $0x68] sm:$0xff]  ;;  %v1556_v43 = vld [vmem:[%s11162_s4 + $0x60] sm:$0xff]  ;;  %s7699_s15 = scalar_lea.vmem %s7698_s29, 32  ;;  %p7700_p1 = scmp.lt.s32.totalorder %s11113_s20, %s7698_s29 }
  0x22   : > { %6931 = vmatmul.mubr.msk.f32.vlgmr.msra.gmra.mrb[0].mxu0 %vm438_vm1, %v7915_v12  ;;  %6941 = vmatmul.mubr.msk.f32.vlgmr.msra.gmra.mrb[0].mxu1 %vm438_vm1, %v7915_v12  ;;  %v1559_v44 = vld [vmem:[%s11162_s4 + $0x78] sm:$0xff]  ;;  %v1558_v45 = vld [vmem:[%s11162_s4 + $0x70] sm:$0xff]  ;;  %v3266_v48 = vld [vmem:[%s11164_s6 + $0x8] sm:$0xff]  ;;  %p7695_p13 = pnand %p7694_p12, %p7866_p4  ;;  %p7701_p2 = scmp.lt.s32.totalorder %s7699_s15, %s7693_s27 }
  0x23   : > { %566 = vmatprep.mubr.f32.mxu0 %v11168_v5  ;;  %679 = vmatprep.mubr.f32.mxu1 %v11168_v5  ;;  %v8079_v46 = vld [vmem:[%s7900_s24 + $0x30] sm:$0x77]  ;;  %v8082_v47 = vld [vmem:[%s7900_s24 + $0x38] sm:$0x77]  ;;  %v3265_v49 = vld [vmem:[%s11164_s6] sm:$0xff] }
  0x24   : > { %419 = vperm.xlu1 %7583, %v381_v15   ;;  %414 = vperm.xlu0 %7582, %v380_v16   ;;  %v436_v50 = vcombine.high %v8079_v46, %v8079_v46  ;;  %v437_v51 = vcombine.high %v8082_v47, %v8082_v47  ;;  %v3268_v52 = vld [vmem:[%s11164_s6 + $0x18] sm:$0xff]  ;;  %v3267_v53 = vld [vmem:[%s11164_s6 + $0x10] sm:$0xff]  ;;  %v3270_v54 = vld [vmem:[%s11164_s6 + $0x28] sm:$0xff]  ;;  %p7696_p0 = pneg %p7695_p13  ;;  %p7702_p3 = por %p7701_p2, %p7700_p1 }
  0x25   : > { %6949 = vmatprep.subr.msk.mxu0 %vm463_vm0, %v432_v17  ;;  %6959 = vmatprep.subr.msk.mxu1 %vm463_vm0, %v433_v18  ;;  %v3269_v55 = vld [vmem:[%s11164_s6 + $0x20] sm:$0xff]  ;;  %v3272_v56 = vld [vmem:[%s11164_s6 + $0x38] sm:$0xff]  ;;  %v3271_v57 = vld [vmem:[%s11164_s6 + $0x30] sm:$0xff] }
  0x26   : > { %6932 = vmatmul.mubr.msk.f32.gmra.mrb[2].mxu0 %vm438_vm1, %v7936_v19  ;;  %6942 = vmatmul.mubr.msk.f32.gmra.mrb[2].mxu1 %vm438_vm1, %v7936_v19  ;;  %v3274_v58 = vld [vmem:[%s11164_s6 + $0x48] sm:$0xff]  ;;  %v3273_v59 = vld [vmem:[%s11164_s6 + $0x40] sm:$0xff]  ;;  %v3276_v60 = vld [vmem:[%s11164_s6 + $0x58] sm:$0xff]  ;;  %p7703_p5 = pnand %p7702_p3, %p7696_p0 }
  0x27   : > { %572 = vmatprep.mubr.f32.mxu0 %v11168_v5  ;;  %685 = vmatprep.mubr.f32.mxu1 %v11168_v5  ;;  %v3275_v61 = vld [vmem:[%s11164_s6 + $0x50] sm:$0xff]  ;;  %v3278_v62 = vld [vmem:[%s11164_s6 + $0x68] sm:$0xff]  ;;  %v3277_v63 = vld [vmem:[%s11164_s6 + $0x60] sm:$0xff] }
  0x28   : > { %1567 = vperm.xlu1 %7583, %v1545_v20   ;;  %1562 = vperm.xlu0 %7582, %v1544_v21   ;;  %v3280_v0 = vld [vmem:[%s11164_s6 + $0x78] sm:$0xff]  ;;  %v3279_v1 = vld [vmem:[%s11164_s6 + $0x70] sm:$0xff]  ;;  %v3282_v2 = vld [vmem:[%s11164_s6 + $0x88] sm:$0xff] }
  0x29   : > { %6950 = vmatpush1.msk.msra.mxu0 %vm463_vm0, %v360_v13  ;;  %6960 = vmatpush1.msk.msra.mxu1 %vm463_vm0, %v361_v14  ;;  %v3281_v3 = vld [vmem:[%s11164_s6 + $0x80] sm:$0xff]  ;;  %v3284_v4 = vld [vmem:[%s11164_s6 + $0x98] sm:$0xff]  ;;  %v3283_v6 = vld [vmem:[%s11164_s6 + $0x90] sm:$0xff] }
  0x2a   : > { %6933 = vmatmul.mubr.msk.f32.gmra.mrb[4].mxu0 %vm438_vm1, %v7961_v24  ;;  %6943 = vmatmul.mubr.msk.f32.gmra.mrb[4].mxu1 %vm438_vm1, %v7961_v24  ;;  %v3286_v7 = vld [vmem:[%s11164_s6 + $0xa8] sm:$0xff]  ;;  %v3285_v8 = vld [vmem:[%s11164_s6 + $0xa0] sm:$0xff]  ;;  %v3288_v9 = vld [vmem:[%s11164_s6 + $0xb8] sm:$0xff] }
  0x2b   : > { %578 = vmatprep.mubr.f32.mxu0 %v11168_v5  ;;  %691 = vmatprep.mubr.f32.mxu1 %v11168_v5  ;;  %v3287_v10 = vld [vmem:[%s11164_s6 + $0xb0] sm:$0xff]  ;;  %v3290_v11 = vld [vmem:[%s11164_s6 + $0xc8] sm:$0xff]  ;;  %v3289_v13 = vld [vmem:[%s11164_s6 + $0xc0] sm:$0xff] }
  0x2c   : > { %1577 = vperm.xlu1 %7583, %v1547_v25   ;;  %1572 = vperm.xlu0 %7582, %v1546_v26   ;;  %v3292_v14 = vld [vmem:[%s11164_s6 + $0xd8] sm:$0xff]  ;;  %v3291_v15 = vld [vmem:[%s11164_s6 + $0xd0] sm:$0xff]  ;;  %v3294_v16 = vld [vmem:[%s11164_s6 + $0xe8] sm:$0xff] }
  0x2d   : > { %6969 = vmatprep.subr.msk.mxu0 %vm463_vm0, %v434_v27  ;;  %6979 = vmatprep.subr.msk.mxu1 %vm463_vm0, %v435_v28  ;;  %v3293_v17 = vld [vmem:[%s11164_s6 + $0xe0] sm:$0xff]  ;;  %v3296_v18 = vld [vmem:[%s11164_s6 + $0xf8] sm:$0xff]  ;;  %v3295_v20 = vld [vmem:[%s11164_s6 + $0xf0] sm:$0xff] }
  0x2e   : > { %6934 = vmatmul.mubr.msk.f32.gmra.mrb[6].mxu0 %vm438_vm1, %v7984_v29  ;;  %6944 = vmatmul.mubr.msk.f32.gmra.mrb[6].mxu1 %vm438_vm1, %v7984_v29 }
  0x2f   : > { %584 = vmatprep.mubr.f32.mxu0 %v11168_v5  ;;  %697 = vmatprep.mubr.f32.mxu1 %v11168_v5 }
  0x30   : > { %1587 = vperm.xlu1 %7583, %v1549_v30   ;;  %1582 = vperm.xlu0 %7582, %v1548_v31  }
  0x32   : > { %6935 = vmatmul.mubr.msk.f32.gmra.mrb[8].mxu0 %vm438_vm1, %v8003_v32  ;;  %6945 = vmatmul.mubr.msk.f32.gmra.mrb[8].mxu1 %vm438_vm1, %v8003_v32 }
  0x33   : > { %590 = vmatprep.mubr.f32.mxu0 %v11168_v5  ;;  %703 = vmatprep.mubr.f32.mxu1 %v11168_v5 }
  0x34   : > { %1597 = vperm.xlu1 %7583, %v1551_v33   ;;  %1592 = vperm.xlu0 %7582, %v1550_v34  }
  0x36   : > { %6936 = vmatmul.mubr.msk.f32.gmra.mrb[10].mxu0 %vm438_vm1, %v8020_v35  ;;  %6946 = vmatmul.mubr.msk.f32.gmra.mrb[10].mxu1 %vm438_vm1, %v8020_v35 }
  0x37   : > { %596 = vmatprep.mubr.f32.mxu0 %v11168_v5  ;;  %709 = vmatprep.mubr.f32.mxu1 %v11168_v5 }
  0x38   : > { %1607 = vperm.xlu1 %7583, %v1553_v36   ;;  %1602 = vperm.xlu0 %7582, %v1552_v37  }
  0x3a   : > { %6937 = vmatmul.mubr.msk.f32.gmra.mrb[12].mxu0 %vm438_vm1, %v8037_v38  ;;  %6947 = vmatmul.mubr.msk.f32.gmra.mrb[12].mxu1 %vm438_vm1, %v8037_v38 }
  0x3b   : > { %602 = vmatprep.mubr.f32.mxu0 %v11168_v5  ;;  %715 = vmatprep.mubr.f32.mxu1 %v11168_v5 }
  0x3c   : > { %1617 = vperm.xlu1 %7583, %v1555_v39   ;;  %1612 = vperm.xlu0 %7582, %v1554_v40  }
  0x3e   : > { %6938 = vmatmul.mubr.msk.f32.gmra.mrb[14].mxu0 %vm438_vm1, %v8054_v41  ;;  %6948 = vmatmul.mubr.msk.f32.gmra.mrb[14].mxu1 %vm438_vm1, %v8054_v41 }
  0x3f   : > { %786 = vmatprep.mubr.f32.mxu0 %v11168_v5  ;;  %899 = vmatprep.mubr.f32.mxu1 %v11168_v5 }
  0x40   : > { %1627 = vperm.xlu1 %7583, %v1557_v42   ;;  %1622 = vperm.xlu0 %7582, %v1556_v43  }
  0x42   : > { %6951 = vmatmul.mubr.msk.f32.vlgmr.msra.gmra.mrb[16].mxu0 %vm438_vm1, %v7915_v12  ;;  %6961 = vmatmul.mubr.msk.f32.vlgmr.msra.gmra.mrb[16].mxu1 %vm438_vm1, %v7915_v12 }
  0x43   : > { %792 = vmatprep.mubr.f32.mxu0 %v11168_v5  ;;  %905 = vmatprep.mubr.f32.mxu1 %v11168_v5 }
  0x44   : > { %1637 = vperm.xlu1 %7583, %v1559_v44   ;;  %1632 = vperm.xlu0 %7582, %v1558_v45  }
  0x45   : > { %6970 = vmatpush1.msk.msra.mxu0 %vm463_vm0, %v7951_v22  ;;  %6980 = vmatpush1.msk.msra.mxu1 %vm463_vm0, %v7954_v23 }
  0x46   : > { %6952 = vmatmul.mubr.msk.f32.gmra.mrb[18].mxu0 %vm438_vm1, %v7936_v19  ;;  %6962 = vmatmul.mubr.msk.f32.gmra.mrb[18].mxu1 %vm438_vm1, %v7936_v19 }
  0x47   : > { %798 = vmatprep.mubr.f32.mxu0 %v11168_v5  ;;  %911 = vmatprep.mubr.f32.mxu1 %v11168_v5 }
  0x48   : > { %3304 = vperm.xlu1 %7583, %v3266_v48   ;;  %3299 = vperm.xlu0 %7582, %v3265_v49  }
  0x49   : > { %6989 = vmatprep.subr.msk.mxu0 %vm463_vm0, %v436_v50  ;;  %6999 = vmatprep.subr.msk.mxu1 %vm463_vm0, %v437_v51 }
  0x4a   : > { %6953 = vmatmul.mubr.msk.f32.gmra.mrb[20].mxu0 %vm438_vm1, %v7961_v24  ;;  %6963 = vmatmul.mubr.msk.f32.gmra.mrb[20].mxu1 %vm438_vm1, %v7961_v24 }
  0x4b   : > { %804 = vmatprep.mubr.f32.mxu0 %v11168_v5  ;;  %917 = vmatprep.mubr.f32.mxu1 %v11168_v5 }
  0x4c   : > { %3314 = vperm.xlu1 %7583, %v3268_v52   ;;  %3309 = vperm.xlu0 %7582, %v3267_v53  }
  0x4e   : > { %6954 = vmatmul.mubr.msk.f32.gmra.mrb[22].mxu0 %vm438_vm1, %v7984_v29  ;;  %6964 = vmatmul.mubr.msk.f32.gmra.mrb[22].mxu1 %vm438_vm1, %v7984_v29 }
  0x4f   : > { %810 = vmatprep.mubr.f32.mxu0 %v11168_v5  ;;  %923 = vmatprep.mubr.f32.mxu1 %v11168_v5 }
  0x50   : > { %3324 = vperm.xlu1 %7583, %v3270_v54   ;;  %3319 = vperm.xlu0 %7582, %v3269_v55  }
  0x52   : > { %6955 = vmatmul.mubr.msk.f32.gmra.mrb[24].mxu0 %vm438_vm1, %v8003_v32  ;;  %6965 = vmatmul.mubr.msk.f32.gmra.mrb[24].mxu1 %vm438_vm1, %v8003_v32 }
  0x53   : > { %816 = vmatprep.mubr.f32.mxu0 %v11168_v5  ;;  %929 = vmatprep.mubr.f32.mxu1 %v11168_v5 }
  0x54   : > { %3334 = vperm.xlu1 %7583, %v3272_v56   ;;  %3329 = vperm.xlu0 %7582, %v3271_v57  }
  0x56   : > { %6956 = vmatmul.mubr.msk.f32.gmra.mrb[26].mxu0 %vm438_vm1, %v8020_v35  ;;  %6966 = vmatmul.mubr.msk.f32.gmra.mrb[26].mxu1 %vm438_vm1, %v8020_v35 }
  0x57   : > { %822 = vmatprep.mubr.f32.mxu0 %v11168_v5  ;;  %935 = vmatprep.mubr.f32.mxu1 %v11168_v5 }
  0x58   : > { %3344 = vperm.xlu1 %7583, %v3274_v58   ;;  %3339 = vperm.xlu0 %7582, %v3273_v59  }
  0x5a   : > { %6957 = vmatmul.mubr.msk.f32.gmra.mrb[28].mxu0 %vm438_vm1, %v8037_v38  ;;  %6967 = vmatmul.mubr.msk.f32.gmra.mrb[28].mxu1 %vm438_vm1, %v8037_v38 }
  0x5b   : > { %828 = vmatprep.mubr.f32.mxu0 %v11168_v5  ;;  %941 = vmatprep.mubr.f32.mxu1 %v11168_v5 }
  0x5c   : > { %3354 = vperm.xlu1 %7583, %v3276_v60   ;;  %3349 = vperm.xlu0 %7582, %v3275_v61  }
  0x5e   : > { %6958 = vmatmul.mubr.msk.f32.gmra.mrb[30].mxu0 %vm438_vm1, %v8054_v41  ;;  %6968 = vmatmul.mubr.msk.f32.gmra.mrb[30].mxu1 %vm438_vm1, %v8054_v41 }
  0x5f   : > { %1012 = vmatprep.mubr.f32.mxu0 %v11168_v5  ;;  %1125 = vmatprep.mubr.f32.mxu1 %v11168_v5 }
  0x60   : > { %3364 = vperm.xlu1 %7583, %v3278_v62   ;;  %3359 = vperm.xlu0 %7582, %v3277_v63  }
  0x62   : > { %6971 = vmatmul.mubr.msk.f32.vlgmr.msra.gmra.mrb[32].mxu0 %vm438_vm1, %v7915_v12  ;;  %6981 = vmatmul.mubr.msk.f32.vlgmr.msra.gmra.mrb[32].mxu1 %vm438_vm1, %v7915_v12 }
  0x63   : > { %1018 = vmatprep.mubr.f32.mxu0 %v11168_v5  ;;  %1131 = vmatprep.mubr.f32.mxu1 %v11168_v5 }
  0x64   : > { %3374 = vperm.xlu1 %7583, %v3280_v0   ;;  %3369 = vperm.xlu0 %7582, %v3279_v1  }
  0x65   : > { %6990 = vmatpush1.msk.msra.mxu0 %vm463_vm0, %v8079_v46  ;;  %7000 = vmatpush1.msk.msra.mxu1 %vm463_vm0, %v8082_v47 }
  0x66   : > { %6972 = vmatmul.mubr.msk.f32.gmra.mrb[34].mxu0 %vm438_vm1, %v7936_v19  ;;  %6982 = vmatmul.mubr.msk.f32.gmra.mrb[34].mxu1 %vm438_vm1, %v7936_v19 }
  0x67   : > { %1024 = vmatprep.mubr.f32.mxu0 %v11168_v5  ;;  %1137 = vmatprep.mubr.f32.mxu1 %v11168_v5 }
  0x68   : > { %3384 = vperm.xlu1 %7583, %v3282_v2   ;;  %3379 = vperm.xlu0 %7582, %v3281_v3  }
  0x6a   : > { %6973 = vmatmul.mubr.msk.f32.gmra.mrb[36].mxu0 %vm438_vm1, %v7961_v24  ;;  %6983 = vmatmul.mubr.msk.f32.gmra.mrb[36].mxu1 %vm438_vm1, %v7961_v24 }
  0x6b   : > { %1030 = vmatprep.mubr.f32.mxu0 %v11168_v5  ;;  %1143 = vmatprep.mubr.f32.mxu1 %v11168_v5 }
  0x6c   : > { %3394 = vperm.xlu1 %7583, %v3284_v4   ;;  %3389 = vperm.xlu0 %7582, %v3283_v6  }
  0x6e   : > { %6974 = vmatmul.mubr.msk.f32.gmra.mrb[38].mxu0 %vm438_vm1, %v7984_v29  ;;  %6984 = vmatmul.mubr.msk.f32.gmra.mrb[38].mxu1 %vm438_vm1, %v7984_v29 }
  0x6f   : > { %1036 = vmatprep.mubr.f32.mxu0 %v11168_v5  ;;  %1149 = vmatprep.mubr.f32.mxu1 %v11168_v5 }
  0x70   : > { %3404 = vperm.xlu1 %7583, %v3286_v7   ;;  %3399 = vperm.xlu0 %7582, %v3285_v8  }
  0x72   : > { %6975 = vmatmul.mubr.msk.f32.gmra.mrb[40].mxu0 %vm438_vm1, %v8003_v32  ;;  %6985 = vmatmul.mubr.msk.f32.gmra.mrb[40].mxu1 %vm438_vm1, %v8003_v32 }
  0x73   : > { %1042 = vmatprep.mubr.f32.mxu0 %v11168_v5  ;;  %1155 = vmatprep.mubr.f32.mxu1 %v11168_v5 }
  0x74   : > { %3414 = vperm.xlu1 %7583, %v3288_v9   ;;  %3409 = vperm.xlu0 %7582, %v3287_v10  }
  0x76   : > { %6976 = vmatmul.mubr.msk.f32.gmra.mrb[42].mxu0 %vm438_vm1, %v8020_v35  ;;  %6986 = vmatmul.mubr.msk.f32.gmra.mrb[42].mxu1 %vm438_vm1, %v8020_v35 }
  0x77   : > { %1048 = vmatprep.mubr.f32.mxu0 %v11168_v5  ;;  %1161 = vmatprep.mubr.f32.mxu1 %v11168_v5 }
  0x78   : > { %3424 = vperm.xlu1 %7583, %v3290_v11   ;;  %3419 = vperm.xlu0 %7582, %v3289_v13  }
  0x7a   : > { %6977 = vmatmul.mubr.msk.f32.gmra.mrb[44].mxu0 %vm438_vm1, %v8037_v38  ;;  %6987 = vmatmul.mubr.msk.f32.gmra.mrb[44].mxu1 %vm438_vm1, %v8037_v38 }
  0x7b   : > { %1054 = vmatprep.mubr.f32.mxu0 %v11168_v5  ;;  %1167 = vmatprep.mubr.f32.mxu1 %v11168_v5 }
  0x7c   : > { %3434 = vperm.xlu1 %7583, %v3292_v14   ;;  %3429 = vperm.xlu0 %7582, %v3291_v15  }
  0x7e   : > { %6978 = vmatmul.mubr.msk.f32.gmra.mrb[46].mxu0 %vm438_vm1, %v8054_v41  ;;  %6988 = vmatmul.mubr.msk.f32.gmra.mrb[46].mxu1 %vm438_vm1, %v8054_v41 }
  0x7f   : > { %1238 = vmatprep.mubr.f32.mxu0 %v11168_v5  ;;  %1351 = vmatprep.mubr.f32.mxu1 %v11168_v5 }
  0x80   : > { %3444 = vperm.xlu1 %7583, %v3294_v16   ;;  %3439 = vperm.xlu0 %7582, %v3293_v17  }
  0x82   : > { %6991 = vmatmul.mubr.msk.f32.vlgmr.msra.gmra.mrb[48].mxu0 %vm438_vm1, %v7915_v12  ;;  %7001 = vmatmul.mubr.msk.f32.vlgmr.msra.gmra.mrb[48].mxu1 %vm438_vm1, %v7915_v12 }
  0x83   : > { %1244 = vmatprep.mubr.f32.mxu0 %v11168_v5  ;;  %1357 = vmatprep.mubr.f32.mxu1 %v11168_v5 }
  0x84   : > { %3454 = vperm.xlu1 %7583, %v3296_v18   ;;  %3449 = vperm.xlu0 %7582, %v3295_v20  }
  0x86   : > { %6992 = vmatmul.mubr.msk.f32.gmra.mrb[50].mxu0 %vm438_vm1, %v7936_v19  ;;  %7002 = vmatmul.mubr.msk.f32.gmra.mrb[50].mxu1 %vm438_vm1, %v7936_v19 }
  0x87   : > { %1250 = vmatprep.mubr.f32.mxu0 %v11168_v5  ;;  %1363 = vmatprep.mubr.f32.mxu1 %v11168_v5 }
  0x8a   : > { %6993 = vmatmul.mubr.msk.f32.gmra.mrb[52].mxu0 %vm438_vm1, %v7961_v24  ;;  %7003 = vmatmul.mubr.msk.f32.gmra.mrb[52].mxu1 %vm438_vm1, %v7961_v24 }
  0x8b   : > { %1256 = vmatprep.mubr.f32.mxu0 %v11168_v5  ;;  %1369 = vmatprep.mubr.f32.mxu1 %v11168_v5 }
  0x8e   : > { %6994 = vmatmul.mubr.msk.f32.gmra.mrb[54].mxu0 %vm438_vm1, %v7984_v29  ;;  %7004 = vmatmul.mubr.msk.f32.gmra.mrb[54].mxu1 %vm438_vm1, %v7984_v29 }
  0x8f   : > { %1262 = vmatprep.mubr.f32.mxu0 %v11168_v5  ;;  %1375 = vmatprep.mubr.f32.mxu1 %v11168_v5 }
  0x92   : > { %6995 = vmatmul.mubr.msk.f32.gmra.mrb[56].mxu0 %vm438_vm1, %v8003_v32  ;;  %7005 = vmatmul.mubr.msk.f32.gmra.mrb[56].mxu1 %vm438_vm1, %v8003_v32 }
  0x93   : > { %1268 = vmatprep.mubr.f32.mxu0 %v11168_v5  ;;  %1381 = vmatprep.mubr.f32.mxu1 %v11168_v5 }
  0x96   : > { %6996 = vmatmul.mubr.msk.f32.gmra.mrb[58].mxu0 %vm438_vm1, %v8020_v35  ;;  %7006 = vmatmul.mubr.msk.f32.gmra.mrb[58].mxu1 %vm438_vm1, %v8020_v35 }
  0x97   : > { %1274 = vmatprep.mubr.f32.mxu0 %v11168_v5  ;;  %1387 = vmatprep.mubr.f32.mxu1 %v11168_v5  ;;  %v8334_v12 = vpop.permute.xlu0 %384  ;;  %v8338_v26 = vpop.permute.xlu1 %394 }
  0x9a   : > { %6997 = vmatmul.mubr.msk.f32.gmra.mrb[60].mxu0 %vm438_vm1, %v8037_v38  ;;  %7007 = vmatmul.mubr.msk.f32.gmra.mrb[60].mxu1 %vm438_vm1, %v8037_v38 }
  0x9b   : > { %1280 = vmatprep.mubr.f32.mxu0 %v11168_v5  ;;  %1393 = vmatprep.mubr.f32.mxu1 %v11168_v5  ;;  %v8340_v27 = vpop.permute.xlu0 %389  ;;  %v8350_v56 = vpop.permute.xlu1 %399 }
  0x9e   : > { %6998 = vmatmul.mubr.msk.f32.gmra.mrb[62].mxu0 %vm438_vm1, %v8054_v41  ;;  %7008 = vmatmul.mubr.msk.f32.gmra.mrb[62].mxu1 %vm438_vm1, %v8054_v41 }
  0x9f   : > { %1753 = vmatprep.mubr.f32.mxu0 %v11168_v5  ;;  %1914 = vmatprep.mubr.f32.mxu1 %v11168_v5  ;;  %v8358_v20 = vpop.permute.xlu0 %404 }
  0xf5   : > { %v562_v19 = vpop.f32.mrb[0].mxu0  ;;  %v675_v21 = vpop.f32.mrb[0].mxu1 }
  0xf6   : > { %v676_v22 = vadd.f32 %v675_v21, %v8334_v12  ;;  %v564_v23 = vpop.f32.mrb[1].mxu0  ;;  %v677_v24 = vpop.f32.mrb[1].mxu1  ;;  %v563_v28 = vadd.f32 %v562_v19, %v8334_v12 }
  0xf7   : > { %v678_v25 = vadd.f32 %v677_v24, %v8334_v12  ;;  %v565_v29 = vadd.f32 %v564_v23, %v8334_v12 }
  0xf8   : > { %v1402_v32 = vmax.f32 %v676_v22, 0.0  ;;  %v1400_v40 = vmax.f32 %v563_v28, 0.0  ;;  %v8360_v22 = vpop.permute.xlu1 %409 }
  0xf9   : > { %v568_v30 = vpop.f32.mrb[2].mxu0  ;;  %v681_v31 = vpop.f32.mrb[2].mxu1  ;;  %v1403_v37 = vmax.f32 %v678_v25, 0.0  ;;  %v1401_v43 = vmax.f32 %v565_v29, 0.0 }
  0xfa   : > { %v569_v33 = vadd.f32 %v568_v30, %v8340_v27  ;;  %v682_v34 = vadd.f32 %v681_v31, %v8340_v27  ;;  %v570_v35 = vpop.f32.mrb[3].mxu0  ;;  %v683_v36 = vpop.f32.mrb[3].mxu1 }
  0xfb   : > { %v571_v38 = vadd.f32 %v570_v35, %v8340_v27  ;;  %v684_v39 = vadd.f32 %v683_v36, %v8340_v27 }
  0xfc   : > { %v1416_v41 = vmax.f32 %v569_v33, 0.0  ;;  %v1418_v42 = vmax.f32 %v682_v34, 0.0 }
  0xfd   : > { %v1417_v44 = vmax.f32 %v571_v38, 0.0  ;;  %v1419_v45 = vmax.f32 %v684_v39, 0.0  ;;  %v574_v46 = vpop.f32.mrb[4].mxu0  ;;  %v687_v47 = vpop.f32.mrb[4].mxu1 }
  0xfe   : > { %v7143_v48 = vpack.c.bf16 %v1416_v41, %v1400_v40  ;;  %v7159_v49 = vpack.c.bf16 %v1418_v42, %v1402_v32  ;;  %v688_v50 = vadd.f32 %v687_v47, %v8338_v26  ;;  %v576_v51 = vpop.f32.mrb[5].mxu0  ;;  %v689_v52 = vpop.f32.mrb[5].mxu1  ;;  %v575_v57 = vadd.f32 %v574_v46, %v8338_v26 }
  0xff   : > { %v690_v53 = vadd.f32 %v689_v52, %v8338_v26  ;;  %v7141_v54 = vpack.c.bf16 %v1417_v44, %v1401_v43  ;;  %v7157_v55 = vpack.c.bf16 %v1419_v45, %v1403_v37  ;;  %v577_v58 = vadd.f32 %v576_v51, %v8338_v26  ;;  %v8370_v51 = vpop.permute.xlu0 %414 }
 0x100   : > { %v1434_v61 = vmax.f32 %v688_v50, 0.0  ;;  %v1432_v6 = vmax.f32 %v575_v57, 0.0 }
 0x101   : > { %v580_v59 = vpop.f32.mrb[6].mxu0  ;;  %v693_v60 = vpop.f32.mrb[6].mxu1  ;;  %7142 = vmatprep.subr.bf16.mxu0 %v7141_v54  ;;  %7158 = vmatprep.subr.bf16.mxu1 %v7157_v55  ;;  %v1435_v2 = vmax.f32 %v690_v53, 0.0  ;;  %v1433_v9 = vmax.f32 %v577_v58, 0.0 }
 0x102   : > { %v581_v62 = vadd.f32 %v580_v59, %v8350_v56  ;;  %v694_v63 = vadd.f32 %v693_v60, %v8350_v56  ;;  %v582_v0 = vpop.f32.mrb[7].mxu0  ;;  %v695_v1 = vpop.f32.mrb[7].mxu1  ;;  %7144 = vmatpush1.bf16.msra.mxu0 %v7143_v48  ;;  %7160 = vmatpush1.bf16.msra.mxu1 %v7159_v49 }
 0x103   : > { %v583_v3 = vadd.f32 %v582_v0, %v8350_v56  ;;  %v696_v4 = vadd.f32 %v695_v1, %v8350_v56  ;;  %v8372_v54 = vpop.permute.xlu1 %419 }
 0x104   : > { %v1448_v7 = vmax.f32 %v581_v62, 0.0  ;;  %v1450_v8 = vmax.f32 %v694_v63, 0.0 }
 0x105   : > { %v1449_v10 = vmax.f32 %v583_v3, 0.0  ;;  %v1451_v11 = vmax.f32 %v696_v4, 0.0  ;;  %v586_v13 = vpop.f32.mrb[8].mxu0  ;;  %v699_v14 = vpop.f32.mrb[8].mxu1 }
 0x106   : > { %v7147_v15 = vpack.c.bf16 %v1448_v7, %v1432_v6  ;;  %v7163_v16 = vpack.c.bf16 %v1450_v8, %v1434_v61  ;;  %v588_v17 = vpop.f32.mrb[9].mxu0  ;;  %v701_v18 = vpop.f32.mrb[9].mxu1  ;;  %v587_v23 = vadd.f32 %v586_v13, %v8358_v20  ;;  %v700_v24 = vadd.f32 %v699_v14, %v8358_v20 }
 0x107   : > { %v7145_v19 = vpack.c.bf16 %v1449_v10, %v1433_v9  ;;  %v7161_v21 = vpack.c.bf16 %v1451_v11, %v1435_v2  ;;  %v589_v25 = vadd.f32 %v588_v17, %v8358_v20  ;;  %v702_v28 = vadd.f32 %v701_v18, %v8358_v20 }
 0x108   : > { %v1464_v37 = vmax.f32 %v587_v23, 0.0  ;;  %v1466_v38 = vmax.f32 %v700_v24, 0.0 }
 0x109   : > { %v592_v29 = vpop.f32.mrb[10].mxu0  ;;  %v705_v30 = vpop.f32.mrb[10].mxu1  ;;  %7146 = vmatprep.subr.bf16.mxu0 %v7145_v19  ;;  %7162 = vmatprep.subr.bf16.mxu1 %v7161_v21  ;;  %v1465_v41 = vmax.f32 %v589_v25, 0.0  ;;  %v1467_v42 = vmax.f32 %v702_v28, 0.0 }
 0x10a   : > { %v593_v31 = vadd.f32 %v592_v29, %v8360_v22  ;;  %v706_v32 = vadd.f32 %v705_v30, %v8360_v22  ;;  %v594_v33 = vpop.f32.mrb[11].mxu0  ;;  %v707_v34 = vpop.f32.mrb[11].mxu1  ;;  %7148 = vmatpush1.bf16.msra.mxu0 %v7147_v15  ;;  %7164 = vmatpush1.bf16.msra.mxu1 %v7163_v16 }
 0x10b   : > { %v595_v35 = vadd.f32 %v594_v33, %v8360_v22  ;;  %v708_v36 = vadd.f32 %v707_v34, %v8360_v22 }
 0x10c   : > { %v1480_v39 = vmax.f32 %v593_v31, 0.0  ;;  %v1482_v40 = vmax.f32 %v706_v32, 0.0 }
 0x10d   : > { %v1481_v43 = vmax.f32 %v595_v35, 0.0  ;;  %v1483_v44 = vmax.f32 %v708_v36, 0.0  ;;  %v598_v45 = vpop.f32.mrb[12].mxu0  ;;  %v711_v46 = vpop.f32.mrb[12].mxu1  ;;  %v8391_v36 = vld [vmem:[%s11161_s3] sm:$0xff] }
 0x10e   : > { %v7151_v47 = vpack.c.bf16 %v1480_v39, %v1464_v37  ;;  %v7167_v48 = vpack.c.bf16 %v1482_v40, %v1466_v38  ;;  %v600_v49 = vpop.f32.mrb[13].mxu0  ;;  %v713_v50 = vpop.f32.mrb[13].mxu1  ;;  %v599_v55 = vadd.f32 %v598_v45, %v8370_v51  ;;  %v712_v57 = vadd.f32 %v711_v46, %v8370_v51 }
 0x10f   : > { %v7149_v52 = vpack.c.bf16 %v1481_v43, %v1465_v41  ;;  %v7165_v53 = vpack.c.bf16 %v1483_v44, %v1467_v42  ;;  %v601_v58 = vadd.f32 %v600_v49, %v8370_v51  ;;  %v714_v59 = vadd.f32 %v713_v50, %v8370_v51 }
 0x110   : > { %v1496_v4 = vmax.f32 %v599_v55, 0.0  ;;  %v1498_v6 = vmax.f32 %v712_v57, 0.0  ;;  %v8403_v55 = vld [vmem:[%s11161_s3 + $0x8] sm:$0xff] }
 0x111   : > { %v604_v60 = vpop.f32.mrb[14].mxu0  ;;  %v717_v61 = vpop.f32.mrb[14].mxu1  ;;  %7150 = vmatprep.subr.bf16.mxu0 %v7149_v52  ;;  %7166 = vmatprep.subr.bf16.mxu1 %v7165_v53  ;;  %v1497_v9 = vmax.f32 %v601_v58, 0.0  ;;  %v1499_v10 = vmax.f32 %v714_v59, 0.0 }
 0x112   : > { %v605_v62 = vadd.f32 %v604_v60, %v8372_v54  ;;  %v718_v63 = vadd.f32 %v717_v61, %v8372_v54  ;;  %v606_v0 = vpop.f32.mrb[15].mxu0  ;;  %v719_v1 = vpop.f32.mrb[15].mxu1  ;;  %7152 = vmatpush1.bf16.msra.mxu0 %v7151_v47  ;;  %7168 = vmatpush1.bf16.msra.mxu1 %v7167_v48 }
 0x113   : > { %v607_v2 = vadd.f32 %v606_v0, %v8372_v54  ;;  %v720_v3 = vadd.f32 %v719_v1, %v8372_v54 }
 0x114   : > { %v1512_v7 = vmax.f32 %v605_v62, 0.0  ;;  %v1514_v8 = vmax.f32 %v718_v63, 0.0 }
 0x115   : > { %v1513_v11 = vmax.f32 %v607_v2, 0.0  ;;  %v1515_v13 = vmax.f32 %v720_v3, 0.0  ;;  %v788_v14 = vpop.f32.mrb[16].mxu0  ;;  %v901_v15 = vpop.f32.mrb[16].mxu1 }
 0x116   : > { %v7155_v16 = vpack.c.bf16 %v1512_v7, %v1496_v4  ;;  %v7171_v17 = vpack.c.bf16 %v1514_v8, %v1498_v6  ;;  %v790_v18 = vpop.f32.mrb[17].mxu0  ;;  %v903_v19 = vpop.f32.mrb[17].mxu1  ;;  %v789_v24 = vadd.f32 %v788_v14, %v8334_v12  ;;  %v902_v25 = vadd.f32 %v901_v15, %v8334_v12  ;;  %v8419_v6 = vld [vmem:[%s11161_s3 + $0x10] sm:$0xff] }
 0x117   : > { %v7153_v21 = vpack.c.bf16 %v1513_v11, %v1497_v9  ;;  %v7169_v23 = vpack.c.bf16 %v1515_v13, %v1499_v10  ;;  %v791_v28 = vadd.f32 %v790_v18, %v8334_v12  ;;  %v904_v29 = vadd.f32 %v903_v19, %v8334_v12 }
 0x118   : > { %v1404_v39 = vmax.f32 %v789_v24, 0.0  ;;  %v1406_v40 = vmax.f32 %v902_v25, 0.0 }
 0x119   : > { %v794_v30 = vpop.f32.mrb[18].mxu0  ;;  %v907_v31 = vpop.f32.mrb[18].mxu1  ;;  %7154 = vmatprep.subr.bf16.mxu0 %v7153_v21  ;;  %7170 = vmatprep.subr.bf16.mxu1 %v7169_v23  ;;  %v1405_v43 = vmax.f32 %v791_v28, 0.0  ;;  %v1407_v44 = vmax.f32 %v904_v29, 0.0  ;;  %v8433_v28 = vld [vmem:[%s11161_s3 + $0x18] sm:$0xff] }
 0x11a   : > { %v795_v32 = vadd.f32 %v794_v30, %v8340_v27  ;;  %v908_v33 = vadd.f32 %v907_v31, %v8340_v27  ;;  %v796_v34 = vpop.f32.mrb[19].mxu0  ;;  %v909_v35 = vpop.f32.mrb[19].mxu1  ;;  %7156 = vmatpush1.bf16.msra.mxu0 %v7155_v16  ;;  %7172 = vmatpush1.bf16.msra.mxu1 %v7171_v17 }
 0x11b   : > { %v797_v37 = vadd.f32 %v796_v34, %v8340_v27  ;;  %v910_v38 = vadd.f32 %v909_v35, %v8340_v27 }
 0x11c   : > { %v1420_v41 = vmax.f32 %v795_v32, 0.0  ;;  %v1422_v42 = vmax.f32 %v908_v33, 0.0 }
 0x11d   : > { %v1421_v45 = vmax.f32 %v797_v37, 0.0  ;;  %v1423_v46 = vmax.f32 %v910_v38, 0.0  ;;  %v800_v47 = vpop.f32.mrb[20].mxu0  ;;  %v913_v48 = vpop.f32.mrb[20].mxu1  ;;  %7009 = vmatmul.mubr.msk.f32.vlgmr.msra.gmra.mrb[64].mxu0 %vm1640_vm2, %v8391_v36  ;;  %7025 = vmatmul.mubr.msk.f32.vlgmr.msra.gmra.mrb[64].mxu1 %vm1640_vm2, %v8391_v36 }
 0x11e   : > { %v7175_v49 = vpack.c.bf16 %v1420_v41, %v1404_v39  ;;  %v7191_v50 = vpack.c.bf16 %v1422_v42, %v1406_v40  ;;  %v802_v52 = vpop.f32.mrb[21].mxu0  ;;  %v915_v53 = vpop.f32.mrb[21].mxu1  ;;  %1759 = vmatprep.mubr.f32.mxu0 %v11168_v5  ;;  %1920 = vmatprep.mubr.f32.mxu1 %v11168_v5  ;;  %v801_v59 = vadd.f32 %v800_v47, %v8338_v26  ;;  %v8449_v42 = vld [vmem:[%s11161_s3 + $0x20] sm:$0xff] }
 0x11f   : > { %v7173_v57 = vpack.c.bf16 %v1421_v45, %v1405_v43  ;;  %v7189_v58 = vpack.c.bf16 %v1423_v46, %v1407_v44  ;;  %v914_v60 = vadd.f32 %v913_v48, %v8338_v26  ;;  %v803_v61 = vadd.f32 %v802_v52, %v8338_v26 }
 0x120   : > { %v916_v62 = vadd.f32 %v915_v53, %v8338_v26  ;;  %v1436_v9 = vmax.f32 %v801_v59, 0.0 }
 0x121   : > { %v806_v63 = vpop.f32.mrb[22].mxu0  ;;  %v919_v0 = vpop.f32.mrb[22].mxu1  ;;  %7010 = vmatmul.mubr.msk.f32.gmra.mrb[66].mxu0 %vm1640_vm2, %v8403_v55  ;;  %7026 = vmatmul.mubr.msk.f32.gmra.mrb[66].mxu1 %vm1640_vm2, %v8403_v55  ;;  %v1438_v10 = vmax.f32 %v914_v60, 0.0  ;;  %v1437_v14 = vmax.f32 %v803_v61, 0.0 }
 0x122   : > { %v807_v1 = vadd.f32 %v806_v63, %v8350_v56  ;;  %v920_v2 = vadd.f32 %v919_v0, %v8350_v56  ;;  %7174 = vmatprep.subr.bf16.mxu0 %v7173_v57  ;;  %7190 = vmatprep.subr.bf16.mxu1 %v7189_v58  ;;  %v808_v3 = vpop.f32.mrb[23].mxu0  ;;  %v921_v4 = vpop.f32.mrb[23].mxu1  ;;  %v1439_v15 = vmax.f32 %v916_v62, 0.0  ;;  %v8463_v63 = vld [vmem:[%s11161_s3 + $0x28] sm:$0xff] }
 0x123   : > { %v809_v7 = vadd.f32 %v808_v3, %v8350_v56  ;;  %v922_v8 = vadd.f32 %v921_v4, %v8350_v56  ;;  %7176 = vmatpush1.bf16.msra.mxu0 %v7175_v49  ;;  %7192 = vmatpush1.bf16.msra.mxu1 %v7191_v50 }
 0x124   : > { %v1452_v11 = vmax.f32 %v807_v1, 0.0  ;;  %v1454_v13 = vmax.f32 %v920_v2, 0.0  ;;  %1765 = vmatprep.mubr.f32.mxu0 %v11168_v5  ;;  %1926 = vmatprep.mubr.f32.mxu1 %v11168_v5 }
 0x125   : > { %v1453_v16 = vmax.f32 %v809_v7, 0.0  ;;  %v1455_v17 = vmax.f32 %v922_v8, 0.0  ;;  %v812_v18 = vpop.f32.mrb[24].mxu0  ;;  %v925_v19 = vpop.f32.mrb[24].mxu1  ;;  %7011 = vmatmul.mubr.msk.f32.gmra.mrb[68].mxu0 %vm1640_vm2, %v8419_v6  ;;  %7027 = vmatmul.mubr.msk.f32.gmra.mrb[68].mxu1 %vm1640_vm2, %v8419_v6 }
 0x126   : > { %v7179_v21 = vpack.c.bf16 %v1452_v11, %v1436_v9  ;;  %v7195_v23 = vpack.c.bf16 %v1454_v13, %v1438_v10  ;;  %v814_v24 = vpop.f32.mrb[25].mxu0  ;;  %v927_v25 = vpop.f32.mrb[25].mxu1  ;;  %1771 = vmatprep.mubr.f32.mxu0 %v11168_v5  ;;  %1932 = vmatprep.mubr.f32.mxu1 %v11168_v5  ;;  %v813_v31 = vadd.f32 %v812_v18, %v8358_v20 }
 0x127   : > { %v7177_v29 = vpack.c.bf16 %v1453_v16, %v1437_v14  ;;  %v7193_v30 = vpack.c.bf16 %v1455_v17, %v1439_v15  ;;  %v926_v32 = vadd.f32 %v925_v19, %v8358_v20  ;;  %v815_v33 = vadd.f32 %v814_v24, %v8358_v20  ;;  %v8479_v15 = vld [vmem:[%s11161_s3 + $0x30] sm:$0xff] }
 0x128   : > { %v928_v34 = vadd.f32 %v927_v25, %v8358_v20  ;;  %v1468_v45 = vmax.f32 %v813_v31, 0.0 }
 0x129   : > { %v818_v35 = vpop.f32.mrb[26].mxu0  ;;  %v931_v37 = vpop.f32.mrb[26].mxu1  ;;  %7012 = vmatmul.mubr.msk.f32.gmra.mrb[70].mxu0 %vm1640_vm2, %v8433_v28  ;;  %7028 = vmatmul.mubr.msk.f32.gmra.mrb[70].mxu1 %vm1640_vm2, %v8433_v28  ;;  %v1470_v46 = vmax.f32 %v926_v32, 0.0  ;;  %v1469_v49 = vmax.f32 %v815_v33, 0.0 }
 0x12a   : > { %v819_v38 = vadd.f32 %v818_v35, %v8360_v22  ;;  %v932_v39 = vadd.f32 %v931_v37, %v8360_v22  ;;  %7178 = vmatprep.subr.bf16.mxu0 %v7177_v29  ;;  %7194 = vmatprep.subr.bf16.mxu1 %v7193_v30  ;;  %v820_v40 = vpop.f32.mrb[27].mxu0  ;;  %v933_v41 = vpop.f32.mrb[27].mxu1  ;;  %v1471_v50 = vmax.f32 %v928_v34, 0.0 }
 0x12b   : > { %v821_v43 = vadd.f32 %v820_v40, %v8360_v22  ;;  %v934_v44 = vadd.f32 %v933_v41, %v8360_v22  ;;  %7180 = vmatpush1.bf16.msra.mxu0 %v7179_v21  ;;  %7196 = vmatpush1.bf16.msra.mxu1 %v7195_v23 }
 0x12c   : > { %v1484_v47 = vmax.f32 %v819_v38, 0.0  ;;  %v1486_v48 = vmax.f32 %v932_v39, 0.0  ;;  %1777 = vmatprep.mubr.f32.mxu0 %v11168_v5  ;;  %1938 = vmatprep.mubr.f32.mxu1 %v11168_v5  ;;  %v8493_v38 = vld [vmem:[%s11161_s3 + $0x38] sm:$0xff] }
 0x12d   : > { %v1485_v52 = vmax.f32 %v821_v43, 0.0  ;;  %v1487_v53 = vmax.f32 %v934_v44, 0.0  ;;  %v824_v57 = vpop.f32.mrb[28].mxu0  ;;  %v937_v58 = vpop.f32.mrb[28].mxu1  ;;  %7013 = vmatmul.mubr.msk.f32.gmra.mrb[72].mxu0 %vm1640_vm2, %v8449_v42  ;;  %7029 = vmatmul.mubr.msk.f32.gmra.mrb[72].mxu1 %vm1640_vm2, %v8449_v42 }
 0x12e   : > { %v7183_v59 = vpack.c.bf16 %v1484_v47, %v1468_v45  ;;  %v7199_v60 = vpack.c.bf16 %v1486_v48, %v1470_v46  ;;  %v826_v61 = vpop.f32.mrb[29].mxu0  ;;  %v939_v62 = vpop.f32.mrb[29].mxu1  ;;  %1783 = vmatprep.mubr.f32.mxu0 %v11168_v5  ;;  %1944 = vmatprep.mubr.f32.mxu1 %v11168_v5  ;;  %v825_v2 = vadd.f32 %v824_v57, %v8370_v51 }
 0x12f   : > { %v7181_v0 = vpack.c.bf16 %v1485_v52, %v1469_v49  ;;  %v7197_v1 = vpack.c.bf16 %v1487_v53, %v1471_v50  ;;  %v938_v3 = vadd.f32 %v937_v58, %v8370_v51  ;;  %v827_v4 = vadd.f32 %v826_v61, %v8370_v51  ;;  %v8509_v53 = vld [vmem:[%s11161_s3 + $0x40] sm:$0xff] }
 0x130   : > { %v940_v7 = vadd.f32 %v939_v62, %v8370_v51  ;;  %v1500_v18 = vmax.f32 %v825_v2, 0.0 }
 0x131   : > { %v830_v8 = vpop.f32.mrb[30].mxu0  ;;  %v943_v9 = vpop.f32.mrb[30].mxu1  ;;  %7014 = vmatmul.mubr.msk.f32.gmra.mrb[74].mxu0 %vm1640_vm2, %v8463_v63  ;;  %7030 = vmatmul.mubr.msk.f32.gmra.mrb[74].mxu1 %vm1640_vm2, %v8463_v63  ;;  %v1502_v19 = vmax.f32 %v938_v3, 0.0  ;;  %v1501_v24 = vmax.f32 %v827_v4, 0.0 }
 0x132   : > { %v831_v10 = vadd.f32 %v830_v8, %v8372_v54  ;;  %v944_v11 = vadd.f32 %v943_v9, %v8372_v54  ;;  %7182 = vmatprep.subr.bf16.mxu0 %v7181_v0  ;;  %7198 = vmatprep.subr.bf16.mxu1 %v7197_v1  ;;  %v832_v13 = vpop.f32.mrb[31].mxu0  ;;  %v945_v14 = vpop.f32.mrb[31].mxu1  ;;  %v1503_v25 = vmax.f32 %v940_v7, 0.0 }
 0x133   : > { %v833_v16 = vadd.f32 %v832_v13, %v8372_v54  ;;  %v946_v17 = vadd.f32 %v945_v14, %v8372_v54  ;;  %7184 = vmatpush1.bf16.msra.mxu0 %v7183_v59  ;;  %7200 = vmatpush1.bf16.msra.mxu1 %v7199_v60  ;;  %v8527_v13 = vld [vmem:[%s11161_s3 + $0x48] sm:$0xff] }
 0x134   : > { %v1516_v21 = vmax.f32 %v831_v10, 0.0  ;;  %v1518_v23 = vmax.f32 %v944_v11, 0.0  ;;  %1789 = vmatprep.mubr.f32.mxu0 %v11168_v5  ;;  %1950 = vmatprep.mubr.f32.mxu1 %v11168_v5 }
 0x135   : > { %v1517_v29 = vmax.f32 %v833_v16, 0.0  ;;  %v1519_v30 = vmax.f32 %v946_v17, 0.0  ;;  %v1014_v31 = vpop.f32.mrb[32].mxu0  ;;  %v1127_v32 = vpop.f32.mrb[32].mxu1  ;;  %7015 = vmatmul.mubr.msk.f32.gmra.mrb[76].mxu0 %vm1640_vm2, %v8479_v15  ;;  %7031 = vmatmul.mubr.msk.f32.gmra.mrb[76].mxu1 %vm1640_vm2, %v8479_v15 }
 0x136   : > { %v7187_v33 = vpack.c.bf16 %v1516_v21, %v1500_v18  ;;  %v7203_v34 = vpack.c.bf16 %v1518_v23, %v1502_v19  ;;  %v1016_v35 = vpop.f32.mrb[33].mxu0  ;;  %v1129_v37 = vpop.f32.mrb[33].mxu1  ;;  %1795 = vmatprep.mubr.f32.mxu0 %v11168_v5  ;;  %1956 = vmatprep.mubr.f32.mxu1 %v11168_v5  ;;  %v1015_v41 = vadd.f32 %v1014_v31, %v8334_v12 }
 0x137   : > { %v7185_v39 = vpack.c.bf16 %v1517_v29, %v1501_v24  ;;  %v7201_v40 = vpack.c.bf16 %v1519_v30, %v1503_v25  ;;  %v1128_v43 = vadd.f32 %v1127_v32, %v8334_v12  ;;  %v1017_v44 = vadd.f32 %v1016_v35, %v8334_v12  ;;  %v8543_v32 = vld [vmem:[%s11161_s3 + $0x50] sm:$0xff] }
 0x138   : > { %v1130_v45 = vadd.f32 %v1129_v37, %v8334_v12  ;;  %v1408_v59 = vmax.f32 %v1015_v41, 0.0 }
 0x139   : > { %v1020_v46 = vpop.f32.mrb[34].mxu0  ;;  %v1133_v47 = vpop.f32.mrb[34].mxu1  ;;  %7016 = vmatmul.mubr.msk.f32.gmra.mrb[78].mxu0 %vm1640_vm2, %v8493_v38  ;;  %7032 = vmatmul.mubr.msk.f32.gmra.mrb[78].mxu1 %vm1640_vm2, %v8493_v38  ;;  %v1410_v60 = vmax.f32 %v1128_v43, 0.0  ;;  %v1409_v0 = vmax.f32 %v1017_v44, 0.0 }
 0x13a   : > { %v1021_v48 = vadd.f32 %v1020_v46, %v8340_v27  ;;  %v1134_v49 = vadd.f32 %v1133_v47, %v8340_v27  ;;  %7186 = vmatprep.subr.bf16.mxu0 %v7185_v39  ;;  %7202 = vmatprep.subr.bf16.mxu1 %v7201_v40  ;;  %v1022_v50 = vpop.f32.mrb[35].mxu0  ;;  %v1135_v52 = vpop.f32.mrb[35].mxu1  ;;  %v1411_v1 = vmax.f32 %v1130_v45, 0.0 }
 0x13b   : > { %v1023_v57 = vadd.f32 %v1022_v50, %v8340_v27  ;;  %v1136_v58 = vadd.f32 %v1135_v52, %v8340_v27  ;;  %7188 = vmatpush1.bf16.msra.mxu0 %v7187_v33  ;;  %7204 = vmatpush1.bf16.msra.mxu1 %v7203_v34 }
 0x13c   : > { %v1424_v61 = vmax.f32 %v1021_v48, 0.0  ;;  %v1426_v62 = vmax.f32 %v1134_v49, 0.0  ;;  %1801 = vmatprep.mubr.f32.mxu0 %v11168_v5  ;;  %1962 = vmatprep.mubr.f32.mxu1 %v11168_v5 }
 0x13d   : > { %v1425_v2 = vmax.f32 %v1023_v57, 0.0  ;;  %v1427_v3 = vmax.f32 %v1136_v58, 0.0  ;;  %v1026_v4 = vpop.f32.mrb[36].mxu0  ;;  %v1139_v7 = vpop.f32.mrb[36].mxu1  ;;  %7017 = vmatmul.mubr.msk.f32.gmra.mrb[80].mxu0 %vm1640_vm2, %v8509_v53  ;;  %7033 = vmatmul.mubr.msk.f32.gmra.mrb[80].mxu1 %vm1640_vm2, %v8509_v53  ;;  %v8561_v57 = vld [vmem:[%s11161_s3 + $0x58] sm:$0xff] }
 0x13e   : > { %v8519_v8 = vpack.c.bf16 %v1424_v61, %v1408_v59  ;;  %v8521_v9 = vpack.c.bf16 %v1426_v62, %v1410_v60  ;;  %v1028_v10 = vpop.f32.mrb[37].mxu0  ;;  %v1141_v11 = vpop.f32.mrb[37].mxu1  ;;  %1807 = vmatprep.mubr.f32.mxu0 %v11168_v5  ;;  %1968 = vmatprep.mubr.f32.mxu1 %v11168_v5  ;;  %v1027_v17 = vadd.f32 %v1026_v4, %v8338_v26 }
 0x13f   : > { %v7205_v14 = vpack.c.bf16 %v1425_v2, %v1409_v0  ;;  %v7221_v16 = vpack.c.bf16 %v1427_v3, %v1411_v1  ;;  %v1140_v18 = vadd.f32 %v1139_v7, %v8338_v26  ;;  %v1029_v19 = vadd.f32 %v1028_v10, %v8338_v26 }
 0x140   : > { %v1142_v21 = vadd.f32 %v1141_v11, %v8338_v26  ;;  %v1440_v35 = vmax.f32 %v1027_v17, 0.0  ;;  %v8583_v11 = vld [vmem:[%s11161_s3 + $0x60] sm:$0xff] }
 0x141   : > { %v1032_v23 = vpop.f32.mrb[38].mxu0  ;;  %v1145_v24 = vpop.f32.mrb[38].mxu1  ;;  %7018 = vmatmul.mubr.msk.f32.gmra.mrb[82].mxu0 %vm1640_vm2, %v8527_v13  ;;  %7034 = vmatmul.mubr.msk.f32.gmra.mrb[82].mxu1 %vm1640_vm2, %v8527_v13  ;;  %v1442_v37 = vmax.f32 %v1140_v18, 0.0  ;;  %v1441_v41 = vmax.f32 %v1029_v19, 0.0 }
 0x142   : > { %v1033_v25 = vadd.f32 %v1032_v23, %v8350_v56  ;;  %v1146_v29 = vadd.f32 %v1145_v24, %v8350_v56  ;;  %7206 = vmatprep.subr.bf16.mxu0 %v7205_v14  ;;  %7222 = vmatprep.subr.bf16.mxu1 %v7221_v16  ;;  %v1034_v30 = vpop.f32.mrb[39].mxu0  ;;  %v1147_v31 = vpop.f32.mrb[39].mxu1  ;;  %v1443_v43 = vmax.f32 %v1142_v21, 0.0 }
 0x143   : > { %v1035_v33 = vadd.f32 %v1034_v30, %v8350_v56  ;;  %v1148_v34 = vadd.f32 %v1147_v31, %v8350_v56  ;;  %1813 = vmatprep.mubr.f32.mxu0 %v11168_v5  ;;  %1974 = vmatprep.mubr.f32.mxu1 %v11168_v5 }
 0x144   : > { %v1456_v39 = vmax.f32 %v1033_v25, 0.0  ;;  %v1458_v40 = vmax.f32 %v1146_v29, 0.0 }
 0x145   : > { %v1457_v44 = vmax.f32 %v1035_v33, 0.0  ;;  %v1459_v45 = vmax.f32 %v1148_v34, 0.0  ;;  %v1038_v46 = vpop.f32.mrb[40].mxu0  ;;  %v1151_v47 = vpop.f32.mrb[40].mxu1  ;;  %7019 = vmatmul.mubr.msk.f32.gmra.mrb[84].mxu0 %vm1640_vm2, %v8543_v32  ;;  %7035 = vmatmul.mubr.msk.f32.gmra.mrb[84].mxu1 %vm1640_vm2, %v8543_v32 }
 0x146   : > { %v8553_v48 = vpack.c.bf16 %v1456_v39, %v1440_v35  ;;  %v8555_v49 = vpack.c.bf16 %v1458_v40, %v1442_v37  ;;  %v1040_v50 = vpop.f32.mrb[41].mxu0  ;;  %v1153_v52 = vpop.f32.mrb[41].mxu1  ;;  %1819 = vmatprep.mubr.f32.mxu0 %v11168_v5  ;;  %1980 = vmatprep.mubr.f32.mxu1 %v11168_v5  ;;  %v1039_v60 = vadd.f32 %v1038_v46, %v8358_v20  ;;  %v8599_v39 = vld [vmem:[%s11161_s3 + $0x68] sm:$0xff] }
 0x147   : > { %v8564_v58 = vpack.c.bf16 %v1457_v44, %v1441_v41  ;;  %v8566_v59 = vpack.c.bf16 %v1459_v45, %v1443_v43  ;;  %v1152_v61 = vadd.f32 %v1151_v47, %v8358_v20  ;;  %v1041_v62 = vadd.f32 %v1040_v50, %v8358_v20 }
 0x148   : > { %v1154_v0 = vadd.f32 %v1153_v52, %v8358_v20  ;;  %v1472_v17 = vmax.f32 %v1039_v60, 0.0 }
 0x149   : > { %v1044_v1 = vpop.f32.mrb[42].mxu0  ;;  %v1157_v2 = vpop.f32.mrb[42].mxu1  ;;  %7020 = vmatmul.mubr.msk.f32.gmra.mrb[86].mxu0 %vm1640_vm2, %v8561_v57  ;;  %7036 = vmatmul.mubr.msk.f32.gmra.mrb[86].mxu1 %vm1640_vm2, %v8561_v57  ;;  %v1474_v18 = vmax.f32 %v1152_v61, 0.0  ;;  %v1473_v23 = vmax.f32 %v1041_v62, 0.0 }
 0x14a   : > { %v1045_v3 = vadd.f32 %v1044_v1, %v8360_v22  ;;  %v1158_v4 = vadd.f32 %v1157_v2, %v8360_v22  ;;  %v1046_v7 = vpop.f32.mrb[43].mxu0  ;;  %v1159_v10 = vpop.f32.mrb[43].mxu1  ;;  %1825 = vmatprep.mubr.f32.mxu0 %v11168_v5  ;;  %1986 = vmatprep.mubr.f32.mxu1 %v11168_v5  ;;  %v1475_v24 = vmax.f32 %v1154_v0, 0.0  ;;  %v8621_v0 = vld [vmem:[%s11161_s3 + $0x70] sm:$0xff] }
 0x14b   : > { %v1047_v14 = vadd.f32 %v1046_v7, %v8360_v22  ;;  %v1160_v16 = vadd.f32 %v1159_v10, %v8360_v22 }
 0x14c   : > { %v1488_v19 = vmax.f32 %v1045_v3, 0.0  ;;  %v1490_v21 = vmax.f32 %v1158_v4, 0.0 }
 0x14d   : > { %v1489_v25 = vmax.f32 %v1047_v14, 0.0  ;;  %v1491_v29 = vmax.f32 %v1160_v16, 0.0  ;;  %v1050_v30 = vpop.f32.mrb[44].mxu0  ;;  %v1163_v31 = vpop.f32.mrb[44].mxu1  ;;  %7021 = vmatmul.mubr.msk.f32.gmra.mrb[88].mxu0 %vm1640_vm2, %v8583_v11  ;;  %7037 = vmatmul.mubr.msk.f32.gmra.mrb[88].mxu1 %vm1640_vm2, %v8583_v11 }
 0x14e   : > { %v8591_v33 = vpack.c.bf16 %v1488_v19, %v1472_v17  ;;  %v8593_v34 = vpack.c.bf16 %v1490_v21, %v1474_v18  ;;  %v1052_v35 = vpop.f32.mrb[45].mxu0  ;;  %v1165_v37 = vpop.f32.mrb[45].mxu1  ;;  %1831 = vmatprep.mubr.f32.mxu0 %v11168_v5  ;;  %1992 = vmatprep.mubr.f32.mxu1 %v11168_v5  ;;  %v1051_v43 = vadd.f32 %v1050_v30, %v8370_v51  ;;  %v8637_v30 = vld [vmem:[%s11161_s3 + $0x78] sm:$0xff] }
 0x14f   : > { %v8602_v40 = vpack.c.bf16 %v1489_v25, %v1473_v23  ;;  %v8604_v41 = vpack.c.bf16 %v1491_v29, %v1475_v24  ;;  %v1164_v44 = vadd.f32 %v1163_v31, %v8370_v51  ;;  %v1053_v45 = vadd.f32 %v1052_v35, %v8370_v51 }
 0x150   : > { %v1166_v46 = vadd.f32 %v1165_v37, %v8370_v51  ;;  %v1504_v3 = vmax.f32 %v1051_v43, 0.0 }
 0x151   : > { %v1056_v47 = vpop.f32.mrb[46].mxu0  ;;  %v1169_v50 = vpop.f32.mrb[46].mxu1  ;;  %7022 = vmatmul.mubr.msk.f32.gmra.mrb[90].mxu0 %vm1640_vm2, %v8599_v39  ;;  %7038 = vmatmul.mubr.msk.f32.gmra.mrb[90].mxu1 %vm1640_vm2, %v8599_v39  ;;  %v1506_v4 = vmax.f32 %v1164_v44, 0.0  ;;  %v1505_v14 = vmax.f32 %v1053_v45, 0.0 }
 0x152   : > { %v1057_v52 = vadd.f32 %v1056_v47, %v8372_v54  ;;  %v1170_v60 = vadd.f32 %v1169_v50, %v8372_v54  ;;  %v1058_v61 = vpop.f32.mrb[47].mxu0  ;;  %v1171_v62 = vpop.f32.mrb[47].mxu1  ;;  %1837 = vmatprep.mubr.f32.mxu0 %v11168_v5  ;;  %1998 = vmatprep.mubr.f32.mxu1 %v11168_v5  ;;  %v1507_v16 = vmax.f32 %v1166_v46, 0.0 }
 0x153   : > { %v1059_v1 = vadd.f32 %v1058_v61, %v8372_v54  ;;  %v1172_v2 = vadd.f32 %v1171_v62, %v8372_v54 }
 0x154   : > { %v1520_v7 = vmax.f32 %v1057_v52, 0.0  ;;  %v1522_v10 = vmax.f32 %v1170_v60, 0.0 }
 0x155   : > { %v1521_v17 = vmax.f32 %v1059_v1, 0.0  ;;  %v1523_v18 = vmax.f32 %v1172_v2, 0.0  ;;  %v1240_v19 = vpop.f32.mrb[48].mxu0  ;;  %v1353_v21 = vpop.f32.mrb[48].mxu1  ;;  %7023 = vmatmul.mubr.msk.f32.gmra.mrb[92].mxu0 %vm1640_vm2, %v8621_v0  ;;  %7039 = vmatmul.mubr.msk.f32.gmra.mrb[92].mxu1 %vm1640_vm2, %v8621_v0 }
 0x156   : > { %v8629_v23 = vpack.c.bf16 %v1520_v7, %v1504_v3  ;;  %v8631_v24 = vpack.c.bf16 %v1522_v10, %v1506_v4  ;;  %v1242_v25 = vpop.f32.mrb[49].mxu0  ;;  %v1355_v29 = vpop.f32.mrb[49].mxu1  ;;  %1843 = vmatprep.mubr.f32.mxu0 %v11168_v5  ;;  %2004 = vmatprep.mubr.f32.mxu1 %v11168_v5  ;;  %v1241_v37 = vadd.f32 %v1240_v19, %v8334_v12 }
 0x157   : > { %v8640_v31 = vpack.c.bf16 %v1521_v17, %v1505_v14  ;;  %v8642_v35 = vpack.c.bf16 %v1523_v18, %v1507_v16  ;;  %v1354_v43 = vadd.f32 %v1353_v21, %v8334_v12  ;;  %v1243_v44 = vadd.f32 %v1242_v25, %v8334_v12 }
 0x158   : > { %v1356_v47 = vadd.f32 %v1355_v29, %v8334_v12  ;;  %v1412_v2 = vmax.f32 %v1241_v37, 0.0 }
 0x159   : > { %v1246_v45 = vpop.f32.mrb[50].mxu0  ;;  %v1359_v46 = vpop.f32.mrb[50].mxu1  ;;  %7024 = vmatmul.mubr.msk.f32.gmra.mrb[94].mxu0 %vm1640_vm2, %v8637_v30  ;;  %7040 = vmatmul.mubr.msk.f32.gmra.mrb[94].mxu1 %vm1640_vm2, %v8637_v30  ;;  %v1414_v3 = vmax.f32 %v1354_v43, 0.0  ;;  %v1413_v10 = vmax.f32 %v1243_v44, 0.0 }
 0x15a   : > { %v1247_v50 = vadd.f32 %v1246_v45, %v8340_v27  ;;  %v1360_v52 = vadd.f32 %v1359_v46, %v8340_v27  ;;  %v1248_v60 = vpop.f32.mrb[51].mxu0  ;;  %v1361_v61 = vpop.f32.mrb[51].mxu1  ;;  %2075 = vmatprep.mubr.f32.mxu0 %v11168_v5  ;;  %2236 = vmatprep.mubr.f32.mxu1 %v11168_v5  ;;  %v1415_v18 = vmax.f32 %v1356_v47, 0.0 }
 0x15b   : > { %v1249_v62 = vadd.f32 %v1248_v60, %v8340_v27  ;;  %v1362_v1 = vadd.f32 %v1361_v61, %v8340_v27 }
 0x15c   : > { %v1428_v4 = vmax.f32 %v1247_v50, 0.0  ;;  %v1430_v7 = vmax.f32 %v1360_v52, 0.0 }
 0x15d   : > { %v1429_v12 = vmax.f32 %v1249_v62, 0.0  ;;  %v1431_v14 = vmax.f32 %v1362_v1, 0.0  ;;  %v1252_v16 = vpop.f32.mrb[52].mxu0  ;;  %v1365_v17 = vpop.f32.mrb[52].mxu1  ;;  %7041 = vmatmul.mubr.msk.f32.vlgmr.msra.gmra.mrb[96].mxu0 %vm1640_vm2, %v8391_v36  ;;  %7057 = vmatmul.mubr.msk.f32.vlgmr.msra.gmra.mrb[96].mxu1 %vm1640_vm2, %v8391_v36 }
 0x15e   : > { %v8662_v19 = vpack.c.bf16 %v1428_v4, %v1412_v2  ;;  %v8664_v21 = vpack.c.bf16 %v1430_v7, %v1414_v3  ;;  %7208 = vmatpush1.bf16.msra.mxu0 %v8519_v8  ;;  %v1254_v27 = vpop.f32.mrb[53].mxu0  ;;  %v1367_v25 = vpop.f32.mrb[53].mxu1  ;;  %7224 = vmatpush1.bf16.msra.mxu1 %v8521_v9  ;;  %v1253_v37 = vadd.f32 %v1252_v16, %v8338_v26 }
 0x15f   : > { %7210 = vmatprep.subr.bf16.mxu0 %v8564_v58  ;;  %v8669_v29 = vpack.c.bf16 %v1429_v12, %v1413_v10  ;;  %v1366_v43 = vadd.f32 %v1365_v17, %v8338_v26  ;;  %7226 = vmatprep.subr.bf16.mxu1 %v8566_v59  ;;  %v8675_v44 = vpack.c.bf16 %v1431_v14, %v1415_v18 }
 0x160   : > { %2081 = vmatprep.mubr.f32.mxu0 %v11168_v5  ;;  %v1255_v8 = vadd.f32 %v1254_v27, %v8338_v26  ;;  %2242 = vmatprep.mubr.f32.mxu1 %v11168_v5  ;;  %v1368_v58 = vadd.f32 %v1367_v25, %v8338_v26  ;;  %v1444_v26 = vmax.f32 %v1253_v37, 0.0 }
 0x161   : > { %v1258_v45 = vpop.f32.mrb[54].mxu0  ;;  %v1371_v9 = vpop.f32.mrb[54].mxu1  ;;  %7042 = vmatmul.mubr.msk.f32.gmra.mrb[98].mxu0 %vm1640_vm2, %v8403_v55  ;;  %7058 = vmatmul.mubr.msk.f32.gmra.mrb[98].mxu1 %vm1640_vm2, %v8403_v55  ;;  %v1446_v61 = vmax.f32 %v1366_v43, 0.0 }
 0x162   : > { %v1259_v46 = vadd.f32 %v1258_v45, %v8350_v56  ;;  %v1372_v47 = vadd.f32 %v1371_v9, %v8350_v56  ;;  %7212 = vmatpush1.bf16.msra.mxu0 %v8553_v48  ;;  %v1260_v59 = vpop.f32.mrb[55].mxu0  ;;  %v1373_v50 = vpop.f32.mrb[55].mxu1  ;;  %7228 = vmatpush1.bf16.msra.mxu1 %v8555_v49  ;;  %v1445_v2 = vmax.f32 %v1255_v8, 0.0 }
 0x163   : > { %v1261_v52 = vadd.f32 %v1260_v59, %v8350_v56  ;;  %v1374_v60 = vadd.f32 %v1373_v50, %v8350_v56  ;;  %7214 = vmatprep.subr.bf16.mxu0 %v8602_v40  ;;  %7230 = vmatprep.subr.bf16.mxu1 %v8604_v41  ;;  %v1447_v56 = vmax.f32 %v1368_v58, 0.0 }
 0x164   : > { %v1460_v62 = vmax.f32 %v1259_v46, 0.0  ;;  %v1462_v1 = vmax.f32 %v1372_v47, 0.0  ;;  %2087 = vmatprep.mubr.f32.mxu0 %v11168_v5  ;;  %2248 = vmatprep.mubr.f32.mxu1 %v11168_v5 }
 0x165   : > { %v1461_v48 = vmax.f32 %v1261_v52, 0.0  ;;  %v1463_v3 = vmax.f32 %v1374_v60, 0.0  ;;  %v1264_v49 = vpop.f32.mrb[56].mxu0  ;;  %v1377_v4 = vpop.f32.mrb[56].mxu1  ;;  %7043 = vmatmul.mubr.msk.f32.gmra.mrb[100].mxu0 %vm1640_vm2, %v8419_v6  ;;  %7059 = vmatmul.mubr.msk.f32.gmra.mrb[100].mxu1 %vm1640_vm2, %v8419_v6 }
 0x166   : > { %v8696_v40 = vpack.c.bf16 %v1460_v62, %v1444_v26  ;;  %v8698_v7 = vpack.c.bf16 %v1462_v1, %v1446_v61  ;;  %v1266_v41 = vpop.f32.mrb[57].mxu0  ;;  %v1379_v10 = vpop.f32.mrb[57].mxu1  ;;  %7216 = vmatpush1.bf16.msra.mxu0 %v8591_v33  ;;  %7232 = vmatpush1.bf16.msra.mxu1 %v8593_v34  ;;  %v1265_v14 = vadd.f32 %v1264_v49, %v8358_v20 }
 0x167   : > { %v8704_v12 = vpack.c.bf16 %v1461_v48, %v1445_v2  ;;  %v1378_v16 = vadd.f32 %v1377_v4, %v8358_v20  ;;  %7218 = vmatprep.subr.bf16.mxu0 %v8640_v31  ;;  %7234 = vmatprep.subr.bf16.mxu1 %v8642_v35  ;;  %v8710_v17 = vpack.c.bf16 %v1463_v3, %v1447_v56 }
 0x168   : > { %v1267_v18 = vadd.f32 %v1266_v41, %v8358_v20  ;;  %2093 = vmatprep.mubr.f32.mxu0 %v11168_v5  ;;  %2254 = vmatprep.mubr.f32.mxu1 %v11168_v5  ;;  %v1380_v27 = vadd.f32 %v1379_v10, %v8358_v20  ;;  %v1476_v8 = vmax.f32 %v1265_v14, 0.0 }
 0x169   : > { %v1270_v33 = vpop.f32.mrb[58].mxu0  ;;  %v1383_v34 = vpop.f32.mrb[58].mxu1  ;;  %7044 = vmatmul.mubr.msk.f32.gmra.mrb[102].mxu0 %vm1640_vm2, %v8433_v28  ;;  %7060 = vmatmul.mubr.msk.f32.gmra.mrb[102].mxu1 %vm1640_vm2, %v8433_v28  ;;  %v1478_v45 = vmax.f32 %v1378_v16, 0.0 }
 0x16a   : > { %v1271_v25 = vadd.f32 %v1270_v33, %v8360_v22  ;;  %v1384_v37 = vadd.f32 %v1383_v34, %v8360_v22  ;;  %v1272_v31 = vpop.f32.mrb[59].mxu0  ;;  %v1385_v35 = vpop.f32.mrb[59].mxu1  ;;  %7220 = vmatpush1.bf16.msra.mxu0 %v8629_v23  ;;  %7236 = vmatpush1.bf16.msra.mxu1 %v8631_v24  ;;  %v1477_v46 = vmax.f32 %v1267_v18, 0.0  ;;  %v1479_v50 = vmax.f32 %v1380_v27, 0.0 }
 0x16b   : > { %v1273_v43 = vadd.f32 %v1272_v31, %v8360_v22  ;;  %v1386_v20 = vadd.f32 %v1385_v35, %v8360_v22  ;;  %7238 = vmatprep.subr.bf16.mxu0 %v8669_v29  ;;  %7254 = vmatprep.subr.bf16.mxu1 %v8675_v44 }
 0x16c   : > { %v1492_v9 = vmax.f32 %v1271_v25, 0.0  ;;  %v1494_v58 = vmax.f32 %v1384_v37, 0.0  ;;  %2099 = vmatprep.mubr.f32.mxu0 %v11168_v5  ;;  %2260 = vmatprep.mubr.f32.mxu1 %v11168_v5 }
 0x16d   : > { %v1493_v47 = vmax.f32 %v1273_v43, 0.0  ;;  %v1495_v59 = vmax.f32 %v1386_v20, 0.0  ;;  %v1276_v23 = vpop.f32.mrb[60].mxu0  ;;  %v1389_v24 = vpop.f32.mrb[60].mxu1  ;;  %7045 = vmatmul.mubr.msk.f32.gmra.mrb[104].mxu0 %vm1640_vm2, %v8449_v42  ;;  %7061 = vmatmul.mubr.msk.f32.gmra.mrb[104].mxu1 %vm1640_vm2, %v8449_v42 }
 0x16e   : > { %v8730_v52 = vpack.c.bf16 %v1492_v9, %v1476_v8  ;;  %v8732_v22 = vpack.c.bf16 %v1494_v58, %v1478_v45  ;;  %v1278_v29 = vpop.f32.mrb[61].mxu0  ;;  %v1391_v60 = vpop.f32.mrb[61].mxu1  ;;  %2105 = vmatprep.mubr.f32.mxu0 %v11168_v5  ;;  %v1277_v26 = vadd.f32 %v1276_v23, %v8370_v51  ;;  %v1390_v61 = vadd.f32 %v1389_v24, %v8370_v51 }
 0x16f   : > { %v8739_v44 = vpack.c.bf16 %v1493_v47, %v1477_v46  ;;  %2266 = vmatprep.mubr.f32.mxu1 %v11168_v5  ;;  %v8744_v62 = vpack.c.bf16 %v1495_v59, %v1479_v50  ;;  %v1279_v1 = vadd.f32 %v1278_v29, %v8370_v51  ;;  %v1392_v2 = vadd.f32 %v1391_v60, %v8370_v51 }
 0x170   : > { %v1508_v51 = vmax.f32 %v1277_v26, 0.0  ;;  %v1510_v16 = vmax.f32 %v1390_v61, 0.0 }
 0x171   : > { %v1282_v48 = vpop.f32.mrb[62].mxu0  ;;  %v1395_v3 = vpop.f32.mrb[62].mxu1  ;;  %7046 = vmatmul.mubr.msk.f32.gmra.mrb[106].mxu0 %vm1640_vm2, %v8463_v63  ;;  %7062 = vmatmul.mubr.msk.f32.gmra.mrb[106].mxu1 %vm1640_vm2, %v8463_v63  ;;  %v1509_v34 = vmax.f32 %v1279_v1, 0.0  ;;  %v1511_v27 = vmax.f32 %v1392_v2, 0.0 }
 0x172   : > { %v1283_v49 = vadd.f32 %v1282_v48, %v8372_v54  ;;  %v1396_v4 = vadd.f32 %v1395_v3, %v8372_v54  ;;  %v1284_v56 = vpop.f32.mrb[63].mxu0  ;;  %v1397_v41 = vpop.f32.mrb[63].mxu1  ;;  %2111 = vmatprep.mubr.f32.mxu0 %v11168_v5  ;;  %2272 = vmatprep.mubr.f32.mxu1 %v11168_v5 }
 0x173   : > { %v1285_v10 = vadd.f32 %v1284_v56, %v8372_v54  ;;  %v1398_v14 = vadd.f32 %v1397_v41, %v8372_v54 }
 0x174   : > { %v1524_v18 = vmax.f32 %v1283_v49, 0.0  ;;  %v1526_v33 = vmax.f32 %v1396_v4, 0.0 }
 0x175   : > { %v1525_v25 = vmax.f32 %v1285_v10, 0.0  ;;  %v1527_v37 = vmax.f32 %v1398_v14, 0.0  ;;  %7047 = vmatmul.mubr.msk.f32.gmra.mrb[108].mxu0 %vm1640_vm2, %v8479_v15  ;;  %7063 = vmatmul.mubr.msk.f32.gmra.mrb[108].mxu1 %vm1640_vm2, %v8479_v15 }
 0x176   : > { %v8758_v31 = vpack.c.bf16 %v1524_v18, %v1508_v51  ;;  %v8760_v35 = vpack.c.bf16 %v1526_v33, %v1510_v16  ;;  %2117 = vmatprep.mubr.f32.mxu0 %v11168_v5  ;;  %2278 = vmatprep.mubr.f32.mxu1 %v11168_v5 }
 0x177   : > { %v7249_v54 = vpack.c.bf16 %v1525_v25, %v1509_v34  ;;  %v7265_v43 = vpack.c.bf16 %v1527_v37, %v1511_v27 }
 0x179   : > { %7048 = vmatmul.mubr.msk.f32.gmra.mrb[110].mxu0 %vm1640_vm2, %v8493_v38  ;;  %7064 = vmatmul.mubr.msk.f32.gmra.mrb[110].mxu1 %vm1640_vm2, %v8493_v38 }
 0x17a   : > { %2123 = vmatprep.mubr.f32.mxu0 %v11168_v5  ;;  %2284 = vmatprep.mubr.f32.mxu1 %v11168_v5 }
 0x17d   : > { %7049 = vmatmul.mubr.msk.f32.gmra.mrb[112].mxu0 %vm1640_vm2, %v8509_v53  ;;  %7065 = vmatmul.mubr.msk.f32.gmra.mrb[112].mxu1 %vm1640_vm2, %v8509_v53 }
 0x17e   : > { %2129 = vmatprep.mubr.f32.mxu0 %v11168_v5  ;;  %2290 = vmatprep.mubr.f32.mxu1 %v11168_v5 }
 0x181   : > { %7050 = vmatmul.mubr.msk.f32.gmra.mrb[114].mxu0 %vm1640_vm2, %v8527_v13  ;;  %7066 = vmatmul.mubr.msk.f32.gmra.mrb[114].mxu1 %vm1640_vm2, %v8527_v13 }
 0x182   : > { %2135 = vmatprep.mubr.f32.mxu0 %v11168_v5  ;;  %2296 = vmatprep.mubr.f32.mxu1 %v11168_v5 }
 0x185   : > { %7051 = vmatmul.mubr.msk.f32.gmra.mrb[116].mxu0 %vm1640_vm2, %v8543_v32  ;;  %7067 = vmatmul.mubr.msk.f32.gmra.mrb[116].mxu1 %vm1640_vm2, %v8543_v32 }
 0x186   : > { %2141 = vmatprep.mubr.f32.mxu0 %v11168_v5  ;;  %2302 = vmatprep.mubr.f32.mxu1 %v11168_v5 }
 0x189   : > { %7052 = vmatmul.mubr.msk.f32.gmra.mrb[118].mxu0 %vm1640_vm2, %v8561_v57  ;;  %7068 = vmatmul.mubr.msk.f32.gmra.mrb[118].mxu1 %vm1640_vm2, %v8561_v57 }
 0x18a   : > { %2147 = vmatprep.mubr.f32.mxu0 %v11168_v5  ;;  %2308 = vmatprep.mubr.f32.mxu1 %v11168_v5 }
 0x18d   : > { %7053 = vmatmul.mubr.msk.f32.gmra.mrb[120].mxu0 %vm1640_vm2, %v8583_v11  ;;  %7069 = vmatmul.mubr.msk.f32.gmra.mrb[120].mxu1 %vm1640_vm2, %v8583_v11 }
 0x18e   : > { %2153 = vmatprep.mubr.f32.mxu0 %v11168_v5  ;;  %2314 = vmatprep.mubr.f32.mxu1 %v11168_v5 }
 0x191   : > { %7054 = vmatmul.mubr.msk.f32.gmra.mrb[122].mxu0 %vm1640_vm2, %v8599_v39  ;;  %7070 = vmatmul.mubr.msk.f32.gmra.mrb[122].mxu1 %vm1640_vm2, %v8599_v39 }
 0x192   : > { %2159 = vmatprep.mubr.f32.mxu0 %v11168_v5  ;;  %2320 = vmatprep.mubr.f32.mxu1 %v11168_v5 }
 0x195   : > { %7055 = vmatmul.mubr.msk.f32.gmra.mrb[124].mxu0 %vm1640_vm2, %v8621_v0  ;;  %7071 = vmatmul.mubr.msk.f32.gmra.mrb[124].mxu1 %vm1640_vm2, %v8621_v0 }
 0x196   : > { %2165 = vmatprep.mubr.f32.mxu0 %v11168_v5  ;;  %2326 = vmatprep.mubr.f32.mxu1 %v11168_v5 }
 0x199   : > { %7056 = vmatmul.mubr.msk.f32.gmra.mrb[126].mxu0 %vm1640_vm2, %v8637_v30  ;;  %7072 = vmatmul.mubr.msk.f32.gmra.mrb[126].mxu1 %vm1640_vm2, %v8637_v30 }
 0x19a   : > { %2397 = vmatprep.mubr.f32.mxu0 %v11168_v5  ;;  %2558 = vmatprep.mubr.f32.mxu1 %v11168_v5 }
 0x19d   : > { %7073 = vmatmul.mubr.msk.f32.vlgmr.msra.gmra.mrb[128].mxu0 %vm1640_vm2, %v8391_v36  ;;  %7089 = vmatmul.mubr.msk.f32.vlgmr.msra.gmra.mrb[128].mxu1 %vm1640_vm2, %v8391_v36  ;;  %v7592_v36 = vld [vmem:[%s11161_s3] sm:$0xff] }
 0x19e   : > { %7240 = vmatpush1.bf16.msra.mxu0 %v8662_v19  ;;  %7256 = vmatpush1.bf16.msra.mxu1 %v8664_v21 }
 0x19f   : > { %7242 = vmatprep.subr.bf16.mxu0 %v8704_v12  ;;  %7258 = vmatprep.subr.bf16.mxu1 %v8710_v17  ;;  %v8965_v12 = vpop.permute.xlu0 %1562  ;;  %v8969_v17 = vpop.permute.xlu1 %1567 }
 0x1a0   : > { %2403 = vmatprep.mubr.f32.mxu0 %v11168_v5  ;;  %2564 = vmatprep.mubr.f32.mxu1 %v11168_v5 }
 0x1a1   : > { %7074 = vmatmul.mubr.msk.f32.gmra.mrb[130].mxu0 %vm1640_vm2, %v8403_v55  ;;  %7090 = vmatmul.mubr.msk.f32.gmra.mrb[130].mxu1 %vm1640_vm2, %v8403_v55  ;;  %v7593_v55 = vld [vmem:[%s11161_s3 + $0x8] sm:$0xff] }
 0x1a2   : > { %7244 = vmatpush1.bf16.msra.mxu0 %v8696_v40  ;;  %7260 = vmatpush1.bf16.msra.mxu1 %v8698_v7 }
 0x1a3   : > { %7246 = vmatprep.subr.bf16.mxu0 %v8739_v44  ;;  %7262 = vmatprep.subr.bf16.mxu1 %v8744_v62  ;;  %v8989_v56 = vpop.permute.xlu0 %1572  ;;  %v8993_v10 = vpop.permute.xlu1 %1577 }
 0x1a4   : > { %2409 = vmatprep.mubr.f32.mxu0 %v11168_v5  ;;  %2570 = vmatprep.mubr.f32.mxu1 %v11168_v5 }
 0x1a5   : > { %7075 = vmatmul.mubr.msk.f32.gmra.mrb[132].mxu0 %vm1640_vm2, %v8419_v6  ;;  %7091 = vmatmul.mubr.msk.f32.gmra.mrb[132].mxu1 %vm1640_vm2, %v8419_v6  ;;  %v7594_v6 = vld [vmem:[%s11161_s3 + $0x10] sm:$0xff] }
 0x1a6   : > { %7248 = vmatpush1.bf16.msra.mxu0 %v8730_v52  ;;  %7264 = vmatpush1.bf16.msra.mxu1 %v8732_v22 }
 0x1a7   : > { %7250 = vmatprep.subr.bf16.mxu0 %v7249_v54  ;;  %7266 = vmatprep.subr.bf16.mxu1 %v7265_v43 }
 0x1a8   : > { %2415 = vmatprep.mubr.f32.mxu0 %v11168_v5  ;;  %2576 = vmatprep.mubr.f32.mxu1 %v11168_v5 }
 0x1a9   : > { %7076 = vmatmul.mubr.msk.f32.gmra.mrb[134].mxu0 %vm1640_vm2, %v8433_v28  ;;  %7092 = vmatmul.mubr.msk.f32.gmra.mrb[134].mxu1 %vm1640_vm2, %v8433_v28  ;;  %v7595_v28 = vld [vmem:[%s11161_s3 + $0x18] sm:$0xff] }
 0x1aa   : > { %7252 = vmatpush1.bf16.msra.mxu0 %v8758_v31  ;;  %7268 = vmatpush1.bf16.msra.mxu1 %v8760_v35 }
 0x1ab   : > { %2421 = vmatprep.mubr.f32.mxu0 %v11168_v5  ;;  %2582 = vmatprep.mubr.f32.mxu1 %v11168_v5 }
 0x1ad   : > { %7077 = vmatmul.mubr.msk.f32.gmra.mrb[136].mxu0 %vm1640_vm2, %v8449_v42  ;;  %7093 = vmatmul.mubr.msk.f32.gmra.mrb[136].mxu1 %vm1640_vm2, %v8449_v42  ;;  %v7596_v42 = vld [vmem:[%s11161_s3 + $0x20] sm:$0xff] }
 0x1ae   : > { %2427 = vmatprep.mubr.f32.mxu0 %v11168_v5  ;;  %2588 = vmatprep.mubr.f32.mxu1 %v11168_v5 }
 0x1b1   : > { %7078 = vmatmul.mubr.msk.f32.gmra.mrb[138].mxu0 %vm1640_vm2, %v8463_v63  ;;  %7094 = vmatmul.mubr.msk.f32.gmra.mrb[138].mxu1 %vm1640_vm2, %v8463_v63 }
 0x1b2   : > { %2433 = vmatprep.mubr.f32.mxu0 %v11168_v5  ;;  %2594 = vmatprep.mubr.f32.mxu1 %v11168_v5 }
 0x1b5   : > { %7079 = vmatmul.mubr.msk.f32.gmra.mrb[140].mxu0 %vm1640_vm2, %v8479_v15  ;;  %7095 = vmatmul.mubr.msk.f32.gmra.mrb[140].mxu1 %vm1640_vm2, %v8479_v15 }
 0x1b6   : > { %2439 = vmatprep.mubr.f32.mxu0 %v11168_v5  ;;  %2600 = vmatprep.mubr.f32.mxu1 %v11168_v5 }
 0x1b9   : > { %7080 = vmatmul.mubr.msk.f32.gmra.mrb[142].mxu0 %vm1640_vm2, %v8493_v38  ;;  %7096 = vmatmul.mubr.msk.f32.gmra.mrb[142].mxu1 %vm1640_vm2, %v8493_v38 }
 0x1ba   : > { %2445 = vmatprep.mubr.f32.mxu0 %v11168_v5  ;;  %2606 = vmatprep.mubr.f32.mxu1 %v11168_v5 }
 0x1bd   : > { %7081 = vmatmul.mubr.msk.f32.gmra.mrb[144].mxu0 %vm1640_vm2, %v8509_v53  ;;  %7097 = vmatmul.mubr.msk.f32.gmra.mrb[144].mxu1 %vm1640_vm2, %v8509_v53 }
 0x1be   : > { %2451 = vmatprep.mubr.f32.mxu0 %v11168_v5  ;;  %2612 = vmatprep.mubr.f32.mxu1 %v11168_v5 }
 0x1c1   : > { %7082 = vmatmul.mubr.msk.f32.gmra.mrb[146].mxu0 %vm1640_vm2, %v8527_v13  ;;  %7098 = vmatmul.mubr.msk.f32.gmra.mrb[146].mxu1 %vm1640_vm2, %v8527_v13 }
 0x1c2   : > { %2457 = vmatprep.mubr.f32.mxu0 %v11168_v5  ;;  %2618 = vmatprep.mubr.f32.mxu1 %v11168_v5 }
 0x1c5   : > { %7083 = vmatmul.mubr.msk.f32.gmra.mrb[148].mxu0 %vm1640_vm2, %v8543_v32  ;;  %7099 = vmatmul.mubr.msk.f32.gmra.mrb[148].mxu1 %vm1640_vm2, %v8543_v32 }
 0x1c6   : > { %2463 = vmatprep.mubr.f32.mxu0 %v11168_v5  ;;  %2624 = vmatprep.mubr.f32.mxu1 %v11168_v5 }
 0x1c9   : > { %7084 = vmatmul.mubr.msk.f32.gmra.mrb[150].mxu0 %vm1640_vm2, %v8561_v57  ;;  %7100 = vmatmul.mubr.msk.f32.gmra.mrb[150].mxu1 %vm1640_vm2, %v8561_v57 }
 0x1ca   : > { %2469 = vmatprep.mubr.f32.mxu0 %v11168_v5  ;;  %2630 = vmatprep.mubr.f32.mxu1 %v11168_v5 }
 0x1cd   : > { %7085 = vmatmul.mubr.msk.f32.gmra.mrb[152].mxu0 %vm1640_vm2, %v8583_v11  ;;  %7101 = vmatmul.mubr.msk.f32.gmra.mrb[152].mxu1 %vm1640_vm2, %v8583_v11 }
 0x1ce   : > { %2475 = vmatprep.mubr.f32.mxu0 %v11168_v5  ;;  %2636 = vmatprep.mubr.f32.mxu1 %v11168_v5 }
 0x1d1   : > { %7086 = vmatmul.mubr.msk.f32.gmra.mrb[154].mxu0 %vm1640_vm2, %v8599_v39  ;;  %7102 = vmatmul.mubr.msk.f32.gmra.mrb[154].mxu1 %vm1640_vm2, %v8599_v39 }
 0x1d2   : > { %2481 = vmatprep.mubr.f32.mxu0 %v11168_v5  ;;  %2642 = vmatprep.mubr.f32.mxu1 %v11168_v5 }
 0x1d5   : > { %7087 = vmatmul.mubr.msk.f32.gmra.mrb[156].mxu0 %vm1640_vm2, %v8621_v0  ;;  %7103 = vmatmul.mubr.msk.f32.gmra.mrb[156].mxu1 %vm1640_vm2, %v8621_v0 }
 0x1d6   : > { %2487 = vmatprep.mubr.f32.mxu0 %v11168_v5  ;;  %2648 = vmatprep.mubr.f32.mxu1 %v11168_v5 }
 0x1d9   : > { %7088 = vmatmul.mubr.msk.f32.gmra.mrb[158].mxu0 %vm1640_vm2, %v8637_v30  ;;  %7104 = vmatmul.mubr.msk.f32.gmra.mrb[158].mxu1 %vm1640_vm2, %v8637_v30 }
 0x1da   : > { %2719 = vmatprep.mubr.f32.mxu0 %v11168_v5  ;;  %2880 = vmatprep.mubr.f32.mxu1 %v11168_v5 }
 0x1dd   : > { %7105 = vmatmul.mubr.msk.f32.vlgmr.msra.gmra.mrb[160].mxu0 %vm1640_vm2, %v7592_v36  ;;  %7121 = vmatmul.mubr.msk.f32.vlgmr.msra.gmra.mrb[160].mxu1 %vm1640_vm2, %v7592_v36 }
 0x1de   : > { %2725 = vmatprep.mubr.f32.mxu0 %v11168_v5  ;;  %2886 = vmatprep.mubr.f32.mxu1 %v11168_v5 }
 0x1e1   : > { %7106 = vmatmul.mubr.msk.f32.gmra.mrb[162].mxu0 %vm1640_vm2, %v7593_v55  ;;  %7122 = vmatmul.mubr.msk.f32.gmra.mrb[162].mxu1 %vm1640_vm2, %v7593_v55 }
 0x1e2   : > { %2731 = vmatprep.mubr.f32.mxu0 %v11168_v5  ;;  %2892 = vmatprep.mubr.f32.mxu1 %v11168_v5 }
 0x1e5   : > { %7107 = vmatmul.mubr.msk.f32.gmra.mrb[164].mxu0 %vm1640_vm2, %v7594_v6  ;;  %7123 = vmatmul.mubr.msk.f32.gmra.mrb[164].mxu1 %vm1640_vm2, %v7594_v6 }
 0x1e6   : > { %2737 = vmatprep.mubr.f32.mxu0 %v11168_v5  ;;  %2898 = vmatprep.mubr.f32.mxu1 %v11168_v5 }
 0x1e9   : > { %7108 = vmatmul.mubr.msk.f32.gmra.mrb[166].mxu0 %vm1640_vm2, %v7595_v28  ;;  %7124 = vmatmul.mubr.msk.f32.gmra.mrb[166].mxu1 %vm1640_vm2, %v7595_v28 }
 0x1ea   : > { %2743 = vmatprep.mubr.f32.mxu0 %v11168_v5  ;;  %2904 = vmatprep.mubr.f32.mxu1 %v11168_v5 }
 0x1ed   : > { %7109 = vmatmul.mubr.msk.f32.gmra.mrb[168].mxu0 %vm1640_vm2, %v7596_v42  ;;  %7125 = vmatmul.mubr.msk.f32.gmra.mrb[168].mxu1 %vm1640_vm2, %v7596_v42 }
 0x1ee   : > { %2749 = vmatprep.mubr.f32.mxu0 %v11168_v5  ;;  %2910 = vmatprep.mubr.f32.mxu1 %v11168_v5 }
 0x1f0   : > { %v1755_v19 = vpop.f32.mrb[64].mxu0  ;;  %v1916_v21 = vpop.f32.mrb[64].mxu1 }
 0x1f1   : > { %v1757_v40 = vpop.f32.mrb[65].mxu0  ;;  %v1918_v7 = vpop.f32.mrb[65].mxu1  ;;  %7110 = vmatmul.mubr.msk.f32.gmra.mrb[170].mxu0 %vm1640_vm2, %v8463_v63  ;;  %v1756_v20 = vadd.f32 %v1755_v19, %v8965_v12  ;;  %v1917_v8 = vadd.f32 %v1916_v21, %v8965_v12  ;;  %7126 = vmatmul.mubr.msk.f32.gmra.mrb[170].mxu1 %vm1640_vm2, %v8463_v63 }
 0x1f2   : > { %2755 = vmatprep.mubr.f32.mxu0 %v11168_v5  ;;  %v1758_v45 = vadd.f32 %v1757_v40, %v8965_v12  ;;  %v1919_v9 = vadd.f32 %v1918_v7, %v8965_v12  ;;  %2916 = vmatprep.mubr.f32.mxu1 %v11168_v5 }
 0x1f3   : > { %v2977_v52 = vmax.f32 %v1756_v20, 0.0  ;;  %v2979_v22 = vmax.f32 %v1917_v8, 0.0 }
 0x1f4   : > { %v1761_v58 = vpop.f32.mrb[66].mxu0  ;;  %v1922_v46 = vpop.f32.mrb[66].mxu1  ;;  %v2978_v44 = vmax.f32 %v1758_v45, 0.0  ;;  %v2980_v26 = vmax.f32 %v1919_v9, 0.0 }
 0x1f5   : > { %v1762_v47 = vadd.f32 %v1761_v58, %v8969_v17  ;;  %v1923_v59 = vadd.f32 %v1922_v46, %v8969_v17  ;;  %v1763_v23 = vpop.f32.mrb[67].mxu0  ;;  %v1924_v24 = vpop.f32.mrb[67].mxu1  ;;  %7111 = vmatmul.mubr.msk.f32.gmra.mrb[172].mxu0 %vm1640_vm2, %v8479_v15  ;;  %7127 = vmatmul.mubr.msk.f32.gmra.mrb[172].mxu1 %vm1640_vm2, %v8479_v15 }
 0x1f6   : > { %v1764_v50 = vadd.f32 %v1763_v23, %v8969_v17  ;;  %v1925_v63 = vadd.f32 %v1924_v24, %v8969_v17  ;;  %2761 = vmatprep.mubr.f32.mxu0 %v11168_v5  ;;  %2922 = vmatprep.mubr.f32.mxu1 %v11168_v5  ;;  %v9013_v9 = vpop.permute.xlu0 %1582  ;;  %v9017_v46 = vpop.permute.xlu1 %1587 }
 0x1f7   : > { %v2993_v29 = vmax.f32 %v1762_v47, 0.0  ;;  %v2995_v60 = vmax.f32 %v1923_v59, 0.0 }
 0x1f8   : > { %v2994_v61 = vmax.f32 %v1764_v50, 0.0  ;;  %v2996_v62 = vmax.f32 %v1925_v63, 0.0  ;;  %v1767_v1 = vpop.f32.mrb[68].mxu0  ;;  %v1928_v2 = vpop.f32.mrb[68].mxu1 }
 0x1f9   : > { %v7271_v48 = vpack.c.bf16 %v2993_v29, %v2977_v52  ;;  %v7303_v3 = vpack.c.bf16 %v2995_v60, %v2979_v22  ;;  %v1769_v49 = vpop.f32.mrb[69].mxu0  ;;  %v1930_v4 = vpop.f32.mrb[69].mxu1  ;;  %7112 = vmatmul.mubr.msk.f32.gmra.mrb[174].mxu0 %vm1640_vm2, %v8493_v38  ;;  %v1768_v14 = vadd.f32 %v1767_v1, %v8989_v56  ;;  %v1929_v51 = vadd.f32 %v1928_v2, %v8989_v56 }
 0x1fa   : > { %v7269_v15 = vpack.c.bf16 %v2994_v61, %v2978_v44  ;;  %v7301_v41 = vpack.c.bf16 %v2996_v62, %v2980_v26  ;;  %7128 = vmatmul.mubr.msk.f32.gmra.mrb[174].mxu1 %vm1640_vm2, %v8493_v38  ;;  %2767 = vmatprep.mubr.f32.mxu0 %v11168_v5  ;;  %v1770_v16 = vadd.f32 %v1769_v49, %v8989_v56 }
 0x1fb   : > { %v1931_v18 = vadd.f32 %v1930_v4, %v8989_v56  ;;  %2928 = vmatprep.mubr.f32.mxu1 %v11168_v5  ;;  %v3009_v54 = vmax.f32 %v1768_v14, 0.0  ;;  %v3011_v43 = vmax.f32 %v1929_v51, 0.0 }
 0x1fc   : > { %v1773_v33 = vpop.f32.mrb[70].mxu0  ;;  %v1934_v34 = vpop.f32.mrb[70].mxu1  ;;  %7270 = vmatprep.subr.bf16.mxu0 %v7269_v15  ;;  %7302 = vmatprep.subr.bf16.mxu1 %v7301_v41  ;;  %v3010_v6 = vmax.f32 %v1770_v16, 0.0 }
 0x1fd   : > { %v1774_v27 = vadd.f32 %v1773_v33, %v8993_v10  ;;  %v1935_v25 = vadd.f32 %v1934_v34, %v8993_v10  ;;  %v1775_v37 = vpop.f32.mrb[71].mxu0  ;;  %v1936_v31 = vpop.f32.mrb[71].mxu1  ;;  %7272 = vmatpush1.bf16.msra.mxu0 %v7271_v48  ;;  %7304 = vmatpush1.bf16.msra.mxu1 %v7303_v3  ;;  %v3012_v28 = vmax.f32 %v1931_v18, 0.0 }
 0x1fe   : > { %v1776_v38 = vadd.f32 %v1775_v37, %v8993_v10  ;;  %v1937_v35 = vadd.f32 %v1936_v31, %v8993_v10  ;;  %7113 = vmatmul.mubr.msk.f32.gmra.mrb[176].mxu0 %vm1640_vm2, %v8509_v53  ;;  %7129 = vmatmul.mubr.msk.f32.gmra.mrb[176].mxu1 %vm1640_vm2, %v8509_v53  ;;  %v9037_v18 = vpop.permute.xlu0 %1592  ;;  %v9041_v34 = vpop.permute.xlu1 %1597 }
 0x1ff   : > { %v3025_v36 = vmax.f32 %v1774_v27, 0.0  ;;  %v3027_v55 = vmax.f32 %v1935_v25, 0.0  ;;  %2773 = vmatprep.mubr.f32.mxu0 %v11168_v5  ;;  %2934 = vmatprep.mubr.f32.mxu1 %v11168_v5 }
 0x200   : > { %v3026_v42 = vmax.f32 %v1776_v38, 0.0  ;;  %v3028_v19 = vmax.f32 %v1937_v35, 0.0  ;;  %v1779_v21 = vpop.f32.mrb[72].mxu0  ;;  %v1940_v40 = vpop.f32.mrb[72].mxu1 }
 0x201   : > { %v7275_v7 = vpack.c.bf16 %v3025_v36, %v3009_v54  ;;  %v7307_v20 = vpack.c.bf16 %v3027_v55, %v3011_v43  ;;  %v1781_v8 = vpop.f32.mrb[73].mxu0  ;;  %v1942_v45 = vpop.f32.mrb[73].mxu1  ;;  %v1780_v47 = vadd.f32 %v1779_v21, %v9013_v9  ;;  %v1941_v59 = vadd.f32 %v1940_v40, %v9013_v9 }
 0x202   : > { %7114 = vmatmul.mubr.msk.f32.gmra.mrb[178].mxu0 %vm1640_vm2, %v8527_v13  ;;  %v7273_v53 = vpack.c.bf16 %v3026_v42, %v3010_v6  ;;  %v7305_v58 = vpack.c.bf16 %v3028_v19, %v3012_v28  ;;  %7130 = vmatmul.mubr.msk.f32.gmra.mrb[178].mxu1 %vm1640_vm2, %v8527_v13  ;;  %v1782_v23 = vadd.f32 %v1781_v8, %v9013_v9 }
 0x203   : > { %2779 = vmatprep.mubr.f32.mxu0 %v11168_v5  ;;  %v1943_v24 = vadd.f32 %v1942_v45, %v9013_v9  ;;  %2940 = vmatprep.mubr.f32.mxu1 %v11168_v5  ;;  %v3041_v26 = vmax.f32 %v1780_v47, 0.0  ;;  %v3043_v61 = vmax.f32 %v1941_v59, 0.0 }
 0x204   : > { %v1785_v50 = vpop.f32.mrb[74].mxu0  ;;  %v1946_v63 = vpop.f32.mrb[74].mxu1  ;;  %7274 = vmatprep.subr.bf16.mxu0 %v7273_v53  ;;  %7306 = vmatprep.subr.bf16.mxu1 %v7305_v58  ;;  %v3042_v2 = vmax.f32 %v1782_v23, 0.0 }
 0x205   : > { %v1786_v52 = vadd.f32 %v1785_v50, %v9017_v46  ;;  %v1947_v22 = vadd.f32 %v1946_v63, %v9017_v46  ;;  %v1787_v29 = vpop.f32.mrb[75].mxu0  ;;  %v1948_v60 = vpop.f32.mrb[75].mxu1  ;;  %7276 = vmatpush1.bf16.msra.mxu0 %v7275_v7  ;;  %7308 = vmatpush1.bf16.msra.mxu1 %v7307_v20  ;;  %v3044_v48 = vmax.f32 %v1943_v24, 0.0 }
 0x206   : > { %v1788_v13 = vadd.f32 %v1787_v29, %v9017_v46  ;;  %v1949_v44 = vadd.f32 %v1948_v60, %v9017_v46  ;;  %7115 = vmatmul.mubr.msk.f32.gmra.mrb[180].mxu0 %vm1640_vm2, %v8543_v32  ;;  %7131 = vmatmul.mubr.msk.f32.gmra.mrb[180].mxu1 %vm1640_vm2, %v8543_v32  ;;  %v9061_v24 = vpop.permute.xlu0 %1602  ;;  %v9065_v63 = vpop.permute.xlu1 %1607 }
 0x207   : > { %v3057_v62 = vmax.f32 %v1786_v52, 0.0  ;;  %v3059_v1 = vmax.f32 %v1947_v22, 0.0  ;;  %2785 = vmatprep.mubr.f32.mxu0 %v11168_v5  ;;  %2946 = vmatprep.mubr.f32.mxu1 %v11168_v5 }
 0x208   : > { %v3058_v3 = vmax.f32 %v1788_v13, 0.0  ;;  %v3060_v49 = vmax.f32 %v1949_v44, 0.0  ;;  %v1791_v4 = vpop.f32.mrb[76].mxu0  ;;  %v1952_v15 = vpop.f32.mrb[76].mxu1 }
 0x209   : > { %v7279_v41 = vpack.c.bf16 %v3057_v62, %v3041_v26  ;;  %v7311_v14 = vpack.c.bf16 %v3059_v1, %v3043_v61  ;;  %v1793_v51 = vpop.f32.mrb[77].mxu0  ;;  %v1954_v16 = vpop.f32.mrb[77].mxu1  ;;  %v1792_v27 = vadd.f32 %v1791_v4, %v9037_v18  ;;  %v1953_v25 = vadd.f32 %v1952_v15, %v9037_v18 }
 0x20a   : > { %7116 = vmatmul.mubr.msk.f32.gmra.mrb[182].mxu0 %vm1640_vm2, %v8561_v57  ;;  %v7277_v32 = vpack.c.bf16 %v3058_v3, %v3042_v2  ;;  %v7309_v33 = vpack.c.bf16 %v3060_v49, %v3044_v48  ;;  %7132 = vmatmul.mubr.msk.f32.gmra.mrb[182].mxu1 %vm1640_vm2, %v8561_v57  ;;  %v1794_v37 = vadd.f32 %v1793_v51, %v9037_v18 }
 0x20b   : > { %2791 = vmatprep.mubr.f32.mxu0 %v11168_v5  ;;  %v1955_v31 = vadd.f32 %v1954_v16, %v9037_v18  ;;  %2952 = vmatprep.mubr.f32.mxu1 %v11168_v5  ;;  %v3073_v28 = vmax.f32 %v1792_v27, 0.0  ;;  %v3075_v42 = vmax.f32 %v1953_v25, 0.0 }
 0x20c   : > { %v1797_v38 = vpop.f32.mrb[78].mxu0  ;;  %v1958_v35 = vpop.f32.mrb[78].mxu1  ;;  %7278 = vmatprep.subr.bf16.mxu0 %v7277_v32  ;;  %7310 = vmatprep.subr.bf16.mxu1 %v7309_v33  ;;  %v3074_v40 = vmax.f32 %v1794_v37, 0.0 }
 0x20d   : > { %v1798_v54 = vadd.f32 %v1797_v38, %v9041_v34  ;;  %v1959_v43 = vadd.f32 %v1958_v35, %v9041_v34  ;;  %v1799_v36 = vpop.f32.mrb[79].mxu0  ;;  %v1960_v55 = vpop.f32.mrb[79].mxu1  ;;  %7280 = vmatpush1.bf16.msra.mxu0 %v7279_v41  ;;  %7312 = vmatpush1.bf16.msra.mxu1 %v7311_v14  ;;  %v3076_v7 = vmax.f32 %v1955_v31, 0.0 }
 0x20e   : > { %v1800_v57 = vadd.f32 %v1799_v36, %v9041_v34  ;;  %v1961_v6 = vadd.f32 %v1960_v55, %v9041_v34  ;;  %7117 = vmatmul.mubr.msk.f32.gmra.mrb[184].mxu0 %vm1640_vm2, %v8583_v11  ;;  %7133 = vmatmul.mubr.msk.f32.gmra.mrb[184].mxu1 %vm1640_vm2, %v8583_v11  ;;  %v9085_v31 = vpop.permute.xlu0 %1612  ;;  %v9089_v35 = vpop.permute.xlu1 %1617 }
 0x20f   : > { %v3089_v19 = vmax.f32 %v1798_v54, 0.0  ;;  %v3091_v21 = vmax.f32 %v1959_v43, 0.0  ;;  %2797 = vmatprep.mubr.f32.mxu0 %v11168_v5  ;;  %2958 = vmatprep.mubr.f32.mxu1 %v11168_v5 }
 0x210   : > { %v3090_v20 = vmax.f32 %v1800_v57, 0.0  ;;  %v3092_v8 = vmax.f32 %v1961_v6, 0.0  ;;  %v1803_v45 = vpop.f32.mrb[80].mxu0  ;;  %v1964_v53 = vpop.f32.mrb[80].mxu1 }
 0x211   : > { %v7283_v58 = vpack.c.bf16 %v3089_v19, %v3073_v28  ;;  %v7315_v47 = vpack.c.bf16 %v3091_v21, %v3075_v42  ;;  %v1805_v59 = vpop.f32.mrb[81].mxu0  ;;  %v1966_v23 = vpop.f32.mrb[81].mxu1  ;;  %v1804_v52 = vadd.f32 %v1803_v45, %v9061_v24  ;;  %v1965_v22 = vadd.f32 %v1964_v53, %v9061_v24 }
 0x212   : > { %7118 = vmatmul.mubr.msk.f32.gmra.mrb[186].mxu0 %vm1640_vm2, %v8599_v39  ;;  %v7281_v11 = vpack.c.bf16 %v3090_v20, %v3074_v40  ;;  %v7313_v50 = vpack.c.bf16 %v3092_v8, %v3076_v7  ;;  %7134 = vmatmul.mubr.msk.f32.gmra.mrb[186].mxu1 %vm1640_vm2, %v8599_v39  ;;  %v1806_v29 = vadd.f32 %v1805_v59, %v9061_v24 }
 0x213   : > { %2803 = vmatprep.mubr.f32.mxu0 %v11168_v5  ;;  %v1967_v60 = vadd.f32 %v1966_v23, %v9061_v24  ;;  %2964 = vmatprep.mubr.f32.mxu1 %v11168_v5  ;;  %v3105_v48 = vmax.f32 %v1804_v52, 0.0  ;;  %v3107_v3 = vmax.f32 %v1965_v22, 0.0 }
 0x214   : > { %v1809_v13 = vpop.f32.mrb[82].mxu0  ;;  %v1970_v44 = vpop.f32.mrb[82].mxu1  ;;  %7282 = vmatprep.subr.bf16.mxu0 %v7281_v11  ;;  %7314 = vmatprep.subr.bf16.mxu1 %v7313_v50  ;;  %v3106_v15 = vmax.f32 %v1806_v29, 0.0 }
 0x215   : > { %v1810_v26 = vadd.f32 %v1809_v13, %v9065_v63  ;;  %v1971_v61 = vadd.f32 %v1970_v44, %v9065_v63  ;;  %v1811_v62 = vpop.f32.mrb[83].mxu0  ;;  %v1972_v1 = vpop.f32.mrb[83].mxu1  ;;  %7284 = vmatpush1.bf16.msra.mxu0 %v7283_v58  ;;  %7316 = vmatpush1.bf16.msra.mxu1 %v7315_v47  ;;  %v3108_v41 = vmax.f32 %v1967_v60, 0.0 }
 0x216   : > { %v1812_v39 = vadd.f32 %v1811_v62, %v9065_v63  ;;  %v1973_v2 = vadd.f32 %v1972_v1, %v9065_v63  ;;  %7119 = vmatmul.mubr.msk.f32.gmra.mrb[188].mxu0 %vm1640_vm2, %v8621_v0  ;;  %7135 = vmatmul.mubr.msk.f32.gmra.mrb[188].mxu1 %vm1640_vm2, %v8621_v0  ;;  %v9103_v60 = vpop.permute.xlu0 %1622 }
 0x217   : > { %v3121_v49 = vmax.f32 %v1810_v26, 0.0  ;;  %v3123_v4 = vmax.f32 %v1971_v61, 0.0  ;;  %2809 = vmatprep.mubr.f32.mxu0 %v11168_v5  ;;  %2970 = vmatprep.mubr.f32.mxu1 %v11168_v5  ;;  %v9105_v26 = vpop.permute.xlu1 %1627 }
 0x218   : > { %v3122_v14 = vmax.f32 %v1812_v39, 0.0  ;;  %v3124_v51 = vmax.f32 %v1973_v2, 0.0  ;;  %v1815_v16 = vpop.f32.mrb[84].mxu0  ;;  %v1976_v32 = vpop.f32.mrb[84].mxu1 }
 0x219   : > { %v7287_v33 = vpack.c.bf16 %v3121_v49, %v3105_v48  ;;  %v7319_v27 = vpack.c.bf16 %v3123_v4, %v3107_v3  ;;  %v1817_v25 = vpop.f32.mrb[85].mxu0  ;;  %v1978_v37 = vpop.f32.mrb[85].mxu1  ;;  %v1816_v54 = vadd.f32 %v1815_v16, %v9085_v31  ;;  %v1977_v43 = vadd.f32 %v1976_v32, %v9085_v31 }
 0x21a   : > { %7120 = vmatmul.mubr.msk.f32.gmra.mrb[190].mxu0 %vm1640_vm2, %v8637_v30  ;;  %v7285_v0 = vpack.c.bf16 %v3122_v14, %v3106_v15  ;;  %v7317_v38 = vpack.c.bf16 %v3124_v51, %v3108_v41  ;;  %7136 = vmatmul.mubr.msk.f32.gmra.mrb[190].mxu1 %vm1640_vm2, %v8637_v30  ;;  %v1818_v36 = vadd.f32 %v1817_v25, %v9085_v31 }
 0x21b   : > { %3521 = vmatprep.mubr.f32.mxu0 %v11168_v5  ;;  %v1979_v55 = vadd.f32 %v1978_v37, %v9085_v31  ;;  %3778 = vmatprep.mubr.f32.mxu1 %v11168_v5  ;;  %v3137_v7 = vmax.f32 %v1816_v54, 0.0  ;;  %v3139_v20 = vmax.f32 %v1977_v43, 0.0 }
 0x21c   : > { %v1821_v57 = vpop.f32.mrb[86].mxu0  ;;  %v1982_v6 = vpop.f32.mrb[86].mxu1  ;;  %7286 = vmatprep.subr.bf16.mxu0 %v7285_v0  ;;  %7318 = vmatprep.subr.bf16.mxu1 %v7317_v38  ;;  %v3138_v53 = vmax.f32 %v1818_v36, 0.0 }
 0x21d   : > { %v1822_v28 = vadd.f32 %v1821_v57, %v9089_v35  ;;  %v1983_v42 = vadd.f32 %v1982_v6, %v9089_v35  ;;  %v1823_v19 = vpop.f32.mrb[87].mxu0  ;;  %v1984_v21 = vpop.f32.mrb[87].mxu1  ;;  %7288 = vmatpush1.bf16.msra.mxu0 %v7287_v33  ;;  %7320 = vmatpush1.bf16.msra.mxu1 %v7319_v27  ;;  %v3140_v58 = vmax.f32 %v1979_v55, 0.0 }
 0x21e   : > { %v1824_v30 = vadd.f32 %v1823_v19, %v9089_v35  ;;  %v1985_v40 = vadd.f32 %v1984_v21, %v9089_v35  ;;  %v9115_v6 = vpop.permute.xlu0 %1632  ;;  %v9117_v19 = vpop.permute.xlu1 %1637 }
 0x21f   : > { %v3153_v8 = vmax.f32 %v1822_v28, 0.0  ;;  %v3155_v45 = vmax.f32 %v1983_v42, 0.0 }
 0x220   : > { %v3154_v47 = vmax.f32 %v1824_v30, 0.0  ;;  %v3156_v59 = vmax.f32 %v1985_v40, 0.0  ;;  %v1827_v23 = vpop.f32.mrb[88].mxu0  ;;  %v1988_v11 = vpop.f32.mrb[88].mxu1 }
 0x221   : > { %v7291_v50 = vpack.c.bf16 %v3153_v8, %v3137_v7  ;;  %v7323_v52 = vpack.c.bf16 %v3155_v45, %v3139_v20  ;;  %v1829_v22 = vpop.f32.mrb[89].mxu0  ;;  %v1990_v29 = vpop.f32.mrb[89].mxu1  ;;  %v1828_v61 = vadd.f32 %v1827_v23, %v9103_v60  ;;  %v1989_v62 = vadd.f32 %v1988_v11, %v9103_v60 }
 0x222   : > { %v7289_v13 = vpack.c.bf16 %v3154_v47, %v3138_v53  ;;  %v7321_v44 = vpack.c.bf16 %v3156_v59, %v3140_v58  ;;  %v1830_v1 = vadd.f32 %v1829_v22, %v9103_v60  ;;  %v1991_v39 = vadd.f32 %v1990_v29, %v9103_v60 }
 0x223   : > { %v3169_v51 = vmax.f32 %v1828_v61, 0.0  ;;  %v3171_v16 = vmax.f32 %v1989_v62, 0.0 }
 0x224   : > { %v1833_v2 = vpop.f32.mrb[90].mxu0  ;;  %v1994_v48 = vpop.f32.mrb[90].mxu1  ;;  %7290 = vmatprep.subr.bf16.mxu0 %v7289_v13  ;;  %7322 = vmatprep.subr.bf16.mxu1 %v7321_v44  ;;  %v3170_v27 = vmax.f32 %v1830_v1, 0.0  ;;  %v3172_v25 = vmax.f32 %v1991_v39, 0.0 }
 0x225   : > { %v1834_v3 = vadd.f32 %v1833_v2, %v9105_v26  ;;  %v1995_v49 = vadd.f32 %v1994_v48, %v9105_v26  ;;  %v1835_v4 = vpop.f32.mrb[91].mxu0  ;;  %v1996_v15 = vpop.f32.mrb[91].mxu1  ;;  %7292 = vmatpush1.bf16.msra.mxu0 %v7291_v50  ;;  %7324 = vmatpush1.bf16.msra.mxu1 %v7323_v52 }
 0x226   : > { %v1836_v41 = vadd.f32 %v1835_v4, %v9105_v26  ;;  %v1997_v14 = vadd.f32 %v1996_v15, %v9105_v26 }
 0x227   : > { %v3185_v32 = vmax.f32 %v1834_v3, 0.0  ;;  %v3187_v33 = vmax.f32 %v1995_v49, 0.0 }
 0x228   : > { %v3186_v37 = vmax.f32 %v1836_v41, 0.0  ;;  %v3188_v0 = vmax.f32 %v1997_v14, 0.0  ;;  %v1839_v38 = vpop.f32.mrb[92].mxu0  ;;  %v2000_v54 = vpop.f32.mrb[92].mxu1 }
 0x229   : > { %v7295_v43 = vpack.c.bf16 %v3185_v32, %v3169_v51  ;;  %v7327_v36 = vpack.c.bf16 %v3187_v33, %v3171_v16  ;;  %v1841_v55 = vpop.f32.mrb[93].mxu0  ;;  %v2002_v57 = vpop.f32.mrb[93].mxu1  ;;  %v1840_v21 = vadd.f32 %v1839_v38, %v9115_v6  ;;  %v2001_v30 = vadd.f32 %v2000_v54, %v9115_v6 }
 0x22a   : > { %v7293_v28 = vpack.c.bf16 %v3186_v37, %v3170_v27  ;;  %v7325_v42 = vpack.c.bf16 %v3188_v0, %v3172_v25  ;;  %v1842_v40 = vadd.f32 %v1841_v55, %v9115_v6  ;;  %v2003_v7 = vadd.f32 %v2002_v57, %v9115_v6  ;;  %v3233_v25 = vld [vmem:[%s11163_s5] sm:$0xff] }
 0x22b   : > { %v3201_v11 = vmax.f32 %v1840_v21, 0.0  ;;  %v3203_v50 = vmax.f32 %v2001_v30, 0.0 }
 0x22c   : > { %v1845_v20 = vpop.f32.mrb[94].mxu0  ;;  %v2006_v8 = vpop.f32.mrb[94].mxu1  ;;  %7294 = vmatprep.subr.bf16.mxu0 %v7293_v28  ;;  %7326 = vmatprep.subr.bf16.mxu1 %v7325_v42  ;;  %v3202_v29 = vmax.f32 %v1842_v40, 0.0  ;;  %v3204_v13 = vmax.f32 %v2003_v7, 0.0 }
 0x22d   : > { %v1846_v45 = vadd.f32 %v1845_v20, %v9117_v19  ;;  %v2007_v53 = vadd.f32 %v2006_v8, %v9117_v19  ;;  %v1847_v58 = vpop.f32.mrb[95].mxu0  ;;  %v2008_v47 = vpop.f32.mrb[95].mxu1  ;;  %7296 = vmatpush1.bf16.msra.mxu0 %v7295_v43  ;;  %7328 = vmatpush1.bf16.msra.mxu1 %v7327_v36 }
 0x22e   : > { %v1848_v59 = vadd.f32 %v1847_v58, %v9117_v19  ;;  %v2009_v23 = vadd.f32 %v2008_v47, %v9117_v19 }
 0x22f   : > { %v3217_v52 = vmax.f32 %v1846_v45, 0.0  ;;  %v3219_v22 = vmax.f32 %v2007_v53, 0.0  ;;  %v3234_v45 = vld [vmem:[%s11163_s5 + $0x8] sm:$0xff] }
 0x230   : > { %v3218_v44 = vmax.f32 %v1848_v59, 0.0  ;;  %v3220_v61 = vmax.f32 %v2009_v23, 0.0  ;;  %v2077_v62 = vpop.f32.mrb[96].mxu0  ;;  %v2238_v1 = vpop.f32.mrb[96].mxu1 }
 0x231   : > { %v7299_v39 = vpack.c.bf16 %v3217_v52, %v3201_v11  ;;  %v7331_v2 = vpack.c.bf16 %v3219_v22, %v3203_v50  ;;  %v2079_v48 = vpop.f32.mrb[97].mxu0  ;;  %v2240_v3 = vpop.f32.mrb[97].mxu1  ;;  %v2078_v15 = vadd.f32 %v2077_v62, %v8965_v12  ;;  %v2239_v41 = vadd.f32 %v2238_v1, %v8965_v12 }
 0x232   : > { %v7297_v49 = vpack.c.bf16 %v3218_v44, %v3202_v29  ;;  %v7329_v4 = vpack.c.bf16 %v3220_v61, %v3204_v13  ;;  %v2080_v14 = vadd.f32 %v2079_v48, %v8965_v12  ;;  %v2241_v16 = vadd.f32 %v2240_v3, %v8965_v12  ;;  %v3235_v13 = vld [vmem:[%s11163_s5 + $0x10] sm:$0xff] }
 0x233   : > { %v2981_v54 = vmax.f32 %v2078_v15, 0.0  ;;  %v2983_v55 = vmax.f32 %v2239_v41, 0.0 }
 0x234   : > { %v2083_v51 = vpop.f32.mrb[98].mxu0  ;;  %7298 = vmatprep.subr.bf16.mxu0 %v7297_v49  ;;  %7330 = vmatprep.subr.bf16.mxu1 %v7329_v4  ;;  %v2244_v33 = vpop.f32.mrb[98].mxu1  ;;  %v2982_v57 = vmax.f32 %v2080_v14, 0.0  ;;  %v2984_v30 = vmax.f32 %v2241_v16, 0.0 }
 0x235   : > { %v2084_v32 = vadd.f32 %v2083_v51, %v8969_v17  ;;  %v2085_v27 = vpop.f32.mrb[99].mxu0  ;;  %7300 = vmatpush1.bf16.msra.mxu0 %v7299_v39  ;;  %7332 = vmatpush1.bf16.msra.mxu1 %v7331_v2  ;;  %v2245_v37 = vadd.f32 %v2244_v33, %v8969_v17  ;;  %v2246_v38 = vpop.f32.mrb[99].mxu1 }
 0x236   : > { %v2086_v0 = vadd.f32 %v2085_v27, %v8969_v17  ;;  %v2247_v36 = vadd.f32 %v2246_v38, %v8969_v17 }
 0x237   : > { %v2997_v43 = vmax.f32 %v2084_v32, 0.0  ;;  %v2999_v28 = vmax.f32 %v2245_v37, 0.0  ;;  %v3236_v32 = vld [vmem:[%s11163_s5 + $0x18] sm:$0xff] }
 0x238   : > { %v2998_v42 = vmax.f32 %v2086_v0, 0.0  ;;  %v2089_v21 = vpop.f32.mrb[100].mxu0  ;;  %3522 = vmatmul.mubr.f32.vlgmr.msra.gmra.mrb[192].mxu0 %v3233_v25  ;;  %3779 = vmatmul.mubr.f32.vlgmr.msra.gmra.mrb[192].mxu1 %v3233_v25  ;;  %v3000_v7 = vmax.f32 %v2247_v36, 0.0  ;;  %v2250_v20 = vpop.f32.mrb[100].mxu1 }
 0x239   : > { %v7335_v40 = vpack.c.bf16 %v2997_v43, %v2981_v54  ;;  %v2091_v8 = vpop.f32.mrb[101].mxu0  ;;  %3527 = vmatprep.mubr.f32.mxu0 %v11168_v5  ;;  %3784 = vmatprep.mubr.f32.mxu1 %v11168_v5  ;;  %v7367_v53 = vpack.c.bf16 %v2999_v28, %v2983_v55  ;;  %v2252_v58 = vpop.f32.mrb[101].mxu1  ;;  %v2090_v23 = vadd.f32 %v2089_v21, %v8989_v56  ;;  %v3237_v28 = vld [vmem:[%s11163_s5 + $0x20] sm:$0xff] }
 0x23a   : > { %v7333_v47 = vpack.c.bf16 %v2998_v42, %v2982_v57  ;;  %v7365_v59 = vpack.c.bf16 %v3000_v7, %v2984_v30  ;;  %v2251_v11 = vadd.f32 %v2250_v20, %v8989_v56  ;;  %v2092_v50 = vadd.f32 %v2091_v8, %v8989_v56 }
 0x23b   : > { %v2253_v52 = vadd.f32 %v2252_v58, %v8989_v56  ;;  %v3013_v48 = vmax.f32 %v2090_v23, 0.0 }
 0x23c   : > { %3528 = vmatmul.mubr.f32.gmra.mrb[194].mxu0 %v3234_v45  ;;  %3785 = vmatmul.mubr.f32.gmra.mrb[194].mxu1 %v3234_v45  ;;  %v2095_v22 = vpop.f32.mrb[102].mxu0  ;;  %v2256_v29 = vpop.f32.mrb[102].mxu1  ;;  %v3015_v3 = vmax.f32 %v2251_v11, 0.0  ;;  %v3014_v15 = vmax.f32 %v2092_v50, 0.0 }
 0x23d   : > { %7334 = vmatprep.subr.bf16.mxu0 %v7333_v47  ;;  %7366 = vmatprep.subr.bf16.mxu1 %v7365_v59  ;;  %v2096_v44 = vadd.f32 %v2095_v22, %v8993_v10  ;;  %v2257_v61 = vadd.f32 %v2256_v29, %v8993_v10  ;;  %v2097_v62 = vpop.f32.mrb[103].mxu0  ;;  %v2258_v1 = vpop.f32.mrb[103].mxu1  ;;  %v3016_v41 = vmax.f32 %v2253_v52, 0.0  ;;  %v3238_v52 = vld [vmem:[%s11163_s5 + $0x28] sm:$0xff] }
 0x23e   : > { %7336 = vmatpush1.bf16.msra.mxu0 %v7335_v40  ;;  %7368 = vmatpush1.bf16.msra.mxu1 %v7367_v53  ;;  %v2098_v39 = vadd.f32 %v2097_v62, %v8993_v10  ;;  %v2259_v2 = vadd.f32 %v2258_v1, %v8993_v10 }
 0x23f   : > { %3533 = vmatprep.mubr.f32.mxu0 %v11168_v5  ;;  %3790 = vmatprep.mubr.f32.mxu1 %v11168_v5  ;;  %v3029_v49 = vmax.f32 %v2096_v44, 0.0  ;;  %v3031_v4 = vmax.f32 %v2257_v61, 0.0 }
 0x240   : > { %3534 = vmatmul.mubr.f32.gmra.mrb[196].mxu0 %v3235_v13  ;;  %3791 = vmatmul.mubr.f32.gmra.mrb[196].mxu1 %v3235_v13  ;;  %v3030_v14 = vmax.f32 %v2098_v39, 0.0  ;;  %v3032_v51 = vmax.f32 %v2259_v2, 0.0  ;;  %v2101_v16 = vpop.f32.mrb[104].mxu0  ;;  %v2262_v25 = vpop.f32.mrb[104].mxu1 }
 0x241   : > { %3539 = vmatprep.mubr.f32.mxu0 %v11168_v5  ;;  %3796 = vmatprep.mubr.f32.mxu1 %v11168_v5  ;;  %v7339_v33 = vpack.c.bf16 %v3029_v49, %v3013_v48  ;;  %v7371_v27 = vpack.c.bf16 %v3031_v4, %v3015_v3  ;;  %v2103_v37 = vpop.f32.mrb[105].mxu0  ;;  %v2264_v0 = vpop.f32.mrb[105].mxu1  ;;  %v2102_v43 = vadd.f32 %v2101_v16, %v9013_v9 }
 0x242   : > { %v7337_v38 = vpack.c.bf16 %v3030_v14, %v3014_v15  ;;  %v7369_v54 = vpack.c.bf16 %v3032_v51, %v3016_v41  ;;  %v2263_v36 = vadd.f32 %v2262_v25, %v9013_v9  ;;  %v2104_v55 = vadd.f32 %v2103_v37, %v9013_v9  ;;  %v3239_v15 = vld [vmem:[%s11163_s5 + $0x30] sm:$0xff] }
 0x243   : > { %v2265_v42 = vadd.f32 %v2264_v0, %v9013_v9  ;;  %v3045_v45 = vmax.f32 %v2102_v43, 0.0 }
 0x244   : > { %3540 = vmatmul.mubr.f32.gmra.mrb[198].mxu0 %v3236_v32  ;;  %3797 = vmatmul.mubr.f32.gmra.mrb[198].mxu1 %v3236_v32  ;;  %v2107_v57 = vpop.f32.mrb[106].mxu0  ;;  %v2268_v30 = vpop.f32.mrb[106].mxu1  ;;  %v3047_v47 = vmax.f32 %v2263_v36, 0.0  ;;  %v3046_v59 = vmax.f32 %v2104_v55, 0.0 }
 0x245   : > { %7338 = vmatprep.subr.bf16.mxu0 %v7337_v38  ;;  %7370 = vmatprep.subr.bf16.mxu1 %v7369_v54  ;;  %v2108_v21 = vadd.f32 %v2107_v57, %v9017_v46  ;;  %v2109_v40 = vpop.f32.mrb[107].mxu0  ;;  %v2269_v7 = vadd.f32 %v2268_v30, %v9017_v46  ;;  %v2270_v8 = vpop.f32.mrb[107].mxu1  ;;  %v3048_v22 = vmax.f32 %v2265_v42, 0.0  ;;  %v3240_v57 = vld [vmem:[%s11163_s5 + $0x38] sm:$0xff] }
 0x246   : > { %7340 = vmatpush1.bf16.msra.mxu0 %v7339_v33  ;;  %7372 = vmatpush1.bf16.msra.mxu1 %v7371_v27  ;;  %v2110_v20 = vadd.f32 %v2109_v40, %v9017_v46  ;;  %v2271_v58 = vadd.f32 %v2270_v8, %v9017_v46 }
 0x247   : > { %3545 = vmatprep.mubr.f32.mxu0 %v11168_v5  ;;  %3802 = vmatprep.mubr.f32.mxu1 %v11168_v5  ;;  %v3061_v53 = vmax.f32 %v2108_v21, 0.0  ;;  %v3063_v23 = vmax.f32 %v2269_v7, 0.0 }
 0x248   : > { %3546 = vmatmul.mubr.f32.gmra.mrb[200].mxu0 %v3237_v28  ;;  %3803 = vmatmul.mubr.f32.gmra.mrb[200].mxu1 %v3237_v28  ;;  %v3062_v11 = vmax.f32 %v2110_v20, 0.0  ;;  %v2113_v50 = vpop.f32.mrb[108].mxu0  ;;  %v3064_v13 = vmax.f32 %v2271_v58, 0.0  ;;  %v2274_v44 = vpop.f32.mrb[108].mxu1 }
 0x249   : > { %3551 = vmatprep.mubr.f32.mxu0 %v11168_v5  ;;  %3808 = vmatprep.mubr.f32.mxu1 %v11168_v5  ;;  %v7343_v29 = vpack.c.bf16 %v3061_v53, %v3045_v45  ;;  %v2115_v61 = vpop.f32.mrb[109].mxu0  ;;  %v7375_v62 = vpack.c.bf16 %v3063_v23, %v3047_v47  ;;  %v2276_v1 = vpop.f32.mrb[109].mxu1  ;;  %v2114_v2 = vadd.f32 %v2113_v50, %v9037_v18  ;;  %v3241_v23 = vld [vmem:[%s11163_s5 + $0x40] sm:$0xff] }
 0x24a   : > { %v7341_v39 = vpack.c.bf16 %v3062_v11, %v3046_v59  ;;  %v7373_v48 = vpack.c.bf16 %v3064_v13, %v3048_v22  ;;  %v2275_v3 = vadd.f32 %v2274_v44, %v9037_v18  ;;  %v2116_v49 = vadd.f32 %v2115_v61, %v9037_v18 }
 0x24b   : > { %v2277_v41 = vadd.f32 %v2276_v1, %v9037_v18  ;;  %v3077_v25 = vmax.f32 %v2114_v2, 0.0 }
 0x24c   : > { %3552 = vmatmul.mubr.f32.gmra.mrb[202].mxu0 %v3238_v52  ;;  %3809 = vmatmul.mubr.f32.gmra.mrb[202].mxu1 %v3238_v52  ;;  %v2119_v4 = vpop.f32.mrb[110].mxu0  ;;  %v2280_v51 = vpop.f32.mrb[110].mxu1  ;;  %v3079_v38 = vmax.f32 %v2275_v3, 0.0  ;;  %v3078_v54 = vmax.f32 %v2116_v49, 0.0 }
 0x24d   : > { %7342 = vmatprep.subr.bf16.mxu0 %v7341_v39  ;;  %3557 = vmatprep.mubr.f32.mxu0 %v11168_v5  ;;  %v2120_v14 = vadd.f32 %v2119_v4, %v9041_v34  ;;  %v2121_v16 = vpop.f32.mrb[111].mxu0  ;;  %v2281_v32 = vadd.f32 %v2280_v51, %v9041_v34  ;;  %v2282_v27 = vpop.f32.mrb[111].mxu1  ;;  %v3080_v28 = vmax.f32 %v2277_v41, 0.0  ;;  %v3242_v4 = vld [vmem:[%s11163_s5 + $0x48] sm:$0xff] }
 0x24e   : > { %7374 = vmatprep.subr.bf16.mxu1 %v7373_v48  ;;  %7344 = vmatpush1.bf16.msra.mxu0 %v7343_v29  ;;  %v2122_v33 = vadd.f32 %v2121_v16, %v9041_v34  ;;  %v2283_v0 = vadd.f32 %v2282_v27, %v9041_v34 }
 0x24f   : > { %7376 = vmatpush1.bf16.msra.mxu1 %v7375_v62  ;;  %3814 = vmatprep.mubr.f32.mxu1 %v11168_v5  ;;  %v3093_v37 = vmax.f32 %v2120_v14, 0.0  ;;  %v3095_v43 = vmax.f32 %v2281_v32, 0.0 }
 0x250   : > { %3558 = vmatmul.mubr.f32.gmra.mrb[204].mxu0 %v3239_v15  ;;  %3815 = vmatmul.mubr.f32.gmra.mrb[204].mxu1 %v3239_v15  ;;  %v3094_v36 = vmax.f32 %v2122_v33, 0.0  ;;  %v2125_v55 = vpop.f32.mrb[112].mxu0  ;;  %v3096_v21 = vmax.f32 %v2283_v0, 0.0  ;;  %v2286_v30 = vpop.f32.mrb[112].mxu1 }
 0x251   : > { %3563 = vmatprep.mubr.f32.mxu0 %v11168_v5  ;;  %3820 = vmatprep.mubr.f32.mxu1 %v11168_v5  ;;  %v7347_v42 = vpack.c.bf16 %v3093_v37, %v3077_v25  ;;  %v2127_v40 = vpop.f32.mrb[113].mxu0  ;;  %v7379_v7 = vpack.c.bf16 %v3095_v43, %v3079_v38  ;;  %v2288_v20 = vpop.f32.mrb[113].mxu1  ;;  %v2126_v45 = vadd.f32 %v2125_v55, %v9061_v24  ;;  %v3243_v43 = vld [vmem:[%s11163_s5 + $0x50] sm:$0xff] }
 0x252   : > { %v7345_v8 = vpack.c.bf16 %v3094_v36, %v3078_v54  ;;  %v7377_v53 = vpack.c.bf16 %v3096_v21, %v3080_v28  ;;  %v2287_v58 = vadd.f32 %v2286_v30, %v9061_v24  ;;  %v2128_v47 = vadd.f32 %v2127_v40, %v9061_v24 }
 0x253   : > { %v2289_v11 = vadd.f32 %v2288_v20, %v9061_v24  ;;  %v3109_v61 = vmax.f32 %v2126_v45, 0.0 }
 0x254   : > { %3564 = vmatmul.mubr.f32.gmra.mrb[206].mxu0 %v3240_v57  ;;  %3821 = vmatmul.mubr.f32.gmra.mrb[206].mxu1 %v3240_v57  ;;  %v2131_v59 = vpop.f32.mrb[114].mxu0  ;;  %v2292_v52 = vpop.f32.mrb[114].mxu1  ;;  %v3111_v39 = vmax.f32 %v2287_v58, 0.0  ;;  %v3110_v2 = vmax.f32 %v2128_v47, 0.0 }
 0x255   : > { %7346 = vmatprep.subr.bf16.mxu0 %v7345_v8  ;;  %3569 = vmatprep.mubr.f32.mxu0 %v11168_v5  ;;  %v2132_v50 = vadd.f32 %v2131_v59, %v9065_v63  ;;  %v2133_v22 = vpop.f32.mrb[115].mxu0  ;;  %v2293_v29 = vadd.f32 %v2292_v52, %v9065_v63  ;;  %v2294_v44 = vpop.f32.mrb[115].mxu1  ;;  %v3112_v15 = vmax.f32 %v2289_v11, 0.0  ;;  %v3244_v59 = vld [vmem:[%s11163_s5 + $0x58] sm:$0xff] }
 0x256   : > { %7378 = vmatprep.subr.bf16.mxu1 %v7377_v53  ;;  %7348 = vmatpush1.bf16.msra.mxu0 %v7347_v42  ;;  %v2134_v13 = vadd.f32 %v2133_v22, %v9065_v63  ;;  %v2295_v1 = vadd.f32 %v2294_v44, %v9065_v63 }
 0x257   : > { %7380 = vmatpush1.bf16.msra.mxu1 %v7379_v7  ;;  %3826 = vmatprep.mubr.f32.mxu1 %v11168_v5  ;;  %v3125_v62 = vmax.f32 %v2132_v50, 0.0  ;;  %v3127_v48 = vmax.f32 %v2293_v29, 0.0 }
 0x258   : > { %3570 = vmatmul.mubr.f32.gmra.mrb[208].mxu0 %v3241_v23  ;;  %3827 = vmatmul.mubr.f32.gmra.mrb[208].mxu1 %v3241_v23  ;;  %v3126_v3 = vmax.f32 %v2134_v13, 0.0  ;;  %v2137_v49 = vpop.f32.mrb[116].mxu0  ;;  %v3128_v14 = vmax.f32 %v2295_v1, 0.0  ;;  %v2298_v51 = vpop.f32.mrb[116].mxu1 }
 0x259   : > { %3575 = vmatprep.mubr.f32.mxu0 %v11168_v5  ;;  %3832 = vmatprep.mubr.f32.mxu1 %v11168_v5  ;;  %v7351_v41 = vpack.c.bf16 %v3125_v62, %v3109_v61  ;;  %v2139_v16 = vpop.f32.mrb[117].mxu0  ;;  %v7383_v32 = vpack.c.bf16 %v3127_v48, %v3111_v39  ;;  %v2300_v33 = vpop.f32.mrb[117].mxu1  ;;  %v2138_v25 = vadd.f32 %v2137_v49, %v9085_v31  ;;  %v3245_v48 = vld [vmem:[%s11163_s5 + $0x60] sm:$0xff] }
 0x25a   : > { %v7349_v27 = vpack.c.bf16 %v3126_v3, %v3110_v2  ;;  %v7381_v37 = vpack.c.bf16 %v3128_v14, %v3112_v15  ;;  %v2299_v0 = vadd.f32 %v2298_v51, %v9085_v31  ;;  %v2140_v38 = vadd.f32 %v2139_v16, %v9085_v31 }
 0x25b   : > { %v2301_v36 = vadd.f32 %v2300_v33, %v9085_v31  ;;  %v3141_v40 = vmax.f32 %v2138_v25, 0.0 }
 0x25c   : > { %3576 = vmatmul.mubr.f32.gmra.mrb[210].mxu0 %v3242_v4  ;;  %3833 = vmatmul.mubr.f32.gmra.mrb[210].mxu1 %v3242_v4  ;;  %v2143_v54 = vpop.f32.mrb[118].mxu0  ;;  %v2304_v57 = vpop.f32.mrb[118].mxu1  ;;  %v3143_v8 = vmax.f32 %v2299_v0, 0.0  ;;  %v3142_v45 = vmax.f32 %v2140_v38, 0.0 }
 0x25d   : > { %7350 = vmatprep.subr.bf16.mxu0 %v7349_v27  ;;  %3581 = vmatprep.mubr.f32.mxu0 %v11168_v5  ;;  %v2144_v55 = vadd.f32 %v2143_v54, %v9089_v35  ;;  %v2145_v28 = vpop.f32.mrb[119].mxu0  ;;  %v2305_v42 = vadd.f32 %v2304_v57, %v9089_v35  ;;  %v2306_v30 = vpop.f32.mrb[119].mxu1  ;;  %v3144_v23 = vmax.f32 %v2301_v36, 0.0  ;;  %v3246_v54 = vld [vmem:[%s11163_s5 + $0x68] sm:$0xff] }
 0x25e   : > { %7382 = vmatprep.subr.bf16.mxu1 %v7381_v37  ;;  %7352 = vmatpush1.bf16.msra.mxu0 %v7351_v41  ;;  %v2146_v21 = vadd.f32 %v2145_v28, %v9089_v35  ;;  %v2307_v20 = vadd.f32 %v2306_v30, %v9089_v35 }
 0x25f   : > { %7384 = vmatpush1.bf16.msra.mxu1 %v7383_v32  ;;  %3838 = vmatprep.mubr.f32.mxu1 %v11168_v5  ;;  %v3157_v7 = vmax.f32 %v2144_v55, 0.0  ;;  %v3159_v53 = vmax.f32 %v2305_v42, 0.0 }
 0x260   : > { %3582 = vmatmul.mubr.f32.gmra.mrb[212].mxu0 %v3243_v43  ;;  %3839 = vmatmul.mubr.f32.gmra.mrb[212].mxu1 %v3243_v43  ;;  %v3158_v58 = vmax.f32 %v2146_v21, 0.0  ;;  %v2149_v47 = vpop.f32.mrb[120].mxu0  ;;  %v3160_v50 = vmax.f32 %v2307_v20, 0.0  ;;  %v2310_v52 = vpop.f32.mrb[120].mxu1 }
 0x261   : > { %3587 = vmatprep.mubr.f32.mxu0 %v11168_v5  ;;  %3844 = vmatprep.mubr.f32.mxu1 %v11168_v5  ;;  %v7355_v11 = vpack.c.bf16 %v3157_v7, %v3141_v40  ;;  %v2151_v22 = vpop.f32.mrb[121].mxu0  ;;  %v7387_v29 = vpack.c.bf16 %v3159_v53, %v3143_v8  ;;  %v2312_v13 = vpop.f32.mrb[121].mxu1  ;;  %v2150_v61 = vadd.f32 %v2149_v47, %v9103_v60  ;;  %v3247_v53 = vld [vmem:[%s11163_s5 + $0x70] sm:$0xff] }
 0x262   : > { %v7353_v44 = vpack.c.bf16 %v3158_v58, %v3142_v45  ;;  %v7385_v62 = vpack.c.bf16 %v3160_v50, %v3144_v23  ;;  %v2311_v1 = vadd.f32 %v2310_v52, %v9103_v60  ;;  %v2152_v39 = vadd.f32 %v2151_v22, %v9103_v60 }
 0x263   : > { %v2313_v3 = vadd.f32 %v2312_v13, %v9103_v60  ;;  %v3173_v16 = vmax.f32 %v2150_v61, 0.0 }
 0x264   : > { %3588 = vmatmul.mubr.f32.gmra.mrb[214].mxu0 %v3244_v59  ;;  %3845 = vmatmul.mubr.f32.gmra.mrb[214].mxu1 %v3244_v59  ;;  %v2155_v2 = vpop.f32.mrb[122].mxu0  ;;  %v2316_v4 = vpop.f32.mrb[122].mxu1  ;;  %v3175_v27 = vmax.f32 %v2311_v1, 0.0  ;;  %v3174_v25 = vmax.f32 %v2152_v39, 0.0 }
 0x265   : > { %7354 = vmatprep.subr.bf16.mxu0 %v7353_v44  ;;  %3593 = vmatprep.mubr.f32.mxu0 %v11168_v5  ;;  %v2156_v49 = vadd.f32 %v2155_v2, %v9105_v26  ;;  %v2157_v15 = vpop.f32.mrb[123].mxu0  ;;  %v2317_v41 = vadd.f32 %v2316_v4, %v9105_v26  ;;  %v2318_v51 = vpop.f32.mrb[123].mxu1  ;;  %v3176_v43 = vmax.f32 %v2313_v3, 0.0  ;;  %v3248_v2 = vld [vmem:[%s11163_s5 + $0x78] sm:$0xff] }
 0x266   : > { %7386 = vmatprep.subr.bf16.mxu1 %v7385_v62  ;;  %7356 = vmatpush1.bf16.msra.mxu0 %v7355_v11  ;;  %v2158_v14 = vadd.f32 %v2157_v15, %v9105_v26  ;;  %v2319_v33 = vadd.f32 %v2318_v51, %v9105_v26 }
 0x267   : > { %7388 = vmatpush1.bf16.msra.mxu1 %v7387_v29  ;;  %3850 = vmatprep.mubr.f32.mxu1 %v11168_v5  ;;  %v3189_v32 = vmax.f32 %v2156_v49, 0.0  ;;  %v3191_v37 = vmax.f32 %v2317_v41, 0.0 }
 0x268   : > { %3594 = vmatmul.mubr.f32.gmra.mrb[216].mxu0 %v3245_v48  ;;  %3851 = vmatmul.mubr.f32.gmra.mrb[216].mxu1 %v3245_v48  ;;  %v3190_v0 = vmax.f32 %v2158_v14, 0.0  ;;  %v2161_v38 = vpop.f32.mrb[124].mxu0  ;;  %v3192_v55 = vmax.f32 %v2319_v33, 0.0  ;;  %v2322_v57 = vpop.f32.mrb[124].mxu1 }
 0x269   : > { %3599 = vmatprep.mubr.f32.mxu0 %v11168_v5  ;;  %3856 = vmatprep.mubr.f32.mxu1 %v11168_v5  ;;  %v7359_v36 = vpack.c.bf16 %v3189_v32, %v3173_v16  ;;  %v2163_v28 = vpop.f32.mrb[125].mxu0  ;;  %v7391_v42 = vpack.c.bf16 %v3191_v37, %v3175_v27  ;;  %v2324_v21 = vpop.f32.mrb[125].mxu1  ;;  %v2162_v40 = vadd.f32 %v2161_v38, %v9115_v6  ;;  %v3249_v37 = vld [vmem:[%s11163_s5 + $0x80] sm:$0xff] }
 0x26a   : > { %v7357_v30 = vpack.c.bf16 %v3190_v0, %v3174_v25  ;;  %v7389_v7 = vpack.c.bf16 %v3192_v55, %v3176_v43  ;;  %v2323_v20 = vadd.f32 %v2322_v57, %v9115_v6  ;;  %v2164_v8 = vadd.f32 %v2163_v28, %v9115_v6 }
 0x26b   : > { %v2325_v58 = vadd.f32 %v2324_v21, %v9115_v6  ;;  %v3205_v22 = vmax.f32 %v2162_v40, 0.0 }
 0x26c   : > { %3600 = vmatmul.mubr.f32.gmra.mrb[218].mxu0 %v3246_v54  ;;  %3857 = vmatmul.mubr.f32.gmra.mrb[218].mxu1 %v3246_v54  ;;  %v2167_v45 = vpop.f32.mrb[126].mxu0  ;;  %v2328_v59 = vpop.f32.mrb[126].mxu1  ;;  %v3207_v44 = vmax.f32 %v2323_v20, 0.0  ;;  %v3206_v61 = vmax.f32 %v2164_v8, 0.0 }
 0x26d   : > { %7358 = vmatprep.subr.bf16.mxu0 %v7357_v30  ;;  %3605 = vmatprep.mubr.f32.mxu0 %v11168_v5  ;;  %v2168_v47 = vadd.f32 %v2167_v45, %v9117_v19  ;;  %v2169_v23 = vpop.f32.mrb[127].mxu0  ;;  %v2329_v11 = vadd.f32 %v2328_v59, %v9117_v19  ;;  %v2330_v52 = vpop.f32.mrb[127].mxu1  ;;  %v3208_v48 = vmax.f32 %v2325_v58, 0.0  ;;  %v3250_v45 = vld [vmem:[%s11163_s5 + $0x88] sm:$0xff] }
 0x26e   : > { %7390 = vmatprep.subr.bf16.mxu1 %v7389_v7  ;;  %7360 = vmatpush1.bf16.msra.mxu0 %v7359_v36  ;;  %v2170_v50 = vadd.f32 %v2169_v23, %v9117_v19  ;;  %v2331_v13 = vadd.f32 %v2330_v52, %v9117_v19 }
 0x26f   : > { %7392 = vmatpush1.bf16.msra.mxu1 %v7391_v42  ;;  %3862 = vmatprep.mubr.f32.mxu1 %v11168_v5  ;;  %v3221_v29 = vmax.f32 %v2168_v47, 0.0  ;;  %v3223_v62 = vmax.f32 %v2329_v11, 0.0 }
 0x270   : > { %3606 = vmatmul.mubr.f32.gmra.mrb[220].mxu0 %v3247_v53  ;;  %3863 = vmatmul.mubr.f32.gmra.mrb[220].mxu1 %v3247_v53  ;;  %v3222_v1 = vmax.f32 %v2170_v50, 0.0  ;;  %v2399_v39 = vpop.f32.mrb[128].mxu0  ;;  %v3224_v49 = vmax.f32 %v2331_v13, 0.0  ;;  %v2560_v4 = vpop.f32.mrb[128].mxu1 }
 0x271   : > { %3611 = vmatprep.mubr.f32.mxu0 %v11168_v5  ;;  %3868 = vmatprep.mubr.f32.mxu1 %v11168_v5  ;;  %v7363_v3 = vpack.c.bf16 %v3221_v29, %v3205_v22  ;;  %v2401_v15 = vpop.f32.mrb[129].mxu0  ;;  %v7395_v41 = vpack.c.bf16 %v3223_v62, %v3207_v44  ;;  %v2562_v14 = vpop.f32.mrb[129].mxu1  ;;  %v2400_v16 = vadd.f32 %v2399_v39, %v8965_v12  ;;  %v3251_v62 = vld [vmem:[%s11163_s5 + $0x90] sm:$0xff] }
 0x272   : > { %v7361_v51 = vpack.c.bf16 %v3222_v1, %v3206_v61  ;;  %v7393_v32 = vpack.c.bf16 %v3224_v49, %v3208_v48  ;;  %v2561_v33 = vadd.f32 %v2560_v4, %v8965_v12  ;;  %v2402_v27 = vadd.f32 %v2401_v15, %v8965_v12 }
 0x273   : > { %v2563_v0 = vadd.f32 %v2562_v14, %v8965_v12  ;;  %v2985_v28 = vmax.f32 %v2400_v16, 0.0 }
 0x274   : > { %3612 = vmatmul.mubr.f32.gmra.mrb[222].mxu0 %v3248_v2  ;;  %3869 = vmatmul.mubr.f32.gmra.mrb[222].mxu1 %v3248_v2  ;;  %v2405_v25 = vpop.f32.mrb[130].mxu0  ;;  %v2566_v54 = vpop.f32.mrb[130].mxu1  ;;  %v2987_v30 = vmax.f32 %v2561_v33, 0.0  ;;  %v2986_v40 = vmax.f32 %v2402_v27, 0.0 }
 0x275   : > { %7362 = vmatprep.subr.bf16.mxu0 %v7361_v51  ;;  %3617 = vmatprep.mubr.f32.mxu0 %v11168_v5  ;;  %v2406_v38 = vadd.f32 %v2405_v25, %v8969_v17  ;;  %v2407_v43 = vpop.f32.mrb[131].mxu0  ;;  %v2567_v36 = vadd.f32 %v2566_v54, %v8969_v17  ;;  %v2568_v57 = vpop.f32.mrb[131].mxu1  ;;  %v2988_v53 = vmax.f32 %v2563_v0, 0.0  ;;  %v3252_v25 = vld [vmem:[%s11163_s5 + $0x98] sm:$0xff] }
 0x276   : > { %7394 = vmatprep.subr.bf16.mxu1 %v7393_v32  ;;  %7364 = vmatpush1.bf16.msra.mxu0 %v7363_v3  ;;  %v2408_v55 = vadd.f32 %v2407_v43, %v8969_v17  ;;  %v2569_v21 = vadd.f32 %v2568_v57, %v8969_v17 }
 0x277   : > { %7396 = vmatpush1.bf16.msra.mxu1 %v7395_v41  ;;  %3874 = vmatprep.mubr.f32.mxu1 %v11168_v5  ;;  %v3001_v42 = vmax.f32 %v2406_v38, 0.0  ;;  %v3003_v7 = vmax.f32 %v2567_v36, 0.0 }
 0x278   : > { %3618 = vmatmul.mubr.f32.gmra.mrb[224].mxu0 %v3249_v37  ;;  %3875 = vmatmul.mubr.f32.gmra.mrb[224].mxu1 %v3249_v37  ;;  %v3002_v20 = vmax.f32 %v2408_v55, 0.0  ;;  %v2411_v8 = vpop.f32.mrb[132].mxu0  ;;  %v3004_v47 = vmax.f32 %v2569_v21, 0.0  ;;  %v2572_v59 = vpop.f32.mrb[132].mxu1 }
 0x279   : > { %3623 = vmatprep.mubr.f32.mxu0 %v11168_v5  ;;  %3880 = vmatprep.mubr.f32.mxu1 %v11168_v5  ;;  %v9287_v58 = vpack.c.bf16 %v3001_v42, %v2985_v28  ;;  %v2413_v23 = vpop.f32.mrb[133].mxu0  ;;  %v9289_v11 = vpack.c.bf16 %v3003_v7, %v2987_v30  ;;  %v2574_v50 = vpop.f32.mrb[133].mxu1  ;;  %v2412_v22 = vadd.f32 %v2411_v8, %v8989_v56  ;;  %v3253_v7 = vld [vmem:[%s11163_s5 + $0xa0] sm:$0xff] }
 0x27a   : > { %v7397_v52 = vpack.c.bf16 %v3002_v20, %v2986_v40  ;;  %v7429_v29 = vpack.c.bf16 %v3004_v47, %v2988_v53  ;;  %v2573_v13 = vadd.f32 %v2572_v59, %v8989_v56  ;;  %v2414_v44 = vadd.f32 %v2413_v23, %v8989_v56 }
 0x27b   : > { %v2575_v1 = vadd.f32 %v2574_v50, %v8989_v56  ;;  %v3017_v15 = vmax.f32 %v2412_v22, 0.0 }
 0x27c   : > { %3624 = vmatmul.mubr.f32.gmra.mrb[226].mxu0 %v3250_v45  ;;  %3881 = vmatmul.mubr.f32.gmra.mrb[226].mxu1 %v3250_v45  ;;  %v2417_v61 = vpop.f32.mrb[134].mxu0  ;;  %v2578_v2 = vpop.f32.mrb[134].mxu1  ;;  %v3019_v51 = vmax.f32 %v2573_v13, 0.0  ;;  %v3018_v16 = vmax.f32 %v2414_v44, 0.0 }
 0x27d   : > { %7398 = vmatprep.subr.bf16.mxu0 %v7397_v52  ;;  %3629 = vmatprep.mubr.f32.mxu0 %v11168_v5  ;;  %v2418_v39 = vadd.f32 %v2417_v61, %v8993_v10  ;;  %v2419_v48 = vpop.f32.mrb[135].mxu0  ;;  %v2579_v3 = vadd.f32 %v2578_v2, %v8993_v10  ;;  %v2580_v4 = vpop.f32.mrb[135].mxu1  ;;  %v3020_v37 = vmax.f32 %v2575_v1, 0.0  ;;  %v3254_v1 = vld [vmem:[%s11163_s5 + $0xa8] sm:$0xff] }
 0x27e   : > { %7430 = vmatprep.subr.bf16.mxu1 %v7429_v29  ;;  %3886 = vmatprep.mubr.f32.mxu1 %v11168_v5  ;;  %v2420_v49 = vadd.f32 %v2419_v48, %v8993_v10  ;;  %v2581_v14 = vadd.f32 %v2580_v4, %v8993_v10 }
 0x27f   : > { %v3033_v41 = vmax.f32 %v2418_v39, 0.0  ;;  %v3035_v32 = vmax.f32 %v2579_v3, 0.0 }
 0x280   : > { %3630 = vmatmul.mubr.f32.gmra.mrb[228].mxu0 %v3251_v62  ;;  %3887 = vmatmul.mubr.f32.gmra.mrb[228].mxu1 %v3251_v62  ;;  %v3034_v33 = vmax.f32 %v2420_v49, 0.0  ;;  %v2423_v27 = vpop.f32.mrb[136].mxu0  ;;  %v3036_v38 = vmax.f32 %v2581_v14, 0.0  ;;  %v2584_v54 = vpop.f32.mrb[136].mxu1 }
 0x281   : > { %3635 = vmatprep.mubr.f32.mxu0 %v11168_v5  ;;  %3892 = vmatprep.mubr.f32.mxu1 %v11168_v5  ;;  %v9309_v0 = vpack.c.bf16 %v3033_v41, %v3017_v15  ;;  %v2425_v43 = vpop.f32.mrb[137].mxu0  ;;  %v9311_v36 = vpack.c.bf16 %v3035_v32, %v3019_v51  ;;  %v2586_v55 = vpop.f32.mrb[137].mxu1  ;;  %v2424_v28 = vadd.f32 %v2423_v27, %v9013_v9  ;;  %v3255_v27 = vld [vmem:[%s11163_s5 + $0xb0] sm:$0xff] }
 0x282   : > { %v9313_v57 = vpack.c.bf16 %v3034_v33, %v3018_v16  ;;  %v9316_v42 = vpack.c.bf16 %v3036_v38, %v3020_v37  ;;  %v2585_v21 = vadd.f32 %v2584_v54, %v9013_v9  ;;  %v2426_v30 = vadd.f32 %v2425_v43, %v9013_v9 }
 0x283   : > { %v2587_v20 = vadd.f32 %v2586_v55, %v9013_v9  ;;  %v3049_v50 = vmax.f32 %v2424_v28, 0.0 }
 0x284   : > { %3636 = vmatmul.mubr.f32.gmra.mrb[230].mxu0 %v3252_v25  ;;  %3893 = vmatmul.mubr.f32.gmra.mrb[230].mxu1 %v3252_v25  ;;  %v2429_v40 = vpop.f32.mrb[138].mxu0  ;;  %v2590_v45 = vpop.f32.mrb[138].mxu1  ;;  %v3051_v29 = vmax.f32 %v2585_v21, 0.0  ;;  %v3050_v13 = vmax.f32 %v2426_v30, 0.0 }
 0x285   : > { %3641 = vmatprep.mubr.f32.mxu0 %v11168_v5  ;;  %3898 = vmatprep.mubr.f32.mxu1 %v11168_v5  ;;  %v2430_v8 = vadd.f32 %v2429_v40, %v9017_v46  ;;  %v2431_v53 = vpop.f32.mrb[139].mxu0  ;;  %v2591_v47 = vadd.f32 %v2590_v45, %v9017_v46  ;;  %v2592_v23 = vpop.f32.mrb[139].mxu1  ;;  %v3052_v39 = vmax.f32 %v2587_v20, 0.0 }
 0x286   : > { %v2432_v59 = vadd.f32 %v2431_v53, %v9017_v46  ;;  %v2593_v22 = vadd.f32 %v2592_v23, %v9017_v46 }
 0x287   : > { %v3065_v52 = vmax.f32 %v2430_v8, 0.0  ;;  %v3067_v44 = vmax.f32 %v2591_v47, 0.0  ;;  %v3256_v47 = vld [vmem:[%s11163_s5 + $0xb8] sm:$0xff] }
 0x288   : > { %3642 = vmatmul.mubr.f32.gmra.mrb[232].mxu0 %v3253_v7  ;;  %3899 = vmatmul.mubr.f32.gmra.mrb[232].mxu1 %v3253_v7  ;;  %v3066_v61 = vmax.f32 %v2432_v59, 0.0  ;;  %v2435_v62 = vpop.f32.mrb[140].mxu0  ;;  %v3068_v48 = vmax.f32 %v2593_v22, 0.0  ;;  %v2596_v3 = vpop.f32.mrb[140].mxu1 }
 0x289   : > { %3647 = vmatprep.mubr.f32.mxu0 %v11168_v5  ;;  %3904 = vmatprep.mubr.f32.mxu1 %v11168_v5  ;;  %v9335_v2 = vpack.c.bf16 %v3065_v52, %v3049_v50  ;;  %v2437_v49 = vpop.f32.mrb[141].mxu0  ;;  %v9337_v4 = vpack.c.bf16 %v3067_v44, %v3051_v29  ;;  %v2598_v15 = vpop.f32.mrb[141].mxu1  ;;  %v2436_v14 = vadd.f32 %v2435_v62, %v9037_v18 }
 0x28a   : > { %v9339_v41 = vpack.c.bf16 %v3066_v61, %v3050_v13  ;;  %v9342_v51 = vpack.c.bf16 %v3068_v48, %v3052_v39  ;;  %v2597_v16 = vadd.f32 %v2596_v3, %v9037_v18  ;;  %v2438_v32 = vadd.f32 %v2437_v49, %v9037_v18  ;;  %v3257_v3 = vld [vmem:[%s11163_s5 + $0xc0] sm:$0xff] }
 0x28b   : > { %v2599_v25 = vadd.f32 %v2598_v15, %v9037_v18  ;;  %v3081_v21 = vmax.f32 %v2436_v14, 0.0 }
 0x28c   : > { %3648 = vmatmul.mubr.f32.gmra.mrb[234].mxu0 %v3254_v1  ;;  %3905 = vmatmul.mubr.f32.gmra.mrb[234].mxu1 %v3254_v1  ;;  %v2441_v33 = vpop.f32.mrb[142].mxu0  ;;  %v2602_v38 = vpop.f32.mrb[142].mxu1  ;;  %v3083_v7 = vmax.f32 %v2597_v16, 0.0  ;;  %v3082_v20 = vmax.f32 %v2438_v32, 0.0 }
 0x28d   : > { %3653 = vmatprep.mubr.f32.mxu0 %v11168_v5  ;;  %3910 = vmatprep.mubr.f32.mxu1 %v11168_v5  ;;  %v2442_v37 = vadd.f32 %v2441_v33, %v9041_v34  ;;  %v2443_v54 = vpop.f32.mrb[143].mxu0  ;;  %v2603_v43 = vadd.f32 %v2602_v38, %v9041_v34  ;;  %v2604_v28 = vpop.f32.mrb[143].mxu1  ;;  %v3084_v59 = vmax.f32 %v2599_v25, 0.0 }
 0x28e   : > { %v2444_v55 = vadd.f32 %v2443_v54, %v9041_v34  ;;  %v2605_v40 = vadd.f32 %v2604_v28, %v9041_v34 }
 0x28f   : > { %v3097_v30 = vmax.f32 %v2442_v37, 0.0  ;;  %v3099_v8 = vmax.f32 %v2603_v43, 0.0 }
 0x290   : > { %3654 = vmatmul.mubr.f32.gmra.mrb[236].mxu0 %v3255_v27  ;;  %3911 = vmatmul.mubr.f32.gmra.mrb[236].mxu1 %v3255_v27  ;;  %v3098_v45 = vmax.f32 %v2444_v55, 0.0  ;;  %v2447_v53 = vpop.f32.mrb[144].mxu0  ;;  %v3100_v50 = vmax.f32 %v2605_v40, 0.0  ;;  %v2608_v52 = vpop.f32.mrb[144].mxu1 }
 0x291   : > { %3659 = vmatprep.mubr.f32.mxu0 %v11168_v5  ;;  %3916 = vmatprep.mubr.f32.mxu1 %v11168_v5  ;;  %v9361_v23 = vpack.c.bf16 %v3097_v30, %v3081_v21  ;;  %v2449_v22 = vpop.f32.mrb[145].mxu0  ;;  %v9363_v29 = vpack.c.bf16 %v3099_v8, %v3083_v7  ;;  %v2610_v13 = vpop.f32.mrb[145].mxu1  ;;  %v2448_v61 = vadd.f32 %v2447_v53, %v9061_v24  ;;  %v3258_v30 = vld [vmem:[%s11163_s5 + $0xc8] sm:$0xff] }
 0x292   : > { %v9365_v44 = vpack.c.bf16 %v3098_v45, %v3082_v20  ;;  %v9368_v62 = vpack.c.bf16 %v3100_v50, %v3084_v59  ;;  %v2609_v1 = vadd.f32 %v2608_v52, %v9061_v24  ;;  %v2450_v39 = vadd.f32 %v2449_v22, %v9061_v24 }
 0x293   : > { %v2611_v49 = vadd.f32 %v2610_v13, %v9061_v24  ;;  %v3113_v25 = vmax.f32 %v2448_v61, 0.0 }
 0x294   : > { %3660 = vmatmul.mubr.f32.gmra.mrb[238].mxu0 %v3256_v47  ;;  %3917 = vmatmul.mubr.f32.gmra.mrb[238].mxu1 %v3256_v47  ;;  %v2453_v48 = vpop.f32.mrb[146].mxu0  ;;  %v2614_v14 = vpop.f32.mrb[146].mxu1  ;;  %v3115_v54 = vmax.f32 %v2609_v1, 0.0  ;;  %v3114_v43 = vmax.f32 %v2450_v39, 0.0  ;;  %v3259_v1 = vld [vmem:[%s11163_s5 + $0xd0] sm:$0xff] }
 0x295   : > { %3665 = vmatprep.mubr.f32.mxu0 %v11168_v5  ;;  %3922 = vmatprep.mubr.f32.mxu1 %v11168_v5  ;;  %v2454_v15 = vadd.f32 %v2453_v48, %v9065_v63  ;;  %v2455_v16 = vpop.f32.mrb[147].mxu0  ;;  %v2615_v32 = vadd.f32 %v2614_v14, %v9065_v63  ;;  %v2616_v27 = vpop.f32.mrb[147].mxu1  ;;  %v3116_v40 = vmax.f32 %v2611_v49, 0.0 }
 0x296   : > { %v2456_v33 = vadd.f32 %v2455_v16, %v9065_v63  ;;  %v2617_v38 = vadd.f32 %v2616_v27, %v9065_v63 }
 0x297   : > { %v3129_v37 = vmax.f32 %v2454_v15, 0.0  ;;  %v3131_v55 = vmax.f32 %v2615_v32, 0.0 }
 0x298   : > { %3666 = vmatmul.mubr.f32.gmra.mrb[240].mxu0 %v3257_v3  ;;  %3923 = vmatmul.mubr.f32.gmra.mrb[240].mxu1 %v3257_v3  ;;  %v3130_v28 = vmax.f32 %v2456_v33, 0.0  ;;  %v2459_v21 = vpop.f32.mrb[148].mxu0  ;;  %v3132_v20 = vmax.f32 %v2617_v38, 0.0  ;;  %v2620_v8 = vpop.f32.mrb[148].mxu1 }
 0x299   : > { %3671 = vmatprep.mubr.f32.mxu0 %v11168_v5  ;;  %3928 = vmatprep.mubr.f32.mxu1 %v11168_v5  ;;  %v9387_v7 = vpack.c.bf16 %v3129_v37, %v3113_v25  ;;  %v2461_v45 = vpop.f32.mrb[149].mxu0  ;;  %v9389_v53 = vpack.c.bf16 %v3131_v55, %v3115_v54  ;;  %v2622_v47 = vpop.f32.mrb[149].mxu1  ;;  %v2460_v50 = vadd.f32 %v2459_v21, %v9085_v31  ;;  %v3260_v55 = vld [vmem:[%s11163_s5 + $0xd8] sm:$0xff] }
 0x29a   : > { %v9391_v59 = vpack.c.bf16 %v3130_v28, %v3114_v43  ;;  %v9394_v52 = vpack.c.bf16 %v3132_v20, %v3116_v40  ;;  %v2621_v22 = vadd.f32 %v2620_v8, %v9085_v31  ;;  %v2462_v13 = vadd.f32 %v2461_v45, %v9085_v31 }
 0x29b   : > { %v2623_v39 = vadd.f32 %v2622_v47, %v9085_v31  ;;  %v3145_v32 = vmax.f32 %v2460_v50, 0.0 }
 0x29c   : > { %3672 = vmatmul.mubr.f32.gmra.mrb[242].mxu0 %v3258_v30  ;;  %3929 = vmatmul.mubr.f32.gmra.mrb[242].mxu1 %v3258_v30  ;;  %v2465_v61 = vpop.f32.mrb[150].mxu0  ;;  %v2626_v3 = vpop.f32.mrb[150].mxu1  ;;  %v3147_v25 = vmax.f32 %v2621_v22, 0.0  ;;  %v3146_v37 = vmax.f32 %v2462_v13, 0.0 }
 0x29d   : > { %3677 = vmatprep.mubr.f32.mxu0 %v11168_v5  ;;  %3934 = vmatprep.mubr.f32.mxu1 %v11168_v5  ;;  %v2466_v48 = vadd.f32 %v2465_v61, %v9089_v35  ;;  %v2467_v49 = vpop.f32.mrb[151].mxu0  ;;  %v2627_v15 = vadd.f32 %v2626_v3, %v9089_v35  ;;  %v2628_v16 = vpop.f32.mrb[151].mxu1  ;;  %v3148_v28 = vmax.f32 %v2623_v39, 0.0  ;;  %v3261_v39 = vld [vmem:[%s11163_s5 + $0xe0] sm:$0xff] }
 0x29e   : > { %v2468_v14 = vadd.f32 %v2467_v49, %v9089_v35  ;;  %v2629_v27 = vadd.f32 %v2628_v16, %v9089_v35 }
 0x29f   : > { %v3161_v33 = vmax.f32 %v2466_v48, 0.0  ;;  %v3163_v38 = vmax.f32 %v2627_v15, 0.0 }
 0x2a0   : > { %3678 = vmatmul.mubr.f32.gmra.mrb[244].mxu0 %v3259_v1  ;;  %3935 = vmatmul.mubr.f32.gmra.mrb[244].mxu1 %v3259_v1  ;;  %v3162_v54 = vmax.f32 %v2468_v14, 0.0  ;;  %v2471_v43 = vpop.f32.mrb[152].mxu0  ;;  %v3164_v30 = vmax.f32 %v2629_v27, 0.0  ;;  %v2632_v40 = vpop.f32.mrb[152].mxu1 }
 0x2a1   : > { %3683 = vmatprep.mubr.f32.mxu0 %v11168_v5  ;;  %3940 = vmatprep.mubr.f32.mxu1 %v11168_v5  ;;  %v9413_v21 = vpack.c.bf16 %v3161_v33, %v3145_v32  ;;  %v2473_v20 = vpop.f32.mrb[153].mxu0  ;;  %v9415_v8 = vpack.c.bf16 %v3163_v38, %v3147_v25  ;;  %v2634_v45 = vpop.f32.mrb[153].mxu1  ;;  %v2472_v50 = vadd.f32 %v2471_v43, %v9103_v60 }
 0x2a2   : > { %v9417_v47 = vpack.c.bf16 %v3162_v54, %v3146_v37  ;;  %v9420_v22 = vpack.c.bf16 %v3164_v30, %v3148_v28  ;;  %v2633_v13 = vadd.f32 %v2632_v40, %v9103_v60  ;;  %v2474_v61 = vadd.f32 %v2473_v20, %v9103_v60  ;;  %v3262_v28 = vld [vmem:[%s11163_s5 + $0xe8] sm:$0xff] }
 0x2a3   : > { %v2635_v48 = vadd.f32 %v2634_v45, %v9103_v60  ;;  %v3177_v33 = vmax.f32 %v2472_v50, 0.0 }
 0x2a4   : > { %3684 = vmatmul.mubr.f32.gmra.mrb[246].mxu0 %v3260_v55  ;;  %3941 = vmatmul.mubr.f32.gmra.mrb[246].mxu1 %v3260_v55  ;;  %v2477_v1 = vpop.f32.mrb[154].mxu0  ;;  %v2638_v49 = vpop.f32.mrb[154].mxu1  ;;  %v3179_v37 = vmax.f32 %v2633_v13, 0.0  ;;  %v3178_v38 = vmax.f32 %v2474_v61, 0.0 }
 0x2a5   : > { %3689 = vmatprep.mubr.f32.mxu0 %v11168_v5  ;;  %3946 = vmatprep.mubr.f32.mxu1 %v11168_v5  ;;  %v2478_v3 = vadd.f32 %v2477_v1, %v9105_v26  ;;  %v2479_v15 = vpop.f32.mrb[155].mxu0  ;;  %v2639_v14 = vadd.f32 %v2638_v49, %v9105_v26  ;;  %v2640_v32 = vpop.f32.mrb[155].mxu1  ;;  %v3180_v30 = vmax.f32 %v2635_v48, 0.0 }
 0x2a6   : > { %v2480_v16 = vadd.f32 %v2479_v15, %v9105_v26  ;;  %v2641_v25 = vadd.f32 %v2640_v32, %v9105_v26 }
 0x2a7   : > { %v3193_v27 = vmax.f32 %v2478_v3, 0.0  ;;  %v3195_v54 = vmax.f32 %v2639_v14, 0.0  ;;  %v3263_v14 = vld [vmem:[%s11163_s5 + $0xf0] sm:$0xff] }
 0x2a8   : > { %3690 = vmatmul.mubr.f32.gmra.mrb[248].mxu0 %v3261_v39  ;;  %3947 = vmatmul.mubr.f32.gmra.mrb[248].mxu1 %v3261_v39  ;;  %v3194_v43 = vmax.f32 %v2480_v16, 0.0  ;;  %v2483_v55 = vpop.f32.mrb[156].mxu0  ;;  %v3196_v20 = vmax.f32 %v2641_v25, 0.0  ;;  %v2644_v45 = vpop.f32.mrb[156].mxu1 }
 0x2a9   : > { %3695 = vmatprep.mubr.f32.mxu0 %v11168_v5  ;;  %3952 = vmatprep.mubr.f32.mxu1 %v11168_v5  ;;  %v9439_v40 = vpack.c.bf16 %v3193_v27, %v3177_v33  ;;  %v2485_v50 = vpop.f32.mrb[157].mxu0  ;;  %v9441_v1 = vpack.c.bf16 %v3195_v54, %v3179_v37  ;;  %v2646_v13 = vpop.f32.mrb[157].mxu1  ;;  %v2484_v39 = vadd.f32 %v2483_v55, %v9115_v6 }
 0x2aa   : > { %v9443_v61 = vpack.c.bf16 %v3194_v43, %v3178_v38  ;;  %v9446_v3 = vpack.c.bf16 %v3196_v20, %v3180_v30  ;;  %v2645_v49 = vadd.f32 %v2644_v45, %v9115_v6  ;;  %v2486_v48 = vadd.f32 %v2485_v50, %v9115_v6 }
 0x2ab   : > { %v2647_v16 = vadd.f32 %v2646_v13, %v9115_v6  ;;  %v3209_v54 = vmax.f32 %v2484_v39, 0.0  ;;  %v3264_v13 = vld [vmem:[%s11163_s5 + $0xf8] sm:$0xff] }
 0x2ac   : > { %3696 = vmatmul.mubr.f32.gmra.mrb[250].mxu0 %v3262_v28  ;;  %3953 = vmatmul.mubr.f32.gmra.mrb[250].mxu1 %v3262_v28  ;;  %v2489_v15 = vpop.f32.mrb[158].mxu0  ;;  %v2650_v33 = vpop.f32.mrb[158].mxu1  ;;  %v3211_v28 = vmax.f32 %v2645_v49, 0.0  ;;  %v3210_v30 = vmax.f32 %v2486_v48, 0.0 }
 0x2ad   : > { %3701 = vmatprep.mubr.f32.mxu0 %v11168_v5  ;;  %3958 = vmatprep.mubr.f32.mxu1 %v11168_v5  ;;  %v2490_v32 = vadd.f32 %v2489_v15, %v9117_v19  ;;  %v2491_v27 = vpop.f32.mrb[159].mxu0  ;;  %v2651_v25 = vadd.f32 %v2650_v33, %v9117_v19  ;;  %v2652_v38 = vpop.f32.mrb[159].mxu1  ;;  %v3212_v15 = vmax.f32 %v2647_v16, 0.0  ;;  %v11236_v16 = vmov 0.0  }
 0x2ae   : > { %v2492_v37 = vadd.f32 %v2491_v27, %v9117_v19  ;;  %v2653_v55 = vadd.f32 %v2652_v38, %v9117_v19 }
 0x2af   : > { %v3225_v43 = vmax.f32 %v2490_v32, 0.0  ;;  %v3227_v20 = vmax.f32 %v2651_v25, 0.0 }
 0x2b0   : > { %3702 = vmatmul.mubr.f32.gmra.mrb[252].mxu0 %v3263_v14  ;;  %3959 = vmatmul.mubr.f32.gmra.mrb[252].mxu1 %v3263_v14  ;;  %v3226_v45 = vmax.f32 %v2492_v37, 0.0  ;;  %v2721_v50 = vpop.f32.mrb[160].mxu0  ;;  %v3228_v32 = vmax.f32 %v2653_v55, 0.0  ;;  %v2882_v33 = vpop.f32.mrb[160].mxu1 }
 0x2b1   : > { %3707 = vmatprep.mubr.f32.mxu0 %v11168_v5  ;;  %3964 = vmatprep.mubr.f32.mxu1 %v11168_v5  ;;  %v9465_v39 = vpack.c.bf16 %v3225_v43, %v3209_v54  ;;  %v2723_v27 = vpop.f32.mrb[161].mxu0  ;;  %v9467_v14 = vpack.c.bf16 %v3227_v20, %v3211_v28  ;;  %v2884_v49 = vpop.f32.mrb[161].mxu1  ;;  %v2722_v25 = vadd.f32 %v2721_v50, %v8965_v12 }
 0x2b2   : > { %v9469_v48 = vpack.c.bf16 %v3226_v45, %v3210_v30  ;;  %v9472_v37 = vpack.c.bf16 %v3228_v32, %v3212_v15  ;;  %v2883_v38 = vadd.f32 %v2882_v33, %v8965_v12  ;;  %v2724_v54 = vadd.f32 %v2723_v27, %v8965_v12  ;;  %v7597_v33 = vld [vmem:[%s11163_s5] sm:$0xff] }
 0x2b3   : > { %v2885_v43 = vadd.f32 %v2884_v49, %v8965_v12 }
 0x2b4   : > { %3708 = vmatmul.mubr.f32.gmra.mrb[254].mxu0 %v3264_v13  ;;  %3965 = vmatmul.mubr.f32.gmra.mrb[254].mxu1 %v3264_v13  ;;  %v2727_v5 = vpop.f32.mrb[162].mxu0  ;;  %v2888_v28 = vpop.f32.mrb[162].mxu1  ;;  %v2989_v13 = vmax.f32 %v2722_v25, 0.0  ;;  %v2991_v12 = vmax.f32 %v2883_v38, 0.0 }
 0x2b5   : > { %4035 = vmatprep.mubr.f32.mxu0 %v11236_v16  ;;  %4292 = vmatprep.mubr.f32.mxu1 %v11236_v16  ;;  %v2728_v55 = vadd.f32 %v2727_v5, %v8969_v17  ;;  %v2729_v30 = vpop.f32.mrb[163].mxu0  ;;  %v2889_v20 = vadd.f32 %v2888_v28, %v8969_v17  ;;  %v2890_v50 = vpop.f32.mrb[163].mxu1  ;;  %v2990_v28 = vmax.f32 %v2724_v54, 0.0 }
 0x2b6   : > { %v2730_v45 = vadd.f32 %v2729_v30, %v8969_v17  ;;  %v2891_v32 = vadd.f32 %v2890_v50, %v8969_v17  ;;  %v2992_v30 = vmax.f32 %v2885_v43, 0.0 }
 0x2b7   : > { %v3005_v15 = vmax.f32 %v2728_v55, 0.0  ;;  %v3007_v27 = vmax.f32 %v2889_v20, 0.0 }
 0x2b8   : > { %4036 = vmatmul.mubr.f32.vlgmr.msra.gmra.mrb[0].mxu0 %v7597_v33  ;;  %4293 = vmatmul.mubr.f32.vlgmr.msra.gmra.mrb[0].mxu1 %v7597_v33  ;;  %v3006_v5 = vmax.f32 %v2730_v45, 0.0  ;;  %v2733_v49 = vpop.f32.mrb[164].mxu0  ;;  %v3008_v55 = vmax.f32 %v2891_v32, 0.0  ;;  %v2894_v17 = vpop.f32.mrb[164].mxu1 }
 0x2b9   : > { %7400 = vmatpush1.bf16.msra.mxu0 %v9287_v58  ;;  %7432 = vmatpush1.bf16.msra.mxu1 %v9289_v11  ;;  %v9488_v25 = vpack.c.bf16 %v3005_v15, %v2989_v13  ;;  %v2735_v50 = vpop.f32.mrb[165].mxu0  ;;  %v9492_v33 = vpack.c.bf16 %v3007_v27, %v2991_v12  ;;  %v2896_v38 = vpop.f32.mrb[165].mxu1  ;;  %v2734_v58 = vadd.f32 %v2733_v49, %v8989_v56  ;;  %v7598_v11 = vld [vmem:[%s11163_s5 + $0x8] sm:$0xff]  ;;  %v7599_v49 = vld [vmem:[%s11163_s5 + $0x10] sm:$0xff] }
 0x2ba   : > { %7402 = vmatprep.subr.bf16.mxu0 %v9313_v57  ;;  %7434 = vmatprep.subr.bf16.mxu1 %v9316_v42  ;;  %v9500_v54 = vpack.c.bf16 %v3006_v5, %v2990_v28  ;;  %v9502_v57 = vpack.c.bf16 %v3008_v55, %v2992_v30  ;;  %v2895_v42 = vadd.f32 %v2894_v17, %v8989_v56 }
 0x2bb   : > { %4041 = vmatprep.mubr.f32.mxu0 %v11236_v16  ;;  %4298 = vmatprep.mubr.f32.mxu1 %v11236_v16  ;;  %v2736_v20 = vadd.f32 %v2735_v50, %v8989_v56  ;;  %v2897_v45 = vadd.f32 %v2896_v38, %v8989_v56 }
 0x2bc   : > { %4042 = vmatmul.mubr.f32.gmra.mrb[2].mxu0 %v7598_v11  ;;  %4299 = vmatmul.mubr.f32.gmra.mrb[2].mxu1 %v7598_v11  ;;  %v2739_v43 = vpop.f32.mrb[166].mxu0  ;;  %v2900_v15 = vpop.f32.mrb[166].mxu1 }
 0x2bd   : > { %7404 = vmatpush1.bf16.msra.mxu0 %v9309_v0  ;;  %7436 = vmatpush1.bf16.msra.mxu1 %v9311_v36  ;;  %v2740_v13 = vadd.f32 %v2739_v43, %v8993_v10  ;;  %v2741_v32 = vpop.f32.mrb[167].mxu0  ;;  %v2901_v12 = vadd.f32 %v2900_v15, %v8993_v10  ;;  %v2902_v5 = vpop.f32.mrb[167].mxu1  ;;  %v3021_v0 = vmax.f32 %v2734_v58, 0.0  ;;  %v3022_v55 = vmax.f32 %v2736_v20, 0.0 }
 0x2be   : > { %7406 = vmatprep.subr.bf16.mxu0 %v9339_v41  ;;  %7438 = vmatprep.subr.bf16.mxu1 %v9342_v51  ;;  %v2742_v27 = vadd.f32 %v2741_v32, %v8993_v10  ;;  %v2903_v56 = vadd.f32 %v2902_v5, %v8993_v10  ;;  %v3023_v41 = vmax.f32 %v2895_v42, 0.0  ;;  %v3024_v17 = vmax.f32 %v2897_v45, 0.0 }
 0x2bf   : > { %4047 = vmatprep.mubr.f32.mxu0 %v11236_v16  ;;  %4304 = vmatprep.mubr.f32.mxu1 %v11236_v16  ;;  %v3037_v36 = vmax.f32 %v2740_v13, 0.0  ;;  %v3039_v51 = vmax.f32 %v2901_v12, 0.0 }
 0x2c0   : > { %4048 = vmatmul.mubr.f32.gmra.mrb[4].mxu0 %v7599_v49  ;;  %4305 = vmatmul.mubr.f32.gmra.mrb[4].mxu1 %v7599_v49  ;;  %v3038_v28 = vmax.f32 %v2742_v27, 0.0  ;;  %v2745_v30 = vpop.f32.mrb[168].mxu0  ;;  %v3040_v38 = vmax.f32 %v2903_v56, 0.0  ;;  %v2906_v10 = vpop.f32.mrb[168].mxu1 }
 0x2c1   : > { %7408 = vmatpush1.bf16.msra.mxu0 %v9335_v2  ;;  %7440 = vmatpush1.bf16.msra.mxu1 %v9337_v4  ;;  %v9522_v50 = vpack.c.bf16 %v3037_v36, %v3021_v0  ;;  %v2747_v58 = vpop.f32.mrb[169].mxu0  ;;  %v9526_v11 = vpack.c.bf16 %v3039_v51, %v3023_v41  ;;  %v2908_v42 = vpop.f32.mrb[169].mxu1  ;;  %v2746_v2 = vadd.f32 %v2745_v30, %v9013_v9  ;;  %v7600_v4 = vld [vmem:[%s11163_s5 + $0x18] sm:$0xff]  ;;  %v7601_v36 = vld [vmem:[%s11163_s5 + $0x20] sm:$0xff] }
 0x2c2   : > { %7410 = vmatprep.subr.bf16.mxu0 %v9365_v44  ;;  %7442 = vmatprep.subr.bf16.mxu1 %v9368_v62  ;;  %v9534_v43 = vpack.c.bf16 %v3038_v28, %v3022_v55  ;;  %v9536_v44 = vpack.c.bf16 %v3040_v38, %v3024_v17  ;;  %v2907_v62 = vadd.f32 %v2906_v10, %v9013_v9 }
 0x2c3   : > { %4053 = vmatprep.mubr.f32.mxu0 %v11236_v16  ;;  %4310 = vmatprep.mubr.f32.mxu1 %v11236_v16  ;;  %v2748_v45 = vadd.f32 %v2747_v58, %v9013_v9  ;;  %v2909_v13 = vadd.f32 %v2908_v42, %v9013_v9 }
 0x2c4   : > { %4054 = vmatmul.mubr.f32.gmra.mrb[6].mxu0 %v7600_v4  ;;  %4311 = vmatmul.mubr.f32.gmra.mrb[6].mxu1 %v7600_v4  ;;  %v2751_v20 = vpop.f32.mrb[170].mxu0  ;;  %v2912_v32 = vpop.f32.mrb[170].mxu1 }
 0x2c5   : > { %7412 = vmatpush1.bf16.msra.mxu0 %v9361_v23  ;;  %7444 = vmatpush1.bf16.msra.mxu1 %v9363_v29  ;;  %v2752_v15 = vadd.f32 %v2751_v20, %v9017_v46  ;;  %v2753_v12 = vpop.f32.mrb[171].mxu0  ;;  %v2913_v27 = vadd.f32 %v2912_v32, %v9017_v46  ;;  %v2914_v0 = vpop.f32.mrb[171].mxu1  ;;  %v3053_v23 = vmax.f32 %v2746_v2, 0.0  ;;  %v3054_v41 = vmax.f32 %v2748_v45, 0.0  ;;  %v7603_v32 = vld [vmem:[%s11163_s5 + $0x30] sm:$0xff] }
 0x2c6   : > { %7414 = vmatprep.subr.bf16.mxu0 %v9391_v59  ;;  %7446 = vmatprep.subr.bf16.mxu1 %v9394_v52  ;;  %v2754_v5 = vadd.f32 %v2753_v12, %v9017_v46  ;;  %v2915_v9 = vadd.f32 %v2914_v0, %v9017_v46  ;;  %v3055_v59 = vmax.f32 %v2907_v62, 0.0  ;;  %v3056_v51 = vmax.f32 %v2909_v13, 0.0 }
 0x2c7   : > { %4059 = vmatprep.mubr.f32.mxu0 %v11236_v16  ;;  %4316 = vmatprep.mubr.f32.mxu1 %v11236_v16  ;;  %v3069_v29 = vmax.f32 %v2752_v15, 0.0  ;;  %v3071_v52 = vmax.f32 %v2913_v27, 0.0 }
 0x2c8   : > { %4060 = vmatmul.mubr.f32.gmra.mrb[8].mxu0 %v7601_v36  ;;  %4317 = vmatmul.mubr.f32.gmra.mrb[8].mxu1 %v7601_v36  ;;  %v3070_v56 = vmax.f32 %v2754_v5, 0.0  ;;  %v2757_v49 = vpop.f32.mrb[172].mxu0  ;;  %v3072_v30 = vmax.f32 %v2915_v9, 0.0  ;;  %v2918_v46 = vpop.f32.mrb[172].mxu1 }
 0x2c9   : > { %7416 = vmatpush1.bf16.msra.mxu0 %v9387_v7  ;;  %7448 = vmatpush1.bf16.msra.mxu1 %v9389_v53  ;;  %v9556_v28 = vpack.c.bf16 %v3069_v29, %v3053_v23  ;;  %v2759_v55 = vpop.f32.mrb[173].mxu0  ;;  %v9560_v17 = vpack.c.bf16 %v3071_v52, %v3055_v59  ;;  %v2920_v38 = vpop.f32.mrb[173].mxu1  ;;  %v2758_v7 = vadd.f32 %v2757_v49, %v9037_v18  ;;  %v7602_v53 = vld [vmem:[%s11163_s5 + $0x28] sm:$0xff] }
 0x2ca   : > { %7418 = vmatprep.subr.bf16.mxu0 %v9417_v47  ;;  %7450 = vmatprep.subr.bf16.mxu1 %v9420_v22  ;;  %v9568_v10 = vpack.c.bf16 %v3070_v56, %v3054_v41  ;;  %v9570_v47 = vpack.c.bf16 %v3072_v30, %v3056_v51  ;;  %v2919_v22 = vadd.f32 %v2918_v46, %v9037_v18 }
 0x2cb   : > { %4065 = vmatprep.mubr.f32.mxu0 %v11236_v16  ;;  %4322 = vmatprep.mubr.f32.mxu1 %v11236_v16  ;;  %v2760_v42 = vadd.f32 %v2759_v55, %v9037_v18  ;;  %v2921_v2 = vadd.f32 %v2920_v38, %v9037_v18 }
 0x2cc   : > { %4066 = vmatmul.mubr.f32.gmra.mrb[10].mxu0 %v7602_v53  ;;  %4323 = vmatmul.mubr.f32.gmra.mrb[10].mxu1 %v7602_v53  ;;  %v2763_v58 = vpop.f32.mrb[174].mxu0  ;;  %v7605_v53 = vld [vmem:[%s11163_s5 + $0x40] sm:$0xff] }
 0x2cd   : > { %7420 = vmatpush1.bf16.msra.mxu0 %v9413_v21  ;;  %7452 = vmatpush1.bf16.msra.mxu1 %v9415_v8  ;;  %v2764_v4 = vadd.f32 %v2763_v58, %v9041_v34  ;;  %v2924_v62 = vpop.f32.mrb[174].mxu1  ;;  %v2765_v20 = vpop.f32.mrb[175].mxu0  ;;  %v3085_v21 = vmax.f32 %v2758_v7, 0.0  ;;  %v3086_v5 = vmax.f32 %v2760_v42, 0.0  ;;  %v3088_v0 = vmax.f32 %v2921_v2, 0.0 }
 0x2ce   : > { %7422 = vmatprep.subr.bf16.mxu0 %v9443_v61  ;;  %7454 = vmatprep.subr.bf16.mxu1 %v9446_v3  ;;  %v2925_v45 = vadd.f32 %v2924_v62, %v9041_v34  ;;  %v2766_v13 = vadd.f32 %v2765_v20, %v9041_v34  ;;  %v2926_v15 = vpop.f32.mrb[175].mxu1  ;;  %v3087_v61 = vmax.f32 %v2919_v22, 0.0 }
 0x2cf   : > { %4071 = vmatprep.mubr.f32.mxu0 %v11236_v16  ;;  %4328 = vmatprep.mubr.f32.mxu1 %v11236_v16  ;;  %v3101_v8 = vmax.f32 %v2764_v4, 0.0  ;;  %v2927_v18 = vadd.f32 %v2926_v15, %v9041_v34 }
 0x2d0   : > { %4072 = vmatmul.mubr.f32.gmra.mrb[12].mxu0 %v7603_v32  ;;  %4329 = vmatmul.mubr.f32.gmra.mrb[12].mxu1 %v7603_v32  ;;  %v3103_v3 = vmax.f32 %v2925_v45, 0.0  ;;  %v3102_v12 = vmax.f32 %v2766_v13, 0.0 }
 0x2d1   : > { %v2769_v27 = vpop.f32.mrb[176].mxu0  ;;  %7424 = vmatpush1.bf16.msra.mxu0 %v9439_v40  ;;  %7456 = vmatpush1.bf16.msra.mxu1 %v9441_v1  ;;  %v9590_v23 = vpack.c.bf16 %v3101_v8, %v3085_v21  ;;  %v3104_v29 = vmax.f32 %v2927_v18, 0.0  ;;  %v2930_v34 = vpop.f32.mrb[176].mxu1  ;;  %v7604_v1 = vld [vmem:[%s11163_s5 + $0x38] sm:$0xff]  ;;  %v7606_v8 = vld [vmem:[%s11163_s5 + $0x48] sm:$0xff] }
 0x2d2   : > { %v2771_v9 = vpop.f32.mrb[177].mxu0  ;;  %7426 = vmatprep.subr.bf16.mxu0 %v9469_v48  ;;  %7458 = vmatprep.subr.bf16.mxu1 %v9472_v37  ;;  %v9594_v36 = vpack.c.bf16 %v3103_v3, %v3087_v61  ;;  %v2932_v59 = vpop.f32.mrb[177].mxu1  ;;  %v2770_v40 = vadd.f32 %v2769_v27, %v9061_v24  ;;  %v9602_v52 = vpack.c.bf16 %v3102_v12, %v3086_v5 }
 0x2d3   : > { %4077 = vmatprep.mubr.f32.mxu0 %v11236_v16  ;;  %4334 = vmatprep.mubr.f32.mxu1 %v11236_v16  ;;  %v9604_v48 = vpack.c.bf16 %v3104_v29, %v3088_v0  ;;  %v2931_v37 = vadd.f32 %v2930_v34, %v9061_v24  ;;  %v2772_v56 = vadd.f32 %v2771_v9, %v9061_v24 }
 0x2d4   : > { %4078 = vmatmul.mubr.f32.gmra.mrb[14].mxu0 %v7604_v1  ;;  %4335 = vmatmul.mubr.f32.gmra.mrb[14].mxu1 %v7604_v1  ;;  %v2933_v41 = vadd.f32 %v2932_v59, %v9061_v24 }
 0x2d5   : > { %v2775_v49 = vpop.f32.mrb[178].mxu0  ;;  %7428 = vmatpush1.bf16.msra.mxu0 %v9465_v39  ;;  %7460 = vmatpush1.bf16.msra.mxu1 %v9467_v14  ;;  %v2936_v30 = vpop.f32.mrb[178].mxu1  ;;  %v3117_v39 = vmax.f32 %v2770_v40, 0.0 }
 0x2d6   : > { %v2776_v51 = vadd.f32 %v2775_v49, %v9065_v63  ;;  %v2777_v46 = vpop.f32.mrb[179].mxu0  ;;  %7462 = vmatprep.subr.bf16.mxu0 %v9500_v54  ;;  %7494 = vmatprep.subr.bf16.mxu1 %v9502_v57  ;;  %v2937_v55 = vadd.f32 %v2936_v30, %v9065_v63  ;;  %v2938_v7 = vpop.f32.mrb[179].mxu1  ;;  %v3119_v54 = vmax.f32 %v2931_v37, 0.0  ;;  %v3118_v57 = vmax.f32 %v2772_v56, 0.0  ;;  %v7607_v37 = vld [vmem:[%s11163_s5 + $0x50] sm:$0xff] }
 0x2d7   : > { %v2778_v38 = vadd.f32 %v2777_v46, %v9065_v63  ;;  %4083 = vmatprep.mubr.f32.mxu0 %v11236_v16  ;;  %4340 = vmatprep.mubr.f32.mxu1 %v11236_v16  ;;  %v2939_v24 = vadd.f32 %v2938_v7, %v9065_v63  ;;  %v3120_v2 = vmax.f32 %v2933_v41, 0.0 }
 0x2d8   : > { %v3133_v14 = vmax.f32 %v2776_v51, 0.0  ;;  %4084 = vmatmul.mubr.f32.gmra.mrb[16].mxu0 %v7605_v53  ;;  %4341 = vmatmul.mubr.f32.gmra.mrb[16].mxu1 %v7605_v53  ;;  %v3135_v22 = vmax.f32 %v2937_v55, 0.0  ;;  %v7608_v53 = vld [vmem:[%s11163_s5 + $0x58] sm:$0xff] }
 0x2d9   : > { %v3134_v58 = vmax.f32 %v2778_v38, 0.0  ;;  %v2781_v42 = vpop.f32.mrb[180].mxu0  ;;  %4089 = vmatprep.mubr.f32.mxu0 %v11236_v16  ;;  %4346 = vmatprep.mubr.f32.mxu1 %v11236_v16  ;;  %v3136_v62 = vmax.f32 %v2939_v24, 0.0  ;;  %v2942_v63 = vpop.f32.mrb[180].mxu1 }
 0x2da   : > { %v9624_v4 = vpack.c.bf16 %v3133_v14, %v3117_v39  ;;  %v2783_v20 = vpop.f32.mrb[181].mxu0  ;;  %v9626_v45 = vpack.c.bf16 %v3135_v22, %v3119_v54  ;;  %v2944_v13 = vpop.f32.mrb[181].mxu1  ;;  %v2782_v21 = vadd.f32 %v2781_v42, %v9085_v31  ;;  %v2943_v32 = vadd.f32 %v2942_v63, %v9085_v31 }
 0x2db   : > { %v9628_v15 = vpack.c.bf16 %v3134_v58, %v3118_v57  ;;  %v9634_v18 = vpack.c.bf16 %v3136_v62, %v3120_v2  ;;  %v2784_v61 = vadd.f32 %v2783_v20, %v9085_v31  ;;  %v2945_v12 = vadd.f32 %v2944_v13, %v9085_v31 }
 0x2dc   : > { %4090 = vmatmul.mubr.f32.gmra.mrb[18].mxu0 %v7606_v8  ;;  %4347 = vmatmul.mubr.f32.gmra.mrb[18].mxu1 %v7606_v8  ;;  %v3149_v59 = vmax.f32 %v2782_v21, 0.0  ;;  %v3151_v31 = vmax.f32 %v2943_v32, 0.0 }
 0x2dd   : > { %v2787_v3 = vpop.f32.mrb[182].mxu0  ;;  %4095 = vmatprep.mubr.f32.mxu0 %v11236_v16  ;;  %4352 = vmatprep.mubr.f32.mxu1 %v11236_v16  ;;  %v2948_v5 = vpop.f32.mrb[182].mxu1  ;;  %v3150_v56 = vmax.f32 %v2784_v61, 0.0  ;;  %v3152_v30 = vmax.f32 %v2945_v12, 0.0 }
 0x2de   : > { %v2788_v27 = vadd.f32 %v2787_v3, %v9089_v35  ;;  %v2789_v0 = vpop.f32.mrb[183].mxu0  ;;  %v2949_v29 = vadd.f32 %v2948_v5, %v9089_v35  ;;  %v2950_v9 = vpop.f32.mrb[183].mxu1  ;;  %v7609_v3 = vld [vmem:[%s11163_s5 + $0x60] sm:$0xff] }
 0x2df   : > { %v2790_v34 = vadd.f32 %v2789_v0, %v9089_v35  ;;  %v2951_v1 = vadd.f32 %v2950_v9, %v9089_v35 }
 0x2e0   : > { %v3165_v40 = vmax.f32 %v2788_v27, 0.0  ;;  %4096 = vmatmul.mubr.f32.gmra.mrb[20].mxu0 %v7607_v37  ;;  %4353 = vmatmul.mubr.f32.gmra.mrb[20].mxu1 %v7607_v37  ;;  %v3167_v49 = vmax.f32 %v2949_v29, 0.0 }
 0x2e1   : > { %v3166_v41 = vmax.f32 %v2790_v34, 0.0  ;;  %v2793_v51 = vpop.f32.mrb[184].mxu0  ;;  %4101 = vmatprep.mubr.f32.mxu0 %v11236_v16  ;;  %4358 = vmatprep.mubr.f32.mxu1 %v11236_v16  ;;  %v3168_v55 = vmax.f32 %v2951_v1, 0.0  ;;  %v2954_v35 = vpop.f32.mrb[184].mxu1 }
 0x2e2   : > { %v9650_v46 = vpack.c.bf16 %v3165_v40, %v3149_v59  ;;  %v2795_v38 = vpop.f32.mrb[185].mxu0  ;;  %v9652_v7 = vpack.c.bf16 %v3167_v49, %v3151_v31  ;;  %v2956_v39 = vpop.f32.mrb[185].mxu1  ;;  %v2794_v24 = vadd.f32 %v2793_v51, %v9103_v60  ;;  %v2955_v57 = vadd.f32 %v2954_v35, %v9103_v60 }
 0x2e3   : > { %v9654_v14 = vpack.c.bf16 %v3166_v41, %v3150_v56  ;;  %v9660_v54 = vpack.c.bf16 %v3168_v55, %v3152_v30  ;;  %v2796_v22 = vadd.f32 %v2795_v38, %v9103_v60  ;;  %v2957_v42 = vadd.f32 %v2956_v39, %v9103_v60  ;;  %v7610_v56 = vld [vmem:[%s11163_s5 + $0x68] sm:$0xff] }
 0x2e4   : > { %4102 = vmatmul.mubr.f32.gmra.mrb[22].mxu0 %v7608_v53  ;;  %4359 = vmatmul.mubr.f32.gmra.mrb[22].mxu1 %v7608_v53  ;;  %v3181_v8 = vmax.f32 %v2794_v24, 0.0  ;;  %v3183_v60 = vmax.f32 %v2955_v57, 0.0 }
 0x2e5   : > { %v2799_v58 = vpop.f32.mrb[186].mxu0  ;;  %4107 = vmatprep.mubr.f32.mxu0 %v11236_v16  ;;  %4364 = vmatprep.mubr.f32.mxu1 %v11236_v16  ;;  %v2960_v62 = vpop.f32.mrb[186].mxu1  ;;  %v3182_v12 = vmax.f32 %v2796_v22, 0.0  ;;  %v3184_v29 = vmax.f32 %v2957_v42, 0.0 }
 0x2e6   : > { %v2800_v2 = vadd.f32 %v2799_v58, %v9105_v26  ;;  %v2801_v63 = vpop.f32.mrb[187].mxu0  ;;  %v2961_v20 = vadd.f32 %v2960_v62, %v9105_v26  ;;  %v2962_v21 = vpop.f32.mrb[187].mxu1 }
 0x2e7   : > { %v2802_v13 = vadd.f32 %v2801_v63, %v9105_v26  ;;  %v2963_v61 = vadd.f32 %v2962_v21, %v9105_v26 }
 0x2e8   : > { %v3197_v32 = vmax.f32 %v2800_v2, 0.0  ;;  %4108 = vmatmul.mubr.f32.gmra.mrb[24].mxu0 %v7609_v3  ;;  %4365 = vmatmul.mubr.f32.gmra.mrb[24].mxu1 %v7609_v3  ;;  %v3199_v27 = vmax.f32 %v2961_v20, 0.0  ;;  %v7611_v2 = vld [vmem:[%s11163_s5 + $0x70] sm:$0xff] }
 0x2e9   : > { %v3198_v5 = vmax.f32 %v2802_v13, 0.0  ;;  %v2805_v0 = vpop.f32.mrb[188].mxu0  ;;  %4113 = vmatprep.mubr.f32.mxu0 %v11236_v16  ;;  %4370 = vmatprep.mubr.f32.mxu1 %v11236_v16  ;;  %v3200_v9 = vmax.f32 %v2963_v61, 0.0  ;;  %v2966_v26 = vpop.f32.mrb[188].mxu1  ;;  %v7612_v61 = vld [vmem:[%s11163_s5 + $0x78] sm:$0xff] }
 0x2ea   : > { %v9676_v34 = vpack.c.bf16 %v3197_v32, %v3181_v8  ;;  %v2807_v59 = vpop.f32.mrb[189].mxu0  ;;  %v9678_v40 = vpack.c.bf16 %v3199_v27, %v3183_v60  ;;  %v2968_v1 = vpop.f32.mrb[189].mxu1  ;;  %v2806_v31 = vadd.f32 %v2805_v0, %v9115_v6  ;;  %v2967_v41 = vadd.f32 %v2966_v26, %v9115_v6  ;;  %v7613_v60 = vld [vmem:[%s11163_s5 + $0x80] sm:$0xff]  ;;  %v7615_v27 = vld [vmem:[%s11163_s5 + $0x90] sm:$0xff] }
 0x2eb   : > { %v9680_v37 = vpack.c.bf16 %v3198_v5, %v3182_v12  ;;  %v9686_v49 = vpack.c.bf16 %v3200_v9, %v3184_v29  ;;  %v2808_v51 = vadd.f32 %v2807_v59, %v9115_v6  ;;  %v2969_v55 = vadd.f32 %v2968_v1, %v9115_v6  ;;  %v7614_v12 = vld [vmem:[%s11163_s5 + $0x88] sm:$0xff]  ;;  %v7616_v5 = vld [vmem:[%s11163_s5 + $0x98] sm:$0xff]  ;;  %v7617_v0 = vld [vmem:[%s11163_s5 + $0xa0] sm:$0xff]  ;;  %v9740_v29 = vpop.permute.xlu0 %3299 }
 0x2ec   : > { %4114 = vmatmul.mubr.f32.gmra.mrb[26].mxu0 %v7610_v56  ;;  %4371 = vmatmul.mubr.f32.gmra.mrb[26].mxu1 %v7610_v56  ;;  %v3213_v22 = vmax.f32 %v2806_v31, 0.0  ;;  %v3215_v6 = vmax.f32 %v2967_v41, 0.0  ;;  %v7618_v56 = vld [vmem:[%s11163_s5 + $0xa8] sm:$0xff] }
 0x2ed   : > { %v2811_v30 = vpop.f32.mrb[190].mxu0  ;;  %4119 = vmatprep.mubr.f32.mxu0 %v11236_v16  ;;  %4376 = vmatprep.mubr.f32.mxu1 %v11236_v16  ;;  %v2972_v38 = vpop.f32.mrb[190].mxu1  ;;  %v3214_v62 = vmax.f32 %v2808_v51, 0.0  ;;  %v3216_v13 = vmax.f32 %v2969_v55, 0.0 }
 0x2ee   : > { %v2812_v35 = vadd.f32 %v2811_v30, %v9117_v19  ;;  %v2813_v39 = vpop.f32.mrb[191].mxu0  ;;  %v2973_v24 = vadd.f32 %v2972_v38, %v9117_v19  ;;  %v2974_v57 = vpop.f32.mrb[191].mxu1 }
 0x2ef   : > { %v2814_v53 = vadd.f32 %v2813_v39, %v9117_v19  ;;  %v2975_v42 = vadd.f32 %v2974_v57, %v9117_v19  ;;  %v9750_v30 = vpop.permute.xlu1 %3304 }
 0x2f0   : > { %v3229_v58 = vmax.f32 %v2812_v35, 0.0  ;;  %4120 = vmatmul.mubr.f32.gmra.mrb[28].mxu0 %v7611_v2  ;;  %4377 = vmatmul.mubr.f32.gmra.mrb[28].mxu1 %v7611_v2  ;;  %v3231_v63 = vmax.f32 %v2973_v24, 0.0  ;;  %11237 = vst [vmem:[#allocation6_spill] sm:$0xff] %v9750_v30 }
 0x2f1   : > { %v3230_v20 = vmax.f32 %v2814_v53, 0.0  ;;  %4125 = vmatprep.mubr.f32.mxu0 %v11236_v16  ;;  %4382 = vmatprep.mubr.f32.mxu1 %v11236_v16  ;;  %v3232_v8 = vmax.f32 %v2975_v42, 0.0  ;;  %v7619_v42 = vld [vmem:[%s11163_s5 + $0xb0] sm:$0xff] }
 0x2f2   : > { %v9702_v21 = vpack.c.bf16 %v3229_v58, %v3213_v22  ;;  %v9704_v32 = vpack.c.bf16 %v3231_v63, %v3215_v6  ;;  %v9761_v63 = vpop.permute.xlu0 %3309 }
 0x2f3   : > { %v9706_v19 = vpack.c.bf16 %v3230_v20, %v3214_v62  ;;  %v9711_v3 = vpack.c.bf16 %v3232_v8, %v3216_v13  ;;  %11238 = vst [vmem:[#allocation7_spill] sm:$0xff] %v9761_v63 }
 0x2f4   : > { %4126 = vmatmul.mubr.f32.gmra.mrb[30].mxu0 %v7612_v61  ;;  %4383 = vmatmul.mubr.f32.gmra.mrb[30].mxu1 %v7612_v61 }
 0x2f5   : > { %4131 = vmatprep.mubr.f32.mxu0 %v11236_v16  ;;  %4388 = vmatprep.mubr.f32.mxu1 %v11236_v16 }
 0x2f8   : > { %4132 = vmatmul.mubr.f32.gmra.mrb[32].mxu0 %v7613_v60  ;;  %4389 = vmatmul.mubr.f32.gmra.mrb[32].mxu1 %v7613_v60 }
 0x2f9   : > { %4137 = vmatprep.mubr.f32.mxu0 %v11236_v16  ;;  %4394 = vmatprep.mubr.f32.mxu1 %v11236_v16 }
 0x2fc   : > { %4138 = vmatmul.mubr.f32.gmra.mrb[34].mxu0 %v7614_v12  ;;  %4395 = vmatmul.mubr.f32.gmra.mrb[34].mxu1 %v7614_v12 }
 0x2fd   : > { %4143 = vmatprep.mubr.f32.mxu0 %v11236_v16  ;;  %4400 = vmatprep.mubr.f32.mxu1 %v11236_v16 }
 0x300   : > { %4144 = vmatmul.mubr.f32.gmra.mrb[36].mxu0 %v7615_v27  ;;  %4401 = vmatmul.mubr.f32.gmra.mrb[36].mxu1 %v7615_v27 }
 0x301   : > { %4149 = vmatprep.mubr.f32.mxu0 %v11236_v16  ;;  %4406 = vmatprep.mubr.f32.mxu1 %v11236_v16 }
 0x304   : > { %4150 = vmatmul.mubr.f32.gmra.mrb[38].mxu0 %v7616_v5  ;;  %4407 = vmatmul.mubr.f32.gmra.mrb[38].mxu1 %v7616_v5 }
 0x305   : > { %4155 = vmatprep.mubr.f32.mxu0 %v11236_v16  ;;  %4412 = vmatprep.mubr.f32.mxu1 %v11236_v16 }
 0x308   : > { %4156 = vmatmul.mubr.f32.gmra.mrb[40].mxu0 %v7617_v0  ;;  %4413 = vmatmul.mubr.f32.gmra.mrb[40].mxu1 %v7617_v0 }
 0x309   : > { %4161 = vmatprep.mubr.f32.mxu0 %v11236_v16  ;;  %4418 = vmatprep.mubr.f32.mxu1 %v11236_v16 }
 0x30b   : > { %v3523_v9 = vpop.f32.mrb[192].mxu0  ;;  %v3780_v26 = vpop.f32.mrb[192].mxu1 }
 0x30c   : > { %v3524_v59 = vadd.f32 %v3523_v9, %v9740_v29  ;;  %v3525_v1 = vpop.f32.mrb[193].mxu0  ;;  %v3782_v31 = vpop.f32.mrb[193].mxu1  ;;  %4162 = vmatmul.mubr.f32.gmra.mrb[42].mxu0 %v7618_v56  ;;  %4419 = vmatmul.mubr.f32.gmra.mrb[42].mxu1 %v7618_v56  ;;  %v3781_v41 = vadd.f32 %v3780_v26, %v9740_v29 }
 0x30d   : > { %v3526_v51 = vadd.f32 %v3525_v1, %v9740_v29  ;;  %4167 = vmatprep.mubr.f32.mxu0 %v11236_v16  ;;  %4424 = vmatprep.mubr.f32.mxu1 %v11236_v16  ;;  %v3783_v38 = vadd.f32 %v3782_v31, %v9740_v29 }
 0x30e   : > { %v5513_v55 = vmax.f32 %v3524_v59, 0.0  ;;  %v5515_v2 = vmax.f32 %v3781_v41, 0.0  ;;  %v7620_v59 = vld [vmem:[%s11163_s5 + $0xb8] sm:$0xff] }
 0x30f   : > { %v5514_v35 = vmax.f32 %v3526_v51, 0.0  ;;  %v3529_v39 = vpop.f32.mrb[194].mxu0  ;;  %v3786_v24 = vpop.f32.mrb[194].mxu1  ;;  %v5516_v13 = vmax.f32 %v3783_v38, 0.0 }
 0x310   : > { %v3530_v53 = vadd.f32 %v3529_v39, %v9750_v30  ;;  %v3787_v57 = vadd.f32 %v3786_v24, %v9750_v30  ;;  %v3531_v22 = vpop.f32.mrb[195].mxu0  ;;  %v3788_v58 = vpop.f32.mrb[195].mxu1  ;;  %4168 = vmatmul.mubr.f32.gmra.mrb[44].mxu0 %v7619_v42  ;;  %4425 = vmatmul.mubr.f32.gmra.mrb[44].mxu1 %v7619_v42 }
 0x311   : > { %v6025_v6 = vmax.f32 %v5513_v55, %v5514_v35  ;;  %v3532_v62 = vadd.f32 %v3531_v22, %v9750_v30  ;;  %4173 = vmatprep.mubr.f32.mxu0 %v11236_v16  ;;  %4430 = vmatprep.mubr.f32.mxu1 %v11236_v16  ;;  %v3789_v60 = vadd.f32 %v3788_v58, %v9750_v30  ;;  %v9773_v51 = vpop.permute.xlu1 %3314 }
 0x312   : > { %v5529_v20 = vmax.f32 %v3530_v53, 0.0  ;;  %v5531_v5 = vmax.f32 %v3787_v57, 0.0  ;;  %11239 = vst [vmem:[#allocation8_spill] sm:$0xff] %v9773_v51 }
 0x313   : > { %v6057_v8 = vmax.f32 %v6025_v6, %v5515_v2  ;;  %v5530_v61 = vmax.f32 %v3532_v62, 0.0  ;;  %v3535_v12 = vpop.f32.mrb[196].mxu0  ;;  %v3792_v27 = vpop.f32.mrb[196].mxu1  ;;  %v5532_v35 = vmax.f32 %v3789_v60, 0.0  ;;  %v7621_v6 = vld [vmem:[%s11163_s5 + $0xc0] sm:$0xff] }
 0x314   : > { %v3536_v0 = vadd.f32 %v3535_v12, %v9761_v63  ;;  %v3537_v9 = vpop.f32.mrb[197].mxu0  ;;  %v3794_v26 = vpop.f32.mrb[197].mxu1  ;;  %4174 = vmatmul.mubr.f32.gmra.mrb[46].mxu0 %v7620_v59  ;;  %4431 = vmatmul.mubr.f32.gmra.mrb[46].mxu1 %v7620_v59  ;;  %v3793_v56 = vadd.f32 %v3792_v27, %v9761_v63 }
 0x315   : > { %v9768_v1 = vmax.f32 %v6057_v8, %v5516_v13  ;;  %v6026_v31 = vmax.f32 %v5529_v20, %v5530_v61  ;;  %v3538_v41 = vadd.f32 %v3537_v9, %v9761_v63  ;;  %4179 = vmatprep.mubr.f32.mxu0 %v11236_v16  ;;  %4436 = vmatprep.mubr.f32.mxu1 %v11236_v16  ;;  %v9786_v61 = vpop.permute.xlu0 %3319 }
 0x316   : > { %v5545_v55 = vmax.f32 %v3536_v0, 0.0  ;;  %v3795_v24 = vadd.f32 %v3794_v26, %v9761_v63  ;;  %v5547_v20 = vmax.f32 %v3793_v56, 0.0  ;;  %11240 = vst [vmem:[#allocation9_spill] sm:$0xff] %v9786_v61 }
 0x317   : > { %v6058_v38 = vmax.f32 %v6026_v31, %v5531_v5  ;;  %v5546_v39 = vmax.f32 %v3538_v41, 0.0  ;;  %v3541_v53 = vpop.f32.mrb[198].mxu0  ;;  %v3798_v57 = vpop.f32.mrb[198].mxu1 }
 0x318   : > { %v3542_v22 = vadd.f32 %v3541_v53, %v9773_v51  ;;  %v3799_v58 = vadd.f32 %v3798_v57, %v9773_v51  ;;  %v3543_v42 = vpop.f32.mrb[199].mxu0  ;;  %v3800_v2 = vpop.f32.mrb[199].mxu1  ;;  %4180 = vmatmul.mubr.f32.gmra.mrb[48].mxu0 %v7621_v6  ;;  %4437 = vmatmul.mubr.f32.gmra.mrb[48].mxu1 %v7621_v6  ;;  %v5548_v12 = vmax.f32 %v3795_v24, 0.0 }
 0x319   : > { %v9782_v62 = vmax.f32 %v6058_v38, %v5532_v35  ;;  %v6027_v13 = vmax.f32 %v5545_v55, %v5546_v39  ;;  %v3544_v8 = vadd.f32 %v3543_v42, %v9773_v51  ;;  %4185 = vmatprep.mubr.f32.mxu0 %v11236_v16  ;;  %4442 = vmatprep.mubr.f32.mxu1 %v11236_v16  ;;  %v7622_v55 = vld [vmem:[%s11163_s5 + $0xc8] sm:$0xff]  ;;  %v9799_v53 = vpop.permute.xlu1 %3324 }
 0x31a   : > { %v5561_v60 = vmax.f32 %v3542_v22, 0.0  ;;  %v3801_v0 = vadd.f32 %v3800_v2, %v9773_v51  ;;  %v5563_v59 = vmax.f32 %v3799_v58, 0.0  ;;  %11241 = vst [vmem:[#allocation10_spill] sm:$0xff] %v9799_v53 }
 0x31b   : > { %v6059_v27 = vmax.f32 %v6027_v13, %v5547_v20  ;;  %v5562_v5 = vmax.f32 %v3544_v8, 0.0  ;;  %v3547_v9 = vpop.f32.mrb[200].mxu0  ;;  %v3804_v26 = vpop.f32.mrb[200].mxu1 }
 0x31c   : > { %v3548_v31 = vadd.f32 %v3547_v9, %v9786_v61  ;;  %v3549_v56 = vpop.f32.mrb[201].mxu0  ;;  %v3806_v41 = vpop.f32.mrb[201].mxu1  ;;  %4186 = vmatmul.mubr.f32.gmra.mrb[50].mxu0 %v7622_v55  ;;  %4443 = vmatmul.mubr.f32.gmra.mrb[50].mxu1 %v7622_v55  ;;  %v3805_v39 = vadd.f32 %v3804_v26, %v9786_v61  ;;  %v5564_v22 = vmax.f32 %v3801_v0, 0.0 }
 0x31d   : > { %v9794_v35 = vmax.f32 %v6059_v27, %v5548_v12  ;;  %v6028_v38 = vmax.f32 %v5561_v60, %v5562_v5  ;;  %v3550_v24 = vadd.f32 %v3549_v56, %v9786_v61  ;;  %4191 = vmatprep.mubr.f32.mxu0 %v11236_v16  ;;  %4448 = vmatprep.mubr.f32.mxu1 %v11236_v16  ;;  %v7623_v27 = vld [vmem:[%s11163_s5 + $0xd0] sm:$0xff] }
 0x31e   : > { %v5577_v57 = vmax.f32 %v3548_v31, 0.0  ;;  %v3807_v2 = vadd.f32 %v3806_v41, %v9786_v61  ;;  %v5579_v0 = vmax.f32 %v3805_v39, 0.0 }
 0x31f   : > { %v6060_v58 = vmax.f32 %v6028_v38, %v5563_v59  ;;  %v5578_v42 = vmax.f32 %v3550_v24, 0.0  ;;  %v3553_v6 = vpop.f32.mrb[202].mxu0  ;;  %v3810_v20 = vpop.f32.mrb[202].mxu1 }
 0x320   : > { %v3554_v13 = vadd.f32 %v3553_v6, %v9799_v53  ;;  %v3811_v8 = vadd.f32 %v3810_v20, %v9799_v53  ;;  %v3555_v60 = vpop.f32.mrb[203].mxu0  ;;  %v3812_v12 = vpop.f32.mrb[203].mxu1  ;;  %4192 = vmatmul.mubr.f32.gmra.mrb[52].mxu0 %v7623_v27  ;;  %4449 = vmatmul.mubr.f32.gmra.mrb[52].mxu1 %v7623_v27  ;;  %v5580_v56 = vmax.f32 %v3807_v2, 0.0 }
 0x321   : > { %v9808_v5 = vmax.f32 %v6060_v58, %v5564_v22  ;;  %v6029_v9 = vmax.f32 %v5577_v57, %v5578_v42  ;;  %v3556_v26 = vadd.f32 %v3555_v60, %v9799_v53  ;;  %4197 = vmatprep.mubr.f32.mxu0 %v11236_v16  ;;  %v9812_v59 = vpop.permute.xlu0 %3329  ;;  %4454 = vmatprep.mubr.f32.mxu1 %v11236_v16  ;;  %v7624_v42 = vld [vmem:[%s11163_s5 + $0xd8] sm:$0xff] }
 0x322   : > { %11242 = vst [vmem:[#allocation11_spill] sm:$0xff] %v9812_v59  ;;  %v5593_v31 = vmax.f32 %v3554_v13, 0.0  ;;  %v3813_v38 = vadd.f32 %v3812_v12, %v9799_v53  ;;  %v5595_v22 = vmax.f32 %v3811_v8, 0.0  ;;  %v9825_v8 = vpop.permute.xlu1 %3334 }
 0x323   : > { %v6061_v41 = vmax.f32 %v6029_v9, %v5579_v0  ;;  %v5594_v55 = vmax.f32 %v3556_v26, 0.0  ;;  %v3559_v24 = vpop.f32.mrb[204].mxu0  ;;  %v3816_v6 = vpop.f32.mrb[204].mxu1  ;;  %11243 = vst [vmem:[#allocation12_spill] sm:$0xff] %v9825_v8 }
 0x324   : > { %v3560_v39 = vadd.f32 %v3559_v24, %v9812_v59  ;;  %v3561_v57 = vpop.f32.mrb[205].mxu0  ;;  %v3818_v58 = vpop.f32.mrb[205].mxu1  ;;  %4198 = vmatmul.mubr.f32.gmra.mrb[54].mxu0 %v7624_v42  ;;  %4455 = vmatmul.mubr.f32.gmra.mrb[54].mxu1 %v7624_v42  ;;  %v3817_v13 = vadd.f32 %v3816_v6, %v9812_v59  ;;  %v5596_v27 = vmax.f32 %v3813_v38, 0.0 }
 0x325   : > { %v9820_v20 = vmax.f32 %v6061_v41, %v5580_v56  ;;  %v6030_v2 = vmax.f32 %v5593_v31, %v5594_v55  ;;  %v3562_v60 = vadd.f32 %v3561_v57, %v9812_v59  ;;  %4203 = vmatprep.mubr.f32.mxu0 %v11236_v16  ;;  %4460 = vmatprep.mubr.f32.mxu1 %v11236_v16  ;;  %v7625_v57 = vld [vmem:[%s11163_s5 + $0xe0] sm:$0xff]  ;;  %v9838_v42 = vpop.permute.xlu0 %3339 }
 0x326   : > { %v5609_v12 = vmax.f32 %v3560_v39, 0.0  ;;  %v3819_v26 = vadd.f32 %v3818_v58, %v9812_v59  ;;  %v5611_v38 = vmax.f32 %v3817_v13, 0.0  ;;  %11245 = vst [vmem:[#allocation14_spill] sm:$0xff] %v9838_v42 }
 0x327   : > { %v6062_v0 = vmax.f32 %v6030_v2, %v5595_v22  ;;  %v5610_v9 = vmax.f32 %v3562_v60, 0.0  ;;  %v3565_v24 = vpop.f32.mrb[206].mxu0  ;;  %v3822_v56 = vpop.f32.mrb[206].mxu1 }
 0x328   : > { %v3566_v31 = vadd.f32 %v3565_v24, %v9825_v8  ;;  %v3823_v41 = vadd.f32 %v3822_v56, %v9825_v8  ;;  %v3567_v55 = vpop.f32.mrb[207].mxu0  ;;  %v3824_v6 = vpop.f32.mrb[207].mxu1  ;;  %4204 = vmatmul.mubr.f32.gmra.mrb[56].mxu0 %v7625_v57  ;;  %4461 = vmatmul.mubr.f32.gmra.mrb[56].mxu1 %v7625_v57  ;;  %v5612_v60 = vmax.f32 %v3819_v26, 0.0 }
 0x329   : > { %v9834_v39 = vmax.f32 %v6062_v0, %v5596_v27  ;;  %v6031_v22 = vmax.f32 %v5609_v12, %v5610_v9  ;;  %v3568_v58 = vadd.f32 %v3567_v55, %v9825_v8  ;;  %4209 = vmatprep.mubr.f32.mxu0 %v11236_v16  ;;  %4466 = vmatprep.mubr.f32.mxu1 %v11236_v16  ;;  %v7626_v9 = vld [vmem:[%s11163_s5 + $0xe8] sm:$0xff] }
 0x32a   : > { %v5625_v2 = vmax.f32 %v3566_v31, 0.0  ;;  %v3825_v59 = vadd.f32 %v3824_v6, %v9825_v8  ;;  %v5627_v27 = vmax.f32 %v3823_v41, 0.0  ;;  %v9851_v41 = vpop.permute.xlu1 %3344 }
 0x32b   : > { %11244 = vst [vmem:[#allocation13_spill] sm:$0xff] %v9834_v39  ;;  %v6063_v24 = vmax.f32 %v6031_v22, %v5611_v38  ;;  %v5626_v56 = vmax.f32 %v3568_v58, 0.0  ;;  %v3571_v53 = vpop.f32.mrb[208].mxu0  ;;  %v3828_v57 = vpop.f32.mrb[208].mxu1  ;;  %11247 = vst [vmem:[#allocation16_spill] sm:$0xff] %v9851_v41 }
 0x32c   : > { %v3572_v13 = vadd.f32 %v3571_v53, %v9838_v42  ;;  %v3573_v12 = vpop.f32.mrb[209].mxu0  ;;  %v3830_v0 = vpop.f32.mrb[209].mxu1  ;;  %4210 = vmatmul.mubr.f32.gmra.mrb[58].mxu0 %v7626_v9  ;;  %4467 = vmatmul.mubr.f32.gmra.mrb[58].mxu1 %v7626_v9  ;;  %v3829_v55 = vadd.f32 %v3828_v57, %v9838_v42  ;;  %v5628_v38 = vmax.f32 %v3825_v59, 0.0 }
 0x32d   : > { %v9846_v31 = vmax.f32 %v6063_v24, %v5612_v60  ;;  %v6032_v26 = vmax.f32 %v5625_v2, %v5626_v56  ;;  %v3574_v6 = vadd.f32 %v3573_v12, %v9838_v42  ;;  %4215 = vmatprep.mubr.f32.mxu0 %v11236_v16  ;;  %4472 = vmatprep.mubr.f32.mxu1 %v11236_v16  ;;  %v7627_v12 = vld [vmem:[%s11163_s5 + $0xf0] sm:$0xff] }
 0x32e   : > { %v5641_v53 = vmax.f32 %v3572_v13, 0.0  ;;  %v3831_v8 = vadd.f32 %v3830_v0, %v9838_v42  ;;  %v5643_v59 = vmax.f32 %v3829_v55, 0.0 }
 0x32f   : > { %11246 = vst [vmem:[#allocation15_spill] sm:$0xff] %v9846_v31  ;;  %v6064_v22 = vmax.f32 %v6032_v26, %v5627_v27  ;;  %v5642_v58 = vmax.f32 %v3574_v6, 0.0  ;;  %v3577_v9 = vpop.f32.mrb[210].mxu0  ;;  %v3834_v60 = vpop.f32.mrb[210].mxu1 }
 0x330   : > { %v3578_v2 = vadd.f32 %v3577_v9, %v9851_v41  ;;  %v3835_v24 = vadd.f32 %v3834_v60, %v9851_v41  ;;  %v3579_v56 = vpop.f32.mrb[211].mxu0  ;;  %v3836_v57 = vpop.f32.mrb[211].mxu1  ;;  %4216 = vmatmul.mubr.f32.gmra.mrb[60].mxu0 %v7627_v12  ;;  %4473 = vmatmul.mubr.f32.gmra.mrb[60].mxu1 %v7627_v12  ;;  %v5644_v9 = vmax.f32 %v3831_v8, 0.0 }
 0x331   : > { %v9860_v13 = vmax.f32 %v6064_v22, %v5628_v38  ;;  %v6033_v27 = vmax.f32 %v5641_v53, %v5642_v58  ;;  %v3580_v0 = vadd.f32 %v3579_v56, %v9851_v41  ;;  %4221 = vmatprep.mubr.f32.mxu0 %v11236_v16  ;;  %v9864_v26 = vpop.permute.xlu0 %3349  ;;  %4478 = vmatprep.mubr.f32.mxu1 %v11236_v16  ;;  %v7628_v58 = vld [vmem:[%s11163_s5 + $0xf8] sm:$0xff] }
 0x332   : > { %11248 = vst [vmem:[#allocation17_spill] sm:$0xff] %v9864_v26  ;;  %v5657_v6 = vmax.f32 %v3578_v2, 0.0  ;;  %v3837_v31 = vadd.f32 %v3836_v57, %v9851_v41  ;;  %v5659_v38 = vmax.f32 %v3835_v24, 0.0  ;;  %v9877_v24 = vpop.permute.xlu1 %3354 }
 0x333   : > { %v6065_v60 = vmax.f32 %v6033_v27, %v5643_v59  ;;  %v5658_v42 = vmax.f32 %v3580_v0, 0.0  ;;  %v3583_v39 = vpop.f32.mrb[212].mxu0  ;;  %v3840_v12 = vpop.f32.mrb[212].mxu1 }
 0x334   : > { %v3584_v55 = vadd.f32 %v3583_v39, %v9864_v26  ;;  %v3585_v53 = vpop.f32.mrb[213].mxu0  ;;  %v3842_v22 = vpop.f32.mrb[213].mxu1  ;;  %4222 = vmatmul.mubr.f32.gmra.mrb[62].mxu0 %v7628_v58  ;;  %4479 = vmatmul.mubr.f32.gmra.mrb[62].mxu1 %v7628_v58  ;;  %v3841_v56 = vadd.f32 %v3840_v12, %v9864_v26  ;;  %v5660_v59 = vmax.f32 %v3837_v31, 0.0 }
 0x335   : > { %v9872_v2 = vmax.f32 %v6065_v60, %v5644_v9  ;;  %v6034_v8 = vmax.f32 %v5657_v6, %v5658_v42  ;;  %v3586_v57 = vadd.f32 %v3585_v53, %v9864_v26  ;;  %4549 = vmatprep.mubr.f32.mxu0 %v11236_v16  ;;  %4806 = vmatprep.mubr.f32.mxu1 %v11236_v16  ;;  %v7629_v53 = vld [vmem:[%s11163_s5] sm:$0xff] }
 0x336   : > { %v5673_v39 = vmax.f32 %v3584_v55, 0.0  ;;  %v3843_v41 = vadd.f32 %v3842_v22, %v9864_v26  ;;  %v5675_v31 = vmax.f32 %v3841_v56, 0.0 }
 0x337   : > { %v6066_v27 = vmax.f32 %v6034_v8, %v5659_v38  ;;  %v5674_v0 = vmax.f32 %v3586_v57, 0.0  ;;  %v3589_v58 = vpop.f32.mrb[214].mxu0  ;;  %v3846_v9 = vpop.f32.mrb[214].mxu1 }
 0x338   : > { %v3590_v42 = vadd.f32 %v3589_v58, %v9877_v24  ;;  %v3847_v6 = vadd.f32 %v3846_v9, %v9877_v24  ;;  %v3591_v60 = vpop.f32.mrb[215].mxu0  ;;  %v3848_v12 = vpop.f32.mrb[215].mxu1  ;;  %4550 = vmatmul.mubr.f32.vlgmr.msra.gmra.mrb[64].mxu0 %v7629_v53  ;;  %4807 = vmatmul.mubr.f32.vlgmr.msra.gmra.mrb[64].mxu1 %v7629_v53  ;;  %v5676_v58 = vmax.f32 %v3843_v41, 0.0 }
 0x339   : > { %v9886_v55 = vmax.f32 %v6066_v27, %v5660_v59  ;;  %v6035_v38 = vmax.f32 %v5673_v39, %v5674_v0  ;;  %v3592_v22 = vadd.f32 %v3591_v60, %v9877_v24  ;;  %7464 = vmatpush1.bf16.msra.mxu0 %v9488_v25  ;;  %v9890_v8 = vpop.permute.xlu0 %3359  ;;  %7496 = vmatpush1.bf16.msra.mxu1 %v9492_v33 }
 0x33a   : > { %v5689_v57 = vmax.f32 %v3590_v42, 0.0  ;;  %7466 = vmatprep.subr.bf16.mxu0 %v9534_v43  ;;  %v3849_v53 = vadd.f32 %v3848_v12, %v9877_v24  ;;  %7498 = vmatprep.subr.bf16.mxu1 %v9536_v44  ;;  %v5691_v59 = vmax.f32 %v3847_v6, 0.0  ;;  %v7630_v43 = vld [vmem:[%s11163_s5 + $0x8] sm:$0xff]  ;;  %v9906_v6 = vpop.permute.xlu1 %3364 }
 0x33b   : > { %v6067_v9 = vmax.f32 %v6035_v38, %v5675_v31  ;;  %v5690_v26 = vmax.f32 %v3592_v22, 0.0  ;;  %v3595_v56 = vpop.f32.mrb[216].mxu0  ;;  %v3852_v39 = vpop.f32.mrb[216].mxu1  ;;  %4555 = vmatprep.mubr.f32.mxu0 %v11236_v16  ;;  %4812 = vmatprep.mubr.f32.mxu1 %v11236_v16 }
 0x33c   : > { %v3596_v25 = vadd.f32 %v3595_v56, %v9890_v8  ;;  %v3597_v27 = vpop.f32.mrb[217].mxu0  ;;  %v3854_v33 = vpop.f32.mrb[217].mxu1  ;;  %4556 = vmatmul.mubr.f32.gmra.mrb[66].mxu0 %v7630_v43  ;;  %v3853_v44 = vadd.f32 %v3852_v39, %v9890_v8  ;;  %4813 = vmatmul.mubr.f32.gmra.mrb[66].mxu1 %v7630_v43  ;;  %v5692_v12 = vmax.f32 %v3849_v53, 0.0 }
 0x33d   : > { %v9902_v41 = vmax.f32 %v6067_v9, %v5676_v58  ;;  %v6036_v0 = vmax.f32 %v5689_v57, %v5690_v26  ;;  %v3598_v42 = vadd.f32 %v3597_v27, %v9890_v8  ;;  %7468 = vmatpush1.bf16.msra.mxu0 %v9522_v50  ;;  %7500 = vmatpush1.bf16.msra.mxu1 %v9526_v11 }
 0x33e   : > { %v5705_v60 = vmax.f32 %v3596_v25, 0.0  ;;  %v3855_v22 = vadd.f32 %v3854_v33, %v9890_v8  ;;  %7470 = vmatprep.subr.bf16.mxu0 %v9568_v10  ;;  %7502 = vmatprep.subr.bf16.mxu1 %v9570_v47  ;;  %v5707_v56 = vmax.f32 %v3853_v44, 0.0  ;;  %v7631_v47 = vld [vmem:[%s11163_s5 + $0x10] sm:$0xff] }
 0x33f   : > { %v6068_v31 = vmax.f32 %v6036_v0, %v5691_v59  ;;  %v5706_v38 = vmax.f32 %v3598_v42, 0.0  ;;  %v3601_v26 = vpop.f32.mrb[218].mxu0  ;;  %v3858_v57 = vpop.f32.mrb[218].mxu1  ;;  %4561 = vmatprep.mubr.f32.mxu0 %v11236_v16  ;;  %4818 = vmatprep.mubr.f32.mxu1 %v11236_v16 }
 0x340   : > { %v3602_v58 = vadd.f32 %v3601_v26, %v9906_v6  ;;  %v3859_v9 = vadd.f32 %v3858_v57, %v9906_v6  ;;  %v3603_v50 = vpop.f32.mrb[219].mxu0  ;;  %v3860_v11 = vpop.f32.mrb[219].mxu1  ;;  %4562 = vmatmul.mubr.f32.gmra.mrb[68].mxu0 %v7631_v47  ;;  %4819 = vmatmul.mubr.f32.gmra.mrb[68].mxu1 %v7631_v47  ;;  %v5708_v27 = vmax.f32 %v3855_v22, 0.0 }
 0x341   : > { %v9917_v53 = vmax.f32 %v6068_v31, %v5692_v12  ;;  %v6037_v39 = vmax.f32 %v5705_v60, %v5706_v38  ;;  %v3604_v10 = vadd.f32 %v3603_v50, %v9906_v6  ;;  %v9923_v59 = vpop.permute.xlu0 %3369  ;;  %7472 = vmatpush1.bf16.msra.mxu0 %v9556_v28  ;;  %v3861_v0 = vadd.f32 %v3860_v11, %v9906_v6 }
 0x342   : > { %v5721_v25 = vmax.f32 %v3602_v58, 0.0  ;;  %7504 = vmatpush1.bf16.msra.mxu1 %v9560_v17  ;;  %7474 = vmatprep.subr.bf16.mxu0 %v9602_v52  ;;  %v5723_v60 = vmax.f32 %v3859_v9, 0.0  ;;  %v9937_v52 = vpop.permute.xlu1 %3374 }
 0x343   : > { %v6069_v33 = vmax.f32 %v6037_v39, %v5707_v56  ;;  %v5722_v43 = vmax.f32 %v3604_v10, 0.0  ;;  %v3607_v44 = vpop.f32.mrb[220].mxu0  ;;  %v3864_v42 = vpop.f32.mrb[220].mxu1  ;;  %7506 = vmatprep.subr.bf16.mxu1 %v9604_v48  ;;  %4567 = vmatprep.mubr.f32.mxu0 %v11236_v16  ;;  %v7632_v48 = vld [vmem:[%s11163_s5 + $0x18] sm:$0xff]  ;;  %v5724_v58 = vmax.f32 %v3861_v0, 0.0 }
 0x344   : > { %v3608_v12 = vadd.f32 %v3607_v44, %v9923_v59  ;;  %v3609_v31 = vpop.f32.mrb[221].mxu0  ;;  %v3866_v28 = vpop.f32.mrb[221].mxu1  ;;  %v3865_v26 = vadd.f32 %v3864_v42, %v9923_v59  ;;  %4824 = vmatprep.mubr.f32.mxu1 %v11236_v16  ;;  %4568 = vmatmul.mubr.f32.gmra.mrb[70].mxu0 %v7632_v48 }
 0x345   : > { %v9932_v38 = vmax.f32 %v6069_v33, %v5708_v27  ;;  %v6038_v22 = vmax.f32 %v5721_v25, %v5722_v43  ;;  %v3610_v17 = vadd.f32 %v3609_v31, %v9923_v59  ;;  %4825 = vmatmul.mubr.f32.gmra.mrb[70].mxu1 %v7632_v48  ;;  %v3867_v11 = vadd.f32 %v3866_v28, %v9923_v59 }
 0x346   : > { %v5737_v57 = vmax.f32 %v3608_v12, 0.0  ;;  %7476 = vmatpush1.bf16.msra.mxu0 %v9590_v23  ;;  %7508 = vmatpush1.bf16.msra.mxu1 %v9594_v36  ;;  %v5739_v43 = vmax.f32 %v3865_v26, 0.0  ;;  %v9954_v36 = vpop.permute.xlu0 %3379 }
 0x347   : > { %v6070_v9 = vmax.f32 %v6038_v22, %v5723_v60  ;;  %v5738_v50 = vmax.f32 %v3610_v17, 0.0  ;;  %v3613_v56 = vpop.f32.mrb[222].mxu0  ;;  %v3870_v39 = vpop.f32.mrb[222].mxu1  ;;  %7478 = vmatprep.subr.bf16.mxu0 %v9628_v15  ;;  %7510 = vmatprep.subr.bf16.mxu1 %v9634_v18  ;;  %v7633_v18 = vld [vmem:[%s11163_s5 + $0x20] sm:$0xff]  ;;  %v5740_v44 = vmax.f32 %v3867_v11, 0.0 }
 0x348   : > { %v3614_v10 = vadd.f32 %v3613_v56, %v9937_v52  ;;  %v3871_v47 = vadd.f32 %v3870_v39, %v9937_v52  ;;  %v3615_v25 = vpop.f32.mrb[223].mxu0  ;;  %v3872_v27 = vpop.f32.mrb[223].mxu1  ;;  %4573 = vmatprep.mubr.f32.mxu0 %v11236_v16  ;;  %4830 = vmatprep.mubr.f32.mxu1 %v11236_v16 }
 0x349   : > { %v9949_v33 = vmax.f32 %v6070_v9, %v5724_v58  ;;  %v6039_v0 = vmax.f32 %v5737_v57, %v5738_v50  ;;  %v3616_v23 = vadd.f32 %v3615_v25, %v9937_v52  ;;  %4574 = vmatmul.mubr.f32.gmra.mrb[72].mxu0 %v7633_v18  ;;  %4831 = vmatmul.mubr.f32.gmra.mrb[72].mxu1 %v7633_v18 }
 0x34a   : > { %v5753_v15 = vmax.f32 %v3614_v10, 0.0  ;;  %v3873_v12 = vadd.f32 %v3872_v27, %v9937_v52  ;;  %7480 = vmatpush1.bf16.msra.mxu0 %v9624_v4  ;;  %7512 = vmatpush1.bf16.msra.mxu1 %v9626_v45  ;;  %v5755_v58 = vmax.f32 %v3871_v47, 0.0  ;;  %v9971_v45 = vpop.permute.xlu1 %3384 }
 0x34b   : > { %v6071_v42 = vmax.f32 %v6039_v0, %v5739_v43  ;;  %v5754_v60 = vmax.f32 %v3616_v23, 0.0  ;;  %v3619_v31 = vpop.f32.mrb[224].mxu0  ;;  %v3876_v28 = vpop.f32.mrb[224].mxu1  ;;  %7482 = vmatprep.subr.bf16.mxu0 %v9654_v14  ;;  %7514 = vmatprep.subr.bf16.mxu1 %v9660_v54  ;;  %v7634_v54 = vld [vmem:[%s11163_s5 + $0x28] sm:$0xff] }
 0x34c   : > { %v3620_v22 = vadd.f32 %v3619_v31, %v9954_v36  ;;  %v3877_v26 = vadd.f32 %v3876_v28, %v9954_v36  ;;  %v3621_v17 = vpop.f32.mrb[225].mxu0  ;;  %v3878_v57 = vpop.f32.mrb[225].mxu1  ;;  %4579 = vmatprep.mubr.f32.mxu0 %v11236_v16  ;;  %4836 = vmatprep.mubr.f32.mxu1 %v11236_v16  ;;  %v5756_v50 = vmax.f32 %v3873_v12, 0.0 }
 0x34d   : > { %v9966_v48 = vmax.f32 %v6071_v42, %v5740_v44  ;;  %v6040_v9 = vmax.f32 %v5753_v15, %v5754_v60  ;;  %v3622_v4 = vadd.f32 %v3621_v17, %v9954_v36  ;;  %4580 = vmatmul.mubr.f32.gmra.mrb[74].mxu0 %v7634_v54  ;;  %4837 = vmatmul.mubr.f32.gmra.mrb[74].mxu1 %v7634_v54 }
 0x34e   : > { %v5769_v14 = vmax.f32 %v3620_v22, 0.0  ;;  %v3879_v39 = vadd.f32 %v3878_v57, %v9954_v36  ;;  %7484 = vmatpush1.bf16.msra.mxu0 %v9650_v46  ;;  %7516 = vmatpush1.bf16.msra.mxu1 %v9652_v7  ;;  %v5771_v15 = vmax.f32 %v3877_v26, 0.0  ;;  %v9988_v7 = vpop.permute.xlu0 %3389 }
 0x34f   : > { %v6072_v11 = vmax.f32 %v6040_v9, %v5755_v58  ;;  %v5770_v56 = vmax.f32 %v3622_v4, 0.0  ;;  %v3625_v10 = vpop.f32.mrb[226].mxu0  ;;  %v3882_v47 = vpop.f32.mrb[226].mxu1  ;;  %7486 = vmatprep.subr.bf16.mxu0 %v9680_v37  ;;  %7518 = vmatprep.subr.bf16.mxu1 %v9686_v49  ;;  %v7635_v49 = vld [vmem:[%s11163_s5 + $0x30] sm:$0xff] }
 0x350   : > { %v3626_v25 = vadd.f32 %v3625_v10, %v9971_v45  ;;  %v3883_v27 = vadd.f32 %v3882_v47, %v9971_v45  ;;  %v3627_v43 = vpop.f32.mrb[227].mxu0  ;;  %v3884_v0 = vpop.f32.mrb[227].mxu1  ;;  %4585 = vmatprep.mubr.f32.mxu0 %v11236_v16  ;;  %4842 = vmatprep.mubr.f32.mxu1 %v11236_v16  ;;  %v5772_v44 = vmax.f32 %v3879_v39, 0.0 }
 0x351   : > { %v9983_v23 = vmax.f32 %v6072_v11, %v5756_v50  ;;  %v6041_v18 = vmax.f32 %v5769_v14, %v5770_v56  ;;  %v3628_v46 = vadd.f32 %v3627_v43, %v9971_v45  ;;  %4586 = vmatmul.mubr.f32.gmra.mrb[76].mxu0 %v7635_v49  ;;  %4843 = vmatmul.mubr.f32.gmra.mrb[76].mxu1 %v7635_v49 }
 0x352   : > { %v5785_v37 = vmax.f32 %v3626_v25, 0.0  ;;  %v3885_v12 = vadd.f32 %v3884_v0, %v9971_v45  ;;  %7488 = vmatpush1.bf16.msra.mxu0 %v9676_v34  ;;  %7520 = vmatpush1.bf16.msra.mxu1 %v9678_v40  ;;  %v5787_v9 = vmax.f32 %v3883_v27, 0.0  ;;  %v10005_v40 = vpop.permute.xlu1 %3394 }
 0x353   : > { %v6073_v42 = vmax.f32 %v6041_v18, %v5771_v15  ;;  %v5786_v60 = vmax.f32 %v3628_v46, 0.0  ;;  %v3631_v31 = vpop.f32.mrb[228].mxu0  ;;  %v3888_v28 = vpop.f32.mrb[228].mxu1  ;;  %7490 = vmatprep.subr.bf16.mxu0 %v9706_v19  ;;  %7522 = vmatprep.subr.bf16.mxu1 %v9711_v3  ;;  %v7636_v3 = vld [vmem:[%s11163_s5 + $0x38] sm:$0xff]  ;;  %v7637_v46 = vld [vmem:[%s11163_s5 + $0x40] sm:$0xff] }
 0x354   : > { %v3632_v22 = vadd.f32 %v3631_v31, %v9988_v7  ;;  %v3889_v26 = vadd.f32 %v3888_v28, %v9988_v7  ;;  %v3633_v17 = vpop.f32.mrb[229].mxu0  ;;  %v3890_v57 = vpop.f32.mrb[229].mxu1  ;;  %4591 = vmatprep.mubr.f32.mxu0 %v11236_v16  ;;  %4848 = vmatprep.mubr.f32.mxu1 %v11236_v16  ;;  %v5788_v14 = vmax.f32 %v3885_v12, 0.0 }
 0x355   : > { %v10000_v58 = vmax.f32 %v6073_v42, %v5772_v44  ;;  %v6042_v4 = vmax.f32 %v5785_v37, %v5786_v60  ;;  %v3634_v34 = vadd.f32 %v3633_v17, %v9988_v7  ;;  %4592 = vmatmul.mubr.f32.gmra.mrb[78].mxu0 %v7636_v3  ;;  %4849 = vmatmul.mubr.f32.gmra.mrb[78].mxu1 %v7636_v3  ;;  %v10020_v18 = vpop.permute.xlu0 %3399  ;;  %v7638_v3 = vld [vmem:[%s11163_s5 + $0x48] sm:$0xff] }
 0x356   : > { %v5801_v19 = vmax.f32 %v3632_v22, 0.0  ;;  %v3891_v11 = vadd.f32 %v3890_v57, %v9988_v7  ;;  %7492 = vmatpush1.bf16.msra.mxu0 %v9702_v21  ;;  %7524 = vmatpush1.bf16.msra.mxu1 %v9704_v32  ;;  %v5803_v10 = vmax.f32 %v3889_v26, 0.0  ;;  %11249 = vst [vmem:[#allocation18_spill] sm:$0xff] %v10020_v18 }
 0x357   : > { %v6074_v54 = vmax.f32 %v6042_v4, %v5787_v9  ;;  %v5802_v50 = vmax.f32 %v3634_v34, 0.0  ;;  %v3637_v56 = vpop.f32.mrb[230].mxu0  ;;  %v3894_v39 = vpop.f32.mrb[230].mxu1  ;;  %4597 = vmatprep.mubr.f32.mxu0 %v11236_v16  ;;  %4854 = vmatprep.mubr.f32.mxu1 %v11236_v16 }
 0x358   : > { %v3638_v47 = vadd.f32 %v3637_v56, %v10005_v40  ;;  %v3639_v25 = vpop.f32.mrb[231].mxu0  ;;  %v3896_v27 = vpop.f32.mrb[231].mxu1  ;;  %v3895_v15 = vadd.f32 %v3894_v39, %v10005_v40  ;;  %v5804_v37 = vmax.f32 %v3891_v11, 0.0 }
 0x359   : > { %v10016_v43 = vmax.f32 %v6074_v54, %v5788_v14  ;;  %v6043_v0 = vmax.f32 %v5801_v19, %v5802_v50  ;;  %v3640_v21 = vadd.f32 %v3639_v25, %v10005_v40  ;;  %4598 = vmatmul.mubr.f32.gmra.mrb[80].mxu0 %v7637_v46  ;;  %4855 = vmatmul.mubr.f32.gmra.mrb[80].mxu1 %v7637_v46  ;;  %v10033_v34 = vpop.permute.xlu1 %3404  ;;  %v10046_v46 = vpop.permute.xlu0 %3409 }
 0x35a   : > { %v5817_v32 = vmax.f32 %v3638_v47, 0.0  ;;  %v3897_v42 = vadd.f32 %v3896_v27, %v10005_v40  ;;  %4603 = vmatprep.mubr.f32.mxu0 %v11236_v16  ;;  %4860 = vmatprep.mubr.f32.mxu1 %v11236_v16  ;;  %v5819_v57 = vmax.f32 %v3895_v15, 0.0  ;;  %11250 = vst [vmem:[#allocation19_spill] sm:$0xff] %v10033_v34  ;;  %11251 = vst [vmem:[#allocation20_spill] sm:$0xff] %v10046_v46 }
 0x35b   : > { %v6075_v49 = vmax.f32 %v6043_v0, %v5803_v10  ;;  %v5818_v44 = vmax.f32 %v3640_v21, 0.0  ;;  %v3643_v60 = vpop.f32.mrb[232].mxu0  ;;  %v3900_v12 = vpop.f32.mrb[232].mxu1 }
 0x35c   : > { %v3644_v31 = vadd.f32 %v3643_v60, %v10020_v18  ;;  %v3901_v28 = vadd.f32 %v3900_v12, %v10020_v18  ;;  %v3645_v22 = vpop.f32.mrb[233].mxu0  ;;  %v3902_v26 = vpop.f32.mrb[233].mxu1  ;;  %v5820_v14 = vmax.f32 %v3897_v42, 0.0 }
 0x35d   : > { %v10030_v17 = vmax.f32 %v6075_v49, %v5804_v37  ;;  %v6044_v9 = vmax.f32 %v5817_v32, %v5818_v44  ;;  %v3646_v4 = vadd.f32 %v3645_v22, %v10020_v18  ;;  %4604 = vmatmul.mubr.f32.gmra.mrb[82].mxu0 %v7638_v3  ;;  %4861 = vmatmul.mubr.f32.gmra.mrb[82].mxu1 %v7638_v3  ;;  %v7639_v49 = vld [vmem:[%s11163_s5 + $0x50] sm:$0xff] }
 0x35e   : > { %v5833_v19 = vmax.f32 %v3644_v31, 0.0  ;;  %v3903_v11 = vadd.f32 %v3902_v26, %v10020_v18  ;;  %4609 = vmatprep.mubr.f32.mxu0 %v11236_v16  ;;  %4866 = vmatprep.mubr.f32.mxu1 %v11236_v16  ;;  %v5835_v10 = vmax.f32 %v3901_v28, 0.0 }
 0x35f   : > { %v6076_v54 = vmax.f32 %v6044_v9, %v5819_v57  ;;  %v5834_v50 = vmax.f32 %v3646_v4, 0.0  ;;  %v3649_v56 = vpop.f32.mrb[234].mxu0  ;;  %v3906_v39 = vpop.f32.mrb[234].mxu1 }
 0x360   : > { %v3650_v47 = vadd.f32 %v3649_v56, %v10033_v34  ;;  %v3651_v25 = vpop.f32.mrb[235].mxu0  ;;  %v3908_v27 = vpop.f32.mrb[235].mxu1  ;;  %v3907_v21 = vadd.f32 %v3906_v39, %v10033_v34  ;;  %v5836_v44 = vmax.f32 %v3903_v11, 0.0  ;;  %v7640_v11 = vld [vmem:[%s11163_s5 + $0x58] sm:$0xff] }
 0x361   : > { %v10042_v0 = vmax.f32 %v6076_v54, %v5820_v14  ;;  %v6045_v15 = vmax.f32 %v5833_v19, %v5834_v50  ;;  %v3652_v32 = vadd.f32 %v3651_v25, %v10033_v34  ;;  %4610 = vmatmul.mubr.f32.gmra.mrb[84].mxu0 %v7639_v49  ;;  %4867 = vmatmul.mubr.f32.gmra.mrb[84].mxu1 %v7639_v49  ;;  %v10059_v54 = vpop.permute.xlu1 %3414 }
 0x362   : > { %v5849_v37 = vmax.f32 %v3650_v47, 0.0  ;;  %v3909_v12 = vadd.f32 %v3908_v27, %v10033_v34  ;;  %4615 = vmatprep.mubr.f32.mxu0 %v11236_v16  ;;  %4872 = vmatprep.mubr.f32.mxu1 %v11236_v16  ;;  %v5851_v19 = vmax.f32 %v3907_v21, 0.0  ;;  %11252 = vst [vmem:[#allocation21_spill] sm:$0xff] %v10059_v54 }
 0x363   : > { %v6077_v42 = vmax.f32 %v6045_v15, %v5835_v10  ;;  %v5850_v60 = vmax.f32 %v3652_v32, 0.0  ;;  %v3655_v31 = vpop.f32.mrb[236].mxu0  ;;  %v3912_v28 = vpop.f32.mrb[236].mxu1 }
 0x364   : > { %v3656_v22 = vadd.f32 %v3655_v31, %v10046_v46  ;;  %v3913_v26 = vadd.f32 %v3912_v28, %v10046_v46  ;;  %v3657_v57 = vpop.f32.mrb[237].mxu0  ;;  %v3914_v9 = vpop.f32.mrb[237].mxu1  ;;  %v5852_v56 = vmax.f32 %v3909_v12, 0.0  ;;  %v7641_v28 = vld [vmem:[%s11163_s5 + $0x60] sm:$0xff] }
 0x365   : > { %v10056_v4 = vmax.f32 %v6077_v42, %v5836_v44  ;;  %v6046_v3 = vmax.f32 %v5849_v37, %v5850_v60  ;;  %v3658_v14 = vadd.f32 %v3657_v57, %v10046_v46  ;;  %4616 = vmatmul.mubr.f32.gmra.mrb[86].mxu0 %v7640_v11  ;;  %4873 = vmatmul.mubr.f32.gmra.mrb[86].mxu1 %v7640_v11  ;;  %v10072_v12 = vpop.permute.xlu0 %3419 }
 0x366   : > { %v5865_v50 = vmax.f32 %v3656_v22, 0.0  ;;  %v3915_v47 = vadd.f32 %v3914_v9, %v10046_v46  ;;  %4621 = vmatprep.mubr.f32.mxu0 %v11236_v16  ;;  %4878 = vmatprep.mubr.f32.mxu1 %v11236_v16  ;;  %v5867_v15 = vmax.f32 %v3913_v26, 0.0  ;;  %11253 = vst [vmem:[#allocation22_spill] sm:$0xff] %v10072_v12 }
 0x367   : > { %v6078_v39 = vmax.f32 %v6046_v3, %v5851_v19  ;;  %v5866_v10 = vmax.f32 %v3658_v14, 0.0  ;;  %v3661_v25 = vpop.f32.mrb[238].mxu0  ;;  %v3918_v27 = vpop.f32.mrb[238].mxu1 }
 0x368   : > { %v3662_v21 = vadd.f32 %v3661_v25, %v10059_v54  ;;  %v3663_v32 = vpop.f32.mrb[239].mxu0  ;;  %v3920_v37 = vpop.f32.mrb[239].mxu1  ;;  %v3919_v42 = vadd.f32 %v3918_v27, %v10059_v54  ;;  %v5868_v22 = vmax.f32 %v3915_v47, 0.0 }
 0x369   : > { %v10068_v49 = vmax.f32 %v6078_v39, %v5852_v56  ;;  %v6047_v44 = vmax.f32 %v5865_v50, %v5866_v10  ;;  %v3664_v60 = vadd.f32 %v3663_v32, %v10059_v54  ;;  %4622 = vmatmul.mubr.f32.gmra.mrb[88].mxu0 %v7641_v28  ;;  %4879 = vmatmul.mubr.f32.gmra.mrb[88].mxu1 %v7641_v28  ;;  %v10085_v27 = vpop.permute.xlu1 %3424 }
 0x36a   : > { %v5881_v31 = vmax.f32 %v3662_v21, 0.0  ;;  %v3921_v9 = vadd.f32 %v3920_v37, %v10059_v54  ;;  %4627 = vmatprep.mubr.f32.mxu0 %v11236_v16  ;;  %4884 = vmatprep.mubr.f32.mxu1 %v11236_v16  ;;  %v5883_v10 = vmax.f32 %v3919_v42, 0.0  ;;  %11254 = vst [vmem:[#allocation23_spill] sm:$0xff] %v10085_v27  ;;  %v7642_v21 = vld [vmem:[%s11163_s5 + $0x68] sm:$0xff] }
 0x36b   : > { %v6079_v26 = vmax.f32 %v6047_v44, %v5867_v15  ;;  %v5882_v57 = vmax.f32 %v3664_v60, 0.0  ;;  %v3667_v19 = vpop.f32.mrb[240].mxu0  ;;  %v3924_v3 = vpop.f32.mrb[240].mxu1 }
 0x36c   : > { %v3668_v14 = vadd.f32 %v3667_v19, %v10072_v12  ;;  %v3925_v50 = vadd.f32 %v3924_v3, %v10072_v12  ;;  %v3669_v11 = vpop.f32.mrb[241].mxu0  ;;  %v3926_v56 = vpop.f32.mrb[241].mxu1  ;;  %v5884_v32 = vmax.f32 %v3921_v9, 0.0 }
 0x36d   : > { %v10082_v39 = vmax.f32 %v6079_v26, %v5868_v22  ;;  %v6048_v47 = vmax.f32 %v5881_v31, %v5882_v57  ;;  %v3670_v25 = vadd.f32 %v3669_v11, %v10072_v12  ;;  %4628 = vmatmul.mubr.f32.gmra.mrb[90].mxu0 %v7642_v21  ;;  %4885 = vmatmul.mubr.f32.gmra.mrb[90].mxu1 %v7642_v21  ;;  %v10098_v11 = vpop.permute.xlu0 %3429 }
 0x36e   : > { %v5897_v15 = vmax.f32 %v3668_v14, 0.0  ;;  %v3927_v60 = vadd.f32 %v3926_v56, %v10072_v12  ;;  %4633 = vmatprep.mubr.f32.mxu0 %v11236_v16  ;;  %4890 = vmatprep.mubr.f32.mxu1 %v11236_v16  ;;  %v5899_v42 = vmax.f32 %v3925_v50, 0.0  ;;  %11255 = vst [vmem:[#allocation24_spill] sm:$0xff] %v10098_v11 }
 0x36f   : > { %v6080_v37 = vmax.f32 %v6048_v47, %v5883_v10  ;;  %v5898_v44 = vmax.f32 %v3670_v25, 0.0  ;;  %v3673_v28 = vpop.f32.mrb[242].mxu0  ;;  %v3930_v22 = vpop.f32.mrb[242].mxu1  ;;  %v7643_v10 = vld [vmem:[%s11163_s5 + $0x70] sm:$0xff] }
 0x370   : > { %v3674_v31 = vadd.f32 %v3673_v28, %v10085_v27  ;;  %v3675_v26 = vpop.f32.mrb[243].mxu0  ;;  %v3932_v57 = vpop.f32.mrb[243].mxu1  ;;  %v3931_v9 = vadd.f32 %v3930_v22, %v10085_v27  ;;  %v5900_v50 = vmax.f32 %v3927_v60, 0.0 }
 0x371   : > { %v10094_v19 = vmax.f32 %v6080_v37, %v5884_v32  ;;  %v6049_v3 = vmax.f32 %v5897_v15, %v5898_v44  ;;  %v3676_v14 = vadd.f32 %v3675_v26, %v10085_v27  ;;  %4634 = vmatmul.mubr.f32.gmra.mrb[92].mxu0 %v7643_v10  ;;  %4891 = vmatmul.mubr.f32.gmra.mrb[92].mxu1 %v7643_v10 }
 0x372   : > { %v5913_v56 = vmax.f32 %v3674_v31, 0.0  ;;  %v3933_v21 = vadd.f32 %v3932_v57, %v10085_v27  ;;  %4639 = vmatprep.mubr.f32.mxu0 %v11236_v16  ;;  %4896 = vmatprep.mubr.f32.mxu1 %v11236_v16  ;;  %v5915_v26 = vmax.f32 %v3931_v9, 0.0 }
 0x373   : > { %v6081_v47 = vmax.f32 %v6049_v3, %v5899_v42  ;;  %v5914_v25 = vmax.f32 %v3676_v14, 0.0  ;;  %v3679_v32 = vpop.f32.mrb[244].mxu0  ;;  %v3936_v15 = vpop.f32.mrb[244].mxu1  ;;  %v7644_v14 = vld [vmem:[%s11163_s5 + $0x78] sm:$0xff] }
 0x374   : > { %v3680_v37 = vadd.f32 %v3679_v32, %v10098_v11  ;;  %v3937_v44 = vadd.f32 %v3936_v15, %v10098_v11  ;;  %v3681_v28 = vpop.f32.mrb[245].mxu0  ;;  %v3938_v22 = vpop.f32.mrb[245].mxu1  ;;  %v5916_v10 = vmax.f32 %v3933_v21, 0.0 }
 0x375   : > { %v10108_v31 = vmax.f32 %v6081_v47, %v5900_v50  ;;  %v6050_v60 = vmax.f32 %v5913_v56, %v5914_v25  ;;  %v3682_v42 = vadd.f32 %v3681_v28, %v10098_v11  ;;  %v10111_v3 = vpop.permute.xlu1 %3434  ;;  %4640 = vmatmul.mubr.f32.gmra.mrb[94].mxu0 %v7644_v14  ;;  %4897 = vmatmul.mubr.f32.gmra.mrb[94].mxu1 %v7644_v14 }
 0x376   : > { %11257 = vst [vmem:[#allocation26_spill] sm:$0xff] %v10111_v3  ;;  %v5929_v57 = vmax.f32 %v3680_v37, 0.0  ;;  %v3939_v27 = vadd.f32 %v3938_v22, %v10098_v11  ;;  %4645 = vmatprep.mubr.f32.mxu0 %v11236_v16  ;;  %4902 = vmatprep.mubr.f32.mxu1 %v11236_v16  ;;  %v5931_v9 = vmax.f32 %v3937_v44, 0.0 }
 0x377   : > { %11256 = vst [vmem:[#allocation25_spill] sm:$0xff] %v10108_v31  ;;  %v6082_v32 = vmax.f32 %v6050_v60, %v5915_v26  ;;  %v5930_v15 = vmax.f32 %v3682_v42, 0.0  ;;  %v3685_v50 = vpop.f32.mrb[246].mxu0  ;;  %v3942_v47 = vpop.f32.mrb[246].mxu1  ;;  %v7645_v42 = vld [vmem:[%s11163_s5 + $0x80] sm:$0xff] }
 0x378   : > { %v3686_v56 = vadd.f32 %v3685_v50, %v10111_v3  ;;  %v3687_v25 = vpop.f32.mrb[247].mxu0  ;;  %v3944_v37 = vpop.f32.mrb[247].mxu1  ;;  %v3943_v21 = vadd.f32 %v3942_v47, %v10111_v3  ;;  %v5932_v44 = vmax.f32 %v3939_v27, 0.0 }
 0x379   : > { %v10120_v28 = vmax.f32 %v6082_v32, %v5916_v10  ;;  %v6051_v31 = vmax.f32 %v5929_v57, %v5930_v15  ;;  %v3688_v26 = vadd.f32 %v3687_v25, %v10111_v3  ;;  %v10124_v60 = vpop.permute.xlu0 %3439  ;;  %4646 = vmatmul.mubr.f32.gmra.mrb[96].mxu0 %v7645_v42  ;;  %4903 = vmatmul.mubr.f32.gmra.mrb[96].mxu1 %v7645_v42 }
 0x37a   : > { %11259 = vst [vmem:[#allocation28_spill] sm:$0xff] %v10124_v60  ;;  %v5945_v22 = vmax.f32 %v3686_v56, 0.0  ;;  %v3945_v10 = vadd.f32 %v3944_v37, %v10111_v3  ;;  %4651 = vmatprep.mubr.f32.mxu0 %v11236_v16  ;;  %4908 = vmatprep.mubr.f32.mxu1 %v11236_v16  ;;  %v5947_v42 = vmax.f32 %v3943_v21, 0.0 }
 0x37b   : > { %11258 = vst [vmem:[#allocation27_spill] sm:$0xff] %v10120_v28  ;;  %v6083_v14 = vmax.f32 %v6051_v31, %v5931_v9  ;;  %v5946_v50 = vmax.f32 %v3688_v26, 0.0  ;;  %v3691_v32 = vpop.f32.mrb[248].mxu0  ;;  %v3948_v57 = vpop.f32.mrb[248].mxu1  ;;  %v7646_v26 = vld [vmem:[%s11163_s5 + $0x88] sm:$0xff] }
 0x37c   : > { %v3692_v15 = vadd.f32 %v3691_v32, %v10124_v60  ;;  %v3949_v47 = vadd.f32 %v3948_v57, %v10124_v60  ;;  %v3693_v56 = vpop.f32.mrb[249].mxu0  ;;  %v3950_v25 = vpop.f32.mrb[249].mxu1  ;;  %v5948_v32 = vmax.f32 %v3945_v10, 0.0 }
 0x37d   : > { %v10134_v11 = vmax.f32 %v6083_v14, %v5932_v44  ;;  %v6052_v27 = vmax.f32 %v5945_v22, %v5946_v50  ;;  %v3694_v31 = vadd.f32 %v3693_v56, %v10124_v60  ;;  %v10137_v9 = vpop.permute.xlu1 %3444  ;;  %4652 = vmatmul.mubr.f32.gmra.mrb[98].mxu0 %v7646_v26  ;;  %4909 = vmatmul.mubr.f32.gmra.mrb[98].mxu1 %v7646_v26 }
 0x37e   : > { %11261 = vst [vmem:[#allocation30_spill] sm:$0xff] %v10137_v9  ;;  %v5961_v37 = vmax.f32 %v3692_v15, 0.0  ;;  %v3951_v28 = vadd.f32 %v3950_v25, %v10124_v60  ;;  %4657 = vmatprep.mubr.f32.mxu0 %v11236_v16  ;;  %4914 = vmatprep.mubr.f32.mxu1 %v11236_v16  ;;  %v5963_v21 = vmax.f32 %v3949_v47, 0.0 }
 0x37f   : > { %11260 = vst [vmem:[#allocation29_spill] sm:$0xff] %v10134_v11  ;;  %v6084_v3 = vmax.f32 %v6052_v27, %v5947_v42  ;;  %v5962_v57 = vmax.f32 %v3694_v31, 0.0  ;;  %v3697_v44 = vpop.f32.mrb[250].mxu0  ;;  %v3954_v14 = vpop.f32.mrb[250].mxu1  ;;  %v7647_v31 = vld [vmem:[%s11163_s5 + $0x90] sm:$0xff] }
 0x380   : > { %v3698_v22 = vadd.f32 %v3697_v44, %v10137_v9  ;;  %v3699_v50 = vpop.f32.mrb[251].mxu0  ;;  %v3956_v15 = vpop.f32.mrb[251].mxu1  ;;  %v3955_v10 = vadd.f32 %v3954_v14, %v10137_v9  ;;  %v5964_v47 = vmax.f32 %v3951_v28, 0.0 }
 0x381   : > { %v10146_v56 = vmax.f32 %v6084_v3, %v5948_v32  ;;  %v6053_v11 = vmax.f32 %v5961_v37, %v5962_v57  ;;  %v3700_v42 = vadd.f32 %v3699_v50, %v10137_v9  ;;  %v10150_v27 = vpop.permute.xlu0 %3449  ;;  %4658 = vmatmul.mubr.f32.gmra.mrb[100].mxu0 %v7647_v31  ;;  %4915 = vmatmul.mubr.f32.gmra.mrb[100].mxu1 %v7647_v31 }
 0x382   : > { %11263 = vst [vmem:[#allocation32_spill] sm:$0xff] %v10150_v27  ;;  %v5977_v25 = vmax.f32 %v3698_v22, 0.0  ;;  %v3957_v3 = vadd.f32 %v3956_v15, %v10137_v9  ;;  %4663 = vmatprep.mubr.f32.mxu0 %v11236_v16  ;;  %4920 = vmatprep.mubr.f32.mxu1 %v11236_v16  ;;  %v5979_v31 = vmax.f32 %v3955_v10, 0.0 }
 0x383   : > { %11262 = vst [vmem:[#allocation31_spill] sm:$0xff] %v10146_v56  ;;  %v6085_v26 = vmax.f32 %v6053_v11, %v5963_v21  ;;  %v5978_v44 = vmax.f32 %v3700_v42, 0.0  ;;  %v3703_v32 = vpop.f32.mrb[252].mxu0  ;;  %v3960_v37 = vpop.f32.mrb[252].mxu1  ;;  %v7648_v42 = vld [vmem:[%s11163_s5 + $0x98] sm:$0xff] }
 0x384   : > { %v3704_v57 = vadd.f32 %v3703_v32, %v10150_v27  ;;  %v3961_v14 = vadd.f32 %v3960_v37, %v10150_v27  ;;  %v3705_v22 = vpop.f32.mrb[253].mxu0  ;;  %v3962_v50 = vpop.f32.mrb[253].mxu1  ;;  %v5980_v32 = vmax.f32 %v3957_v3, 0.0 }
 0x385   : > { %v10160_v60 = vmax.f32 %v6085_v26, %v5964_v47  ;;  %v6054_v28 = vmax.f32 %v5977_v25, %v5978_v44  ;;  %v3706_v11 = vadd.f32 %v3705_v22, %v10150_v27  ;;  %v10163_v21 = vpop.permute.xlu1 %3454  ;;  %4664 = vmatmul.mubr.f32.gmra.mrb[102].mxu0 %v7648_v42  ;;  %4921 = vmatmul.mubr.f32.gmra.mrb[102].mxu1 %v7648_v42 }
 0x386   : > { %11265 = vst [vmem:[#allocation34_spill] sm:$0xff] %v10163_v21  ;;  %v5993_v15 = vmax.f32 %v3704_v57, 0.0  ;;  %v3963_v56 = vadd.f32 %v3962_v50, %v10150_v27  ;;  %4669 = vmatprep.mubr.f32.mxu0 %v11236_v16  ;;  %4926 = vmatprep.mubr.f32.mxu1 %v11236_v16  ;;  %v5995_v10 = vmax.f32 %v3961_v14, 0.0  ;;  %v7649_v50 = vld [vmem:[%s11163_s5 + $0xa0] sm:$0xff] }
 0x387   : > { %11264 = vst [vmem:[#allocation33_spill] sm:$0xff] %v10160_v60  ;;  %v6086_v9 = vmax.f32 %v6054_v28, %v5979_v31  ;;  %v5994_v37 = vmax.f32 %v3706_v11, 0.0  ;;  %v3709_v47 = vpop.f32.mrb[254].mxu0  ;;  %v3966_v26 = vpop.f32.mrb[254].mxu1 }
 0x388   : > { %v3710_v25 = vadd.f32 %v3709_v47, %v10163_v21  ;;  %v3711_v44 = vpop.f32.mrb[255].mxu0  ;;  %v3968_v57 = vpop.f32.mrb[255].mxu1  ;;  %v3967_v3 = vadd.f32 %v3966_v26, %v10163_v21  ;;  %v5996_v11 = vmax.f32 %v3963_v56, 0.0 }
 0x389   : > { %v10172_v22 = vmax.f32 %v6086_v9, %v5980_v32  ;;  %v6055_v60 = vmax.f32 %v5993_v15, %v5994_v37  ;;  %v3712_v31 = vadd.f32 %v3711_v44, %v10163_v21  ;;  %4670 = vmatmul.mubr.f32.gmra.mrb[104].mxu0 %v7649_v50  ;;  %4927 = vmatmul.mubr.f32.gmra.mrb[104].mxu1 %v7649_v50 }
 0x38a   : > { %v6009_v28 = vmax.f32 %v3710_v25, 0.0  ;;  %v3969_v47 = vadd.f32 %v3968_v57, %v10163_v21  ;;  %4675 = vmatprep.mubr.f32.mxu0 %v11236_v16  ;;  %4932 = vmatprep.mubr.f32.mxu1 %v11236_v16  ;;  %v6011_v25 = vmax.f32 %v3967_v3, 0.0  ;;  %v7650_v57 = vld [vmem:[%s11163_s5 + $0xa8] sm:$0xff] }
 0x38b   : > { %11266 = vst [vmem:[#allocation35_spill] sm:$0xff] %v10172_v22  ;;  %v6087_v14 = vmax.f32 %v6055_v60, %v5995_v10  ;;  %v6010_v42 = vmax.f32 %v3712_v31, 0.0  ;;  %v4037_v27 = vpop.f32.mrb[0].mxu0  ;;  %v4294_v9 = vpop.f32.mrb[0].mxu1 }
 0x38c   : > { %v4038_v15 = vadd.f32 %v4037_v27, %v9740_v29  ;;  %v4039_v32 = vpop.f32.mrb[1].mxu0  ;;  %v4296_v37 = vpop.f32.mrb[1].mxu1  ;;  %v4295_v10 = vadd.f32 %v4294_v9, %v9740_v29  ;;  %v6012_v31 = vmax.f32 %v3969_v47, 0.0 }
 0x38d   : > { %v10183_v26 = vmax.f32 %v6087_v14, %v5996_v11  ;;  %v6056_v44 = vmax.f32 %v6009_v28, %v6010_v42  ;;  %v4040_v56 = vadd.f32 %v4039_v32, %v9740_v29  ;;  %4676 = vmatmul.mubr.f32.gmra.mrb[106].mxu0 %v7650_v57  ;;  %4933 = vmatmul.mubr.f32.gmra.mrb[106].mxu1 %v7650_v57 }
 0x38e   : > { %v5517_v60 = vmax.f32 %v4038_v15, 0.0  ;;  %4681 = vmatprep.mubr.f32.mxu0 %v11236_v16  ;;  %4938 = vmatprep.mubr.f32.mxu1 %v11236_v16  ;;  %v4297_v28 = vadd.f32 %v4296_v37, %v9740_v29  ;;  %v5519_v15 = vmax.f32 %v4295_v10, 0.0 }
 0x38f   : > { %v6088_v50 = vmax.f32 %v6056_v44, %v6011_v25  ;;  %v5518_v27 = vmax.f32 %v4040_v56, 0.0  ;;  %v4043_v21 = vpop.f32.mrb[2].mxu0  ;;  %v4300_v22 = vpop.f32.mrb[2].mxu1  ;;  %v7651_v56 = vld [vmem:[%s11163_s5 + $0xb0] sm:$0xff] }
 0x390   : > { %v6121_v3 = vmax.f32 %v9768_v1, %v5517_v60  ;;  %v4044_v11 = vadd.f32 %v4043_v21, %v9750_v30  ;;  %v4045_v14 = vpop.f32.mrb[3].mxu0  ;;  %v4302_v42 = vpop.f32.mrb[3].mxu1  ;;  %v4301_v44 = vadd.f32 %v4300_v22, %v9750_v30  ;;  %v5520_v10 = vmax.f32 %v4297_v28, 0.0  ;;  %v7652_v28 = vld [vmem:[%s11163_s5 + $0xb8] sm:$0xff] }
 0x391   : > { %v10195_v9 = vmax.f32 %v6088_v50, %v6012_v31  ;;  %v4046_v47 = vadd.f32 %v4045_v14, %v9750_v30  ;;  %4682 = vmatmul.mubr.f32.gmra.mrb[108].mxu0 %v7651_v56  ;;  %4939 = vmatmul.mubr.f32.gmra.mrb[108].mxu1 %v7651_v56  ;;  %v4303_v21 = vadd.f32 %v4302_v42, %v9750_v30 }
 0x392   : > { %v6153_v32 = vmax.f32 %v6121_v3, %v5518_v27  ;;  %v5533_v25 = vmax.f32 %v4044_v11, 0.0  ;;  %4687 = vmatprep.mubr.f32.mxu0 %v11236_v16  ;;  %4944 = vmatprep.mubr.f32.mxu1 %v11236_v16  ;;  %v5535_v42 = vmax.f32 %v4301_v44, 0.0 }
 0x393   : > { %v5534_v1 = vmax.f32 %v4046_v47, 0.0  ;;  %v4049_v37 = vpop.f32.mrb[4].mxu0  ;;  %v4306_v60 = vpop.f32.mrb[4].mxu1 }
 0x394   : > { %v6185_v57 = vmax.f32 %v6153_v32, %v5519_v15  ;;  %v6122_v31 = vmax.f32 %v9782_v62, %v5533_v25  ;;  %v4050_v22 = vadd.f32 %v4049_v37, %v9761_v63  ;;  %v4051_v50 = vpop.f32.mrb[5].mxu0  ;;  %v4308_v27 = vpop.f32.mrb[5].mxu1  ;;  %v4307_v3 = vadd.f32 %v4306_v60, %v9761_v63 }
 0x395   : > { %v4052_v11 = vadd.f32 %v4051_v50, %v9761_v63  ;;  %4688 = vmatmul.mubr.f32.gmra.mrb[110].mxu0 %v7652_v28  ;;  %4945 = vmatmul.mubr.f32.gmra.mrb[110].mxu1 %v7652_v28  ;;  %v5536_v62 = vmax.f32 %v4303_v21, 0.0  ;;  %v4309_v44 = vadd.f32 %v4308_v27, %v9761_v63 }
 0x396   : > { %v10209_v14 = vmax.f32 %v6185_v57, %v5520_v10  ;;  %v6154_v47 = vmax.f32 %v6122_v31, %v5534_v1  ;;  %v5549_v56 = vmax.f32 %v4050_v22, 0.0  ;;  %4693 = vmatprep.mubr.f32.mxu0 %v11236_v16  ;;  %4950 = vmatprep.mubr.f32.mxu1 %v11236_v16  ;;  %v5551_v31 = vmax.f32 %v4307_v3, 0.0 }
 0x397   : > { %v5550_v15 = vmax.f32 %v4052_v11, 0.0  ;;  %v4055_v32 = vpop.f32.mrb[6].mxu0  ;;  %v4312_v25 = vpop.f32.mrb[6].mxu1  ;;  %v5552_v3 = vmax.f32 %v4309_v44, 0.0  ;;  %v7654_v44 = vld [vmem:[%s11163_s5 + $0xc8] sm:$0xff] }
 0x398   : > { %v6186_v37 = vmax.f32 %v6154_v47, %v5535_v42  ;;  %v6123_v60 = vmax.f32 %v9794_v35, %v5549_v56  ;;  %v4056_v1 = vadd.f32 %v4055_v32, %v9773_v51  ;;  %v4057_v10 = vpop.f32.mrb[7].mxu0  ;;  %v4314_v57 = vpop.f32.mrb[7].mxu1  ;;  %v4313_v28 = vadd.f32 %v4312_v25, %v9773_v51  ;;  %v7653_v42 = vld [vmem:[%s11163_s5 + $0xc0] sm:$0xff] }
 0x399   : > { %v4058_v22 = vadd.f32 %v4057_v10, %v9773_v51  ;;  %4694 = vmatmul.mubr.f32.gmra.mrb[112].mxu0 %v7653_v42  ;;  %4951 = vmatmul.mubr.f32.gmra.mrb[112].mxu1 %v7653_v42  ;;  %v4315_v27 = vadd.f32 %v4314_v57, %v9773_v51 }
 0x39a   : > { %v10220_v21 = vmax.f32 %v6186_v37, %v5536_v62  ;;  %v6155_v50 = vmax.f32 %v6123_v60, %v5550_v15  ;;  %v5565_v11 = vmax.f32 %v4056_v1, 0.0  ;;  %4699 = vmatprep.mubr.f32.mxu0 %v11236_v16  ;;  %4956 = vmatprep.mubr.f32.mxu1 %v11236_v16  ;;  %v5567_v57 = vmax.f32 %v4313_v28, 0.0 }
 0x39b   : > { %v5566_v35 = vmax.f32 %v4058_v22, 0.0  ;;  %v4061_v47 = vpop.f32.mrb[8].mxu0  ;;  %v4318_v56 = vpop.f32.mrb[8].mxu1 }
 0x39c   : > { %v6187_v62 = vmax.f32 %v6155_v50, %v5551_v31  ;;  %v6124_v15 = vmax.f32 %v9808_v5, %v5565_v11  ;;  %v4062_v32 = vadd.f32 %v4061_v47, %v9786_v61  ;;  %v4063_v25 = vpop.f32.mrb[9].mxu0  ;;  %v4320_v37 = vpop.f32.mrb[9].mxu1  ;;  %v4319_v60 = vadd.f32 %v4318_v56, %v9786_v61 }
 0x39d   : > { %v4064_v1 = vadd.f32 %v4063_v25, %v9786_v61  ;;  %4700 = vmatmul.mubr.f32.gmra.mrb[114].mxu0 %v7654_v44  ;;  %4957 = vmatmul.mubr.f32.gmra.mrb[114].mxu1 %v7654_v44  ;;  %v5568_v5 = vmax.f32 %v4315_v27, 0.0  ;;  %v4321_v28 = vadd.f32 %v4320_v37, %v9786_v61 }
 0x39e   : > { %v10233_v10 = vmax.f32 %v6187_v62, %v5552_v3  ;;  %v6156_v22 = vmax.f32 %v6124_v15, %v5566_v35  ;;  %v5581_v42 = vmax.f32 %v4062_v32, 0.0  ;;  %4705 = vmatprep.mubr.f32.mxu0 %v11236_v16  ;;  %4962 = vmatprep.mubr.f32.mxu1 %v11236_v16  ;;  %v11267_v35 = vld [vmem:[#allocation10_spill] sm:$0xff]  ;;  %v5583_v32 = vmax.f32 %v4319_v60, 0.0 }
 0x39f   : > { %v5582_v31 = vmax.f32 %v4064_v1, 0.0  ;;  %v4067_v50 = vpop.f32.mrb[10].mxu0  ;;  %v4324_v11 = vpop.f32.mrb[10].mxu1  ;;  %v5584_v60 = vmax.f32 %v4321_v28, 0.0  ;;  %v7656_v28 = vld [vmem:[%s11163_s5 + $0xd8] sm:$0xff] }
 0x3a0   : > { %v6188_v47 = vmax.f32 %v6156_v22, %v5567_v57  ;;  %v6125_v56 = vmax.f32 %v9820_v20, %v5581_v42  ;;  %v4068_v3 = vadd.f32 %v4067_v50, %v11267_v35  ;;  %v4069_v62 = vpop.f32.mrb[11].mxu0  ;;  %v4326_v15 = vpop.f32.mrb[11].mxu1  ;;  %v4325_v51 = vadd.f32 %v4324_v11, %v11267_v35  ;;  %v7655_v57 = vld [vmem:[%s11163_s5 + $0xd0] sm:$0xff] }
 0x3a1   : > { %v4070_v25 = vadd.f32 %v4069_v62, %v11267_v35  ;;  %4706 = vmatmul.mubr.f32.gmra.mrb[116].mxu0 %v7655_v57  ;;  %4963 = vmatmul.mubr.f32.gmra.mrb[116].mxu1 %v7655_v57  ;;  %v4327_v37 = vadd.f32 %v4326_v15, %v11267_v35  ;;  %v11270_v11 = vld [vmem:[#allocation11_spill] sm:$0xff] }
 0x3a2   : > { %v10244_v27 = vmax.f32 %v6188_v47, %v5568_v5  ;;  %v6157_v1 = vmax.f32 %v6125_v56, %v5582_v31  ;;  %v5597_v44 = vmax.f32 %v4068_v3, 0.0  ;;  %4711 = vmatprep.mubr.f32.mxu0 %v11236_v16  ;;  %4968 = vmatprep.mubr.f32.mxu1 %v11236_v16  ;;  %v11269_v31 = vld [vmem:[#allocation13_spill] sm:$0xff]  ;;  %v5599_v15 = vmax.f32 %v4325_v51, 0.0 }
 0x3a3   : > { %v5598_v20 = vmax.f32 %v4070_v25, 0.0  ;;  %v4073_v22 = vpop.f32.mrb[12].mxu0  ;;  %v4330_v42 = vpop.f32.mrb[12].mxu1 }
 0x3a4   : > { %11268 = vst [vmem:[#allocation36_spill] sm:$0xff] %v10244_v27  ;;  %v6189_v5 = vmax.f32 %v6157_v1, %v5583_v32  ;;  %v6126_v50 = vmax.f32 %v11269_v31, %v5597_v44  ;;  %v4074_v47 = vadd.f32 %v4073_v22, %v11270_v11  ;;  %v4075_v56 = vpop.f32.mrb[13].mxu0  ;;  %v4332_v3 = vpop.f32.mrb[13].mxu1  ;;  %v4331_v62 = vadd.f32 %v4330_v42, %v11270_v11 }
 0x3a5   : > { %v4076_v25 = vadd.f32 %v4075_v56, %v11270_v11  ;;  %4712 = vmatmul.mubr.f32.gmra.mrb[118].mxu0 %v7656_v28  ;;  %4969 = vmatmul.mubr.f32.gmra.mrb[118].mxu1 %v7656_v28  ;;  %v5600_v32 = vmax.f32 %v4327_v37, 0.0  ;;  %v4333_v51 = vadd.f32 %v4332_v3, %v11270_v11 }
 0x3a6   : > { %v10257_v57 = vmax.f32 %v6189_v5, %v5584_v60  ;;  %v6158_v35 = vmax.f32 %v6126_v50, %v5598_v20  ;;  %v5613_v61 = vmax.f32 %v4074_v47, 0.0  ;;  %4717 = vmatprep.mubr.f32.mxu0 %v11236_v16  ;;  %4974 = vmatprep.mubr.f32.mxu1 %v11236_v16  ;;  %v11272_v60 = vld [vmem:[#allocation15_spill] sm:$0xff]  ;;  %v11273_v20 = vld [vmem:[#allocation12_spill] sm:$0xff]  ;;  %v5615_v56 = vmax.f32 %v4331_v62, 0.0 }
 0x3a7   : > { %v5614_v1 = vmax.f32 %v4076_v25, 0.0  ;;  %v4079_v44 = vpop.f32.mrb[14].mxu0  ;;  %v4336_v22 = vpop.f32.mrb[14].mxu1  ;;  %v5616_v62 = vmax.f32 %v4333_v51, 0.0  ;;  %v7658_v51 = vld [vmem:[%s11163_s5 + $0xe8] sm:$0xff] }
 0x3a8   : > { %11271 = vst [vmem:[#allocation13_spill] sm:$0xff] %v10257_v57  ;;  %v6190_v42 = vmax.f32 %v6158_v35, %v5599_v15  ;;  %v6127_v5 = vmax.f32 %v11272_v60, %v5613_v61  ;;  %v4080_v31 = vadd.f32 %v4079_v44, %v11273_v20  ;;  %v4081_v50 = vpop.f32.mrb[15].mxu0  ;;  %v4338_v47 = vpop.f32.mrb[15].mxu1  ;;  %v4337_v27 = vadd.f32 %v4336_v22, %v11273_v20  ;;  %v7657_v35 = vld [vmem:[%s11163_s5 + $0xe0] sm:$0xff] }
 0x3a9   : > { %v4082_v28 = vadd.f32 %v4081_v50, %v11273_v20  ;;  %4718 = vmatmul.mubr.f32.gmra.mrb[120].mxu0 %v7657_v35  ;;  %4975 = vmatmul.mubr.f32.gmra.mrb[120].mxu1 %v7657_v35  ;;  %v4339_v3 = vadd.f32 %v4338_v47, %v11273_v20  ;;  %v11274_v22 = vld [vmem:[#allocation14_spill] sm:$0xff] }
 0x3aa   : > { %v10268_v37 = vmax.f32 %v6190_v42, %v5600_v32  ;;  %v6159_v25 = vmax.f32 %v6127_v5, %v5614_v1  ;;  %v5629_v57 = vmax.f32 %v4080_v31, 0.0  ;;  %4723 = vmatprep.mubr.f32.mxu0 %v11236_v16  ;;  %4980 = vmatprep.mubr.f32.mxu1 %v11236_v16  ;;  %v5631_v47 = vmax.f32 %v4337_v27, 0.0 }
 0x3ab   : > { %v5630_v61 = vmax.f32 %v4082_v28, 0.0  ;;  %v4085_v15 = vpop.f32.mrb[16].mxu0  ;;  %v4342_v44 = vpop.f32.mrb[16].mxu1 }
 0x3ac   : > { %v6191_v32 = vmax.f32 %v6159_v25, %v5615_v56  ;;  %v6128_v1 = vmax.f32 %v9860_v13, %v5629_v57  ;;  %v4086_v42 = vadd.f32 %v4085_v15, %v11274_v22  ;;  %v4087_v60 = vpop.f32.mrb[17].mxu0  ;;  %v4344_v5 = vpop.f32.mrb[17].mxu1  ;;  %v4343_v31 = vadd.f32 %v4342_v44, %v11274_v22 }
 0x3ad   : > { %v4088_v50 = vadd.f32 %v4087_v60, %v11274_v22  ;;  %4724 = vmatmul.mubr.f32.gmra.mrb[122].mxu0 %v7658_v51  ;;  %4981 = vmatmul.mubr.f32.gmra.mrb[122].mxu1 %v7658_v51  ;;  %v5632_v13 = vmax.f32 %v4339_v3, 0.0  ;;  %v4345_v27 = vadd.f32 %v4344_v5, %v11274_v22 }
 0x3ae   : > { %v10281_v28 = vmax.f32 %v6191_v32, %v5616_v62  ;;  %v6160_v35 = vmax.f32 %v6128_v1, %v5630_v61  ;;  %v5645_v20 = vmax.f32 %v4086_v42, 0.0  ;;  %4729 = vmatprep.mubr.f32.mxu0 %v11236_v16  ;;  %4986 = vmatprep.mubr.f32.mxu1 %v11236_v16  ;;  %v11276_v61 = vld [vmem:[#allocation16_spill] sm:$0xff]  ;;  %v5647_v42 = vmax.f32 %v4343_v31, 0.0 }
 0x3af   : > { %v5646_v57 = vmax.f32 %v4088_v50, 0.0  ;;  %v4091_v56 = vpop.f32.mrb[18].mxu0  ;;  %v4348_v25 = vpop.f32.mrb[18].mxu1  ;;  %v5648_v31 = vmax.f32 %v4345_v27, 0.0  ;;  %v7660_v27 = vld [vmem:[%s11163_s5 + $0xf8] sm:$0xff] }
 0x3b0   : > { %11275 = vst [vmem:[#allocation11_spill] sm:$0xff] %v10281_v28  ;;  %v6192_v15 = vmax.f32 %v6160_v35, %v5631_v47  ;;  %v6129_v44 = vmax.f32 %v9872_v2, %v5645_v20  ;;  %v4092_v62 = vadd.f32 %v4091_v56, %v11276_v61  ;;  %v4093_v32 = vpop.f32.mrb[19].mxu0  ;;  %v4350_v1 = vpop.f32.mrb[19].mxu1  ;;  %v4349_v28 = vadd.f32 %v4348_v25, %v11276_v61  ;;  %v7659_v47 = vld [vmem:[%s11163_s5 + $0xf0] sm:$0xff]  ;;  %v11277_v56 = vld [vmem:[#allocation17_spill] sm:$0xff] }
 0x3b1   : > { %v4094_v60 = vadd.f32 %v4093_v32, %v11276_v61  ;;  %4730 = vmatmul.mubr.f32.gmra.mrb[124].mxu0 %v7659_v47  ;;  %4987 = vmatmul.mubr.f32.gmra.mrb[124].mxu1 %v7659_v47  ;;  %v4351_v20 = vadd.f32 %v4350_v1, %v11276_v61 }
 0x3b2   : > { %v10292_v3 = vmax.f32 %v6192_v15, %v5632_v13  ;;  %v6161_v50 = vmax.f32 %v6129_v44, %v5646_v57  ;;  %v5661_v51 = vmax.f32 %v4092_v62, 0.0  ;;  %4735 = vmatprep.mubr.f32.mxu0 %v11236_v16  ;;  %4992 = vmatprep.mubr.f32.mxu1 %v11236_v16  ;;  %v5663_v1 = vmax.f32 %v4349_v28, 0.0 }
 0x3b3   : > { %v5662_v2 = vmax.f32 %v4094_v60, 0.0  ;;  %v4097_v5 = vpop.f32.mrb[20].mxu0  ;;  %v4354_v35 = vpop.f32.mrb[20].mxu1 }
 0x3b4   : > { %v6193_v13 = vmax.f32 %v6161_v50, %v5647_v42  ;;  %v6130_v57 = vmax.f32 %v9886_v55, %v5661_v51  ;;  %v4098_v25 = vadd.f32 %v4097_v5, %v11277_v56  ;;  %v4099_v15 = vpop.f32.mrb[21].mxu0  ;;  %v4356_v44 = vpop.f32.mrb[21].mxu1  ;;  %v4355_v62 = vadd.f32 %v4354_v35, %v11277_v56 }
 0x3b5   : > { %v4100_v32 = vadd.f32 %v4099_v15, %v11277_v56  ;;  %4736 = vmatmul.mubr.f32.gmra.mrb[126].mxu0 %v7660_v27  ;;  %4993 = vmatmul.mubr.f32.gmra.mrb[126].mxu1 %v7660_v27  ;;  %v5664_v55 = vmax.f32 %v4351_v20, 0.0  ;;  %v4357_v28 = vadd.f32 %v4356_v44, %v11277_v56 }
 0x3b6   : > { %v10305_v60 = vmax.f32 %v6193_v13, %v5648_v31  ;;  %v6162_v47 = vmax.f32 %v6130_v57, %v5662_v2  ;;  %v5677_v61 = vmax.f32 %v4098_v25, 0.0  ;;  %5063 = vmatprep.mubr.f32.mxu0 %v11236_v16  ;;  %5320 = vmatprep.mubr.f32.mxu1 %v11236_v16  ;;  %v5679_v57 = vmax.f32 %v4355_v62, 0.0 }
 0x3b7   : > { %v5678_v42 = vmax.f32 %v4100_v32, 0.0  ;;  %v4103_v50 = vpop.f32.mrb[22].mxu0  ;;  %v4360_v51 = vpop.f32.mrb[22].mxu1  ;;  %v5680_v62 = vmax.f32 %v4357_v28, 0.0  ;;  %v7662_v28 = vld [vmem:[%s11163_s5 + $0x8] sm:$0xff] }
 0x3b8   : > { %v6194_v5 = vmax.f32 %v6162_v47, %v5663_v1  ;;  %v6131_v35 = vmax.f32 %v9902_v41, %v5677_v61  ;;  %v4104_v2 = vadd.f32 %v4103_v50, %v9877_v24  ;;  %v4105_v31 = vpop.f32.mrb[23].mxu0  ;;  %v4362_v13 = vpop.f32.mrb[23].mxu1  ;;  %v4361_v27 = vadd.f32 %v4360_v51, %v9877_v24  ;;  %v7661_v1 = vld [vmem:[%s11163_s5] sm:$0xff] }
 0x3b9   : > { %v4106_v25 = vadd.f32 %v4105_v31, %v9877_v24  ;;  %5064 = vmatmul.mubr.f32.vlgmr.msra.gmra.mrb[128].mxu0 %v7661_v1  ;;  %5321 = vmatmul.mubr.f32.vlgmr.msra.gmra.mrb[128].mxu1 %v7661_v1  ;;  %v4363_v61 = vadd.f32 %v4362_v13, %v9877_v24 }
 0x3ba   : > { %v10316_v20 = vmax.f32 %v6194_v5, %v5664_v55  ;;  %v6163_v15 = vmax.f32 %v6131_v35, %v5678_v42  ;;  %v5693_v32 = vmax.f32 %v4104_v2, 0.0  ;;  %5069 = vmatprep.mubr.f32.mxu0 %v11236_v16  ;;  %5326 = vmatprep.mubr.f32.mxu1 %v11236_v16  ;;  %v5695_v13 = vmax.f32 %v4361_v27, 0.0 }
 0x3bb   : > { %v5694_v41 = vmax.f32 %v4106_v25, 0.0  ;;  %v4109_v44 = vpop.f32.mrb[24].mxu0  ;;  %v4366_v47 = vpop.f32.mrb[24].mxu1 }
 0x3bc   : > { %v6195_v55 = vmax.f32 %v6163_v15, %v5679_v57  ;;  %v6132_v42 = vmax.f32 %v9917_v53, %v5693_v32  ;;  %v4110_v50 = vadd.f32 %v4109_v44, %v9890_v8  ;;  %v4111_v51 = vpop.f32.mrb[25].mxu0  ;;  %v4368_v5 = vpop.f32.mrb[25].mxu1  ;;  %v4367_v35 = vadd.f32 %v4366_v47, %v9890_v8 }
 0x3bd   : > { %v4112_v2 = vadd.f32 %v4111_v51, %v9890_v8  ;;  %5070 = vmatmul.mubr.f32.gmra.mrb[130].mxu0 %v7662_v28  ;;  %5327 = vmatmul.mubr.f32.gmra.mrb[130].mxu1 %v7662_v28  ;;  %v5696_v53 = vmax.f32 %v4363_v61, 0.0  ;;  %v4369_v27 = vadd.f32 %v4368_v5, %v9890_v8 }
 0x3be   : > { %v10329_v31 = vmax.f32 %v6195_v55, %v5680_v62  ;;  %v6164_v25 = vmax.f32 %v6132_v42, %v5694_v41  ;;  %v5709_v1 = vmax.f32 %v4110_v50, 0.0  ;;  %5075 = vmatprep.mubr.f32.mxu0 %v11236_v16  ;;  %5332 = vmatprep.mubr.f32.mxu1 %v11236_v16  ;;  %v5711_v42 = vmax.f32 %v4367_v35, 0.0 }
 0x3bf   : > { %v5710_v57 = vmax.f32 %v4112_v2, 0.0  ;;  %v4115_v15 = vpop.f32.mrb[26].mxu0  ;;  %v4372_v32 = vpop.f32.mrb[26].mxu1  ;;  %v5712_v35 = vmax.f32 %v4369_v27, 0.0  ;;  %v7664_v27 = vld [vmem:[%s11163_s5 + $0x18] sm:$0xff] }
 0x3c0   : > { %v6196_v44 = vmax.f32 %v6164_v25, %v5695_v13  ;;  %v6133_v47 = vmax.f32 %v9932_v38, %v5709_v1  ;;  %v4116_v41 = vadd.f32 %v4115_v15, %v9906_v6  ;;  %v4117_v62 = vpop.f32.mrb[27].mxu0  ;;  %v4374_v55 = vpop.f32.mrb[27].mxu1  ;;  %v4373_v28 = vadd.f32 %v4372_v32, %v9906_v6  ;;  %v7663_v13 = vld [vmem:[%s11163_s5 + $0x10] sm:$0xff] }
 0x3c1   : > { %v4118_v50 = vadd.f32 %v4117_v62, %v9906_v6  ;;  %5076 = vmatmul.mubr.f32.gmra.mrb[132].mxu0 %v7663_v13  ;;  %5333 = vmatmul.mubr.f32.gmra.mrb[132].mxu1 %v7663_v13  ;;  %v4375_v5 = vadd.f32 %v4374_v55, %v9906_v6 }
 0x3c2   : > { %v10340_v61 = vmax.f32 %v6196_v44, %v5696_v53  ;;  %v6165_v51 = vmax.f32 %v6133_v47, %v5710_v57  ;;  %v5725_v2 = vmax.f32 %v4116_v41, 0.0  ;;  %5081 = vmatprep.mubr.f32.mxu0 %v11236_v16  ;;  %5338 = vmatprep.mubr.f32.mxu1 %v11236_v16  ;;  %v5727_v55 = vmax.f32 %v4373_v28, 0.0 }
 0x3c3   : > { %v5726_v38 = vmax.f32 %v4118_v50, 0.0  ;;  %v4121_v25 = vpop.f32.mrb[28].mxu0  ;;  %v4378_v1 = vpop.f32.mrb[28].mxu1 }
 0x3c4   : > { %v6197_v53 = vmax.f32 %v6165_v51, %v5711_v42  ;;  %v6134_v57 = vmax.f32 %v9949_v33, %v5725_v2  ;;  %v4122_v15 = vadd.f32 %v4121_v25, %v9923_v59  ;;  %v4123_v32 = vpop.f32.mrb[29].mxu0  ;;  %v4380_v44 = vpop.f32.mrb[29].mxu1  ;;  %v4379_v47 = vadd.f32 %v4378_v1, %v9923_v59 }
 0x3c5   : > { %v4124_v41 = vadd.f32 %v4123_v32, %v9923_v59  ;;  %5082 = vmatmul.mubr.f32.gmra.mrb[134].mxu0 %v7664_v27  ;;  %5339 = vmatmul.mubr.f32.gmra.mrb[134].mxu1 %v7664_v27  ;;  %v5728_v33 = vmax.f32 %v4375_v5, 0.0  ;;  %v4381_v28 = vadd.f32 %v4380_v44, %v9923_v59 }
 0x3c6   : > { %v10353_v62 = vmax.f32 %v6197_v53, %v5712_v35  ;;  %v6166_v50 = vmax.f32 %v6134_v57, %v5726_v38  ;;  %v5741_v13 = vmax.f32 %v4122_v15, 0.0  ;;  %5087 = vmatprep.mubr.f32.mxu0 %v11236_v16  ;;  %5344 = vmatprep.mubr.f32.mxu1 %v11236_v16  ;;  %v5743_v57 = vmax.f32 %v4379_v47, 0.0 }
 0x3c7   : > { %v5742_v42 = vmax.f32 %v4124_v41, 0.0  ;;  %v4127_v51 = vpop.f32.mrb[30].mxu0  ;;  %v4384_v2 = vpop.f32.mrb[30].mxu1  ;;  %v5744_v47 = vmax.f32 %v4381_v28, 0.0  ;;  %v7666_v28 = vld [vmem:[%s11163_s5 + $0x28] sm:$0xff] }
 0x3c8   : > { %v6198_v25 = vmax.f32 %v6166_v50, %v5727_v55  ;;  %v6135_v1 = vmax.f32 %v9966_v48, %v5741_v13  ;;  %v4128_v38 = vadd.f32 %v4127_v51, %v9937_v52  ;;  %v4129_v35 = vpop.f32.mrb[31].mxu0  ;;  %v4386_v53 = vpop.f32.mrb[31].mxu1  ;;  %v4385_v27 = vadd.f32 %v4384_v2, %v9937_v52  ;;  %v7665_v55 = vld [vmem:[%s11163_s5 + $0x20] sm:$0xff] }
 0x3c9   : > { %v4130_v15 = vadd.f32 %v4129_v35, %v9937_v52  ;;  %5088 = vmatmul.mubr.f32.gmra.mrb[136].mxu0 %v7665_v55  ;;  %5345 = vmatmul.mubr.f32.gmra.mrb[136].mxu1 %v7665_v55  ;;  %v4387_v44 = vadd.f32 %v4386_v53, %v9937_v52 }
 0x3ca   : > { %v10364_v5 = vmax.f32 %v6198_v25, %v5728_v33  ;;  %v6167_v32 = vmax.f32 %v6135_v1, %v5742_v42  ;;  %v5757_v41 = vmax.f32 %v4128_v38, 0.0  ;;  %5093 = vmatprep.mubr.f32.mxu0 %v11236_v16  ;;  %5350 = vmatprep.mubr.f32.mxu1 %v11236_v16  ;;  %v5759_v53 = vmax.f32 %v4385_v27, 0.0 }
 0x3cb   : > { %v5758_v48 = vmax.f32 %v4130_v15, 0.0  ;;  %v4133_v50 = vpop.f32.mrb[32].mxu0  ;;  %v4390_v13 = vpop.f32.mrb[32].mxu1 }
 0x3cc   : > { %v6199_v33 = vmax.f32 %v6167_v32, %v5743_v57  ;;  %v6136_v42 = vmax.f32 %v9983_v23, %v5757_v41  ;;  %v4134_v51 = vadd.f32 %v4133_v50, %v9954_v36  ;;  %v4135_v2 = vpop.f32.mrb[33].mxu0  ;;  %v4392_v25 = vpop.f32.mrb[33].mxu1  ;;  %v4391_v1 = vadd.f32 %v4390_v13, %v9954_v36 }
 0x3cd   : > { %v4136_v38 = vadd.f32 %v4135_v2, %v9954_v36  ;;  %5094 = vmatmul.mubr.f32.gmra.mrb[138].mxu0 %v7666_v28  ;;  %5351 = vmatmul.mubr.f32.gmra.mrb[138].mxu1 %v7666_v28  ;;  %v5760_v23 = vmax.f32 %v4387_v44, 0.0  ;;  %v4393_v27 = vadd.f32 %v4392_v25, %v9954_v36 }
 0x3ce   : > { %v10377_v35 = vmax.f32 %v6199_v33, %v5744_v47  ;;  %v6168_v15 = vmax.f32 %v6136_v42, %v5758_v48  ;;  %v5773_v55 = vmax.f32 %v4134_v51, 0.0  ;;  %5099 = vmatprep.mubr.f32.mxu0 %v11236_v16  ;;  %5356 = vmatprep.mubr.f32.mxu1 %v11236_v16  ;;  %v5775_v42 = vmax.f32 %v4391_v1, 0.0 }
 0x3cf   : > { %v5774_v57 = vmax.f32 %v4136_v38, 0.0  ;;  %v4139_v32 = vpop.f32.mrb[34].mxu0  ;;  %v4396_v41 = vpop.f32.mrb[34].mxu1  ;;  %v5776_v1 = vmax.f32 %v4393_v27, 0.0  ;;  %v7668_v27 = vld [vmem:[%s11163_s5 + $0x38] sm:$0xff] }
 0x3d0   : > { %v6200_v50 = vmax.f32 %v6168_v15, %v5759_v53  ;;  %v6137_v13 = vmax.f32 %v10000_v58, %v5773_v55  ;;  %v4140_v48 = vadd.f32 %v4139_v32, %v9971_v45  ;;  %v4141_v47 = vpop.f32.mrb[35].mxu0  ;;  %v4398_v33 = vpop.f32.mrb[35].mxu1  ;;  %v4397_v28 = vadd.f32 %v4396_v41, %v9971_v45  ;;  %v7667_v53 = vld [vmem:[%s11163_s5 + $0x30] sm:$0xff] }
 0x3d1   : > { %v4142_v51 = vadd.f32 %v4141_v47, %v9971_v45  ;;  %5100 = vmatmul.mubr.f32.gmra.mrb[140].mxu0 %v7667_v53  ;;  %5357 = vmatmul.mubr.f32.gmra.mrb[140].mxu1 %v7667_v53  ;;  %v4399_v25 = vadd.f32 %v4398_v33, %v9971_v45 }
 0x3d2   : > { %v10388_v44 = vmax.f32 %v6200_v50, %v5760_v23  ;;  %v6169_v2 = vmax.f32 %v6137_v13, %v5774_v57  ;;  %v5789_v38 = vmax.f32 %v4140_v48, 0.0  ;;  %5105 = vmatprep.mubr.f32.mxu0 %v11236_v16  ;;  %5362 = vmatprep.mubr.f32.mxu1 %v11236_v16  ;;  %v5791_v33 = vmax.f32 %v4397_v28, 0.0 }
 0x3d3   : > { %v5790_v58 = vmax.f32 %v4142_v51, 0.0  ;;  %v4145_v15 = vpop.f32.mrb[36].mxu0  ;;  %v4402_v55 = vpop.f32.mrb[36].mxu1 }
 0x3d4   : > { %v6201_v23 = vmax.f32 %v6169_v2, %v5775_v42  ;;  %v6138_v57 = vmax.f32 %v10016_v43, %v5789_v38  ;;  %v4146_v32 = vadd.f32 %v4145_v15, %v9988_v7  ;;  %v4147_v41 = vpop.f32.mrb[37].mxu0  ;;  %v4404_v50 = vpop.f32.mrb[37].mxu1  ;;  %v4403_v13 = vadd.f32 %v4402_v55, %v9988_v7 }
 0x3d5   : > { %v4148_v48 = vadd.f32 %v4147_v41, %v9988_v7  ;;  %5106 = vmatmul.mubr.f32.gmra.mrb[142].mxu0 %v7668_v27  ;;  %5363 = vmatmul.mubr.f32.gmra.mrb[142].mxu1 %v7668_v27  ;;  %v5792_v43 = vmax.f32 %v4399_v25, 0.0  ;;  %v4405_v28 = vadd.f32 %v4404_v50, %v9988_v7 }
 0x3d6   : > { %v10401_v47 = vmax.f32 %v6201_v23, %v5776_v1  ;;  %v6170_v51 = vmax.f32 %v6138_v57, %v5790_v58  ;;  %v5805_v53 = vmax.f32 %v4146_v32, 0.0  ;;  %5111 = vmatprep.mubr.f32.mxu0 %v11236_v16  ;;  %5368 = vmatprep.mubr.f32.mxu1 %v11236_v16  ;;  %v5807_v57 = vmax.f32 %v4403_v13, 0.0 }
 0x3d7   : > { %v5806_v42 = vmax.f32 %v4148_v48, 0.0  ;;  %v4151_v2 = vpop.f32.mrb[38].mxu0  ;;  %v4408_v38 = vpop.f32.mrb[38].mxu1  ;;  %v5808_v13 = vmax.f32 %v4405_v28, 0.0  ;;  %v7670_v28 = vld [vmem:[%s11163_s5 + $0x48] sm:$0xff] }
 0x3d8   : > { %v6202_v15 = vmax.f32 %v6170_v51, %v5791_v33  ;;  %v6139_v55 = vmax.f32 %v10030_v17, %v5805_v53  ;;  %v4152_v58 = vadd.f32 %v4151_v2, %v10005_v40  ;;  %v4153_v1 = vpop.f32.mrb[39].mxu0  ;;  %v4410_v23 = vpop.f32.mrb[39].mxu1  ;;  %v4409_v27 = vadd.f32 %v4408_v38, %v10005_v40  ;;  %v7669_v33 = vld [vmem:[%s11163_s5 + $0x40] sm:$0xff] }
 0x3d9   : > { %v4154_v32 = vadd.f32 %v4153_v1, %v10005_v40  ;;  %5112 = vmatmul.mubr.f32.gmra.mrb[144].mxu0 %v7669_v33  ;;  %5369 = vmatmul.mubr.f32.gmra.mrb[144].mxu1 %v7669_v33  ;;  %v4411_v50 = vadd.f32 %v4410_v23, %v10005_v40 }
 0x3da   : > { %v10412_v25 = vmax.f32 %v6202_v15, %v5792_v43  ;;  %v6171_v41 = vmax.f32 %v6139_v55, %v5806_v42  ;;  %v5821_v48 = vmax.f32 %v4152_v58, 0.0  ;;  %5117 = vmatprep.mubr.f32.mxu0 %v11236_v16  ;;  %5374 = vmatprep.mubr.f32.mxu1 %v11236_v16  ;;  %v5823_v23 = vmax.f32 %v4409_v27, 0.0 }
 0x3db   : > { %v5822_v17 = vmax.f32 %v4154_v32, 0.0  ;;  %v4157_v51 = vpop.f32.mrb[40].mxu0  ;;  %v4414_v53 = vpop.f32.mrb[40].mxu1 }
 0x3dc   : > { %v6203_v43 = vmax.f32 %v6171_v41, %v5807_v57  ;;  %v6140_v42 = vmax.f32 %v10042_v0, %v5821_v48  ;;  %v4158_v2 = vadd.f32 %v4157_v51, %v10020_v18  ;;  %v4159_v38 = vpop.f32.mrb[41].mxu0  ;;  %v4416_v15 = vpop.f32.mrb[41].mxu1  ;;  %v4415_v55 = vadd.f32 %v4414_v53, %v10020_v18 }
 0x3dd   : > { %v4160_v58 = vadd.f32 %v4159_v38, %v10020_v18  ;;  %5118 = vmatmul.mubr.f32.gmra.mrb[146].mxu0 %v7670_v28  ;;  %5375 = vmatmul.mubr.f32.gmra.mrb[146].mxu1 %v7670_v28  ;;  %v5824_v0 = vmax.f32 %v4411_v50, 0.0  ;;  %v4417_v27 = vadd.f32 %v4416_v15, %v10020_v18 }
 0x3de   : > { %v10425_v1 = vmax.f32 %v6203_v43, %v5808_v13  ;;  %v6172_v32 = vmax.f32 %v6140_v42, %v5822_v17  ;;  %v5837_v33 = vmax.f32 %v4158_v2, 0.0  ;;  %5123 = vmatprep.mubr.f32.mxu0 %v11236_v16  ;;  %5380 = vmatprep.mubr.f32.mxu1 %v11236_v16  ;;  %v5839_v42 = vmax.f32 %v4415_v55, 0.0 }
 0x3df   : > { %v5838_v57 = vmax.f32 %v4160_v58, 0.0  ;;  %v4163_v41 = vpop.f32.mrb[42].mxu0  ;;  %v4420_v48 = vpop.f32.mrb[42].mxu1  ;;  %v5840_v55 = vmax.f32 %v4417_v27, 0.0  ;;  %v7672_v27 = vld [vmem:[%s11163_s5 + $0x58] sm:$0xff] }
 0x3e0   : > { %v6204_v51 = vmax.f32 %v6172_v32, %v5823_v23  ;;  %v6141_v53 = vmax.f32 %v10056_v4, %v5837_v33  ;;  %v4164_v17 = vadd.f32 %v4163_v41, %v10033_v34  ;;  %v4165_v13 = vpop.f32.mrb[43].mxu0  ;;  %v4422_v43 = vpop.f32.mrb[43].mxu1  ;;  %v4421_v28 = vadd.f32 %v4420_v48, %v10033_v34  ;;  %v7671_v23 = vld [vmem:[%s11163_s5 + $0x50] sm:$0xff] }
 0x3e1   : > { %v4166_v2 = vadd.f32 %v4165_v13, %v10033_v34  ;;  %5124 = vmatmul.mubr.f32.gmra.mrb[148].mxu0 %v7671_v23  ;;  %5381 = vmatmul.mubr.f32.gmra.mrb[148].mxu1 %v7671_v23  ;;  %v4423_v15 = vadd.f32 %v4422_v43, %v10033_v34 }
 0x3e2   : > { %v10436_v50 = vmax.f32 %v6204_v51, %v5824_v0  ;;  %v6173_v38 = vmax.f32 %v6141_v53, %v5838_v57  ;;  %v5853_v58 = vmax.f32 %v4164_v17, 0.0  ;;  %5129 = vmatprep.mubr.f32.mxu0 %v11236_v16  ;;  %5386 = vmatprep.mubr.f32.mxu1 %v11236_v16  ;;  %v5855_v43 = vmax.f32 %v4421_v28, 0.0 }
 0x3e3   : > { %v5854_v4 = vmax.f32 %v4166_v2, 0.0  ;;  %v4169_v32 = vpop.f32.mrb[44].mxu0  ;;  %v4426_v33 = vpop.f32.mrb[44].mxu1 }
 0x3e4   : > { %v6205_v0 = vmax.f32 %v6173_v38, %v5839_v42  ;;  %v6142_v57 = vmax.f32 %v10068_v49, %v5853_v58  ;;  %v4170_v41 = vadd.f32 %v4169_v32, %v10046_v46  ;;  %v4171_v48 = vpop.f32.mrb[45].mxu0  ;;  %v4428_v51 = vpop.f32.mrb[45].mxu1  ;;  %v4427_v53 = vadd.f32 %v4426_v33, %v10046_v46 }
 0x3e5   : > { %v4172_v17 = vadd.f32 %v4171_v48, %v10046_v46  ;;  %5130 = vmatmul.mubr.f32.gmra.mrb[150].mxu0 %v7672_v27  ;;  %5387 = vmatmul.mubr.f32.gmra.mrb[150].mxu1 %v7672_v27  ;;  %v5856_v49 = vmax.f32 %v4423_v15, 0.0  ;;  %v4429_v28 = vadd.f32 %v4428_v51, %v10046_v46 }
 0x3e6   : > { %v10449_v13 = vmax.f32 %v6205_v0, %v5840_v55  ;;  %v6174_v2 = vmax.f32 %v6142_v57, %v5854_v4  ;;  %v5869_v23 = vmax.f32 %v4170_v41, 0.0  ;;  %5135 = vmatprep.mubr.f32.mxu0 %v11236_v16  ;;  %5392 = vmatprep.mubr.f32.mxu1 %v11236_v16  ;;  %v5871_v57 = vmax.f32 %v4427_v53, 0.0 }
 0x3e7   : > { %v5870_v42 = vmax.f32 %v4172_v17, 0.0  ;;  %v4175_v38 = vpop.f32.mrb[46].mxu0  ;;  %v4432_v58 = vpop.f32.mrb[46].mxu1  ;;  %v5872_v53 = vmax.f32 %v4429_v28, 0.0  ;;  %v7674_v28 = vld [vmem:[%s11163_s5 + $0x68] sm:$0xff] }
 0x3e8   : > { %v6206_v32 = vmax.f32 %v6174_v2, %v5855_v43  ;;  %v6143_v33 = vmax.f32 %v10082_v39, %v5869_v23  ;;  %v4176_v4 = vadd.f32 %v4175_v38, %v10059_v54  ;;  %v4177_v55 = vpop.f32.mrb[47].mxu0  ;;  %v4434_v0 = vpop.f32.mrb[47].mxu1  ;;  %v4433_v27 = vadd.f32 %v4432_v58, %v10059_v54  ;;  %v7673_v43 = vld [vmem:[%s11163_s5 + $0x60] sm:$0xff] }
 0x3e9   : > { %v4178_v41 = vadd.f32 %v4177_v55, %v10059_v54  ;;  %5136 = vmatmul.mubr.f32.gmra.mrb[152].mxu0 %v7673_v43  ;;  %5393 = vmatmul.mubr.f32.gmra.mrb[152].mxu1 %v7673_v43  ;;  %v4435_v51 = vadd.f32 %v4434_v0, %v10059_v54 }
 0x3ea   : > { %v10460_v15 = vmax.f32 %v6206_v32, %v5856_v49  ;;  %v6175_v48 = vmax.f32 %v6143_v33, %v5870_v42  ;;  %v5885_v17 = vmax.f32 %v4176_v4, 0.0  ;;  %5141 = vmatprep.mubr.f32.mxu0 %v11236_v16  ;;  %5398 = vmatprep.mubr.f32.mxu1 %v11236_v16  ;;  %v5887_v0 = vmax.f32 %v4433_v27, 0.0 }
 0x3eb   : > { %v5886_v39 = vmax.f32 %v4178_v41, 0.0  ;;  %v4181_v2 = vpop.f32.mrb[48].mxu0  ;;  %v4438_v23 = vpop.f32.mrb[48].mxu1 }
 0x3ec   : > { %v6207_v49 = vmax.f32 %v6175_v48, %v5871_v57  ;;  %v6144_v42 = vmax.f32 %v10094_v19, %v5885_v17  ;;  %v4182_v38 = vadd.f32 %v4181_v2, %v10072_v12  ;;  %v4183_v58 = vpop.f32.mrb[49].mxu0  ;;  %v4440_v32 = vpop.f32.mrb[49].mxu1  ;;  %v4439_v33 = vadd.f32 %v4438_v23, %v10072_v12  ;;  %v11279_v23 = vld [vmem:[#allocation25_spill] sm:$0xff] }
 0x3ed   : > { %v4184_v4 = vadd.f32 %v4183_v58, %v10072_v12  ;;  %5142 = vmatmul.mubr.f32.gmra.mrb[154].mxu0 %v7674_v28  ;;  %5399 = vmatmul.mubr.f32.gmra.mrb[154].mxu1 %v7674_v28  ;;  %v5888_v19 = vmax.f32 %v4435_v51, 0.0  ;;  %v4441_v27 = vadd.f32 %v4440_v32, %v10072_v12 }
 0x3ee   : > { %v10473_v55 = vmax.f32 %v6207_v49, %v5872_v53  ;;  %v6176_v41 = vmax.f32 %v6144_v42, %v5886_v39  ;;  %v5901_v43 = vmax.f32 %v4182_v38, 0.0  ;;  %5147 = vmatprep.mubr.f32.mxu0 %v11236_v16  ;;  %5404 = vmatprep.mubr.f32.mxu1 %v11236_v16  ;;  %v11280_v39 = vld [vmem:[#allocation23_spill] sm:$0xff]  ;;  %v5903_v58 = vmax.f32 %v4439_v33, 0.0 }
 0x3ef   : > { %v5902_v57 = vmax.f32 %v4184_v4, 0.0  ;;  %v4187_v48 = vpop.f32.mrb[50].mxu0  ;;  %v4444_v17 = vpop.f32.mrb[50].mxu1  ;;  %v5904_v33 = vmax.f32 %v4441_v27, 0.0  ;;  %v7676_v27 = vld [vmem:[%s11163_s5 + $0x78] sm:$0xff] }
 0x3f0   : > { %11278 = vst [vmem:[#allocation15_spill] sm:$0xff] %v10473_v55  ;;  %v6208_v2 = vmax.f32 %v6176_v41, %v5887_v0  ;;  %v6145_v53 = vmax.f32 %v11279_v23, %v5901_v43  ;;  %v4188_v49 = vadd.f32 %v4187_v48, %v11280_v39  ;;  %v4189_v42 = vpop.f32.mrb[51].mxu0  ;;  %v4446_v38 = vpop.f32.mrb[51].mxu1  ;;  %v4445_v55 = vadd.f32 %v4444_v17, %v11280_v39  ;;  %v7675_v0 = vld [vmem:[%s11163_s5 + $0x70] sm:$0xff] }
 0x3f1   : > { %v4190_v28 = vadd.f32 %v4189_v42, %v11280_v39  ;;  %5148 = vmatmul.mubr.f32.gmra.mrb[156].mxu0 %v7675_v0  ;;  %5405 = vmatmul.mubr.f32.gmra.mrb[156].mxu1 %v7675_v0  ;;  %v4447_v41 = vadd.f32 %v4446_v38, %v11280_v39  ;;  %v11283_v17 = vld [vmem:[#allocation24_spill] sm:$0xff] }
 0x3f2   : > { %v10484_v51 = vmax.f32 %v6208_v2, %v5888_v19  ;;  %v6177_v4 = vmax.f32 %v6145_v53, %v5902_v57  ;;  %v5917_v54 = vmax.f32 %v4188_v49, 0.0  ;;  %5153 = vmatprep.mubr.f32.mxu0 %v11236_v16  ;;  %5410 = vmatprep.mubr.f32.mxu1 %v11236_v16  ;;  %v11282_v57 = vld [vmem:[#allocation27_spill] sm:$0xff]  ;;  %v5919_v38 = vmax.f32 %v4445_v55, 0.0 }
 0x3f3   : > { %v5918_v32 = vmax.f32 %v4190_v28, 0.0  ;;  %v4193_v43 = vpop.f32.mrb[52].mxu0  ;;  %v4450_v48 = vpop.f32.mrb[52].mxu1 }
 0x3f4   : > { %11281 = vst [vmem:[#allocation14_spill] sm:$0xff] %v10484_v51  ;;  %v6209_v19 = vmax.f32 %v6177_v4, %v5903_v58  ;;  %v6146_v2 = vmax.f32 %v11282_v57, %v5917_v54  ;;  %v4194_v23 = vadd.f32 %v4193_v43, %v11283_v17  ;;  %v4195_v53 = vpop.f32.mrb[53].mxu0  ;;  %v4452_v49 = vpop.f32.mrb[53].mxu1  ;;  %v4451_v42 = vadd.f32 %v4450_v48, %v11283_v17 }
 0x3f5   : > { %v4196_v28 = vadd.f32 %v4195_v53, %v11283_v17  ;;  %5154 = vmatmul.mubr.f32.gmra.mrb[158].mxu0 %v7676_v27  ;;  %5411 = vmatmul.mubr.f32.gmra.mrb[158].mxu1 %v7676_v27  ;;  %v5920_v54 = vmax.f32 %v4447_v41, 0.0  ;;  %v4453_v55 = vadd.f32 %v4452_v49, %v11283_v17 }
 0x3f6   : > { %v10497_v0 = vmax.f32 %v6209_v19, %v5904_v33  ;;  %v6178_v39 = vmax.f32 %v6146_v2, %v5918_v32  ;;  %v5933_v12 = vmax.f32 %v4194_v23, 0.0  ;;  %5159 = vmatprep.mubr.f32.mxu0 %v11236_v16  ;;  %5416 = vmatprep.mubr.f32.mxu1 %v11236_v16  ;;  %v11285_v33 = vld [vmem:[#allocation29_spill] sm:$0xff]  ;;  %v11286_v32 = vld [vmem:[#allocation26_spill] sm:$0xff]  ;;  %v5935_v53 = vmax.f32 %v4451_v42, 0.0 }
 0x3f7   : > { %v5934_v58 = vmax.f32 %v4196_v28, 0.0  ;;  %v4199_v4 = vpop.f32.mrb[54].mxu0  ;;  %v4456_v43 = vpop.f32.mrb[54].mxu1  ;;  %v5936_v42 = vmax.f32 %v4453_v55, 0.0  ;;  %v7678_v55 = vld [vmem:[%s11163_s5 + $0x88] sm:$0xff] }
 0x3f8   : > { %11284 = vst [vmem:[#allocation17_spill] sm:$0xff] %v10497_v0  ;;  %v6210_v48 = vmax.f32 %v6178_v39, %v5919_v38  ;;  %v6147_v19 = vmax.f32 %v11285_v33, %v5933_v12  ;;  %v4200_v57 = vadd.f32 %v4199_v4, %v11286_v32  ;;  %v4201_v2 = vpop.f32.mrb[55].mxu0  ;;  %v4458_v23 = vpop.f32.mrb[55].mxu1  ;;  %v4457_v51 = vadd.f32 %v4456_v43, %v11286_v32  ;;  %v7677_v39 = vld [vmem:[%s11163_s5 + $0x80] sm:$0xff]  ;;  %v11289_v43 = vld [vmem:[#allocation28_spill] sm:$0xff] }
 0x3f9   : > { %v4202_v27 = vadd.f32 %v4201_v2, %v11286_v32  ;;  %5160 = vmatmul.mubr.f32.gmra.mrb[160].mxu0 %v7677_v39  ;;  %5417 = vmatmul.mubr.f32.gmra.mrb[160].mxu1 %v7677_v39  ;;  %v4459_v49 = vadd.f32 %v4458_v23, %v11286_v32 }
 0x3fa   : > { %v10508_v41 = vmax.f32 %v6210_v48, %v5920_v54  ;;  %v6179_v28 = vmax.f32 %v6147_v19, %v5934_v58  ;;  %v5949_v0 = vmax.f32 %v4200_v57, 0.0  ;;  %5165 = vmatprep.mubr.f32.mxu0 %v11236_v16  ;;  %5422 = vmatprep.mubr.f32.mxu1 %v11236_v16  ;;  %v11288_v58 = vld [vmem:[#allocation31_spill] sm:$0xff]  ;;  %v5951_v23 = vmax.f32 %v4457_v51, 0.0 }
 0x3fb   : > { %v5950_v12 = vmax.f32 %v4202_v27, 0.0  ;;  %v4205_v38 = vpop.f32.mrb[56].mxu0  ;;  %v4462_v4 = vpop.f32.mrb[56].mxu1 }
 0x3fc   : > { %11287 = vst [vmem:[#allocation25_spill] sm:$0xff] %v10508_v41  ;;  %v6211_v54 = vmax.f32 %v6179_v28, %v5935_v53  ;;  %v6148_v48 = vmax.f32 %v11288_v58, %v5949_v0  ;;  %v4206_v33 = vadd.f32 %v4205_v38, %v11289_v43  ;;  %v4207_v19 = vpop.f32.mrb[57].mxu0  ;;  %v4464_v57 = vpop.f32.mrb[57].mxu1  ;;  %v4463_v2 = vadd.f32 %v4462_v4, %v11289_v43 }
 0x3fd   : > { %v4208_v27 = vadd.f32 %v4207_v19, %v11289_v43  ;;  %5166 = vmatmul.mubr.f32.gmra.mrb[162].mxu0 %v7678_v55  ;;  %5423 = vmatmul.mubr.f32.gmra.mrb[162].mxu1 %v7678_v55  ;;  %v5952_v0 = vmax.f32 %v4459_v49, 0.0  ;;  %v4465_v51 = vadd.f32 %v4464_v57, %v11289_v43 }
 0x3fe   : > { %v10521_v39 = vmax.f32 %v6211_v54, %v5936_v42  ;;  %v6180_v32 = vmax.f32 %v6148_v48, %v5950_v12  ;;  %v5965_v17 = vmax.f32 %v4206_v33, 0.0  ;;  %5171 = vmatprep.mubr.f32.mxu0 %v11236_v16  ;;  %5428 = vmatprep.mubr.f32.mxu1 %v11236_v16  ;;  %v11291_v42 = vld [vmem:[#allocation33_spill] sm:$0xff]  ;;  %v11292_v12 = vld [vmem:[#allocation30_spill] sm:$0xff]  ;;  %v5967_v19 = vmax.f32 %v4463_v2, 0.0 }
 0x3ff   : > { %v5966_v53 = vmax.f32 %v4208_v27, 0.0  ;;  %v4211_v28 = vpop.f32.mrb[58].mxu0  ;;  %v4468_v38 = vpop.f32.mrb[58].mxu1  ;;  %v5968_v2 = vmax.f32 %v4465_v51, 0.0  ;;  %v7680_v51 = vld [vmem:[%s11163_s5 + $0x98] sm:$0xff] }
 0x400   : > { %11290 = vst [vmem:[#allocation27_spill] sm:$0xff] %v10521_v39  ;;  %v6212_v4 = vmax.f32 %v6180_v32, %v5951_v23  ;;  %v6149_v54 = vmax.f32 %v11291_v42, %v5965_v17  ;;  %v4212_v58 = vadd.f32 %v4211_v28, %v11292_v12  ;;  %v4213_v48 = vpop.f32.mrb[59].mxu0  ;;  %v4470_v33 = vpop.f32.mrb[59].mxu1  ;;  %v4469_v41 = vadd.f32 %v4468_v38, %v11292_v12  ;;  %v7679_v32 = vld [vmem:[%s11163_s5 + $0x90] sm:$0xff] }
 0x401   : > { %v4214_v55 = vadd.f32 %v4213_v48, %v11292_v12  ;;  %5172 = vmatmul.mubr.f32.gmra.mrb[164].mxu0 %v7679_v32  ;;  %5429 = vmatmul.mubr.f32.gmra.mrb[164].mxu1 %v7679_v32  ;;  %v4471_v57 = vadd.f32 %v4470_v33, %v11292_v12  ;;  %v11294_v38 = vld [vmem:[#allocation32_spill] sm:$0xff] }
 0x402   : > { %v10532_v49 = vmax.f32 %v6212_v4, %v5952_v0  ;;  %v6181_v27 = vmax.f32 %v6149_v54, %v5966_v53  ;;  %v5981_v39 = vmax.f32 %v4212_v58, 0.0  ;;  %5177 = vmatprep.mubr.f32.mxu0 %v11236_v16  ;;  %5434 = vmatprep.mubr.f32.mxu1 %v11236_v16  ;;  %v11293_v53 = vld [vmem:[#allocation35_spill] sm:$0xff]  ;;  %v5983_v33 = vmax.f32 %v4469_v41, 0.0 }
 0x403   : > { %v5982_v17 = vmax.f32 %v4214_v55, 0.0  ;;  %v4217_v23 = vpop.f32.mrb[60].mxu0  ;;  %v4474_v28 = vpop.f32.mrb[60].mxu1 }
 0x404   : > { %v6213_v0 = vmax.f32 %v6181_v27, %v5967_v19  ;;  %v6150_v4 = vmax.f32 %v11293_v53, %v5981_v39  ;;  %v4218_v42 = vadd.f32 %v4217_v23, %v11294_v38  ;;  %v4219_v54 = vpop.f32.mrb[61].mxu0  ;;  %v4476_v58 = vpop.f32.mrb[61].mxu1  ;;  %v4475_v48 = vadd.f32 %v4474_v28, %v11294_v38 }
 0x405   : > { %v4220_v55 = vadd.f32 %v4219_v54, %v11294_v38  ;;  %5178 = vmatmul.mubr.f32.gmra.mrb[166].mxu0 %v7680_v51  ;;  %5435 = vmatmul.mubr.f32.gmra.mrb[166].mxu1 %v7680_v51  ;;  %v5984_v39 = vmax.f32 %v4471_v57, 0.0  ;;  %v4477_v41 = vadd.f32 %v4476_v58, %v11294_v38 }
 0x406   : > { %v10545_v32 = vmax.f32 %v6213_v0, %v5968_v2  ;;  %v6182_v12 = vmax.f32 %v6150_v4, %v5982_v17  ;;  %v5997_v43 = vmax.f32 %v4218_v42, 0.0  ;;  %5183 = vmatprep.mubr.f32.mxu0 %v11236_v16  ;;  %5440 = vmatprep.mubr.f32.mxu1 %v11236_v16  ;;  %v11296_v17 = vld [vmem:[#allocation34_spill] sm:$0xff]  ;;  %v5999_v42 = vmax.f32 %v4475_v48, 0.0 }
 0x407   : > { %v5998_v19 = vmax.f32 %v4220_v55, 0.0  ;;  %v4223_v27 = vpop.f32.mrb[62].mxu0  ;;  %v4480_v23 = vpop.f32.mrb[62].mxu1  ;;  %v6000_v48 = vmax.f32 %v4477_v41, 0.0  ;;  %v7682_v41 = vld [vmem:[%s11163_s5 + $0xa8] sm:$0xff] }
 0x408   : > { %11295 = vst [vmem:[#allocation29_spill] sm:$0xff] %v10545_v32  ;;  %v6214_v28 = vmax.f32 %v6182_v12, %v5983_v33  ;;  %v6151_v2 = vmax.f32 %v10183_v26, %v5997_v43  ;;  %v4224_v0 = vadd.f32 %v4223_v27, %v11296_v17  ;;  %v4225_v53 = vpop.f32.mrb[63].mxu0  ;;  %v4482_v4 = vpop.f32.mrb[63].mxu1  ;;  %v4481_v32 = vadd.f32 %v4480_v23, %v11296_v17  ;;  %v7681_v12 = vld [vmem:[%s11163_s5 + $0xa0] sm:$0xff] }
 0x409   : > { %v4226_v54 = vadd.f32 %v4225_v53, %v11296_v17  ;;  %5184 = vmatmul.mubr.f32.gmra.mrb[168].mxu0 %v7681_v12  ;;  %5441 = vmatmul.mubr.f32.gmra.mrb[168].mxu1 %v7681_v12  ;;  %v4483_v43 = vadd.f32 %v4482_v4, %v11296_v17 }
 0x40a   : > { %v10556_v57 = vmax.f32 %v6214_v28, %v5984_v39  ;;  %v6183_v55 = vmax.f32 %v6151_v2, %v5998_v19  ;;  %v6013_v51 = vmax.f32 %v4224_v0, 0.0  ;;  %5189 = vmatprep.mubr.f32.mxu0 %v11236_v16  ;;  %5446 = vmatprep.mubr.f32.mxu1 %v11236_v16  ;;  %v6015_v4 = vmax.f32 %v4481_v32, 0.0 }
 0x40b   : > { %v6014_v26 = vmax.f32 %v4226_v54, 0.0  ;;  %v4551_v58 = vpop.f32.mrb[64].mxu0  ;;  %v4808_v33 = vpop.f32.mrb[64].mxu1 }
 0x40c   : > { %v6215_v39 = vmax.f32 %v6183_v55, %v5999_v42  ;;  %v6152_v19 = vmax.f32 %v10195_v9, %v6013_v51  ;;  %v4552_v27 = vadd.f32 %v4551_v58, %v9740_v29  ;;  %v4553_v23 = vpop.f32.mrb[65].mxu0  ;;  %v4810_v28 = vpop.f32.mrb[65].mxu1  ;;  %v4809_v2 = vadd.f32 %v4808_v33, %v9740_v29 }
 0x40d   : > { %v4554_v0 = vadd.f32 %v4553_v23, %v9740_v29  ;;  %5190 = vmatmul.mubr.f32.gmra.mrb[170].mxu0 %v7682_v41  ;;  %5447 = vmatmul.mubr.f32.gmra.mrb[170].mxu1 %v7682_v41  ;;  %v6016_v9 = vmax.f32 %v4483_v43, 0.0  ;;  %v4811_v32 = vadd.f32 %v4810_v28, %v9740_v29 }
 0x40e   : > { %v10569_v53 = vmax.f32 %v6215_v39, %v6000_v48  ;;  %v6184_v54 = vmax.f32 %v6152_v19, %v6014_v26  ;;  %v5521_v12 = vmax.f32 %v4552_v27, 0.0  ;;  %5195 = vmatprep.mubr.f32.mxu0 %v11236_v16  ;;  %5452 = vmatprep.mubr.f32.mxu1 %v11236_v16  ;;  %v5523_v39 = vmax.f32 %v4809_v2, 0.0 }
 0x40f   : > { %v5522_v42 = vmax.f32 %v4554_v0, 0.0  ;;  %v4557_v55 = vpop.f32.mrb[66].mxu0  ;;  %v4814_v33 = vpop.f32.mrb[66].mxu1  ;;  %v5524_v2 = vmax.f32 %v4811_v32, 0.0  ;;  %v7684_v32 = vld [vmem:[%s11163_s5 + $0xb8] sm:$0xff] }
 0x410   : > { %v6216_v51 = vmax.f32 %v6184_v54, %v6015_v4  ;;  %v6249_v58 = vmax.f32 %v10209_v14, %v5521_v12  ;;  %v4558_v26 = vadd.f32 %v4557_v55, %v9750_v30  ;;  %v4559_v48 = vpop.f32.mrb[67].mxu0  ;;  %v4816_v27 = vpop.f32.mrb[67].mxu1  ;;  %v4815_v41 = vadd.f32 %v4814_v33, %v9750_v30  ;;  %v7683_v14 = vld [vmem:[%s11163_s5 + $0xb0] sm:$0xff] }
 0x411   : > { %v4560_v19 = vadd.f32 %v4559_v48, %v9750_v30  ;;  %5196 = vmatmul.mubr.f32.gmra.mrb[172].mxu0 %v7683_v14  ;;  %5453 = vmatmul.mubr.f32.gmra.mrb[172].mxu1 %v7683_v14  ;;  %v4817_v12 = vadd.f32 %v4816_v27, %v9750_v30  ;;  %v11303_v30 = vld [vmem:[#allocation13_spill] sm:$0xff] }
 0x412   : > { %v10580_v43 = vmax.f32 %v6216_v51, %v6016_v9  ;;  %v6281_v23 = vmax.f32 %v6249_v58, %v5522_v42  ;;  %v5537_v0 = vmax.f32 %v4558_v26, 0.0  ;;  %5201 = vmatprep.mubr.f32.mxu0 %v11236_v16  ;;  %5458 = vmatprep.mubr.f32.mxu1 %v11236_v16  ;;  %v5539_v26 = vmax.f32 %v4815_v41, 0.0 }
 0x413   : > { %v5538_v28 = vmax.f32 %v4560_v19, 0.0  ;;  %v4563_v9 = vpop.f32.mrb[68].mxu0  ;;  %v4820_v55 = vpop.f32.mrb[68].mxu1  ;;  %v5540_v27 = vmax.f32 %v4817_v12, 0.0  ;;  %v7685_v12 = vld [vmem:[%s11163_s5 + $0xc0] sm:$0xff] }
 0x414   : > { %v6313_v4 = vmax.f32 %v6281_v23, %v5523_v39  ;;  %v6250_v54 = vmax.f32 %v10220_v21, %v5537_v0  ;;  %v4564_v42 = vadd.f32 %v4563_v9, %v9761_v63  ;;  %v4565_v51 = vpop.f32.mrb[69].mxu0  ;;  %v4822_v19 = vpop.f32.mrb[69].mxu1  ;;  %v4821_v39 = vadd.f32 %v4820_v55, %v9761_v63 }
 0x415   : > { %v4566_v48 = vadd.f32 %v4565_v51, %v9761_v63  ;;  %5202 = vmatmul.mubr.f32.gmra.mrb[174].mxu0 %v7684_v32  ;;  %5459 = vmatmul.mubr.f32.gmra.mrb[174].mxu1 %v7684_v32  ;;  %v4823_v14 = vadd.f32 %v4822_v19, %v9761_v63  ;;  %v11300_v63 = vld [vmem:[#allocation36_spill] sm:$0xff] }
 0x416   : > { %v10591_v58 = vmax.f32 %v6313_v4, %v5524_v2  ;;  %v6282_v33 = vmax.f32 %v6250_v54, %v5538_v28  ;;  %v5553_v21 = vmax.f32 %v4564_v42, 0.0  ;;  %5207 = vmatprep.mubr.f32.mxu0 %v11236_v16  ;;  %5464 = vmatprep.mubr.f32.mxu1 %v11236_v16  ;;  %v11299_v54 = vld [vmem:[#allocation8_spill] sm:$0xff]  ;;  %v5555_v51 = vmax.f32 %v4821_v39, 0.0 }
 0x417   : > { %v5554_v0 = vmax.f32 %v4566_v48, 0.0  ;;  %v4569_v28 = vpop.f32.mrb[70].mxu0  ;;  %v5556_v19 = vmax.f32 %v4823_v14, 0.0 }
 0x418   : > { %11297 = vst [vmem:[#allocation31_spill] sm:$0xff] %v10591_v58  ;;  %v6314_v23 = vmax.f32 %v6282_v33, %v5539_v26  ;;  %v6251_v41 = vmax.f32 %v10233_v10, %v5553_v21  ;;  %v4826_v2 = vpop.f32.mrb[70].mxu1  ;;  %v4570_v9 = vadd.f32 %v4569_v28, %v11299_v54  ;;  %v4571_v42 = vpop.f32.mrb[71].mxu0 }
 0x419   : > { %v4828_v55 = vpop.f32.mrb[71].mxu1  ;;  %5208 = vmatmul.mubr.f32.gmra.mrb[176].mxu0 %v7685_v12  ;;  %v4572_v33 = vadd.f32 %v4571_v42, %v11299_v54  ;;  %5465 = vmatmul.mubr.f32.gmra.mrb[176].mxu1 %v7685_v12  ;;  %v4827_v48 = vadd.f32 %v4826_v2, %v11299_v54 }
 0x41a   : > { %v10602_v4 = vmax.f32 %v6314_v23, %v5540_v27  ;;  %v6283_v26 = vmax.f32 %v6251_v41, %v5554_v0  ;;  %5213 = vmatprep.mubr.f32.mxu0 %v11236_v16  ;;  %v5569_v10 = vmax.f32 %v4570_v9, 0.0  ;;  %5470 = vmatprep.mubr.f32.mxu1 %v11236_v16  ;;  %v4829_v27 = vadd.f32 %v4828_v55, %v11299_v54  ;;  %v11301_v0 = vld [vmem:[#allocation9_spill] sm:$0xff]  ;;  %v7686_v9 = vld [vmem:[%s11163_s5 + $0xc8] sm:$0xff] }
 0x41b   : > { %v5570_v21 = vmax.f32 %v4572_v33, 0.0  ;;  %v5571_v55 = vmax.f32 %v4827_v48, 0.0  ;;  %v7687_v48 = vld [vmem:[%s11163_s5 + $0xd0] sm:$0xff] }
 0x41c   : > { %11298 = vst [vmem:[#allocation33_spill] sm:$0xff] %v10602_v4  ;;  %v6315_v32 = vmax.f32 %v6283_v26, %v5555_v51  ;;  %v4575_v23 = vpop.f32.mrb[72].mxu0  ;;  %v4832_v28 = vpop.f32.mrb[72].mxu1  ;;  %v6252_v39 = vmax.f32 %v11300_v63, %v5569_v10  ;;  %v5572_v33 = vmax.f32 %v4829_v27, 0.0 }
 0x41d   : > { %v4576_v41 = vadd.f32 %v4575_v23, %v11301_v0  ;;  %v4577_v42 = vpop.f32.mrb[73].mxu0  ;;  %v4834_v12 = vpop.f32.mrb[73].mxu1  ;;  %5214 = vmatmul.mubr.f32.gmra.mrb[178].mxu0 %v7686_v9  ;;  %v4833_v14 = vadd.f32 %v4832_v28, %v11301_v0  ;;  %5471 = vmatmul.mubr.f32.gmra.mrb[178].mxu1 %v7686_v9  ;;  %v11304_v28 = vld [vmem:[#allocation10_spill] sm:$0xff] }
 0x41e   : > { %v10618_v2 = vmax.f32 %v6315_v32, %v5556_v19  ;;  %v4578_v51 = vadd.f32 %v4577_v42, %v11301_v0  ;;  %5219 = vmatprep.mubr.f32.mxu0 %v11236_v16  ;;  %v6284_v63 = vmax.f32 %v6252_v39, %v5570_v21  ;;  %5476 = vmatprep.mubr.f32.mxu1 %v11236_v16 }
 0x41f   : > { %v5585_v26 = vmax.f32 %v4576_v41, 0.0  ;;  %v4835_v32 = vadd.f32 %v4834_v12, %v11301_v0  ;;  %v5587_v21 = vmax.f32 %v4833_v14, 0.0 }
 0x420   : > { %11302 = vst [vmem:[#allocation35_spill] sm:$0xff] %v10618_v2  ;;  %v5586_v10 = vmax.f32 %v4578_v51, 0.0  ;;  %v4581_v23 = vpop.f32.mrb[74].mxu0  ;;  %v4838_v54 = vpop.f32.mrb[74].mxu1  ;;  %v6316_v4 = vmax.f32 %v6284_v63, %v5571_v55 }
 0x421   : > { %v6253_v19 = vmax.f32 %v11303_v30, %v5585_v26  ;;  %v4582_v2 = vadd.f32 %v4581_v23, %v11304_v28  ;;  %v4583_v42 = vpop.f32.mrb[75].mxu0  ;;  %v4840_v9 = vpop.f32.mrb[75].mxu1  ;;  %5220 = vmatmul.mubr.f32.gmra.mrb[180].mxu0 %v7687_v48  ;;  %5477 = vmatmul.mubr.f32.gmra.mrb[180].mxu1 %v7687_v48  ;;  %v4839_v12 = vadd.f32 %v4838_v54, %v11304_v28  ;;  %v5588_v23 = vmax.f32 %v4835_v32, 0.0 }
 0x422   : > { %v4584_v27 = vadd.f32 %v4583_v42, %v11304_v28  ;;  %5225 = vmatprep.mubr.f32.mxu0 %v11236_v16  ;;  %v10632_v39 = vmax.f32 %v6316_v4, %v5572_v33  ;;  %5482 = vmatprep.mubr.f32.mxu1 %v11236_v16  ;;  %v4841_v55 = vadd.f32 %v4840_v9, %v11304_v28 }
 0x423   : > { %v6285_v30 = vmax.f32 %v6253_v19, %v5586_v10  ;;  %v5601_v41 = vmax.f32 %v4582_v2, 0.0  ;;  %v7688_v2 = vld [vmem:[%s11163_s5 + $0xd8] sm:$0xff]  ;;  %v5603_v19 = vmax.f32 %v4839_v12, 0.0  ;;  %v7689_v12 = vld [vmem:[%s11163_s5 + $0xe0] sm:$0xff] }
 0x424   : > { %11305 = vst [vmem:[#allocation36_spill] sm:$0xff] %v10632_v39  ;;  %v5602_v51 = vmax.f32 %v4584_v27, 0.0  ;;  %v4587_v63 = vpop.f32.mrb[76].mxu0  ;;  %v4844_v26 = vpop.f32.mrb[76].mxu1  ;;  %v5604_v9 = vmax.f32 %v4841_v55, 0.0 }
 0x425   : > { %v6317_v14 = vmax.f32 %v6285_v30, %v5587_v21  ;;  %v6254_v42 = vmax.f32 %v10268_v37, %v5601_v41  ;;  %v4588_v48 = vadd.f32 %v4587_v63, %v11270_v11  ;;  %v4589_v0 = vpop.f32.mrb[77].mxu0  ;;  %v4846_v4 = vpop.f32.mrb[77].mxu1  ;;  %5226 = vmatmul.mubr.f32.gmra.mrb[182].mxu0 %v7688_v2  ;;  %v4845_v54 = vadd.f32 %v4844_v26, %v11270_v11  ;;  %v11306_v63 = vld [vmem:[#allocation11_spill] sm:$0xff] }
 0x426   : > { %v4590_v33 = vadd.f32 %v4589_v0, %v11270_v11  ;;  %5483 = vmatmul.mubr.f32.gmra.mrb[182].mxu1 %v7688_v2  ;;  %5231 = vmatprep.mubr.f32.mxu0 %v11236_v16  ;;  %v4847_v26 = vadd.f32 %v4846_v4, %v11270_v11  ;;  %v11307_v0 = vld [vmem:[#allocation12_spill] sm:$0xff] }
 0x427   : > { %v10645_v10 = vmax.f32 %v6317_v14, %v5588_v23  ;;  %v6286_v37 = vmax.f32 %v6254_v42, %v5602_v51  ;;  %v5617_v32 = vmax.f32 %v4588_v48, 0.0  ;;  %5488 = vmatprep.mubr.f32.mxu1 %v11236_v16  ;;  %v5619_v51 = vmax.f32 %v4845_v54, 0.0 }
 0x428   : > { %v5618_v21 = vmax.f32 %v4590_v33, 0.0  ;;  %v4593_v27 = vpop.f32.mrb[78].mxu0  ;;  %v4850_v30 = vpop.f32.mrb[78].mxu1 }
 0x429   : > { %v6318_v41 = vmax.f32 %v6286_v37, %v5603_v19  ;;  %v6255_v28 = vmax.f32 %v11306_v63, %v5617_v32  ;;  %v4594_v2 = vadd.f32 %v4593_v27, %v11307_v0  ;;  %v4595_v39 = vpop.f32.mrb[79].mxu0  ;;  %v4852_v58 = vpop.f32.mrb[79].mxu1  ;;  %5232 = vmatmul.mubr.f32.gmra.mrb[184].mxu0 %v7689_v12  ;;  %v4851_v48 = vadd.f32 %v4850_v30, %v11307_v0 }
 0x42a   : > { %v4596_v55 = vadd.f32 %v4595_v39, %v11307_v0  ;;  %5489 = vmatmul.mubr.f32.gmra.mrb[184].mxu1 %v7689_v12  ;;  %5237 = vmatprep.mubr.f32.mxu0 %v11236_v16  ;;  %v4853_v33 = vadd.f32 %v4852_v58, %v11307_v0  ;;  %v5620_v32 = vmax.f32 %v4847_v26, 0.0 }
 0x42b   : > { %v10656_v23 = vmax.f32 %v6318_v41, %v5604_v9  ;;  %v6287_v14 = vmax.f32 %v6255_v28, %v5618_v21  ;;  %v5633_v42 = vmax.f32 %v4594_v2, 0.0  ;;  %5494 = vmatprep.mubr.f32.mxu1 %v11236_v16  ;;  %v7690_v28 = vld [vmem:[%s11163_s5 + $0xe8] sm:$0xff]  ;;  %v5635_v41 = vmax.f32 %v4851_v48, 0.0  ;;  %v7691_v48 = vld [vmem:[%s11163_s5 + $0xf0] sm:$0xff] }
 0x42c   : > { %v5634_v4 = vmax.f32 %v4596_v55, 0.0  ;;  %v4599_v19 = vpop.f32.mrb[80].mxu0  ;;  %v4856_v37 = vpop.f32.mrb[80].mxu1  ;;  %v5636_v2 = vmax.f32 %v4853_v33, 0.0 }
 0x42d   : > { %v6319_v54 = vmax.f32 %v6287_v14, %v5619_v51  ;;  %v6256_v39 = vmax.f32 %v10292_v3, %v5633_v42  ;;  %v4600_v27 = vadd.f32 %v4599_v19, %v11274_v22  ;;  %v4601_v63 = vpop.f32.mrb[81].mxu0  ;;  %v4858_v9 = vpop.f32.mrb[81].mxu1  ;;  %5238 = vmatmul.mubr.f32.gmra.mrb[186].mxu0 %v7690_v28  ;;  %v4857_v21 = vadd.f32 %v4856_v37, %v11274_v22  ;;  %v11308_v37 = vld [vmem:[#allocation16_spill] sm:$0xff] }
 0x42e   : > { %v4602_v30 = vadd.f32 %v4601_v63, %v11274_v22  ;;  %5495 = vmatmul.mubr.f32.gmra.mrb[186].mxu1 %v7690_v28  ;;  %5243 = vmatprep.mubr.f32.mxu0 %v11236_v16  ;;  %v4859_v19 = vadd.f32 %v4858_v9, %v11274_v22 }
 0x42f   : > { %v10669_v58 = vmax.f32 %v6319_v54, %v5620_v32  ;;  %v6288_v3 = vmax.f32 %v6256_v39, %v5634_v4  ;;  %v5649_v26 = vmax.f32 %v4600_v27, 0.0  ;;  %5500 = vmatprep.mubr.f32.mxu1 %v11236_v16  ;;  %v5651_v4 = vmax.f32 %v4857_v21, 0.0 }
 0x430   : > { %v5650_v12 = vmax.f32 %v4602_v30, 0.0  ;;  %v4605_v51 = vpop.f32.mrb[82].mxu0  ;;  %v4862_v55 = vpop.f32.mrb[82].mxu1 }
 0x431   : > { %v6320_v14 = vmax.f32 %v6288_v3, %v5635_v41  ;;  %v6257_v42 = vmax.f32 %v10305_v60, %v5649_v26  ;;  %v4606_v63 = vadd.f32 %v4605_v51, %v11308_v37  ;;  %v4607_v28 = vpop.f32.mrb[83].mxu0  ;;  %v4864_v0 = vpop.f32.mrb[83].mxu1  ;;  %5244 = vmatmul.mubr.f32.gmra.mrb[188].mxu0 %v7691_v48  ;;  %v4863_v39 = vadd.f32 %v4862_v55, %v11308_v37 }
 0x432   : > { %v4608_v33 = vadd.f32 %v4607_v28, %v11308_v37  ;;  %5501 = vmatmul.mubr.f32.gmra.mrb[188].mxu1 %v7691_v48  ;;  %5249 = vmatprep.mubr.f32.mxu0 %v11236_v16  ;;  %v4865_v9 = vadd.f32 %v4864_v0, %v11308_v37  ;;  %v5652_v3 = vmax.f32 %v4859_v19, 0.0 }
 0x433   : > { %v10680_v32 = vmax.f32 %v6320_v14, %v5636_v2  ;;  %v6289_v60 = vmax.f32 %v6257_v42, %v5650_v12  ;;  %v5665_v54 = vmax.f32 %v4606_v63, 0.0  ;;  %5506 = vmatprep.mubr.f32.mxu1 %v11236_v16  ;;  %v7692_v12 = vld [vmem:[%s11163_s5 + $0xf8] sm:$0xff]  ;;  %v5667_v14 = vmax.f32 %v4863_v39, 0.0 }
 0x434   : > { %v5666_v27 = vmax.f32 %v4608_v33, 0.0  ;;  %v4611_v30 = vpop.f32.mrb[84].mxu0  ;;  %v4868_v41 = vpop.f32.mrb[84].mxu1 }
 0x435   : > { %v6321_v21 = vmax.f32 %v6289_v60, %v5651_v4  ;;  %v6258_v26 = vmax.f32 %v10316_v20, %v5665_v54  ;;  %v4612_v51 = vadd.f32 %v4611_v30, %v11277_v56  ;;  %v4613_v28 = vpop.f32.mrb[85].mxu0  ;;  %v4870_v2 = vpop.f32.mrb[85].mxu1  ;;  %5250 = vmatmul.mubr.f32.gmra.mrb[190].mxu0 %v7692_v12  ;;  %v4869_v16 = vadd.f32 %v4868_v41, %v11277_v56 }
 0x436   : > { %v4614_v55 = vadd.f32 %v4613_v28, %v11277_v56  ;;  %5507 = vmatmul.mubr.f32.gmra.mrb[190].mxu1 %v7692_v12  ;;  %v5668_v20 = vmax.f32 %v4865_v9, 0.0  ;;  %v4871_v54 = vadd.f32 %v4870_v2, %v11277_v56 }
 0x437   : > { %v10692_v0 = vmax.f32 %v6321_v21, %v5652_v3  ;;  %v6290_v42 = vmax.f32 %v6258_v26, %v5666_v27  ;;  %v5681_v19 = vmax.f32 %v4612_v51, 0.0  ;;  %v5683_v28 = vmax.f32 %v4869_v16, 0.0 }
 0x438   : > { %v5682_v63 = vmax.f32 %v4614_v55, 0.0  ;;  %v4617_v48 = vpop.f32.mrb[86].mxu0  ;;  %v4874_v4 = vpop.f32.mrb[86].mxu1  ;;  %v5684_v55 = vmax.f32 %v4871_v54, 0.0 }
 0x439   : > { %v6322_v33 = vmax.f32 %v6290_v42, %v5667_v14  ;;  %v6259_v60 = vmax.f32 %v10329_v31, %v5681_v19  ;;  %v4618_v30 = vadd.f32 %v4617_v48, %v9877_v24  ;;  %v4619_v41 = vpop.f32.mrb[87].mxu0  ;;  %v4876_v37 = vpop.f32.mrb[87].mxu1  ;;  %v4875_v9 = vadd.f32 %v4874_v4, %v9877_v24 }
 0x43a   : > { %v4620_v3 = vadd.f32 %v4619_v41, %v9877_v24  ;;  %v4877_v51 = vadd.f32 %v4876_v37, %v9877_v24 }
 0x43b   : > { %v10698_v21 = vmax.f32 %v6322_v33, %v5668_v20  ;;  %v6291_v39 = vmax.f32 %v6259_v60, %v5682_v63  ;;  %v5697_v27 = vmax.f32 %v4618_v30, 0.0  ;;  %v5699_v4 = vmax.f32 %v4875_v9, 0.0 }
 0x43c   : > { %v5698_v26 = vmax.f32 %v4620_v3, 0.0  ;;  %v4623_v12 = vpop.f32.mrb[88].mxu0  ;;  %v4880_v31 = vpop.f32.mrb[88].mxu1  ;;  %v5700_v37 = vmax.f32 %v4877_v51, 0.0 }
 0x43d   : > { %v6323_v2 = vmax.f32 %v6291_v39, %v5683_v28  ;;  %v6260_v14 = vmax.f32 %v10340_v61, %v5697_v27  ;;  %v4624_v42 = vadd.f32 %v4623_v12, %v9890_v8  ;;  %v4625_v16 = vpop.f32.mrb[89].mxu0  ;;  %v4882_v19 = vpop.f32.mrb[89].mxu1  ;;  %v4881_v20 = vadd.f32 %v4880_v31, %v9890_v8 }
 0x43e   : > { %v4626_v63 = vadd.f32 %v4625_v16, %v9890_v8  ;;  %v4883_v3 = vadd.f32 %v4882_v19, %v9890_v8 }
 0x43f   : > { %v10706_v48 = vmax.f32 %v6323_v2, %v5684_v55  ;;  %v6292_v33 = vmax.f32 %v6260_v14, %v5698_v26  ;;  %v5713_v60 = vmax.f32 %v4624_v42, 0.0  ;;  %v5715_v31 = vmax.f32 %v4881_v20, 0.0 }
 0x440   : > { %v5714_v30 = vmax.f32 %v4626_v63, 0.0  ;;  %v4629_v41 = vpop.f32.mrb[90].mxu0  ;;  %v4886_v54 = vpop.f32.mrb[90].mxu1  ;;  %v5716_v63 = vmax.f32 %v4883_v3, 0.0 }
 0x441   : > { %v6324_v28 = vmax.f32 %v6292_v33, %v5699_v4  ;;  %v6261_v61 = vmax.f32 %v10353_v62, %v5713_v60  ;;  %v4630_v39 = vadd.f32 %v4629_v41, %v9906_v6  ;;  %v4631_v27 = vpop.f32.mrb[91].mxu0  ;;  %v4888_v12 = vpop.f32.mrb[91].mxu1  ;;  %v4887_v51 = vadd.f32 %v4886_v54, %v9906_v6 }
 0x442   : > { %v4632_v55 = vadd.f32 %v4631_v27, %v9906_v6  ;;  %v4889_v42 = vadd.f32 %v4888_v12, %v9906_v6 }
 0x443   : > { %v10712_v2 = vmax.f32 %v6324_v28, %v5700_v37  ;;  %v6293_v9 = vmax.f32 %v6261_v61, %v5714_v30  ;;  %v5729_v26 = vmax.f32 %v4630_v39, 0.0  ;;  %v5731_v54 = vmax.f32 %v4887_v51, 0.0 }
 0x444   : > { %v5730_v14 = vmax.f32 %v4632_v55, 0.0  ;;  %v4635_v16 = vpop.f32.mrb[92].mxu0  ;;  %v4892_v62 = vpop.f32.mrb[92].mxu1  ;;  %v5732_v39 = vmax.f32 %v4889_v42, 0.0 }
 0x445   : > { %v6325_v19 = vmax.f32 %v6293_v9, %v5715_v31  ;;  %v6262_v4 = vmax.f32 %v10364_v5, %v5729_v26  ;;  %v4636_v33 = vadd.f32 %v4635_v16, %v9923_v59  ;;  %v4637_v20 = vpop.f32.mrb[93].mxu0  ;;  %v4894_v60 = vpop.f32.mrb[93].mxu1  ;;  %v4893_v37 = vadd.f32 %v4892_v62, %v9923_v59 }
 0x446   : > { %v4638_v30 = vadd.f32 %v4637_v20, %v9923_v59  ;;  %v4895_v55 = vadd.f32 %v4894_v60, %v9923_v59 }
 0x447   : > { %v10720_v41 = vmax.f32 %v6325_v19, %v5716_v63  ;;  %v6294_v28 = vmax.f32 %v6262_v4, %v5730_v14  ;;  %v5745_v61 = vmax.f32 %v4636_v33, 0.0  ;;  %v5747_v62 = vmax.f32 %v4893_v37, 0.0 }
 0x448   : > { %v5746_v27 = vmax.f32 %v4638_v30, 0.0  ;;  %v4641_v12 = vpop.f32.mrb[94].mxu0  ;;  %v4898_v3 = vpop.f32.mrb[94].mxu1  ;;  %v5748_v30 = vmax.f32 %v4895_v55, 0.0 }
 0x449   : > { %v6326_v31 = vmax.f32 %v6294_v28, %v5731_v54  ;;  %v6263_v5 = vmax.f32 %v10377_v35, %v5745_v61  ;;  %v4642_v9 = vadd.f32 %v4641_v12, %v9937_v52  ;;  %v4643_v26 = vpop.f32.mrb[95].mxu0  ;;  %v4900_v16 = vpop.f32.mrb[95].mxu1  ;;  %v4899_v42 = vadd.f32 %v4898_v3, %v9937_v52 }
 0x44a   : > { %v4644_v63 = vadd.f32 %v4643_v26, %v9937_v52  ;;  %v4901_v33 = vadd.f32 %v4900_v16, %v9937_v52 }
 0x44b   : > { %v10726_v19 = vmax.f32 %v6326_v31, %v5732_v39  ;;  %v6295_v51 = vmax.f32 %v6263_v5, %v5746_v27  ;;  %v5761_v14 = vmax.f32 %v4642_v9, 0.0  ;;  %v5763_v3 = vmax.f32 %v4899_v42, 0.0 }
 0x44c   : > { %v5762_v4 = vmax.f32 %v4644_v63, 0.0  ;;  %v4647_v20 = vpop.f32.mrb[96].mxu0  ;;  %v4904_v35 = vpop.f32.mrb[96].mxu1  ;;  %v5764_v9 = vmax.f32 %v4901_v33, 0.0 }
 0x44d   : > { %v6327_v60 = vmax.f32 %v6295_v51, %v5747_v62  ;;  %v6264_v54 = vmax.f32 %v10388_v44, %v5761_v14  ;;  %v4648_v28 = vadd.f32 %v4647_v20, %v9954_v36  ;;  %v4649_v37 = vpop.f32.mrb[97].mxu0  ;;  %v4906_v61 = vpop.f32.mrb[97].mxu1  ;;  %v4905_v39 = vadd.f32 %v4904_v35, %v9954_v36 }
 0x44e   : > { %v4650_v27 = vadd.f32 %v4649_v37, %v9954_v36  ;;  %v4907_v63 = vadd.f32 %v4906_v61, %v9954_v36 }
 0x44f   : > { %v10734_v12 = vmax.f32 %v6327_v60, %v5748_v30  ;;  %v6296_v31 = vmax.f32 %v6264_v54, %v5762_v4  ;;  %v5777_v5 = vmax.f32 %v4648_v28, 0.0  ;;  %v5779_v35 = vmax.f32 %v4905_v39, 0.0 }
 0x450   : > { %v5778_v26 = vmax.f32 %v4650_v27, 0.0  ;;  %v4653_v16 = vpop.f32.mrb[98].mxu0  ;;  %v4910_v55 = vpop.f32.mrb[98].mxu1  ;;  %v5780_v27 = vmax.f32 %v4907_v63, 0.0 }
 0x451   : > { %v6328_v62 = vmax.f32 %v6296_v31, %v5763_v3  ;;  %v6265_v44 = vmax.f32 %v10401_v47, %v5777_v5  ;;  %v4654_v51 = vadd.f32 %v4653_v16, %v9971_v45  ;;  %v4655_v14 = vpop.f32.mrb[99].mxu0  ;;  %v4912_v20 = vpop.f32.mrb[99].mxu1  ;;  %v4911_v33 = vadd.f32 %v4910_v55, %v9971_v45 }
 0x452   : > { %v4656_v30 = vadd.f32 %v4655_v14, %v9971_v45  ;;  %v4913_v28 = vadd.f32 %v4912_v20, %v9971_v45 }
 0x453   : > { %v10740_v60 = vmax.f32 %v6328_v62, %v5764_v9  ;;  %v6297_v42 = vmax.f32 %v6265_v44, %v5778_v26  ;;  %v5793_v4 = vmax.f32 %v4654_v51, 0.0  ;;  %v5795_v55 = vmax.f32 %v4911_v33, 0.0 }
 0x454   : > { %v5794_v54 = vmax.f32 %v4656_v30, 0.0  ;;  %v4659_v37 = vpop.f32.mrb[100].mxu0  ;;  %v4916_v47 = vpop.f32.mrb[100].mxu1  ;;  %v5796_v51 = vmax.f32 %v4913_v28, 0.0 }
 0x455   : > { %v6329_v61 = vmax.f32 %v6297_v42, %v5779_v35  ;;  %v6266_v3 = vmax.f32 %v10412_v25, %v5793_v4  ;;  %v4660_v31 = vadd.f32 %v4659_v37, %v9988_v7  ;;  %v4661_v39 = vpop.f32.mrb[101].mxu0  ;;  %v4918_v5 = vpop.f32.mrb[101].mxu1  ;;  %v4917_v9 = vadd.f32 %v4916_v47, %v9988_v7 }
 0x456   : > { %v4662_v26 = vadd.f32 %v4661_v39, %v9988_v7  ;;  %v4919_v30 = vadd.f32 %v4918_v5, %v9988_v7 }
 0x457   : > { %v10748_v16 = vmax.f32 %v6329_v61, %v5780_v27  ;;  %v6298_v62 = vmax.f32 %v6266_v3, %v5794_v54  ;;  %v5809_v44 = vmax.f32 %v4660_v31, 0.0  ;;  %v5811_v47 = vmax.f32 %v4917_v9, 0.0 }
 0x458   : > { %v5810_v14 = vmax.f32 %v4662_v26, 0.0  ;;  %v4665_v20 = vpop.f32.mrb[102].mxu0  ;;  %v4922_v63 = vpop.f32.mrb[102].mxu1  ;;  %v5812_v26 = vmax.f32 %v4919_v30, 0.0 }
 0x459   : > { %v6330_v35 = vmax.f32 %v6298_v62, %v5795_v55  ;;  %v6267_v25 = vmax.f32 %v10425_v1, %v5809_v44  ;;  %v4666_v42 = vadd.f32 %v4665_v20, %v10005_v40  ;;  %v4667_v4 = vpop.f32.mrb[103].mxu0  ;;  %v4924_v37 = vpop.f32.mrb[103].mxu1  ;;  %v4923_v28 = vadd.f32 %v4922_v63, %v10005_v40 }
 0x45a   : > { %v4668_v27 = vadd.f32 %v4667_v4, %v10005_v40  ;;  %v4925_v31 = vadd.f32 %v4924_v37, %v10005_v40 }
 0x45b   : > { %v10754_v61 = vmax.f32 %v6330_v35, %v5796_v51  ;;  %v6299_v33 = vmax.f32 %v6267_v25, %v5810_v14  ;;  %v5825_v54 = vmax.f32 %v4666_v42, 0.0  ;;  %v5827_v63 = vmax.f32 %v4923_v28, 0.0 }
 0x45c   : > { %v5826_v3 = vmax.f32 %v4668_v27, 0.0  ;;  %v4671_v39 = vpop.f32.mrb[104].mxu0  ;;  %v4928_v1 = vpop.f32.mrb[104].mxu1  ;;  %v5828_v42 = vmax.f32 %v4925_v31, 0.0 }
 0x45d   : > { %v6331_v5 = vmax.f32 %v6299_v33, %v5811_v47  ;;  %v6268_v55 = vmax.f32 %v10436_v50, %v5825_v54  ;;  %v4672_v62 = vadd.f32 %v4671_v39, %v10020_v18  ;;  %v4673_v9 = vpop.f32.mrb[105].mxu0  ;;  %v4930_v44 = vpop.f32.mrb[105].mxu1  ;;  %v4929_v51 = vadd.f32 %v4928_v1, %v10020_v18 }
 0x45e   : > { %v4674_v14 = vadd.f32 %v4673_v9, %v10020_v18  ;;  %v4931_v27 = vadd.f32 %v4930_v44, %v10020_v18 }
 0x45f   : > { %v10762_v20 = vmax.f32 %v6331_v5, %v5812_v26  ;;  %v6300_v35 = vmax.f32 %v6268_v55, %v5826_v3  ;;  %v5841_v25 = vmax.f32 %v4672_v62, 0.0  ;;  %v5843_v1 = vmax.f32 %v4929_v51, 0.0 }
 0x460   : > { %v5842_v4 = vmax.f32 %v4674_v14, 0.0  ;;  %v4677_v37 = vpop.f32.mrb[106].mxu0  ;;  %v4934_v30 = vpop.f32.mrb[106].mxu1  ;;  %v5844_v14 = vmax.f32 %v4931_v27, 0.0 }
 0x461   : > { %v6332_v47 = vmax.f32 %v6300_v35, %v5827_v63  ;;  %v6269_v50 = vmax.f32 %v10449_v13, %v5841_v25  ;;  %v4678_v33 = vadd.f32 %v4677_v37, %v10033_v34  ;;  %v4679_v54 = vpop.f32.mrb[107].mxu0  ;;  %v4936_v39 = vpop.f32.mrb[107].mxu1  ;;  %v4935_v31 = vadd.f32 %v4934_v30, %v10033_v34 }
 0x462   : > { %v4680_v26 = vadd.f32 %v4679_v54, %v10033_v34  ;;  %v4937_v62 = vadd.f32 %v4936_v39, %v10033_v34 }
 0x463   : > { %v10768_v5 = vmax.f32 %v6332_v47, %v5828_v42  ;;  %v6301_v28 = vmax.f32 %v6269_v50, %v5842_v4  ;;  %v5857_v3 = vmax.f32 %v4678_v33, 0.0  ;;  %v5859_v30 = vmax.f32 %v4935_v31, 0.0 }
 0x464   : > { %v5858_v55 = vmax.f32 %v4680_v26, 0.0  ;;  %v4683_v9 = vpop.f32.mrb[108].mxu0  ;;  %v4940_v13 = vpop.f32.mrb[108].mxu1  ;;  %v5860_v33 = vmax.f32 %v4937_v62, 0.0  ;;  %v11310_v26 = vld [vmem:[#allocation15_spill] sm:$0xff] }
 0x465   : > { %v6333_v44 = vmax.f32 %v6301_v28, %v5843_v1  ;;  %v6270_v63 = vmax.f32 %v10460_v15, %v5857_v3  ;;  %v4684_v35 = vadd.f32 %v4683_v9, %v10046_v46  ;;  %v4685_v51 = vpop.f32.mrb[109].mxu0  ;;  %v4942_v25 = vpop.f32.mrb[109].mxu1  ;;  %v4941_v42 = vadd.f32 %v4940_v13, %v10046_v46  ;;  %v11311_v3 = vld [vmem:[#allocation21_spill] sm:$0xff] }
 0x466   : > { %v4686_v4 = vadd.f32 %v4685_v51, %v10046_v46  ;;  %v4943_v28 = vadd.f32 %v4942_v25, %v10046_v46 }
 0x467   : > { %v10776_v37 = vmax.f32 %v6333_v44, %v5844_v14  ;;  %v6302_v47 = vmax.f32 %v6270_v63, %v5858_v55  ;;  %v5873_v50 = vmax.f32 %v4684_v35, 0.0  ;;  %v5875_v18 = vmax.f32 %v4941_v42, 0.0 }
 0x468   : > { %v5874_v54 = vmax.f32 %v4686_v4, 0.0  ;;  %v4689_v39 = vpop.f32.mrb[110].mxu0  ;;  %v4946_v27 = vpop.f32.mrb[110].mxu1 }
 0x469   : > { %11309 = vst [vmem:[#allocation13_spill] sm:$0xff] %v10776_v37  ;;  %v6334_v1 = vmax.f32 %v6302_v47, %v5859_v30  ;;  %v6271_v15 = vmax.f32 %v11310_v26, %v5873_v50  ;;  %v4690_v9 = vadd.f32 %v4689_v39, %v11311_v3  ;;  %v4691_v34 = vpop.f32.mrb[111].mxu0  ;;  %v4948_v13 = vpop.f32.mrb[111].mxu1  ;;  %v4947_v62 = vadd.f32 %v4946_v27, %v11311_v3  ;;  %v11313_v47 = vld [vmem:[#allocation14_spill] sm:$0xff] }
 0x46a   : > { %v4692_v14 = vadd.f32 %v4691_v34, %v11311_v3  ;;  %v4949_v35 = vadd.f32 %v4948_v13, %v11311_v3  ;;  %v5876_v30 = vmax.f32 %v4943_v28, 0.0  ;;  %v11314_v39 = vld [vmem:[#allocation22_spill] sm:$0xff] }
 0x46b   : > { %v10782_v44 = vmax.f32 %v6334_v1, %v5860_v33  ;;  %v6303_v31 = vmax.f32 %v6271_v15, %v5874_v54  ;;  %v5889_v55 = vmax.f32 %v4690_v9, 0.0  ;;  %v5891_v27 = vmax.f32 %v4947_v62, 0.0 }
 0x46c   : > { %v5890_v63 = vmax.f32 %v4692_v14, 0.0  ;;  %v4695_v51 = vpop.f32.mrb[112].mxu0  ;;  %v4952_v4 = vpop.f32.mrb[112].mxu1  ;;  %v5892_v9 = vmax.f32 %v4949_v35, 0.0 }
 0x46d   : > { %11312 = vst [vmem:[#allocation11_spill] sm:$0xff] %v10782_v44  ;;  %v6335_v25 = vmax.f32 %v6303_v31, %v5875_v18  ;;  %v6272_v50 = vmax.f32 %v11313_v47, %v5889_v55  ;;  %v4696_v26 = vadd.f32 %v4695_v51, %v11314_v39  ;;  %v4697_v42 = vpop.f32.mrb[113].mxu0  ;;  %v4954_v46 = vpop.f32.mrb[113].mxu1  ;;  %v4953_v34 = vadd.f32 %v4952_v4, %v11314_v39  ;;  %v11316_v31 = vld [vmem:[#allocation17_spill] sm:$0xff]  ;;  %v11317_v47 = vld [vmem:[#allocation23_spill] sm:$0xff] }
 0x46e   : > { %v4698_v33 = vadd.f32 %v4697_v42, %v11314_v39  ;;  %v4955_v51 = vadd.f32 %v4954_v46, %v11314_v39 }
 0x46f   : > { %v10790_v54 = vmax.f32 %v6335_v25, %v5876_v30  ;;  %v6304_v1 = vmax.f32 %v6272_v50, %v5890_v63  ;;  %v5905_v15 = vmax.f32 %v4696_v26, 0.0  ;;  %v5907_v37 = vmax.f32 %v4953_v34, 0.0 }
 0x470   : > { %v5906_v13 = vmax.f32 %v4698_v33, 0.0  ;;  %v4701_v14 = vpop.f32.mrb[114].mxu0  ;;  %v4958_v28 = vpop.f32.mrb[114].mxu1 }
 0x471   : > { %11315 = vst [vmem:[#allocation15_spill] sm:$0xff] %v10790_v54  ;;  %v6336_v18 = vmax.f32 %v6304_v1, %v5891_v27  ;;  %v6273_v55 = vmax.f32 %v11316_v31, %v5905_v15  ;;  %v4702_v3 = vadd.f32 %v4701_v14, %v11317_v47  ;;  %v4703_v44 = vpop.f32.mrb[115].mxu0  ;;  %v4960_v4 = vpop.f32.mrb[115].mxu1  ;;  %v4959_v35 = vadd.f32 %v4958_v28, %v11317_v47  ;;  %v11319_v1 = vld [vmem:[#allocation25_spill] sm:$0xff]  ;;  %v11320_v14 = vld [vmem:[#allocation24_spill] sm:$0xff] }
 0x472   : > { %v4704_v30 = vadd.f32 %v4703_v44, %v11317_v47  ;;  %v4961_v26 = vadd.f32 %v4960_v4, %v11317_v47  ;;  %v5908_v27 = vmax.f32 %v4955_v51, 0.0 }
 0x473   : > { %v10796_v25 = vmax.f32 %v6336_v18, %v5892_v9  ;;  %v6305_v62 = vmax.f32 %v6273_v55, %v5906_v13  ;;  %v5921_v63 = vmax.f32 %v4702_v3, 0.0  ;;  %v5923_v13 = vmax.f32 %v4959_v35, 0.0 }
 0x474   : > { %v5922_v50 = vmax.f32 %v4704_v30, 0.0  ;;  %v4707_v42 = vpop.f32.mrb[116].mxu0  ;;  %v4964_v33 = vpop.f32.mrb[116].mxu1  ;;  %v5924_v55 = vmax.f32 %v4961_v26, 0.0 }
 0x475   : > { %11318 = vst [vmem:[#allocation14_spill] sm:$0xff] %v10796_v25  ;;  %v6337_v46 = vmax.f32 %v6305_v62, %v5907_v37  ;;  %v6274_v15 = vmax.f32 %v11319_v1, %v5921_v63  ;;  %v4708_v31 = vadd.f32 %v4707_v42, %v11320_v14  ;;  %v4709_v34 = vpop.f32.mrb[117].mxu0  ;;  %v4966_v39 = vpop.f32.mrb[117].mxu1  ;;  %v4965_v44 = vadd.f32 %v4964_v33, %v11320_v14  ;;  %v11321_v62 = vld [vmem:[#allocation27_spill] sm:$0xff]  ;;  %v11322_v1 = vld [vmem:[#allocation26_spill] sm:$0xff] }
 0x476   : > { %v4710_v9 = vadd.f32 %v4709_v34, %v11320_v14  ;;  %v4967_v42 = vadd.f32 %v4966_v39, %v11320_v14 }
 0x477   : > { %v10804_v3 = vmax.f32 %v6337_v46, %v5908_v27  ;;  %v6306_v28 = vmax.f32 %v6274_v15, %v5922_v50  ;;  %v5937_v18 = vmax.f32 %v4708_v31, 0.0  ;;  %v5939_v54 = vmax.f32 %v4965_v44, 0.0 }
 0x478   : > { %v5938_v4 = vmax.f32 %v4710_v9, 0.0  ;;  %v4713_v30 = vpop.f32.mrb[118].mxu0  ;;  %v4970_v51 = vpop.f32.mrb[118].mxu1 }
 0x479   : > { %v6338_v37 = vmax.f32 %v6306_v28, %v5923_v13  ;;  %v6275_v63 = vmax.f32 %v11321_v62, %v5937_v18  ;;  %v4714_v47 = vadd.f32 %v4713_v30, %v11322_v1  ;;  %v4715_v25 = vpop.f32.mrb[119].mxu0  ;;  %v4972_v33 = vpop.f32.mrb[119].mxu1  ;;  %v4971_v26 = vadd.f32 %v4970_v51, %v11322_v1  ;;  %v11324_v18 = vld [vmem:[#allocation28_spill] sm:$0xff] }
 0x47a   : > { %v4716_v27 = vadd.f32 %v4715_v25, %v11322_v1  ;;  %v4973_v31 = vadd.f32 %v4972_v33, %v11322_v1  ;;  %v5940_v13 = vmax.f32 %v4967_v42, 0.0 }
 0x47b   : > { %v10810_v46 = vmax.f32 %v6338_v37, %v5924_v55  ;;  %v6307_v35 = vmax.f32 %v6275_v63, %v5938_v4  ;;  %v5953_v50 = vmax.f32 %v4714_v47, 0.0  ;;  %v5955_v4 = vmax.f32 %v4971_v26, 0.0 }
 0x47c   : > { %v5954_v15 = vmax.f32 %v4716_v27, 0.0  ;;  %v4719_v34 = vpop.f32.mrb[120].mxu0  ;;  %v4976_v9 = vpop.f32.mrb[120].mxu1  ;;  %v5956_v63 = vmax.f32 %v4973_v31, 0.0 }
 0x47d   : > { %11323 = vst [vmem:[#allocation17_spill] sm:$0xff] %v10810_v46  ;;  %v6339_v39 = vmax.f32 %v6307_v35, %v5939_v54  ;;  %v6276_v28 = vmax.f32 %v10532_v49, %v5953_v50  ;;  %v4720_v30 = vadd.f32 %v4719_v34, %v11324_v18  ;;  %v4721_v44 = vpop.f32.mrb[121].mxu0  ;;  %v4978_v62 = vpop.f32.mrb[121].mxu1  ;;  %v4977_v25 = vadd.f32 %v4976_v9, %v11324_v18  ;;  %v11325_v35 = vld [vmem:[#allocation29_spill] sm:$0xff]  ;;  %v11326_v34 = vld [vmem:[#allocation30_spill] sm:$0xff] }
 0x47e   : > { %v4722_v55 = vadd.f32 %v4721_v44, %v11324_v18  ;;  %v4979_v50 = vadd.f32 %v4978_v62, %v11324_v18 }
 0x47f   : > { %v10818_v47 = vmax.f32 %v6339_v39, %v5940_v13  ;;  %v6308_v51 = vmax.f32 %v6276_v28, %v5954_v15  ;;  %v5969_v37 = vmax.f32 %v4720_v30, 0.0  ;;  %v5971_v46 = vmax.f32 %v4977_v25, 0.0 }
 0x480   : > { %v5970_v33 = vmax.f32 %v4722_v55, 0.0  ;;  %v4725_v27 = vpop.f32.mrb[122].mxu0  ;;  %v4982_v42 = vpop.f32.mrb[122].mxu1 }
 0x481   : > { %v6340_v54 = vmax.f32 %v6308_v51, %v5955_v4  ;;  %v6277_v49 = vmax.f32 %v11325_v35, %v5969_v37  ;;  %v4726_v1 = vadd.f32 %v4725_v27, %v11326_v34  ;;  %v4727_v14 = vpop.f32.mrb[123].mxu0  ;;  %v4984_v9 = vpop.f32.mrb[123].mxu1  ;;  %v4983_v31 = vadd.f32 %v4982_v42, %v11326_v34 }
 0x482   : > { %v4728_v13 = vadd.f32 %v4727_v14, %v11326_v34  ;;  %v4985_v30 = vadd.f32 %v4984_v9, %v11326_v34  ;;  %v5972_v4 = vmax.f32 %v4979_v50, 0.0 }
 0x483   : > { %v10824_v39 = vmax.f32 %v6340_v54, %v5956_v63  ;;  %v6309_v26 = vmax.f32 %v6277_v49, %v5970_v33  ;;  %v5985_v15 = vmax.f32 %v4726_v1, 0.0  ;;  %v5987_v33 = vmax.f32 %v4983_v31, 0.0 }
 0x484   : > { %v5986_v28 = vmax.f32 %v4728_v13, 0.0  ;;  %v4731_v44 = vpop.f32.mrb[124].mxu0  ;;  %v4988_v55 = vpop.f32.mrb[124].mxu1  ;;  %v5988_v35 = vmax.f32 %v4985_v30, 0.0 }
 0x485   : > { %v6341_v62 = vmax.f32 %v6309_v26, %v5971_v46  ;;  %v6278_v51 = vmax.f32 %v10556_v57, %v5985_v15  ;;  %v4732_v37 = vadd.f32 %v4731_v44, %v11294_v38  ;;  %v4733_v25 = vpop.f32.mrb[125].mxu0  ;;  %v4990_v27 = vpop.f32.mrb[125].mxu1  ;;  %v4989_v14 = vadd.f32 %v4988_v55, %v11294_v38 }
 0x486   : > { %v4734_v63 = vadd.f32 %v4733_v25, %v11294_v38  ;;  %v4991_v13 = vadd.f32 %v4990_v27, %v11294_v38 }
 0x487   : > { %v10832_v1 = vmax.f32 %v6341_v62, %v5972_v4  ;;  %v6310_v42 = vmax.f32 %v6278_v51, %v5986_v28  ;;  %v6001_v54 = vmax.f32 %v4732_v37, 0.0  ;;  %v6003_v55 = vmax.f32 %v4989_v14, 0.0 }
 0x488   : > { %v6002_v49 = vmax.f32 %v4734_v63, 0.0  ;;  %v4737_v9 = vpop.f32.mrb[126].mxu0  ;;  %v4994_v50 = vpop.f32.mrb[126].mxu1  ;;  %v6004_v63 = vmax.f32 %v4991_v13, 0.0 }
 0x489   : > { %v6342_v46 = vmax.f32 %v6310_v42, %v5987_v33  ;;  %v6279_v57 = vmax.f32 %v10569_v53, %v6001_v54  ;;  %v4738_v26 = vadd.f32 %v4737_v9, %v11296_v17  ;;  %v4739_v15 = vpop.f32.mrb[127].mxu0  ;;  %v4996_v44 = vpop.f32.mrb[127].mxu1  ;;  %v4995_v30 = vadd.f32 %v4994_v50, %v11296_v17 }
 0x48a   : > { %v4740_v4 = vadd.f32 %v4739_v15, %v11296_v17  ;;  %v4997_v37 = vadd.f32 %v4996_v44, %v11296_v17 }
 0x48b   : > { %v10838_v62 = vmax.f32 %v6342_v46, %v5988_v35  ;;  %v6311_v31 = vmax.f32 %v6279_v57, %v6002_v49  ;;  %v6017_v28 = vmax.f32 %v4738_v26, 0.0  ;;  %v6019_v50 = vmax.f32 %v4995_v30, 0.0 }
 0x48c   : > { %v6018_v51 = vmax.f32 %v4740_v4, 0.0  ;;  %v5065_v25 = vpop.f32.mrb[128].mxu0  ;;  %v5322_v53 = vpop.f32.mrb[128].mxu1  ;;  %v6020_v26 = vmax.f32 %v4997_v37, 0.0  ;;  %v11328_v4 = vld [vmem:[#allocation31_spill] sm:$0xff] }
 0x48d   : > { %v6343_v27 = vmax.f32 %v6311_v31, %v6003_v55  ;;  %v6280_v33 = vmax.f32 %v10580_v43, %v6017_v28  ;;  %v5066_v42 = vadd.f32 %v5065_v25, %v9740_v29  ;;  %v5067_v14 = vpop.f32.mrb[129].mxu0  ;;  %v5324_v54 = vpop.f32.mrb[129].mxu1  ;;  %v5323_v35 = vadd.f32 %v5322_v53, %v9740_v29  ;;  %v11329_v28 = vld [vmem:[#allocation6_spill] sm:$0xff] }
 0x48e   : > { %v5068_v49 = vadd.f32 %v5067_v14, %v9740_v29  ;;  %v5325_v31 = vadd.f32 %v5324_v54, %v9740_v29  ;;  %v11331_v29 = vld [vmem:[#allocation33_spill] sm:$0xff] }
 0x48f   : > { %v10846_v9 = vmax.f32 %v6343_v27, %v6004_v63  ;;  %v6312_v46 = vmax.f32 %v6280_v33, %v6018_v51  ;;  %v5525_v57 = vmax.f32 %v5066_v42, 0.0  ;;  %v5527_v38 = vmax.f32 %v5323_v35, 0.0 }
 0x490   : > { %v5526_v15 = vmax.f32 %v5068_v49, 0.0  ;;  %v5071_v44 = vpop.f32.mrb[130].mxu0  ;;  %v5328_v13 = vpop.f32.mrb[130].mxu1 }
 0x491   : > { %11327 = vst [vmem:[#allocation25_spill] sm:$0xff] %v10846_v9  ;;  %v6344_v55 = vmax.f32 %v6312_v46, %v6019_v50  ;;  %v6377_v43 = vmax.f32 %v11328_v4, %v5525_v57  ;;  %v5072_v25 = vadd.f32 %v5071_v44, %v11329_v28  ;;  %v5073_v17 = vpop.f32.mrb[131].mxu0  ;;  %v5330_v53 = vpop.f32.mrb[131].mxu1  ;;  %v5329_v37 = vadd.f32 %v5328_v13, %v11329_v28  ;;  %v11332_v46 = vld [vmem:[#allocation7_spill] sm:$0xff] }
 0x492   : > { %v5074_v63 = vadd.f32 %v5073_v17, %v11329_v28  ;;  %v5331_v42 = vadd.f32 %v5330_v53, %v11329_v28  ;;  %v5528_v50 = vmax.f32 %v5325_v31, 0.0  ;;  %v11333_v31 = vld [vmem:[#allocation35_spill] sm:$0xff] }
 0x493   : > { %v10852_v27 = vmax.f32 %v6344_v55, %v6020_v26  ;;  %v6409_v30 = vmax.f32 %v6377_v43, %v5526_v15  ;;  %v5541_v51 = vmax.f32 %v5072_v25, 0.0  ;;  %v5543_v15 = vmax.f32 %v5329_v37, 0.0 }
 0x494   : > { %v5542_v33 = vmax.f32 %v5074_v63, 0.0  ;;  %v5077_v14 = vpop.f32.mrb[132].mxu0  ;;  %v5334_v49 = vpop.f32.mrb[132].mxu1  ;;  %v5544_v25 = vmax.f32 %v5331_v42, 0.0 }
 0x495   : > { %11330 = vst [vmem:[#allocation27_spill] sm:$0xff] %v10852_v27  ;;  %v6378_v54 = vmax.f32 %v11331_v29, %v5541_v51  ;;  %v5078_v57 = vadd.f32 %v5077_v14, %v11332_v46  ;;  %v5079_v44 = vpop.f32.mrb[133].mxu0  ;;  %v5336_v35 = vpop.f32.mrb[133].mxu1  ;;  %v6441_v4 = vmax.f32 %v6409_v30, %v5527_v38  ;;  %v5335_v17 = vadd.f32 %v5334_v49, %v11332_v46  ;;  %v11334_v14 = vld [vmem:[#allocation8_spill] sm:$0xff] }
 0x496   : > { %v5080_v26 = vadd.f32 %v5079_v44, %v11332_v46  ;;  %v5337_v51 = vadd.f32 %v5336_v35, %v11332_v46  ;;  %v11335_v35 = vld [vmem:[#allocation36_spill] sm:$0xff] }
 0x497   : > { %v6410_v55 = vmax.f32 %v6378_v54, %v5542_v33  ;;  %v5557_v13 = vmax.f32 %v5078_v57, 0.0  ;;  %v6473_v43 = vmax.f32 %v6441_v4, %v5528_v50  ;;  %v5559_v49 = vmax.f32 %v5335_v17, 0.0 }
 0x498   : > { %v5558_v28 = vmax.f32 %v5080_v26, 0.0  ;;  %v5083_v53 = vpop.f32.mrb[134].mxu0  ;;  %v5340_v63 = vpop.f32.mrb[134].mxu1  ;;  %v5560_v46 = vmax.f32 %v5337_v51, 0.0 }
 0x499   : > { %v6379_v27 = vmax.f32 %v11333_v31, %v5557_v13  ;;  %v5084_v29 = vadd.f32 %v5083_v53, %v11334_v14  ;;  %v5085_v9 = vpop.f32.mrb[135].mxu0  ;;  %v5342_v38 = vpop.f32.mrb[135].mxu1  ;;  %6672 = vmax.xlane.f32.xlu0 %v6473_v43  ;;  %v6442_v30 = vmax.f32 %v6410_v55, %v5543_v15  ;;  %v5341_v42 = vadd.f32 %v5340_v63, %v11334_v14  ;;  %v11336_v53 = vld [vmem:[#allocation9_spill] sm:$0xff] }
 0x49a   : > { %v5086_v37 = vadd.f32 %v5085_v9, %v11334_v14  ;;  %v5343_v44 = vadd.f32 %v5342_v38, %v11334_v14 }
 0x49b   : > { %v6411_v33 = vmax.f32 %v6379_v27, %v5558_v28  ;;  %v5573_v54 = vmax.f32 %v5084_v29, 0.0  ;;  %v6474_v50 = vmax.f32 %v6442_v30, %v5544_v25  ;;  %v5575_v55 = vmax.f32 %v5341_v42, 0.0 }
 0x49c   : > { %v5574_v57 = vmax.f32 %v5086_v37, 0.0  ;;  %v5089_v4 = vpop.f32.mrb[136].mxu0  ;;  %v5346_v26 = vpop.f32.mrb[136].mxu1  ;;  %v5576_v14 = vmax.f32 %v5343_v44, 0.0 }
 0x49d   : > { %v6380_v13 = vmax.f32 %v11335_v35, %v5573_v54  ;;  %v5090_v31 = vadd.f32 %v5089_v4, %v11336_v53  ;;  %v5091_v43 = vpop.f32.mrb[137].mxu0  ;;  %v5348_v15 = vpop.f32.mrb[137].mxu1  ;;  %6674 = vmax.xlane.f32.xlu1 %v6474_v50  ;;  %v6443_v17 = vmax.f32 %v6411_v33, %v5559_v49  ;;  %v5347_v9 = vadd.f32 %v5346_v26, %v11336_v53  ;;  %v11337_v54 = vld [vmem:[#allocation10_spill] sm:$0xff] }
 0x49e   : > { %v5092_v27 = vadd.f32 %v5091_v43, %v11336_v53  ;;  %v5349_v37 = vadd.f32 %v5348_v15, %v11336_v53 }
 0x49f   : > { %v6412_v25 = vmax.f32 %v6380_v13, %v5574_v57  ;;  %v5589_v28 = vmax.f32 %v5090_v31, 0.0  ;;  %v6475_v63 = vmax.f32 %v6443_v17, %v5560_v46  ;;  %v5591_v26 = vmax.f32 %v5347_v9, 0.0 }
 0x4a0   : > { %v5590_v29 = vmax.f32 %v5092_v27, 0.0  ;;  %v5095_v38 = vpop.f32.mrb[138].mxu0  ;;  %v5352_v51 = vpop.f32.mrb[138].mxu1  ;;  %v5592_v53 = vmax.f32 %v5349_v37, 0.0 }
 0x4a1   : > { %v6381_v30 = vmax.f32 %v10645_v10, %v5589_v28  ;;  %v5096_v4 = vadd.f32 %v5095_v38, %v11337_v54  ;;  %v5097_v50 = vpop.f32.mrb[139].mxu0  ;;  %v5354_v49 = vpop.f32.mrb[139].mxu1  ;;  %6676 = vmax.xlane.f32.xlu0 %v6475_v63  ;;  %v6444_v33 = vmax.f32 %v6412_v25, %v5575_v55  ;;  %v5353_v44 = vadd.f32 %v5352_v51, %v11337_v54 }
 0x4a2   : > { %v5098_v42 = vadd.f32 %v5097_v50, %v11337_v54  ;;  %v5355_v31 = vadd.f32 %v5354_v49, %v11337_v54  ;;  %v11338_v50 = vld [vmem:[#allocation12_spill] sm:$0xff] }
 0x4a3   : > { %v6413_v57 = vmax.f32 %v6381_v30, %v5590_v29  ;;  %v5605_v35 = vmax.f32 %v5096_v4, 0.0  ;;  %v6476_v46 = vmax.f32 %v6444_v33, %v5576_v14  ;;  %v5607_v63 = vmax.f32 %v5353_v44, 0.0 }
 0x4a4   : > { %v5606_v13 = vmax.f32 %v5098_v42, 0.0  ;;  %v5101_v10 = vpop.f32.mrb[140].mxu0  ;;  %v5358_v43 = vpop.f32.mrb[140].mxu1  ;;  %v5608_v51 = vmax.f32 %v5355_v31, 0.0 }
 0x4a5   : > { %v6382_v15 = vmax.f32 %v10656_v23, %v5605_v35  ;;  %v5102_v17 = vadd.f32 %v5101_v10, %v11270_v11  ;;  %v5103_v27 = vpop.f32.mrb[141].mxu0  ;;  %v5360_v55 = vpop.f32.mrb[141].mxu1  ;;  %6678 = vmax.xlane.f32.xlu0 %v6476_v46  ;;  %v6445_v9 = vmax.f32 %v6413_v57, %v5591_v26  ;;  %v5359_v25 = vadd.f32 %v5358_v43, %v11270_v11 }
 0x4a6   : > { %v5104_v28 = vadd.f32 %v5103_v27, %v11270_v11  ;;  %v5361_v4 = vadd.f32 %v5360_v55, %v11270_v11 }
 0x4a7   : > { %v6414_v14 = vmax.f32 %v6382_v15, %v5606_v13  ;;  %v5621_v29 = vmax.f32 %v5102_v17, 0.0  ;;  %v6477_v38 = vmax.f32 %v6445_v9, %v5592_v53  ;;  %v5623_v57 = vmax.f32 %v5359_v25, 0.0 }
 0x4a8   : > { %v5622_v30 = vmax.f32 %v5104_v28, 0.0  ;;  %v5107_v54 = vpop.f32.mrb[142].mxu0  ;;  %v5364_v37 = vpop.f32.mrb[142].mxu1  ;;  %v5624_v11 = vmax.f32 %v5361_v4, 0.0  ;;  %v11339_v4 = vld [vmem:[#allocation16_spill] sm:$0xff] }
 0x4a9   : > { %v6383_v23 = vmax.f32 %v10669_v58, %v5621_v29  ;;  %v5108_v49 = vadd.f32 %v5107_v54, %v11338_v50  ;;  %v5109_v33 = vpop.f32.mrb[143].mxu0  ;;  %v5366_v26 = vpop.f32.mrb[143].mxu1  ;;  %6680 = vmax.xlane.f32.xlu1 %v6477_v38  ;;  %v6446_v42 = vmax.f32 %v6414_v14, %v5607_v63  ;;  %v5365_v13 = vadd.f32 %v5364_v37, %v11338_v50 }
 0x4aa   : > { %v5110_v35 = vadd.f32 %v5109_v33, %v11338_v50  ;;  %v5367_v43 = vadd.f32 %v5366_v26, %v11338_v50 }
 0x4ab   : > { %v6415_v44 = vmax.f32 %v6383_v23, %v5622_v30  ;;  %v5637_v46 = vmax.f32 %v5108_v49, 0.0  ;;  %v6478_v31 = vmax.f32 %v6446_v42, %v5608_v51  ;;  %v5639_v63 = vmax.f32 %v5365_v13, 0.0 }
 0x4ac   : > { %v5638_v10 = vmax.f32 %v5110_v35, 0.0  ;;  %v5113_v58 = vpop.f32.mrb[144].mxu0  ;;  %v5370_v53 = vpop.f32.mrb[144].mxu1  ;;  %v5640_v51 = vmax.f32 %v5367_v43, 0.0 }
 0x4ad   : > { %v6384_v15 = vmax.f32 %v10680_v32, %v5637_v46  ;;  %v5114_v17 = vadd.f32 %v5113_v58, %v11274_v22  ;;  %v5115_v27 = vpop.f32.mrb[145].mxu0  ;;  %v5372_v55 = vpop.f32.mrb[145].mxu1  ;;  %6682 = vmax.xlane.f32.xlu0 %v6478_v31  ;;  %v6447_v9 = vmax.f32 %v6415_v44, %v5623_v57  ;;  %v5371_v25 = vadd.f32 %v5370_v53, %v11274_v22 }
 0x4ae   : > { %v5116_v28 = vadd.f32 %v5115_v27, %v11274_v22  ;;  %v5373_v23 = vadd.f32 %v5372_v55, %v11274_v22 }
 0x4af   : > { %v6416_v14 = vmax.f32 %v6384_v15, %v5638_v10  ;;  %v5653_v29 = vmax.f32 %v5114_v17, 0.0  ;;  %v6479_v38 = vmax.f32 %v6447_v9, %v5624_v11  ;;  %v5655_v42 = vmax.f32 %v5371_v25, 0.0 }
 0x4b0   : > { %v5654_v30 = vmax.f32 %v5116_v28, 0.0  ;;  %v5119_v54 = vpop.f32.mrb[146].mxu0  ;;  %v5376_v37 = vpop.f32.mrb[146].mxu1  ;;  %v5656_v22 = vmax.f32 %v5373_v23, 0.0 }
 0x4b1   : > { %v6385_v32 = vmax.f32 %v10692_v0, %v5653_v29  ;;  %v5120_v50 = vadd.f32 %v5119_v54, %v11339_v4  ;;  %v5121_v49 = vpop.f32.mrb[147].mxu0  ;;  %v5378_v33 = vpop.f32.mrb[147].mxu1  ;;  %6684 = vmax.xlane.f32.xlu1 %v6479_v38  ;;  %v6448_v26 = vmax.f32 %v6416_v14, %v5639_v63  ;;  %v5377_v46 = vadd.f32 %v5376_v37, %v11339_v4 }
 0x4b2   : > { %v5122_v57 = vadd.f32 %v5121_v49, %v11339_v4  ;;  %v5379_v10 = vadd.f32 %v5378_v33, %v11339_v4 }
 0x4b3   : > { %v6417_v35 = vmax.f32 %v6385_v32, %v5654_v30  ;;  %v5669_v44 = vmax.f32 %v5120_v50, 0.0  ;;  %v6480_v13 = vmax.f32 %v6448_v26, %v5640_v51  ;;  %v5671_v9 = vmax.f32 %v5377_v46, 0.0 }
 0x4b4   : > { %v5670_v31 = vmax.f32 %v5122_v57, 0.0  ;;  %v5125_v0 = vpop.f32.mrb[148].mxu0  ;;  %v5382_v43 = vpop.f32.mrb[148].mxu1  ;;  %v5672_v14 = vmax.f32 %v5379_v10, 0.0 }
 0x4b5   : > { %v6386_v58 = vmax.f32 %v10698_v21, %v5669_v44  ;;  %v5126_v53 = vadd.f32 %v5125_v0, %v11277_v56  ;;  %v5127_v11 = vpop.f32.mrb[149].mxu0  ;;  %v5384_v15 = vpop.f32.mrb[149].mxu1  ;;  %6686 = vmax.xlane.f32.xlu0 %v6480_v13  ;;  %v6449_v17 = vmax.f32 %v6417_v35, %v5655_v42  ;;  %v5383_v27 = vadd.f32 %v5382_v43, %v11277_v56 }
 0x4b6   : > { %v5128_v55 = vadd.f32 %v5127_v11, %v11277_v56  ;;  %v5385_v30 = vadd.f32 %v5384_v15, %v11277_v56 }
 0x4b7   : > { %v6418_v25 = vmax.f32 %v6386_v58, %v5670_v31  ;;  %v5685_v28 = vmax.f32 %v5126_v53, 0.0  ;;  %v6481_v63 = vmax.f32 %v6449_v17, %v5656_v22  ;;  %v5687_v4 = vmax.f32 %v5383_v27, 0.0 }
 0x4b8   : > { %v5686_v29 = vmax.f32 %v5128_v55, 0.0  ;;  %v5131_v38 = vpop.f32.mrb[150].mxu0  ;;  %v5388_v51 = vpop.f32.mrb[150].mxu1  ;;  %v5688_v56 = vmax.f32 %v5385_v30, 0.0 }
 0x4b9   : > { %v6387_v21 = vmax.f32 %v10706_v48, %v5685_v28  ;;  %v5132_v54 = vadd.f32 %v5131_v38, %v9877_v24  ;;  %v5133_v37 = vpop.f32.mrb[151].mxu0  ;;  %v5390_v32 = vpop.f32.mrb[151].mxu1  ;;  %6688 = vmax.xlane.f32.xlu1 %v6481_v63  ;;  %v6450_v23 = vmax.f32 %v6418_v25, %v5671_v9  ;;  %v5389_v26 = vadd.f32 %v5388_v51, %v9877_v24 }
 0x4ba   : > { %v5134_v50 = vadd.f32 %v5133_v37, %v9877_v24  ;;  %v5391_v35 = vadd.f32 %v5390_v32, %v9877_v24 }
 0x4bb   : > { %v6419_v49 = vmax.f32 %v6387_v21, %v5686_v29  ;;  %v5701_v33 = vmax.f32 %v5132_v54, 0.0  ;;  %v6482_v42 = vmax.f32 %v6450_v23, %v5672_v14  ;;  %v5703_v58 = vmax.f32 %v5389_v26, 0.0 }
 0x4bc   : > { %v5702_v57 = vmax.f32 %v5134_v50, 0.0  ;;  %v5137_v48 = vpop.f32.mrb[152].mxu0  ;;  %v5394_v44 = vpop.f32.mrb[152].mxu1  ;;  %v5704_v24 = vmax.f32 %v5391_v35, 0.0 }
 0x4bd   : > { %v6388_v46 = vmax.f32 %v10712_v2, %v5701_v33  ;;  %v5138_v13 = vadd.f32 %v5137_v48, %v9890_v8  ;;  %v5139_v31 = vpop.f32.mrb[153].mxu0  ;;  %v5396_v10 = vpop.f32.mrb[153].mxu1  ;;  %6690 = vmax.xlane.f32.xlu0 %v6482_v42  ;;  %v6451_v0 = vmax.f32 %v6419_v49, %v5687_v4  ;;  %v5395_v43 = vadd.f32 %v5394_v44, %v9890_v8 }
 0x4be   : > { %v5140_v22 = vadd.f32 %v5139_v31, %v9890_v8  ;;  %v5397_v9 = vadd.f32 %v5396_v10, %v9890_v8 }
 0x4bf   : > { %v6420_v53 = vmax.f32 %v6388_v46, %v5702_v57  ;;  %v5717_v11 = vmax.f32 %v5138_v13, 0.0  ;;  %v6483_v15 = vmax.f32 %v6451_v0, %v5688_v56  ;;  %v5719_v29 = vmax.f32 %v5395_v43, 0.0 }
 0x4c0   : > { %v5718_v17 = vmax.f32 %v5140_v22, 0.0  ;;  %v5143_v27 = vpop.f32.mrb[154].mxu0  ;;  %v5400_v55 = vpop.f32.mrb[154].mxu1  ;;  %v5720_v8 = vmax.f32 %v5397_v9, 0.0 }
 0x4c1   : > { %v6389_v2 = vmax.f32 %v10720_v41, %v5717_v11  ;;  %v5144_v25 = vadd.f32 %v5143_v27, %v9906_v6  ;;  %v5145_v28 = vpop.f32.mrb[155].mxu0  ;;  %v5402_v63 = vpop.f32.mrb[155].mxu1  ;;  %6692 = vmax.xlane.f32.xlu1 %v6483_v15  ;;  %v6452_v14 = vmax.f32 %v6420_v53, %v5703_v58  ;;  %v5401_v30 = vadd.f32 %v5400_v55, %v9906_v6 }
 0x4c2   : > { %v5146_v38 = vadd.f32 %v5145_v28, %v9906_v6  ;;  %v5403_v32 = vadd.f32 %v5402_v63, %v9906_v6 }
 0x4c3   : > { %v6421_v51 = vmax.f32 %v6389_v2, %v5718_v17  ;;  %v5733_v21 = vmax.f32 %v5144_v25, 0.0  ;;  %v6484_v54 = vmax.f32 %v6452_v14, %v5704_v24  ;;  %v5735_v35 = vmax.f32 %v5401_v30, 0.0 }
 0x4c4   : > { %v5734_v37 = vmax.f32 %v5146_v38, 0.0  ;;  %v5149_v41 = vpop.f32.mrb[156].mxu0  ;;  %v5406_v23 = vpop.f32.mrb[156].mxu1  ;;  %v5736_v6 = vmax.f32 %v5403_v32, 0.0 }
 0x4c5   : > { %v6390_v4 = vmax.f32 %v10726_v19, %v5733_v21  ;;  %v5150_v50 = vadd.f32 %v5149_v41, %v9923_v59  ;;  %v5151_v49 = vpop.f32.mrb[157].mxu0  ;;  %v5408_v33 = vpop.f32.mrb[157].mxu1  ;;  %6694 = vmax.xlane.f32.xlu0 %v6484_v54  ;;  %v6453_v26 = vmax.f32 %v6421_v51, %v5719_v29  ;;  %v5407_v42 = vadd.f32 %v5406_v23, %v9923_v59 }
 0x4c6   : > { %v5152_v57 = vadd.f32 %v5151_v49, %v9923_v59  ;;  %v5409_v10 = vadd.f32 %v5408_v33, %v9923_v59 }
 0x4c7   : > { %v6422_v48 = vmax.f32 %v6390_v4, %v5734_v37  ;;  %v5749_v44 = vmax.f32 %v5150_v50, 0.0  ;;  %v6485_v56 = vmax.f32 %v6453_v26, %v5720_v8  ;;  %v5751_v53 = vmax.f32 %v5407_v42, 0.0 }
 0x4c8   : > { %v5750_v46 = vmax.f32 %v5152_v57, 0.0  ;;  %v5155_v13 = vpop.f32.mrb[158].mxu0  ;;  %v5412_v31 = vpop.f32.mrb[158].mxu1  ;;  %v5752_v59 = vmax.f32 %v5409_v10, 0.0 }
 0x4c9   : > { %v6391_v19 = vmax.f32 %v10734_v12, %v5749_v44  ;;  %v5156_v0 = vadd.f32 %v5155_v13, %v9937_v52  ;;  %v5157_v43 = vpop.f32.mrb[159].mxu0  ;;  %v5414_v22 = vpop.f32.mrb[159].mxu1  ;;  %6696 = vmax.xlane.f32.xlu1 %v6485_v56  ;;  %v6454_v58 = vmax.f32 %v6422_v48, %v5735_v35  ;;  %v5413_v17 = vadd.f32 %v5412_v31, %v9937_v52 }
 0x4ca   : > { %v5158_v11 = vadd.f32 %v5157_v43, %v9937_v52  ;;  %v5415_v2 = vadd.f32 %v5414_v22, %v9937_v52 }
 0x4cb   : > { %v6423_v15 = vmax.f32 %v6391_v19, %v5750_v46  ;;  %v5765_v24 = vmax.f32 %v5156_v0, 0.0  ;;  %v6486_v27 = vmax.f32 %v6454_v58, %v5736_v6  ;;  %v5767_v21 = vmax.f32 %v5413_v17, 0.0 }
 0x4cc   : > { %v5766_v55 = vmax.f32 %v5158_v11, 0.0  ;;  %v5161_v12 = vpop.f32.mrb[160].mxu0  ;;  %v5418_v9 = vpop.f32.mrb[160].mxu1  ;;  %v5768_v52 = vmax.f32 %v5415_v2, 0.0 }
 0x4cd   : > { %v6392_v25 = vmax.f32 %v10740_v60, %v5765_v24  ;;  %v5162_v28 = vadd.f32 %v5161_v12, %v9954_v36  ;;  %v5163_v63 = vpop.f32.mrb[161].mxu0  ;;  %v5420_v14 = vpop.f32.mrb[161].mxu1  ;;  %6698 = vmax.xlane.f32.xlu0 %v6486_v27  ;;  %v6455_v29 = vmax.f32 %v6423_v15, %v5751_v53  ;;  %v5419_v38 = vadd.f32 %v5418_v9, %v9954_v36 }
 0x4ce   : > { %v5164_v51 = vadd.f32 %v5163_v63, %v9954_v36  ;;  %v5421_v8 = vadd.f32 %v5420_v14, %v9954_v36 }
 0x4cf   : > { %v6424_v30 = vmax.f32 %v6392_v25, %v5766_v55  ;;  %v5781_v54 = vmax.f32 %v5162_v28, 0.0  ;;  %v6487_v37 = vmax.f32 %v6455_v29, %v5752_v59  ;;  %v5783_v26 = vmax.f32 %v5419_v38, 0.0 }
 0x4d0   : > { %v5782_v32 = vmax.f32 %v5164_v51, 0.0  ;;  %v5167_v41 = vpop.f32.mrb[162].mxu0  ;;  %v5424_v23 = vpop.f32.mrb[162].mxu1  ;;  %v5784_v36 = vmax.f32 %v5421_v8, 0.0 }
 0x4d1   : > { %v6393_v60 = vmax.f32 %v10748_v16, %v5781_v54  ;;  %v5168_v4 = vadd.f32 %v5167_v41, %v9971_v45  ;;  %v5169_v50 = vpop.f32.mrb[163].mxu0  ;;  %v5426_v49 = vpop.f32.mrb[163].mxu1  ;;  %6700 = vmax.xlane.f32.xlu1 %v6487_v37  ;;  %v6456_v33 = vmax.f32 %v6424_v30, %v5767_v21  ;;  %v5425_v48 = vadd.f32 %v5424_v23, %v9971_v45  ;;  %v11340_v37 = vld [vmem:[#allocation18_spill] sm:$0xff] }
 0x4d2   : > { %v5170_v42 = vadd.f32 %v5169_v50, %v9971_v45  ;;  %v5427_v6 = vadd.f32 %v5426_v49, %v9971_v45 }
 0x4d3   : > { %v6425_v57 = vmax.f32 %v6393_v60, %v5782_v32  ;;  %v5797_v35 = vmax.f32 %v5168_v4, 0.0  ;;  %v6488_v44 = vmax.f32 %v6456_v33, %v5768_v52  ;;  %v5799_v58 = vmax.f32 %v5425_v48, 0.0 }
 0x4d4   : > { %v5798_v56 = vmax.f32 %v5170_v42, 0.0  ;;  %v5173_v16 = vpop.f32.mrb[164].mxu0  ;;  %v5430_v46 = vpop.f32.mrb[164].mxu1  ;;  %v5800_v45 = vmax.f32 %v5427_v6, 0.0 }
 0x4d5   : > { %v6394_v13 = vmax.f32 %v10754_v61, %v5797_v35  ;;  %v5174_v31 = vadd.f32 %v5173_v16, %v9988_v7  ;;  %v5175_v19 = vpop.f32.mrb[165].mxu0  ;;  %v5432_v10 = vpop.f32.mrb[165].mxu1  ;;  %6702 = vmax.xlane.f32.xlu0 %v6488_v44  ;;  %v6457_v0 = vmax.f32 %v6425_v57, %v5783_v26  ;;  %v5431_v43 = vadd.f32 %v5430_v46, %v9988_v7  ;;  %v11341_v35 = vld [vmem:[#allocation13_spill] sm:$0xff]  ;;  %v11342_v44 = vld [vmem:[#allocation19_spill] sm:$0xff] }
 0x4d6   : > { %v5176_v22 = vadd.f32 %v5175_v19, %v9988_v7  ;;  %v5433_v55 = vadd.f32 %v5432_v10, %v9988_v7 }
 0x4d7   : > { %v6426_v53 = vmax.f32 %v6394_v13, %v5798_v56  ;;  %v5813_v11 = vmax.f32 %v5174_v31, 0.0  ;;  %v6489_v15 = vmax.f32 %v6457_v0, %v5784_v36  ;;  %v5815_v25 = vmax.f32 %v5431_v43, 0.0 }
 0x4d8   : > { %v5814_v24 = vmax.f32 %v5176_v22, 0.0  ;;  %v5179_v17 = vpop.f32.mrb[166].mxu0  ;;  %v5436_v27 = vpop.f32.mrb[166].mxu1  ;;  %v5816_v7 = vmax.f32 %v5433_v55, 0.0 }
 0x4d9   : > { %v6395_v61 = vmax.f32 %v10762_v20, %v5813_v11  ;;  %v5180_v2 = vadd.f32 %v5179_v17, %v10005_v40  ;;  %v5181_v12 = vpop.f32.mrb[167].mxu0  ;;  %v5438_v9 = vpop.f32.mrb[167].mxu1  ;;  %6704 = vmax.xlane.f32.xlu1 %v6489_v15  ;;  %v6458_v59 = vmax.f32 %v6426_v53, %v5799_v58  ;;  %v5437_v29 = vadd.f32 %v5436_v27, %v10005_v40  ;;  %v11343_v15 = vld [vmem:[#allocation11_spill] sm:$0xff] }
 0x4da   : > { %v5182_v28 = vadd.f32 %v5181_v12, %v10005_v40  ;;  %v5439_v21 = vadd.f32 %v5438_v9, %v10005_v40 }
 0x4db   : > { %v6427_v63 = vmax.f32 %v6395_v61, %v5814_v24  ;;  %v5829_v14 = vmax.f32 %v5180_v2, 0.0  ;;  %v6490_v38 = vmax.f32 %v6458_v59, %v5800_v45  ;;  %v5831_v4 = vmax.f32 %v5437_v29, 0.0  ;;  %v11344_v24 = vld [vmem:[#allocation20_spill] sm:$0xff] }
 0x4dc   : > { %v5830_v51 = vmax.f32 %v5182_v28, 0.0  ;;  %v5185_v20 = vpop.f32.mrb[168].mxu0  ;;  %v5442_v30 = vpop.f32.mrb[168].mxu1  ;;  %v5832_v40 = vmax.f32 %v5439_v21, 0.0 }
 0x4dd   : > { %v6396_v54 = vmax.f32 %v10768_v5, %v5829_v14  ;;  %v5186_v52 = vadd.f32 %v5185_v20, %v11340_v37  ;;  %v5187_v32 = vpop.f32.mrb[169].mxu0  ;;  %v5444_v41 = vpop.f32.mrb[169].mxu1  ;;  %6706 = vmax.xlane.f32.xlu0 %v6490_v38  ;;  %v6459_v23 = vmax.f32 %v6427_v63, %v5815_v25  ;;  %v5443_v60 = vadd.f32 %v5442_v30, %v11340_v37  ;;  %v11345_v38 = vld [vmem:[#allocation15_spill] sm:$0xff]  ;;  %v11346_v20 = vld [vmem:[#allocation21_spill] sm:$0xff] }
 0x4de   : > { %v5188_v8 = vadd.f32 %v5187_v32, %v11340_v37  ;;  %v5445_v48 = vadd.f32 %v5444_v41, %v11340_v37 }
 0x4df   : > { %v6428_v50 = vmax.f32 %v6396_v54, %v5830_v51  ;;  %v5845_v49 = vmax.f32 %v5186_v52, 0.0  ;;  %v6491_v33 = vmax.f32 %v6459_v23, %v5816_v7  ;;  %v5847_v36 = vmax.f32 %v5443_v60, 0.0 }
 0x4e0   : > { %v5846_v26 = vmax.f32 %v5188_v8, 0.0  ;;  %v5191_v42 = vpop.f32.mrb[170].mxu0  ;;  %v5448_v57 = vpop.f32.mrb[170].mxu1  ;;  %v5848_v11 = vmax.f32 %v5445_v48, 0.0 }
 0x4e1   : > { %v6397_v5 = vmax.f32 %v11341_v35, %v5845_v49  ;;  %v5192_v56 = vadd.f32 %v5191_v42, %v11342_v44  ;;  %v5193_v6 = vpop.f32.mrb[171].mxu0  ;;  %v5450_v16 = vpop.f32.mrb[171].mxu1  ;;  %6708 = vmax.xlane.f32.xlu1 %v6491_v33  ;;  %v6460_v46 = vmax.f32 %v6428_v50, %v5831_v4  ;;  %v5449_v10 = vadd.f32 %v5448_v57, %v11342_v44  ;;  %v11348_v57 = vld [vmem:[#allocation22_spill] sm:$0xff] }
 0x4e2   : > { %v5194_v13 = vadd.f32 %v5193_v6, %v11342_v44  ;;  %v5451_v22 = vadd.f32 %v5450_v16, %v11342_v44 }
 0x4e3   : > { %v6429_v31 = vmax.f32 %v6397_v5, %v5846_v26  ;;  %v5861_v19 = vmax.f32 %v5192_v56, 0.0  ;;  %v6492_v0 = vmax.f32 %v6460_v46, %v5832_v40  ;;  %v5863_v9 = vmax.f32 %v5449_v10, 0.0  ;;  %v11347_v26 = vld [vmem:[#allocation14_spill] sm:$0xff] }
 0x4e4   : > { %v5862_v43 = vmax.f32 %v5194_v13, 0.0  ;;  %v5197_v58 = vpop.f32.mrb[172].mxu0  ;;  %v5454_v53 = vpop.f32.mrb[172].mxu1  ;;  %v5864_v63 = vmax.f32 %v5451_v22, 0.0 }
 0x4e5   : > { %v6398_v45 = vmax.f32 %v11343_v15, %v5861_v19  ;;  %v5198_v17 = vadd.f32 %v5197_v58, %v11344_v24  ;;  %v5199_v27 = vpop.f32.mrb[173].mxu0  ;;  %v5456_v61 = vpop.f32.mrb[173].mxu1  ;;  %6710 = vmax.xlane.f32.xlu0 %v6492_v0  ;;  %v6461_v55 = vmax.f32 %v6429_v31, %v5847_v36  ;;  %v5455_v2 = vadd.f32 %v5454_v53, %v11344_v24  ;;  %v11349_v58 = vld [vmem:[#allocation23_spill] sm:$0xff] }
 0x4e6   : > { %v5200_v12 = vadd.f32 %v5199_v27, %v11344_v24  ;;  %v5457_v21 = vadd.f32 %v5456_v61, %v11344_v24 }
 0x4e7   : > { %v6430_v59 = vmax.f32 %v6398_v45, %v5862_v43  ;;  %v5877_v25 = vmax.f32 %v5198_v17, 0.0  ;;  %v6493_v28 = vmax.f32 %v6461_v55, %v5848_v11  ;;  %v5879_v52 = vmax.f32 %v5455_v2, 0.0 }
 0x4e8   : > { %v5878_v14 = vmax.f32 %v5200_v12, 0.0  ;;  %v5203_v29 = vpop.f32.mrb[174].mxu0  ;;  %v5460_v7 = vpop.f32.mrb[174].mxu1  ;;  %v5880_v40 = vmax.f32 %v5457_v21, 0.0 }
 0x4e9   : > { %v6399_v51 = vmax.f32 %v11345_v38, %v5877_v25  ;;  %v5204_v30 = vadd.f32 %v5203_v29, %v11346_v20  ;;  %v5205_v54 = vpop.f32.mrb[175].mxu0  ;;  %6712 = vmax.xlane.f32.xlu1 %v6493_v28  ;;  %v6462_v37 = vmax.f32 %v6430_v59, %v5863_v9  ;;  %v5462_v41 = vpop.f32.mrb[175].mxu1  ;;  %v5461_v8 = vadd.f32 %v5460_v7, %v11346_v20  ;;  %v11350_v28 = vld [vmem:[#allocation17_spill] sm:$0xff] }
 0x4ea   : > { %v5206_v32 = vadd.f32 %v5205_v54, %v11346_v20  ;;  %v5463_v49 = vadd.f32 %v5462_v41, %v11346_v20 }
 0x4eb   : > { %v6431_v23 = vmax.f32 %v6399_v51, %v5878_v14  ;;  %v5893_v60 = vmax.f32 %v5204_v30, 0.0  ;;  %v6494_v4 = vmax.f32 %v6462_v37, %v5864_v63  ;;  %v5895_v46 = vmax.f32 %v5461_v8, 0.0  ;;  %v11351_v14 = vld [vmem:[#allocation24_spill] sm:$0xff] }
 0x4ec   : > { %v5894_v50 = vmax.f32 %v5206_v32, 0.0  ;;  %v5209_v33 = vpop.f32.mrb[176].mxu0  ;;  %v5466_v5 = vpop.f32.mrb[176].mxu1  ;;  %v5896_v19 = vmax.f32 %v5463_v49, 0.0 }
 0x4ed   : > { %v6400_v42 = vmax.f32 %v11347_v26, %v5893_v60  ;;  %v5210_v35 = vadd.f32 %v5209_v33, %v11348_v57  ;;  %v5211_v48 = vpop.f32.mrb[177].mxu0  ;;  %6714 = vmax.xlane.f32.xlu0 %v6494_v4  ;;  %v6463_v44 = vmax.f32 %v6431_v23, %v5879_v52  ;;  %v5467_v56 = vadd.f32 %v5466_v5, %v11348_v57  ;;  %v5468_v16 = vpop.f32.mrb[177].mxu1 }
 0x4ee   : > { %v5212_v6 = vadd.f32 %v5211_v48, %v11348_v57  ;;  %v5469_v22 = vadd.f32 %v5468_v16, %v11348_v57 }
 0x4ef   : > { %v6432_v36 = vmax.f32 %v6400_v42, %v5894_v50  ;;  %v5909_v13 = vmax.f32 %v5210_v35, 0.0  ;;  %v6495_v31 = vmax.f32 %v6463_v44, %v5880_v40  ;;  %v5911_v24 = vmax.f32 %v5467_v56, 0.0  ;;  %v11352_v50 = vld [vmem:[#allocation26_spill] sm:$0xff] }
 0x4f0   : > { %v5910_v10 = vmax.f32 %v5212_v6, 0.0  ;;  %v5215_v0 = vpop.f32.mrb[178].mxu0  ;;  %v5472_v11 = vpop.f32.mrb[178].mxu1  ;;  %v5912_v25 = vmax.f32 %v5469_v22, 0.0 }
 0x4f1   : > { %v6401_v43 = vmax.f32 %v10804_v3, %v5909_v13  ;;  %v5216_v53 = vadd.f32 %v5215_v0, %v11349_v58  ;;  %v5217_v15 = vpop.f32.mrb[179].mxu0  ;;  %6716 = vmax.xlane.f32.xlu1 %v6495_v31  ;;  %v6464_v45 = vmax.f32 %v6432_v36, %v5895_v46  ;;  %v5474_v27 = vpop.f32.mrb[179].mxu1  ;;  %v5473_v2 = vadd.f32 %v5472_v11, %v11349_v58 }
 0x4f2   : > { %v5218_v17 = vadd.f32 %v5217_v15, %v11349_v58  ;;  %v5475_v3 = vadd.f32 %v5474_v27, %v11349_v58 }
 0x4f3   : > { %v6433_v61 = vmax.f32 %v6401_v43, %v5910_v10  ;;  %v5925_v55 = vmax.f32 %v5216_v53, 0.0  ;;  %v6496_v12 = vmax.f32 %v6464_v45, %v5896_v19  ;;  %v5927_v54 = vmax.f32 %v5473_v2, 0.0 }
 0x4f4   : > { %v5926_v9 = vmax.f32 %v5218_v17, 0.0  ;;  %v5221_v59 = vpop.f32.mrb[180].mxu0  ;;  %v5478_v38 = vpop.f32.mrb[180].mxu1  ;;  %v5928_v41 = vmax.f32 %v5475_v3, 0.0 }
 0x4f5   : > { %v6402_v63 = vmax.f32 %v11350_v28, %v5925_v55  ;;  %v5222_v29 = vadd.f32 %v5221_v59, %v11351_v14  ;;  %v5223_v51 = vpop.f32.mrb[181].mxu0  ;;  %6718 = vmax.xlane.f32.xlu0 %v6496_v12  ;;  %v6465_v21 = vmax.f32 %v6433_v61, %v5911_v24  ;;  %v5479_v20 = vadd.f32 %v5478_v38, %v11351_v14  ;;  %v5480_v7 = vpop.f32.mrb[181].mxu1 }
 0x4f6   : > { %v5224_v30 = vadd.f32 %v5223_v51, %v11351_v14  ;;  %v5481_v4 = vadd.f32 %v5480_v7, %v11351_v14 }
 0x4f7   : > { %v6434_v37 = vmax.f32 %v6402_v63, %v5926_v9  ;;  %v5941_v52 = vmax.f32 %v5222_v29, 0.0  ;;  %v6497_v32 = vmax.f32 %v6465_v21, %v5912_v25  ;;  %v5943_v42 = vmax.f32 %v5479_v20, 0.0  ;;  %v11353_v21 = vld [vmem:[#allocation32_spill] sm:$0xff] }
 0x4f8   : > { %v5942_v23 = vmax.f32 %v5224_v30, 0.0  ;;  %v5227_v60 = vpop.f32.mrb[182].mxu0  ;;  %v5944_v46 = vmax.f32 %v5481_v4, 0.0 }
 0x4f9   : > { %v6403_v8 = vmax.f32 %v10818_v47, %v5941_v52  ;;  %v5228_v49 = vadd.f32 %v5227_v60, %v11352_v50  ;;  %v5484_v33 = vpop.f32.mrb[182].mxu1  ;;  %v5229_v40 = vpop.f32.mrb[183].mxu0  ;;  %6720 = vmax.xlane.f32.xlu1 %v6497_v32  ;;  %v6466_v26 = vmax.f32 %v6434_v37, %v5927_v54 }
 0x4fa   : > { %v5230_v57 = vadd.f32 %v5229_v40, %v11352_v50  ;;  %v5486_v35 = vpop.f32.mrb[183].mxu1  ;;  %v5485_v44 = vadd.f32 %v5484_v33, %v11352_v50  ;;  %v11355_v40 = vld [vmem:[#allocation34_spill] sm:$0xff] }
 0x4fb   : > { %v6435_v5 = vmax.f32 %v6403_v8, %v5942_v23  ;;  %v5957_v48 = vmax.f32 %v5228_v49, 0.0  ;;  %v6498_v56 = vmax.f32 %v6466_v26, %v5928_v41  ;;  %v5487_v47 = vadd.f32 %v5486_v35, %v11352_v50  ;;  %v11354_v49 = vld [vmem:[#allocation25_spill] sm:$0xff] }
 0x4fc   : > { %v5958_v6 = vmax.f32 %v5230_v57, 0.0  ;;  %v5233_v16 = vpop.f32.mrb[184].mxu0  ;;  %v5959_v58 = vmax.f32 %v5485_v44, 0.0 }
 0x4fd   : > { %v6404_v36 = vmax.f32 %v10824_v39, %v5957_v48  ;;  %v5234_v13 = vadd.f32 %v5233_v16, %v11324_v18  ;;  %v5490_v31 = vpop.f32.mrb[184].mxu1  ;;  %v5235_v19 = vpop.f32.mrb[185].mxu0  ;;  %6722 = vmax.xlane.f32.xlu0 %v6498_v56  ;;  %v6467_v10 = vmax.f32 %v6435_v5, %v5943_v42  ;;  %v5960_v45 = vmax.f32 %v5487_v47, 0.0 }
 0x4fe   : > { %v5491_v0 = vadd.f32 %v5490_v31, %v11324_v18  ;;  %v5236_v43 = vadd.f32 %v5235_v19, %v11324_v18  ;;  %v5492_v22 = vpop.f32.mrb[185].mxu1 }
 0x4ff   : > { %v6436_v53 = vmax.f32 %v6404_v36, %v5958_v6  ;;  %v5973_v11 = vmax.f32 %v5234_v13, 0.0  ;;  %v6499_v15 = vmax.f32 %v6467_v10, %v5944_v46  ;;  %v5493_v27 = vadd.f32 %v5492_v22, %v11324_v18  ;;  %v11356_v13 = vld [vmem:[#allocation27_spill] sm:$0xff] }
 0x500   : > { %v5974_v24 = vmax.f32 %v5236_v43, 0.0  ;;  %v5239_v17 = vpop.f32.mrb[186].mxu0  ;;  %v5975_v9 = vmax.f32 %v5491_v0, 0.0 }
 0x501   : > { %v6405_v39 = vmax.f32 %v10832_v1, %v5973_v11  ;;  %v5240_v61 = vadd.f32 %v5239_v17, %v11326_v34  ;;  %v5496_v55 = vpop.f32.mrb[186].mxu1  ;;  %v5241_v2 = vpop.f32.mrb[187].mxu0  ;;  %6724 = vmax.xlane.f32.xlu1 %v6499_v15  ;;  %v6468_v12 = vmax.f32 %v6436_v53, %v5959_v58  ;;  %v5976_v18 = vmax.f32 %v5493_v27, 0.0  ;;  %v6738_v27 = vld [vmem:[%s11165_s7 + $0x10] sm:$0xff] }
 0x502   : > { %v5242_v3 = vadd.f32 %v5241_v2, %v11326_v34  ;;  %v5498_v59 = vpop.f32.mrb[187].mxu1  ;;  %v5497_v63 = vadd.f32 %v5496_v55, %v11326_v34  ;;  %v6739_v55 = vld [vmem:[%s11165_s7 + $0x18] sm:$0xff] }
 0x503   : > { %v6437_v25 = vmax.f32 %v6405_v39, %v5974_v24  ;;  %v5989_v28 = vmax.f32 %v5240_v61, 0.0  ;;  %v6500_v14 = vmax.f32 %v6468_v12, %v5960_v45  ;;  %v5499_v1 = vadd.f32 %v5498_v59, %v11326_v34  ;;  %v6737_v24 = vld [vmem:[%s11165_s7 + $0x8] sm:$0xff]  ;;  %v6736_v39 = vld [vmem:[%s11165_s7] sm:$0xff] }
 0x504   : > { %v5990_v29 = vmax.f32 %v5242_v3, 0.0  ;;  %v5245_v38 = vpop.f32.mrb[188].mxu0  ;;  %v5991_v41 = vmax.f32 %v5497_v63, 0.0  ;;  %v6740_v3 = vld [vmem:[%s11165_s7 + $0x20] sm:$0xff]  ;;  %v6741_v63 = vld [vmem:[%s11165_s7 + $0x28] sm:$0xff] }
 0x505   : > { %v6406_v51 = vmax.f32 %v10838_v62, %v5989_v28  ;;  %v5246_v20 = vadd.f32 %v5245_v38, %v11353_v21  ;;  %v5502_v30 = vpop.f32.mrb[188].mxu1  ;;  %v5247_v7 = vpop.f32.mrb[189].mxu0  ;;  %6726 = vmax.xlane.f32.xlu0 %v6500_v14  ;;  %v6469_v54 = vmax.f32 %v6437_v25, %v5975_v9  ;;  %v5992_v34 = vmax.f32 %v5499_v1, 0.0  ;;  %v6742_v38 = vld [vmem:[%s11165_s7 + $0x30] sm:$0xff] }
 0x506   : > { %v5503_v37 = vadd.f32 %v5502_v30, %v11353_v21  ;;  %v5248_v52 = vadd.f32 %v5247_v7, %v11353_v21  ;;  %v5504_v32 = vpop.f32.mrb[189].mxu1 }
 0x507   : > { %v6438_v23 = vmax.f32 %v6406_v51, %v5990_v29  ;;  %v6005_v60 = vmax.f32 %v5246_v20, 0.0  ;;  %v6501_v8 = vmax.f32 %v6469_v54, %v5976_v18  ;;  %v5505_v33 = vadd.f32 %v5504_v32, %v11353_v21  ;;  %v6743_v20 = vld [vmem:[%s11165_s7 + $0x38] sm:$0xff] }
 0x508   : > { %v6006_v4 = vmax.f32 %v5248_v52, 0.0  ;;  %v5251_v50 = vpop.f32.mrb[190].mxu0  ;;  %v6007_v5 = vmax.f32 %v5503_v37, 0.0  ;;  %v6744_v37 = vld [vmem:[%s11165_s7 + $0x40] sm:$0xff] }
 0x509   : > { %v6407_v62 = vmax.f32 %v11354_v49, %v6005_v60  ;;  %v5252_v26 = vadd.f32 %v5251_v50, %v11355_v40  ;;  %v5508_v42 = vpop.f32.mrb[190].mxu1  ;;  %v5253_v57 = vpop.f32.mrb[191].mxu0  ;;  %6728 = vmax.xlane.f32.xlu1 %v6501_v8  ;;  %v6470_v35 = vmax.f32 %v6438_v23, %v5991_v41  ;;  %v6008_v36 = vmax.f32 %v5505_v33, 0.0  ;;  %v6745_v23 = vld [vmem:[%s11165_s7 + $0x48] sm:$0xff]  ;;  %v6747_v33 = vld [vmem:[%s11165_s7 + $0x58] sm:$0xff] }
 0x50a   : > { %v5254_v48 = vadd.f32 %v5253_v57, %v11355_v40  ;;  %v5510_v44 = vpop.f32.mrb[191].mxu1  ;;  %v5509_v47 = vadd.f32 %v5508_v42, %v11355_v40  ;;  %v6748_v57 = vld [vmem:[%s11165_s7 + $0x60] sm:$0xff] }
 0x50b   : > { %v6439_v56 = vmax.f32 %v6407_v62, %v6006_v4  ;;  %v6021_v6 = vmax.f32 %v5252_v26, 0.0  ;;  %v6502_v16 = vmax.f32 %v6470_v35, %v5992_v34  ;;  %v5511_v19 = vadd.f32 %v5510_v44, %v11355_v40  ;;  %v6746_v4 = vld [vmem:[%s11165_s7 + $0x50] sm:$0xff]  ;;  %v6749_v44 = vld [vmem:[%s11165_s7 + $0x68] sm:$0xff] }
 0x50c   : > { %v6022_v46 = vmax.f32 %v5254_v48, 0.0  ;;  %v6023_v0 = vmax.f32 %v5509_v47, 0.0 }
 0x50d   : > { %v6408_v31 = vmax.f32 %v11356_v13, %v6021_v6  ;;  %6730 = vmax.xlane.f32.xlu0 %v6502_v16  ;;  %v6471_v10 = vmax.f32 %v6439_v56, %v6007_v5  ;;  %v6024_v58 = vmax.f32 %v5511_v19, 0.0  ;;  %v6750_v16 = vld [vmem:[%s11165_s7 + $0x70] sm:$0xff] }
 0x50f   : > { %v6440_v43 = vmax.f32 %v6408_v31, %v6022_v46  ;;  %v6503_v22 = vmax.f32 %v6471_v10, %v6008_v36  ;;  %v6751_v31 = vld [vmem:[%s11165_s7 + $0x78] sm:$0xff] }
 0x511   : > { %6732 = vmax.xlane.f32.xlu1 %v6503_v22  ;;  %v6472_v53 = vmax.f32 %v6440_v43, %v6023_v0  ;;  %v6752_v43 = vld [vmem:[%s11165_s7 + $0x80] sm:$0xff] }
 0x513   : > { %v6504_v11 = vmax.f32 %v6472_v53, %v6024_v58 }
 0x515   : > { %6734 = vmax.xlane.f32.xlu0 %v6504_v11  ;;  %v6753_v11 = vld [vmem:[%s11165_s7 + $0x88] sm:$0xff] }
 0x526   : > { %v6673_v15 = vpop.xlane.xlu0 %6672 }
 0x527   : > { %v6768_v12 = vmul.f32 %v6736_v39, %v6673_v15 }
 0x52a   : > { %v6675_v17 = vpop.xlane.xlu1 %6674 }
 0x52b   : > { %v6769_v61 = vmul.f32 %v6737_v24, %v6675_v17  ;;  %v6754_v17 = vld [vmem:[%s11165_s7 + $0x90] sm:$0xff] }
 0x52d   : > { %v6800_v25 = vadd.f32 %v6769_v61, %v6768_v12 }
 0x52e   : > { %v6677_v45 = vpop.xlane.xlu0 %6676 }
 0x52f   : > { %v6770_v9 = vmul.f32 %v6738_v27, %v6677_v45 }
 0x531   : > { %v6801_v29 = vadd.f32 %v6800_v25, %v6770_v9 }
 0x532   : > { %v6679_v2 = vpop.xlane.xlu0 %6678 }
 0x533   : > { %v6771_v28 = vmul.f32 %v6739_v55, %v6679_v2  ;;  %v6755_v55 = vld [vmem:[%s11165_s7 + $0x98] sm:$0xff] }
 0x535   : > { %v6802_v51 = vadd.f32 %v6801_v29, %v6771_v28 }
 0x536   : > { %v6681_v59 = vpop.xlane.xlu1 %6680 }
 0x537   : > { %v6772_v1 = vmul.f32 %v6740_v3, %v6681_v59  ;;  %v6756_v3 = vld [vmem:[%s11165_s7 + $0xa0] sm:$0xff] }
 0x539   : > { %v6803_v7 = vadd.f32 %v6802_v51, %v6772_v1 }
 0x53a   : > { %v6683_v14 = vpop.xlane.xlu0 %6682 }
 0x53b   : > { %v6773_v21 = vmul.f32 %v6741_v63, %v6683_v14  ;;  %v6757_v63 = vld [vmem:[%s11165_s7 + $0xa8] sm:$0xff] }
 0x53d   : > { %v6804_v32 = vadd.f32 %v6803_v7, %v6773_v21 }
 0x53e   : > { %v6685_v18 = vpop.xlane.xlu1 %6684 }
 0x53f   : > { %v6774_v54 = vmul.f32 %v6742_v38, %v6685_v18  ;;  %v6758_v38 = vld [vmem:[%s11165_s7 + $0xb0] sm:$0xff] }
 0x541   : > { %v6805_v8 = vadd.f32 %v6804_v32, %v6774_v54 }
 0x542   : > { %v6687_v30 = vpop.xlane.xlu0 %6686 }
 0x543   : > { %v6775_v41 = vmul.f32 %v6743_v20, %v6687_v30  ;;  %v6759_v20 = vld [vmem:[%s11165_s7 + $0xb8] sm:$0xff] }
 0x545   : > { %v6806_v49 = vadd.f32 %v6805_v8, %v6775_v41 }
 0x546   : > { %v6689_v52 = vpop.xlane.xlu1 %6688 }
 0x547   : > { %v6776_v34 = vmul.f32 %v6744_v37, %v6689_v52  ;;  %v6760_v37 = vld [vmem:[%s11165_s7 + $0xc0] sm:$0xff] }
 0x549   : > { %v6807_v26 = vadd.f32 %v6806_v49, %v6776_v34 }
 0x54a   : > { %v6691_v60 = vpop.xlane.xlu0 %6690 }
 0x54b   : > { %v6777_v62 = vmul.f32 %v6745_v23, %v6691_v60  ;;  %v6761_v23 = vld [vmem:[%s11165_s7 + $0xc8] sm:$0xff] }
 0x54d   : > { %v6808_v5 = vadd.f32 %v6807_v26, %v6777_v62 }
 0x54e   : > { %v6693_v50 = vpop.xlane.xlu1 %6692 }
 0x54f   : > { %v6778_v42 = vmul.f32 %v6746_v4, %v6693_v50  ;;  %v6762_v4 = vld [vmem:[%s11165_s7 + $0xd0] sm:$0xff] }
 0x551   : > { %v6809_v6 = vadd.f32 %v6808_v5, %v6778_v42 }
 0x552   : > { %v6695_v40 = vpop.xlane.xlu0 %6694 }
 0x553   : > { %v6779_v48 = vmul.f32 %v6747_v33, %v6695_v40  ;;  %v6763_v33 = vld [vmem:[%s11165_s7 + $0xd8] sm:$0xff] }
 0x555   : > { %v6810_v36 = vadd.f32 %v6809_v6, %v6779_v48 }
 0x556   : > { %v6697_v35 = vpop.xlane.xlu1 %6696 }
 0x557   : > { %v6780_v47 = vmul.f32 %v6748_v57, %v6697_v35  ;;  %v6764_v57 = vld [vmem:[%s11165_s7 + $0xe0] sm:$0xff] }
 0x559   : > { %v6811_v10 = vadd.f32 %v6810_v36, %v6780_v47 }
 0x55a   : > { %v6699_v56 = vpop.xlane.xlu0 %6698 }
 0x55b   : > { %v6781_v13 = vmul.f32 %v6749_v44, %v6699_v56  ;;  %v6765_v44 = vld [vmem:[%s11165_s7 + $0xe8] sm:$0xff] }
 0x55d   : > { %v6812_v58 = vadd.f32 %v6811_v10, %v6781_v13  ;;  %v6767_v10 = vld [vmem:[%s11165_s7 + $0xf8] sm:$0xff] }
 0x55e   : > { %v6701_v46 = vpop.xlane.xlu1 %6700 }
 0x55f   : > { %v6782_v0 = vmul.f32 %v6750_v16, %v6701_v46  ;;  %v6766_v16 = vld [vmem:[%s11165_s7 + $0xf0] sm:$0xff] }
 0x561   : > { %v6813_v45 = vadd.f32 %v6812_v58, %v6782_v0 }
 0x562   : > { %v6703_v19 = vpop.xlane.xlu0 %6702 }
 0x563   : > { %v6783_v53 = vmul.f32 %v6751_v31, %v6703_v19 }
 0x565   : > { %v6814_v27 = vadd.f32 %v6813_v45, %v6783_v53 }
 0x566   : > { %v6705_v22 = vpop.xlane.xlu1 %6704 }
 0x567   : > { %v6784_v24 = vmul.f32 %v6752_v43, %v6705_v22 }
 0x569   : > { %v6815_v12 = vadd.f32 %v6814_v27, %v6784_v24 }
 0x56a   : > { %v6707_v15 = vpop.xlane.xlu0 %6706 }
 0x56b   : > { %v6785_v61 = vmul.f32 %v6753_v11, %v6707_v15 }
 0x56d   : > { %v6816_v25 = vadd.f32 %v6815_v12, %v6785_v61 }
 0x56e   : > { %v6709_v39 = vpop.xlane.xlu1 %6708 }
 0x56f   : > { %v6786_v9 = vmul.f32 %v6754_v17, %v6709_v39  ;;  %v6837_v39 = vld [vmem:[%s11166_s8] sm:$0x1] }
 0x571   : > { %v6817_v29 = vadd.f32 %v6816_v25, %v6786_v9 }
 0x572   : > { %v6711_v2 = vpop.xlane.xlu0 %6710 }
 0x573   : > { %v6787_v28 = vmul.f32 %v6755_v55, %v6711_v2 }
 0x575   : > { %v6818_v51 = vadd.f32 %v6817_v29, %v6787_v28 }
 0x576   : > { %v6713_v59 = vpop.xlane.xlu1 %6712 }
 0x577   : > { %v6788_v1 = vmul.f32 %v6756_v3, %v6713_v59 }
 0x579   : > { %v6819_v7 = vadd.f32 %v6818_v51, %v6788_v1 }
 0x57a   : > { %v6715_v14 = vpop.xlane.xlu0 %6714 }
 0x57b   : > { %v6789_v21 = vmul.f32 %v6757_v63, %v6715_v14 }
 0x57d   : > { %v6820_v32 = vadd.f32 %v6819_v7, %v6789_v21 }
 0x57e   : > { %v6717_v18 = vpop.xlane.xlu1 %6716 }
 0x57f   : > { %v6790_v54 = vmul.f32 %v6758_v38, %v6717_v18 }
 0x581   : > { %v6821_v8 = vadd.f32 %v6820_v32, %v6790_v54 }
 0x582   : > { %v6719_v30 = vpop.xlane.xlu0 %6718 }
 0x583   : > { %v6791_v41 = vmul.f32 %v6759_v20, %v6719_v30 }
 0x585   : > { %v6822_v49 = vadd.f32 %v6821_v8, %v6791_v41 }
 0x586   : > { %v6721_v52 = vpop.xlane.xlu1 %6720 }
 0x587   : > { %v6792_v34 = vmul.f32 %v6760_v37, %v6721_v52 }
 0x589   : > { %v6823_v26 = vadd.f32 %v6822_v49, %v6792_v34 }
 0x58a   : > { %v6723_v60 = vpop.xlane.xlu0 %6722 }
 0x58b   : > { %v6793_v62 = vmul.f32 %v6761_v23, %v6723_v60 }
 0x58d   : > { %v6824_v5 = vadd.f32 %v6823_v26, %v6793_v62 }
 0x58e   : > { %v6725_v50 = vpop.xlane.xlu1 %6724 }
 0x58f   : > { %v6794_v42 = vmul.f32 %v6762_v4, %v6725_v50 }
 0x591   : > { %v6825_v6 = vadd.f32 %v6824_v5, %v6794_v42 }
 0x592   : > { %v6727_v40 = vpop.xlane.xlu0 %6726 }
 0x593   : > { %v6795_v48 = vmul.f32 %v6763_v33, %v6727_v40 }
 0x595   : > { %v6826_v46 = vadd.f32 %v6825_v6, %v6795_v48 }
 0x596   : > { %v6729_v35 = vpop.xlane.xlu1 %6728 }
 0x597   : > { %v6796_v47 = vmul.f32 %v6764_v57, %v6729_v35 }
 0x599   : > { %v6827_v31 = vadd.f32 %v6826_v46, %v6796_v47 }
 0x59a   : > { %v6731_v56 = vpop.xlane.xlu0 %6730 }
 0x59b   : > { %v6797_v36 = vmul.f32 %v6765_v44, %v6731_v56 }
 0x59d   : > { %v6828_v0 = vadd.f32 %v6827_v31, %v6797_v36 }
 0x59e   : > { %v6733_v13 = vpop.xlane.xlu1 %6732 }
 0x59f   : > { %v6798_v19 = vmul.f32 %v6766_v16, %v6733_v13 }
 0x5a1   : > { %v6829_v22 = vadd.f32 %v6828_v0, %v6798_v19 }
 0x5a2   : > { %v6735_v43 = vpop.xlane.xlu0 %6734 }
 0x5a3   : > { %v6799_v58 = vmul.f32 %v6767_v10, %v6735_v43 }
 0x5a5   : > { %v6830_v53 = vadd.f32 %v6829_v22, %v6799_v58 }
 0x5a7   : > { %v6831_v11 = vrot.slane %v6830_v53, 4 }
 0x5a9   : > { %v6832_v15 = vadd.f32 %v6831_v11, %v6830_v53 }
 0x5ab   : > { %v6833_v45 = vrot.slane %v6832_v15, 2 }
 0x5ad   : > { %v6834_v24 = vadd.f32 %v6833_v45, %v6832_v15 }
 0x5af   : > { %v6835_v17 = vrot.slane %v6834_v24, 1 }
 0x5b1   : > { %v6836_v27 = vadd.f32 %v6835_v17, %v6834_v24 }
 0x5b3   : > { %v6838_v61 = vadd.f32 %v6837_v39, %v6836_v27 }
 0x5b5   : > { %6839 = vst [vmem:[%s347_s18] sm:$0x1] %v6838_v61 }
 0x5b6   : > { %7706 = shalt.err (!%p7703_p5)
}
 0x5b7   : > { %s7707_s28 = scalar_lea.hbm %s11111_s25, 16  ;;  %s7711_s23 = scalar_lea.hbm %s11167_s9, 32 }
 0x5b8   : > { %p7708_p6 = scmp.ne.s32.totalorder %s11111_s25, %s7707_s28  ;;  %p7712_p10 = scmp.lt.u32.totalorder %s11111_s25, %s11167_s9 }
 0x5b9   : > { %p7713_p11 = scmp.lt.u32.totalorder %s7711_s23, %s7707_s28  ;;  %p7715_p13 = scmp.lt.u32.totalorder %s7707_s28, %s11111_s25 }
 0x5ba   : > { %p7709_p7 = pnand %p7708_p6, %p7866_p4 }
 0x5bb   : > { %p7714_p12 = por %p7713_p11, %p7712_p10 }
 0x5bc   : > { %p7710_p9 = pneg %p7709_p7 }
 0x5bd   : > { %p7716_p0 = por %p7715_p13, %p7714_p12 }
 0x5bf   : > { %p7717_p1 = pnand %p7716_p0, %p7710_p9 }
 0x5c1   : > { %7720 = shalt.err (!%p7717_p1)
}
 0x5c2   : > { %7525 = dma.vmem_to_hbm [thread:$0]  (%p7866_p4), %s11113_s20, 16, %s11111_s25, %s6841_s26  }
 0x5c3 PF: > { %p7531_p2 = scmp.ge.s32.totalorder %s7771_s14, 2  ;;  %s6865_s27 = sand.u32 1, %s7751_s30  }
 0x5c4   : > { %s6866_s29 = scalar_lea.sflag [#allocation4], %s6865_s27 }
 0x5c5   : > { %p7528_p3 = pnand %p7531_p2, %p7873_p8 }
 0x5c7   : > { %7746 = dma.done.wait (!%p7528_p3), %s6866_s29, 16  }
 0x5c8   : > { %7748 = vsyncadd (!%p7528_p3), %s6866_s29, 4294967280  ;;  %s22_s14 = sadd.s32 1, %s7771_s14   ;;  %s11357_s30 = smov %s7755_s10 }
 0x5c9   : > { %p19_p5 = scmp.ge.s32.totalorder %s22_s14, 4   ;;  %s11358_s10 = smov %s7759_s11 }
 0x5ca   : > { %s11359_s11 = smov %s7879_s22  ;;  %s11360_s12 = smov %s7767_s13 }
 0x5cb   : > { %s11361_s13 = smov %s11363_s17  ;;  %21 = sbr.rel (!%p19_p5) target bundleno = 4 (0x4), region = 99 }
 0x5d2   :  { %6870 = vsyncpa [#allocation4], 1 }
 0x5d3   :  { %6872 = vsyncpa [#allocation4 + $0x1], 1 }

</bundles_post_ra>
